<compile_context>
chip_gen: v7x
topology: tpu7x:2x2x1
jax: 0.10.0
libtpu: 0.0.40
codegen_flags: <defaults>
</compile_context>

<pallas_src>
import functools

import numpy as np
import jax
import jax.numpy as jnp
from jax.experimental import pallas as pl
from jax.experimental.pallas import tpu as pltpu


# ----------------------------------------------------------------------------
# Centered (ortho) DFT matrices: fftshift((i)fft(ifftshift(v), norm='ortho')) == M @ v
# ----------------------------------------------------------------------------
def centered_dft_matrix(n, inverse):
    eye = np.eye(n)
    x = np.fft.ifftshift(eye, axes=0)
    x = (np.fft.ifft if inverse else np.fft.fft)(x, axis=0, norm="ortho")
    x = np.fft.fftshift(x, axes=0)
    return (jnp.asarray(x.real, dtype=jnp.float32),
            jnp.asarray(x.imag, dtype=jnp.float32))


# ----------------------------------------------------------------------------
# In-kernel helpers (traced inside Pallas kernels)
# ----------------------------------------------------------------------------
def _dot(a, b):
    return jnp.dot(a, b, preferred_element_type=jnp.float32)


def _cplx_matmul(xr, xi, mr, mi):
    """(xr + i*xi) @ (mr + i*mi) as four real MXU matmuls."""
    return (_dot(xr, mr) - _dot(xi, mi),
            _dot(xr, mi) + _dot(xi, mr))


def _block_transpose(x, n_blocks, rows, cols):
    """(n_blocks*rows, cols) -> (n_blocks*cols, rows), transposing each block.

    Uses only static sublane-aligned slices + 2-D transposes + axis-0 concat.
    """
    return jnp.concatenate(
        [x[b * rows:(b + 1) * rows, :].T for b in range(n_blocks)], axis=0)


def _batched_centered_dft(xr, xi, mhT_r, mhT_i, mwT_r, mwT_i, C, H, W):
    """Per coil:  Mh @ X @ Mw^T  with x laid out as (C*H, W)."""
    tr, ti = _cplx_matmul(xr, xi, mwT_r, mwT_i)          # X @ Mw^T      (C*H, W)
    trT = _block_transpose(tr, C, H, W)                  # corner turn   (C*W, H)
    tiT = _block_transpose(ti, C, H, W)
    yrT, yiT = _cplx_matmul(trT, tiT, mhT_r, mhT_i)      # (Mh @ T)^T    (C*W, H)
    return (_block_transpose(yrT, C, W, H),              # back to       (C*H, W)
            _block_transpose(yiT, C, W, H))


def _coil_sum(x, C, H):
    """Sum coil blocks of a (C*H, W) array -> (H, W)."""
    acc = x[0:H]
    for c in range(1, C):
        acc = acc + x[c * H:(c + 1) * H]
    return acc


# ----------------------------------------------------------------------------
# Pallas kernels
# ----------------------------------------------------------------------------
def _coil_combine_kernel(kr_ref, ki_ref, sr_ref, si_ref,
                         mhT_r_ref, mhT_i_ref, mwT_r_ref, mwT_i_ref,
                         o_ref, *, C, H, W):
    """img = sum_coils complex_mul(ifft2c(kspace), conj(sens)); all coils batched."""
    kr = kr_ref[0].reshape(C * H, W)
    ki = ki_ref[0].reshape(C * H, W)
    yr, yi = _batched_centered_dft(kr, ki,
                                   mhT_r_ref[...], mhT_i_ref[...],
                                   mwT_r_ref[...], mwT_i_ref[...], C, H, W)
    sr = sr_ref[0].reshape(C * H, W)
    si = si_ref[0].reshape(C * H, W)
    pr = yr * sr + yi * si            # y * conj(s)  (real)
    pi = yi * sr - yr * si            #              (imag)
    o_ref[0, 0] = _coil_sum(pr, C, H)
    o_ref[0, 1] = _coil_sum(pi, C, H)


def _expand_update_kernel(img_ref, sr_ref, si_ref, ckr_ref, cki_ref,
                          mkr_ref, mki_ref, mask_ref,
                          fhT_r_ref, fhT_i_ref, fwT_r_ref, fwT_i_ref,
                          lr_ref, okr_ref, oki_ref, *, C, H, W):
    """fft2c(complex_mul(image, sens)) + data-consistency k-space update (all coils)."""
    ir = img_ref[0, 0]                                   # (H, W)
    ii = img_ref[0, 1]
    sr = sr_ref[0]                                       # (C, H, W)
    si = si_ref[0]
    pr = (ir[None, :, :] * sr - ii[None, :, :] * si).reshape(C * H, W)
    pi = (ir[None, :, :] * si + ii[None, :, :] * sr).reshape(C * H, W)

    kr, ki = _batched_centered_dft(pr, pi,
                                   fhT_r_ref[...], fhT_i_ref[...],
                                   fwT_r_ref[...], fwT_i_ref[...], C, H, W)
    kr3 = kr.reshape(C, H, W)
    ki3 = ki.reshape(C, H, W)

    cr = ckr_ref[0]
    ci = cki_ref[0]
    m = mask_ref[0][None, :, :]
    er = jnp.where(m == 0.0, 0.0, cr - mkr_ref[0])
    ei = jnp.where(m == 0.0, 0.0, ci - mki_ref[0])
    lr = lr_ref[0]                                       # scalar from SMEM
    okr_ref[0] = cr - lr * er + kr3
    oki_ref[0] = ci - lr * ei + ki3


def _conv_gru_layer_kernel(p_ref, h_ref, wc_ref, bc_ref, wx_ref, wh_ref, wo_ref,
                           bg_ref, hnew_ref, cell_ref, *, Ch):
    """Fused: im2col conv (+bias,+ReLU) -> ConvGRU cell with fused gate weights."""
    p = p_ref[0]                                         # (P, HW)   bf16
    h = h_ref[0, 0]                                      # (Ch, HW)  f32

    feat = jnp.maximum(_dot(wc_ref[...], p) + bc_ref[...], 0.0)     # (Ch, HW) f32
    featb = feat.astype(jnp.bfloat16)
    hb = h.astype(jnp.bfloat16)

    gx = _dot(wx_ref[...], featb) + bg_ref[...]          # (3Ch, HW): [u; r; o] from cell
    gh = _dot(wh_ref[...], hb)                           # (2Ch, HW): [u; r]    from hidden

    u = jax.nn.sigmoid(gx[0:Ch] + gh[0:Ch])
    r = jax.nn.sigmoid(gx[Ch:2 * Ch] + gh[Ch:2 * Ch])
    hr = (h * r).astype(jnp.bfloat16)
    d = jnp.tanh(gx[2 * Ch:3 * Ch] + _dot(wo_ref[...], hr))

    hn = h * (1.0 - u) + d * u
    hnew_ref[0] = hn
    cell_ref[0] = jnp.maximum(hn, 0.0).astype(cell_ref.dtype)


def _final_conv_kernel(p_ref, w_ref, b_ref, o_ref):
    o_ref[0] = _dot(w_ref[...], p_ref[0]) + b_ref[...]


# ----------------------------------------------------------------------------
# pallas_call wrappers
# ----------------------------------------------------------------------------
def _parallel(n):
    return pltpu.CompilerParams(dimension_semantics=("parallel",) * n)


def coil_combine(kr, ki, sr, si, mhT_re, mhT_im, mwT_re, mwT_im):
    B, C, H, W = kr.shape
    coil_spec = pl.BlockSpec((1, C, H, W), lambda b: (b, 0, 0, 0))
    mat_h = pl.BlockSpec((H, H), lambda b: (0, 0))
    mat_w = pl.BlockSpec((W, W), lambda b: (0, 0))
    out_spec = pl.BlockSpec((1, 2, H, W), lambda b: (b, 0, 0, 0))
    return pl.pallas_call(
        functools.partial(_coil_combine_kernel, C=C, H=H, W=W),
        out_shape=jax.ShapeDtypeStruct((B, 2, H, W), jnp.float32),
        grid=(B,),
        in_specs=[coil_spec, coil_spec, coil_spec, coil_spec,
                  mat_h, mat_h, mat_w, mat_w],
        out_specs=out_spec,
        compiler_params=_parallel(1),
    )(kr, ki, sr, si, mhT_re, mhT_im, mwT_re, mwT_im)


def expand_update(img, sr, si, ckr, cki, mkr, mki, mask,
                  fhT_re, fhT_im, fwT_re, fwT_im, learning_rate):
    B, C, H, W = ckr.shape
    img_spec = pl.BlockSpec((1, 2, H, W), lambda b: (b, 0, 0, 0))
    coil_spec = pl.BlockSpec((1, C, H, W), lambda b: (b, 0, 0, 0))
    mask_spec = pl.BlockSpec((1, H, W), lambda b: (b, 0, 0))
    mat_h = pl.BlockSpec((H, H), lambda b: (0, 0))
    mat_w = pl.BlockSpec((W, W), lambda b: (0, 0))
    lr_spec = pl.BlockSpec(memory_space=pltpu.MemorySpace.SMEM)
    out_spec = pl.BlockSpec((1, C, H, W), lambda b: (b, 0, 0, 0))
    out_shape = (jax.ShapeDtypeStruct((B, C, H, W), jnp.float32),) * 2
    return pl.pallas_call(
        functools.partial(_expand_update_kernel, C=C, H=H, W=W),
        out_shape=out_shape,
        grid=(B,),
        in_specs=[img_spec, coil_spec, coil_spec, coil_spec, coil_spec,
                  coil_spec, coil_spec, mask_spec,
                  mat_h, mat_h, mat_w, mat_w, lr_spec],
        out_specs=(out_spec, out_spec),
        compiler_params=_parallel(1),
    )(img, sr, si, ckr, cki, mkr, mki, mask,
      fhT_re, fhT_im, fwT_re, fwT_im, learning_rate)


def conv_gru_layer(patches, hidden_all, layer_idx, wcT, bc, wxT, whT, wohT, bg):
    B, P, HW = patches.shape
    Ch = wcT.shape[0]
    p_spec = pl.BlockSpec((1, P, HW), lambda b: (b, 0, 0))
    h_spec = pl.BlockSpec((1, 1, Ch, HW), lambda b, _i=layer_idx: (_i, b, 0, 0))
    out_spec = pl.BlockSpec((1, Ch, HW), lambda b: (b, 0, 0))

    def rep(arr):
        nd = arr.ndim
        return pl.BlockSpec(arr.shape, lambda b, _n=nd: (0,) * _n)

    return pl.pallas_call(
        functools.partial(_conv_gru_layer_kernel, Ch=Ch),
        out_shape=(jax.ShapeDtypeStruct((B, Ch, HW), jnp.float32),
                   jax.ShapeDtypeStruct((B, Ch, HW), jnp.bfloat16)),
        grid=(B,),
        in_specs=[p_spec, h_spec, rep(wcT), rep(bc), rep(wxT),
                  rep(whT), rep(wohT), rep(bg)],
        out_specs=(out_spec, out_spec),
        compiler_params=_parallel(1),
    )(patches, hidden_all, wcT, bc, wxT, whT, wohT, bg)


def final_conv(patches, wcT, bc):
    B, P, HW = patches.shape
    cout = wcT.shape[0]
    return pl.pallas_call(
        _final_conv_kernel,
        out_shape=jax.ShapeDtypeStruct((B, cout, HW), jnp.float32),
        grid=(B,),
        in_specs=[pl.BlockSpec((1, P, HW), lambda b: (b, 0, 0)),
                  pl.BlockSpec((cout, P), lambda b: (0, 0)),
                  pl.BlockSpec((cout, 1), lambda b: (0, 0))],
        out_specs=pl.BlockSpec((1, cout, HW), lambda b: (b, 0, 0)),
        compiler_params=_parallel(1),
    )(patches, wcT, bc)


# ----------------------------------------------------------------------------
# Conv2dGRU regularizer (JAX glue: replication pad + im2col; compute in Pallas)
# ----------------------------------------------------------------------------
def _conv_cfg(idx):
    # mridc Conv2dGRU, replication_padding=True:
    # idx 0: pad 2, 5x5, dil 1 ; idx 1: pad 2, 3x3, dil 2 ; else: pad 1, 3x3, dil 1
    kernel = 5 if idx == 0 else 3
    dilation = 2 if idx == 1 else 1
    pad = 2 if idx in (0, 1) else 1
    return kernel, dilation, pad


def _extract_patches(x_bchw, kernel_size, dilation, pad):
    """Replication pad + im2col, channels-first; output [B, k*k*C, H*W]."""
    # TODO(synk): replace with in-kernel shifted-tap accumulation + HW tiling for
    # realistic MRI resolutions (im2col amplifies conv-input HBM traffic k*k x).
    B, C, H, W = x_bchw.shape
    xp = jnp.pad(x_bchw, ((0, 0), (0, 0), (pad, pad), (pad, pad)), mode="edge")
    taps = []
    for dy in range(kernel_size):
        for dx in range(kernel_size):
            y0 = dy * dilation
            x0 = dx * dilation
            taps.append(xp[:, :, y0:y0 + H, x0:x0 + W])
    patches = jnp.stack(taps, axis=1)                 # [B, k*k, C, H, W]
    return patches.reshape(B, kernel_size * kernel_size * C, H * W)


def _prep_conv_weights(w_hwio, b):
    kh, kw, cin, cout = w_hwio.shape
    wcT = w_hwio.reshape(kh * kw * cin, cout).T.astype(jnp.bfloat16)   # (cout, P)
    bc = b.reshape(cout, 1).astype(jnp.float32)
    return wcT, bc


def _prep_gate_weights(params, idx):
    Ch = params["gate_wu"][idx].shape[1]
    wu, wr, wo = params["gate_wu"][idx], params["gate_wr"][idx], params["gate_wo"][idx]
    wxT = jnp.concatenate([wu[:Ch], wr[:Ch], wo[:Ch]], axis=1).T.astype(jnp.bfloat16)
    whT = jnp.concatenate([wu[Ch:], wr[Ch:]], axis=1).T.astype(jnp.bfloat16)
    wohT = wo[Ch:].T.astype(jnp.bfloat16)
    bg = jnp.concatenate([params["gate_bu"][idx], params["gate_br"][idx],
                          params["gate_bo"][idx]], axis=0).reshape(3 * Ch, 1)
    return wxT, whT, wohT, bg.astype(jnp.float32)


def conv2d_gru(params, image_b2hw, hidden_internal):
    """image_b2hw: [B, 2, H, W] f32; hidden_internal: None or [L, B, Ch, HW] f32."""
    B, _, H, W = image_b2hw.shape
    num_layers = len(params["gate_wu"])
    Ch = params["gate_wu"][0].shape[1]
    HW = H * W

    if hidden_internal is None:
        hidden_internal = jnp.zeros((num_layers, B, Ch, HW), jnp.float32)

    cell = image_b2hw.astype(jnp.bfloat16)            # [B, Cin, H, W]
    new_states = []
    for idx in range(num_layers):
        k, d, p = _conv_cfg(idx)
        patches = _extract_patches(cell, k, d, p)     # [B, k*k*Cin, HW] bf16
        wcT, bc = _prep_conv_weights(params["conv_w"][idx], params["conv_b"][idx])
        wxT, whT, wohT, bg = _prep_gate_weights(params, idx)
        h_new, cell_flat = conv_gru_layer(patches, hidden_internal, idx,
                                          wcT, bc, wxT, whT, wohT, bg)
        new_states.append(h_new)                      # [B, Ch, HW] f32
        cell = cell_flat.reshape(B, Ch, H, W)         # bf16, free reshape

    k, d, p = _conv_cfg(num_layers)
    patches = _extract_patches(cell, k, d, p)
    wcT, bc = _prep_conv_weights(params["conv_w"][num_layers],
                                 params["conv_b"][num_layers])
    out = final_conv(patches, wcT, bc)                # [B, 2, HW] f32
    return out, new_states


# ----------------------------------------------------------------------------
# RecurrentVarNetBlock forward
# ----------------------------------------------------------------------------
def recurrent_varnet_block(params, current_kspace, masked_kspace,
                           sampling_mask, sensitivity_map, hidden_state=None):
    B, C, H, W, _ = current_kspace.shape
    kr, ki = current_kspace[..., 0], current_kspace[..., 1]
    mkr, mki = masked_kspace[..., 0], masked_kspace[..., 1]
    sr, si = sensitivity_map[..., 0], sensitivity_map[..., 1]
    mask = sampling_mask[:, 0, :, :, 0].astype(jnp.float32)       # [B, H, W]

    ih_re, ih_im = centered_dft_matrix(H, inverse=True)
    iw_re, iw_im = centered_dft_matrix(W, inverse=True)
    fh_re, fh_im = centered_dft_matrix(H, inverse=False)
    fw_re, fw_im = centered_dft_matrix(W, inverse=False)

    # 1) recurrent_term = sum_coils complex_mul(ifft2c(current_kspace), conj(sens))
    img = coil_combine(kr, ki, sr, si,
                       ih_re.T, ih_im.T, iw_re.T, iw_im.T)        # [B, 2, H, W]

    # hidden state: convert to internal [L, B, Ch, HW] layout once
    num_layers = len(params["gate_wu"])
    Ch = params["gate_wu"][0].shape[1]
    if hidden_state is None:
        hidden_internal = None
    else:
        hidden_internal = jnp.transpose(hidden_state.astype(jnp.float32),
                                        (4, 0, 1, 2, 3)).reshape(num_layers, B, Ch, H * W)

    # 2) Conv2dGRU regularizer (fused conv+GRU Pallas kernels)
    reg, new_states = conv2d_gru(params, img, hidden_internal)    # [B, 2, HW]

    # 3) coil expand + fft2c + data-consistency update (one fused kernel)
    reg_b2hw = reg.reshape(B, 2, H, W)                            # free reshape
    new_kr, new_ki = expand_update(reg_b2hw, sr, si, kr, ki, mkr, mki, mask,
                                   fh_re.T, fh_im.T, fw_re.T, fw_im.T,
                                   params["learning_rate"])
    new_kspace = jnp.stack([new_kr, new_ki], axis=-1)             # [B,C,H,W,2]

    # new hidden: convert internal -> [B, hidden, H, W, num_layers] once
    new_hidden = jnp.stack(new_states, axis=-1).reshape(B, Ch, H, W, num_layers)
    return new_kspace, new_hidden


# ----------------------------------------------------------------------------
# Deterministic parameter init (shapes follow the PyTorch module's __init__)
# ----------------------------------------------------------------------------
def init_params(key, in_channels=2, hidden_channels=64, num_layers=4):
    keys = iter(jax.random.split(key, 8 * (num_layers + 1)))
    conv_w, conv_b = [], []
    for idx in range(num_layers + 1):
        k, _, _ = _conv_cfg(idx)
        cin = in_channels if idx == 0 else hidden_channels
        cout = hidden_channels if idx < num_layers else in_channels
        conv_w.append(0.05 * jax.random.normal(next(keys), (k, k, cin, cout),
                                               jnp.float32))   # HWIO
        conv_b.append(0.01 * jax.random.normal(next(keys), (cout,), jnp.float32))

    def _ortho(kk):
        a = jax.random.normal(kk, (2 * hidden_channels, hidden_channels), jnp.float32)
        q, _ = jnp.linalg.qr(a)
        return q.astype(jnp.float32)

    gate_wu, gate_wr, gate_wo = [], [], []
    gate_bu, gate_br, gate_bo = [], [], []
    for _ in range(num_layers):
        gate_wu.append(_ortho(next(keys)))
        gate_wr.append(_ortho(next(keys)))
        gate_wo.append(_ortho(next(keys)))
        gate_bu.append(jnp.zeros((hidden_channels,), jnp.float32))
        gate_br.append(jnp.full((hidden_channels,), -1.0, jnp.float32))
        gate_bo.append(jnp.zeros((hidden_channels,), jnp.float32))

    return {
        "learning_rate": jnp.array([1.0], jnp.float32),
        "conv_w": conv_w, "conv_b": conv_b,
        "gate_wu": gate_wu, "gate_wr": gate_wr, "gate_wo": gate_wo,
        "gate_bu": gate_bu, "gate_br": gate_br, "gate_bo": gate_bo,
    }


# ----------------------------------------------------------------------------
if __name__ == "__main__":
    B, C, H, W = 2, 4, 16, 16
    hidden_channels, num_layers = 32, 4

    key = jax.random.PRNGKey(0)
    k1, k2, k3, k4, kp = jax.random.split(key, 5)

    current_kspace = jax.random.normal(k1, (B, C, H, W, 2), jnp.float32)
    masked_kspace = jax.random.normal(k2, (B, C, H, W, 2), jnp.float32)
    mask_cols = (jax.random.uniform(k3, (B, 1, 1, W, 1)) > 0.5).astype(jnp.float32)
    sampling_mask = jnp.broadcast_to(mask_cols, (B, 1, H, W, 1))
    sensitivity_map = 0.5 * jax.random.normal(k4, (B, C, H, W, 2), jnp.float32)

    params = init_params(kp, in_channels=2, hidden_channels=hidden_channels,
                         num_layers=num_layers)

    fwd = jax.jit(recurrent_varnet_block)
    new_kspace, new_hidden = fwd(params, current_kspace, masked_kspace,
                                 sampling_mask, sensitivity_map, None)
    jax.block_until_ready((new_kspace, new_hidden))

    assert new_kspace.shape == (B, C, H, W, 2)
    assert new_hidden.shape == (B, hidden_channels, H, W, num_layers)
    assert bool(jnp.all(jnp.isfinite(new_kspace)))
    assert bool(jnp.all(jnp.isfinite(new_hidden)))
    print("KERNEL_OK")
</pallas_src>

<mosaic_0001>
module attributes {stable_mosaic.version = 11 : i64} {
  func.func @_coil_combine_kernel(%arg0: i32, %arg1: memref<1x4x16x16xf32, #tpu.memory_space<vmem>>, %arg2: memref<1x4x16x16xf32, #tpu.memory_space<vmem>>, %arg3: memref<1x4x16x16xf32, #tpu.memory_space<vmem>>, %arg4: memref<1x4x16x16xf32, #tpu.memory_space<vmem>>, %arg5: memref<16x16xf32, #tpu.memory_space<vmem>>, %arg6: memref<16x16xf32, #tpu.memory_space<vmem>>, %arg7: memref<16x16xf32, #tpu.memory_space<vmem>>, %arg8: memref<16x16xf32, #tpu.memory_space<vmem>>, %arg9: memref<1x2x16x16xf32, #tpu.memory_space<vmem>>) attributes {dimension_semantics = [#tpu.dimension_semantics<parallel>], iteration_bounds = array<i64: 2>, scalar_prefetch = 0 : i64, scratch_operands = 0 : i64, tpu.core_type = #tpu.core_type<tc>, window_params = [{transform_indices = @transform_0, window_bounds = array<i64: 1, 4, 16, 16>}, {transform_indices = @transform_1, window_bounds = array<i64: 1, 4, 16, 16>}, {transform_indices = @transform_2, window_bounds = array<i64: 1, 4, 16, 16>}, {transform_indices = @transform_3, window_bounds = array<i64: 1, 4, 16, 16>}, {pipeline_mode = #tpu.pipeline_mode<synchronous>, transform_indices = @transform_4, window_bounds = array<i64: 16, 16>}, {pipeline_mode = #tpu.pipeline_mode<synchronous>, transform_indices = @transform_5, window_bounds = array<i64: 16, 16>}, {pipeline_mode = #tpu.pipeline_mode<synchronous>, transform_indices = @transform_6, window_bounds = array<i64: 16, 16>}, {pipeline_mode = #tpu.pipeline_mode<synchronous>, transform_indices = @transform_7, window_bounds = array<i64: 16, 16>}, {transform_indices = @transform_8, window_bounds = array<i64: 1, 2, 16, 16>}]} {
    %c0 = arith.constant 0 : index
    %c0_0 = arith.constant 0 : index
    %c0_1 = arith.constant 0 : index
    %c0_2 = arith.constant 0 : index
    %0 = vector.load %arg1[%c0, %c0_0, %c0_1, %c0_2] : memref<1x4x16x16xf32, #tpu.memory_space<vmem>>, vector<1x4x16x16xf32>
    %1 = vector.shape_cast %0 : vector<1x4x16x16xf32> to vector<4x16x16xf32>
    %2 = vector.shape_cast %1 : vector<4x16x16xf32> to vector<64x16xf32>
    %c0_3 = arith.constant 0 : index
    %c0_4 = arith.constant 0 : index
    %c0_5 = arith.constant 0 : index
    %c0_6 = arith.constant 0 : index
    %3 = vector.load %arg2[%c0_3, %c0_4, %c0_5, %c0_6] : memref<1x4x16x16xf32, #tpu.memory_space<vmem>>, vector<1x4x16x16xf32>
    %4 = vector.shape_cast %3 : vector<1x4x16x16xf32> to vector<4x16x16xf32>
    %5 = vector.shape_cast %4 : vector<4x16x16xf32> to vector<64x16xf32>
    %c0_7 = arith.constant 0 : index
    %c0_8 = arith.constant 0 : index
    %6 = vector.load %arg5[%c0_7, %c0_8] : memref<16x16xf32, #tpu.memory_space<vmem>>, vector<16x16xf32>
    %c0_9 = arith.constant 0 : index
    %c0_10 = arith.constant 0 : index
    %7 = vector.load %arg6[%c0_9, %c0_10] : memref<16x16xf32, #tpu.memory_space<vmem>>, vector<16x16xf32>
    %c0_11 = arith.constant 0 : index
    %c0_12 = arith.constant 0 : index
    %8 = vector.load %arg7[%c0_11, %c0_12] : memref<16x16xf32, #tpu.memory_space<vmem>>, vector<16x16xf32>
    %c0_13 = arith.constant 0 : index
    %c0_14 = arith.constant 0 : index
    %9 = vector.load %arg8[%c0_13, %c0_14] : memref<16x16xf32, #tpu.memory_space<vmem>>, vector<16x16xf32>
    %cst = arith.constant dense<0.000000e+00> : vector<64x16xf32>
    %10 = tpu.matmul %2, %8, %cst {dimension_numbers = #tpu.dot_dimension_numbers<[1], [0], [0], [1], [0, 0, 1, 1], [], []>} : vector<64x16xf32>, vector<16x16xf32>, vector<64x16xf32> -> vector<64x16xf32>
    %cst_15 = arith.constant dense<0.000000e+00> : vector<64x16xf32>
    %11 = tpu.matmul %5, %9, %cst_15 {dimension_numbers = #tpu.dot_dimension_numbers<[1], [0], [0], [1], [0, 0, 1, 1], [], []>} : vector<64x16xf32>, vector<16x16xf32>, vector<64x16xf32> -> vector<64x16xf32>
    %12 = arith.subf %10, %11 : vector<64x16xf32>
    %cst_16 = arith.constant dense<0.000000e+00> : vector<64x16xf32>
    %13 = tpu.matmul %2, %9, %cst_16 {dimension_numbers = #tpu.dot_dimension_numbers<[1], [0], [0], [1], [0, 0, 1, 1], [], []>} : vector<64x16xf32>, vector<16x16xf32>, vector<64x16xf32> -> vector<64x16xf32>
    %cst_17 = arith.constant dense<0.000000e+00> : vector<64x16xf32>
    %14 = tpu.matmul %5, %8, %cst_17 {dimension_numbers = #tpu.dot_dimension_numbers<[1], [0], [0], [1], [0, 0, 1, 1], [], []>} : vector<64x16xf32>, vector<16x16xf32>, vector<64x16xf32> -> vector<64x16xf32>
    %15 = arith.addf %13, %14 : vector<64x16xf32>
    %16 = vector.extract_strided_slice %12 {offsets = [0, 0], sizes = [16, 16], strides = [1, 1]} : vector<64x16xf32> to vector<16x16xf32>
    %17 = tpu.transpose %16, [1, 0] : vector<16x16xf32> -> vector<16x16xf32>
    %18 = vector.extract_strided_slice %12 {offsets = [16, 0], sizes = [16, 16], strides = [1, 1]} : vector<64x16xf32> to vector<16x16xf32>
    %19 = tpu.transpose %18, [1, 0] : vector<16x16xf32> -> vector<16x16xf32>
    %20 = vector.extract_strided_slice %12 {offsets = [32, 0], sizes = [16, 16], strides = [1, 1]} : vector<64x16xf32> to vector<16x16xf32>
    %21 = tpu.transpose %20, [1, 0] : vector<16x16xf32> -> vector<16x16xf32>
    %22 = vector.extract_strided_slice %12 {offsets = [48, 0], sizes = [16, 16], strides = [1, 1]} : vector<64x16xf32> to vector<16x16xf32>
    %23 = tpu.transpose %22, [1, 0] : vector<16x16xf32> -> vector<16x16xf32>
    %24 = tpu.concatenate %17, %19, %21, %23 in 0 : vector<16x16xf32>, vector<16x16xf32>, vector<16x16xf32>, vector<16x16xf32> -> vector<64x16xf32>
    %25 = vector.extract_strided_slice %15 {offsets = [0, 0], sizes = [16, 16], strides = [1, 1]} : vector<64x16xf32> to vector<16x16xf32>
    %26 = tpu.transpose %25, [1, 0] : vector<16x16xf32> -> vector<16x16xf32>
    %27 = vector.extract_strided_slice %15 {offsets = [16, 0], sizes = [16, 16], strides = [1, 1]} : vector<64x16xf32> to vector<16x16xf32>
    %28 = tpu.transpose %27, [1, 0] : vector<16x16xf32> -> vector<16x16xf32>
    %29 = vector.extract_strided_slice %15 {offsets = [32, 0], sizes = [16, 16], strides = [1, 1]} : vector<64x16xf32> to vector<16x16xf32>
    %30 = tpu.transpose %29, [1, 0] : vector<16x16xf32> -> vector<16x16xf32>
    %31 = vector.extract_strided_slice %15 {offsets = [48, 0], sizes = [16, 16], strides = [1, 1]} : vector<64x16xf32> to vector<16x16xf32>
    %32 = tpu.transpose %31, [1, 0] : vector<16x16xf32> -> vector<16x16xf32>
    %33 = tpu.concatenate %26, %28, %30, %32 in 0 : vector<16x16xf32>, vector<16x16xf32>, vector<16x16xf32>, vector<16x16xf32> -> vector<64x16xf32>
    %cst_18 = arith.constant dense<0.000000e+00> : vector<64x16xf32>
    %34 = tpu.matmul %24, %6, %cst_18 {dimension_numbers = #tpu.dot_dimension_numbers<[1], [0], [0], [1], [0, 0, 1, 1], [], []>} : vector<64x16xf32>, vector<16x16xf32>, vector<64x16xf32> -> vector<64x16xf32>
    %cst_19 = arith.constant dense<0.000000e+00> : vector<64x16xf32>
    %35 = tpu.matmul %33, %7, %cst_19 {dimension_numbers = #tpu.dot_dimension_numbers<[1], [0], [0], [1], [0, 0, 1, 1], [], []>} : vector<64x16xf32>, vector<16x16xf32>, vector<64x16xf32> -> vector<64x16xf32>
    %36 = arith.subf %34, %35 : vector<64x16xf32>
    %cst_20 = arith.constant dense<0.000000e+00> : vector<64x16xf32>
    %37 = tpu.matmul %24, %7, %cst_20 {dimension_numbers = #tpu.dot_dimension_numbers<[1], [0], [0], [1], [0, 0, 1, 1], [], []>} : vector<64x16xf32>, vector<16x16xf32>, vector<64x16xf32> -> vector<64x16xf32>
    %cst_21 = arith.constant dense<0.000000e+00> : vector<64x16xf32>
    %38 = tpu.matmul %33, %6, %cst_21 {dimension_numbers = #tpu.dot_dimension_numbers<[1], [0], [0], [1], [0, 0, 1, 1], [], []>} : vector<64x16xf32>, vector<16x16xf32>, vector<64x16xf32> -> vector<64x16xf32>
    %39 = arith.addf %37, %38 : vector<64x16xf32>
    %40 = vector.extract_strided_slice %36 {offsets = [0, 0], sizes = [16, 16], strides = [1, 1]} : vector<64x16xf32> to vector<16x16xf32>
    %41 = tpu.transpose %40, [1, 0] : vector<16x16xf32> -> vector<16x16xf32>
    %42 = vector.extract_strided_slice %36 {offsets = [16, 0], sizes = [16, 16], strides = [1, 1]} : vector<64x16xf32> to vector<16x16xf32>
    %43 = tpu.transpose %42, [1, 0] : vector<16x16xf32> -> vector<16x16xf32>
    %44 = vector.extract_strided_slice %36 {offsets = [32, 0], sizes = [16, 16], strides = [1, 1]} : vector<64x16xf32> to vector<16x16xf32>
    %45 = tpu.transpose %44, [1, 0] : vector<16x16xf32> -> vector<16x16xf32>
    %46 = vector.extract_strided_slice %36 {offsets = [48, 0], sizes = [16, 16], strides = [1, 1]} : vector<64x16xf32> to vector<16x16xf32>
    %47 = tpu.transpose %46, [1, 0] : vector<16x16xf32> -> vector<16x16xf32>
    %48 = tpu.concatenate %41, %43, %45, %47 in 0 : vector<16x16xf32>, vector<16x16xf32>, vector<16x16xf32>, vector<16x16xf32> -> vector<64x16xf32>
    %49 = vector.extract_strided_slice %39 {offsets = [0, 0], sizes = [16, 16], strides = [1, 1]} : vector<64x16xf32> to vector<16x16xf32>
    %50 = tpu.transpose %49, [1, 0] : vector<16x16xf32> -> vector<16x16xf32>
    %51 = vector.extract_strided_slice %39 {offsets = [16, 0], sizes = [16, 16], strides = [1, 1]} : vector<64x16xf32> to vector<16x16xf32>
    %52 = tpu.transpose %51, [1, 0] : vector<16x16xf32> -> vector<16x16xf32>
    %53 = vector.extract_strided_slice %39 {offsets = [32, 0], sizes = [16, 16], strides = [1, 1]} : vector<64x16xf32> to vector<16x16xf32>
    %54 = tpu.transpose %53, [1, 0] : vector<16x16xf32> -> vector<16x16xf32>
    %55 = vector.extract_strided_slice %39 {offsets = [48, 0], sizes = [16, 16], strides = [1, 1]} : vector<64x16xf32> to vector<16x16xf32>
    %56 = tpu.transpose %55, [1, 0] : vector<16x16xf32> -> vector<16x16xf32>
    %57 = tpu.concatenate %50, %52, %54, %56 in 0 : vector<16x16xf32>, vector<16x16xf32>, vector<16x16xf32>, vector<16x16xf32> -> vector<64x16xf32>
    %c0_22 = arith.constant 0 : index
    %c0_23 = arith.constant 0 : index
    %c0_24 = arith.constant 0 : index
    %c0_25 = arith.constant 0 : index
    %58 = vector.load %arg3[%c0_22, %c0_23, %c0_24, %c0_25] : memref<1x4x16x16xf32, #tpu.memory_space<vmem>>, vector<1x4x16x16xf32>
    %59 = vector.shape_cast %58 : vector<1x4x16x16xf32> to vector<4x16x16xf32>
    %60 = vector.shape_cast %59 : vector<4x16x16xf32> to vector<64x16xf32>
    %c0_26 = arith.constant 0 : index
    %c0_27 = arith.constant 0 : index
    %c0_28 = arith.constant 0 : index
    %c0_29 = arith.constant 0 : index
    %61 = vector.load %arg4[%c0_26, %c0_27, %c0_28, %c0_29] : memref<1x4x16x16xf32, #tpu.memory_space<vmem>>, vector<1x4x16x16xf32>
    %62 = vector.shape_cast %61 : vector<1x4x16x16xf32> to vector<4x16x16xf32>
    %63 = vector.shape_cast %62 : vector<4x16x16xf32> to vector<64x16xf32>
    %64 = arith.mulf %48, %60 : vector<64x16xf32>
    %65 = arith.mulf %57, %63 : vector<64x16xf32>
    %66 = arith.addf %64, %65 : vector<64x16xf32>
    %67 = arith.mulf %57, %60 : vector<64x16xf32>
    %68 = arith.mulf %48, %63 : vector<64x16xf32>
    %69 = arith.subf %67, %68 : vector<64x16xf32>
    %70 = vector.extract_strided_slice %66 {offsets = [0, 0], sizes = [16, 16], strides = [1, 1]} : vector<64x16xf32> to vector<16x16xf32>
    %71 = vector.extract_strided_slice %66 {offsets = [16, 0], sizes = [16, 16], strides = [1, 1]} : vector<64x16xf32> to vector<16x16xf32>
    %72 = arith.addf %70, %71 : vector<16x16xf32>
    %73 = vector.extract_strided_slice %66 {offsets = [32, 0], sizes = [16, 16], strides = [1, 1]} : vector<64x16xf32> to vector<16x16xf32>
    %74 = arith.addf %72, %73 : vector<16x16xf32>
    %75 = vector.extract_strided_slice %66 {offsets = [48, 0], sizes = [16, 16], strides = [1, 1]} : vector<64x16xf32> to vector<16x16xf32>
    %76 = arith.addf %74, %75 : vector<16x16xf32>
    %c0_30 = arith.constant 0 : index
    %c0_31 = arith.constant 0 : index
    %c0_32 = arith.constant 0 : index
    %c0_33 = arith.constant 0 : index
    %77 = vector.load %arg9[%c0_30, %c0_31, %c0_32, %c0_33] : memref<1x2x16x16xf32, #tpu.memory_space<vmem>>, vector<1x1x16x16xf32>
    %78 = vector.shape_cast %77 : vector<1x1x16x16xf32> to vector<16x16xf32>
    %79 = vector.shape_cast %76 : vector<16x16xf32> to vector<1x1x16x16xf32>
    tpu.vector_store %arg9[%c0_30, %c0_31, %c0_32, %c0_33], %79 {strides = array<i32>} : memref<1x2x16x16xf32, #tpu.memory_space<vmem>>, vector<1x1x16x16xf32>,
    %80 = vector.extract_strided_slice %69 {offsets = [0, 0], sizes = [16, 16], strides = [1, 1]} : vector<64x16xf32> to vector<16x16xf32>
    %81 = vector.extract_strided_slice %69 {offsets = [16, 0], sizes = [16, 16], strides = [1, 1]} : vector<64x16xf32> to vector<16x16xf32>
    %82 = arith.addf %80, %81 : vector<16x16xf32>
    %83 = vector.extract_strided_slice %69 {offsets = [32, 0], sizes = [16, 16], strides = [1, 1]} : vector<64x16xf32> to vector<16x16xf32>
    %84 = arith.addf %82, %83 : vector<16x16xf32>
    %85 = vector.extract_strided_slice %69 {offsets = [48, 0], sizes = [16, 16], strides = [1, 1]} : vector<64x16xf32> to vector<16x16xf32>
    %86 = arith.addf %84, %85 : vector<16x16xf32>
    %c0_34 = arith.constant 0 : index
    %c1 = arith.constant 1 : index
    %c0_35 = arith.constant 0 : index
    %c0_36 = arith.constant 0 : index
    %87 = vector.load %arg9[%c0_34, %c1, %c0_35, %c0_36] : memref<1x2x16x16xf32, #tpu.memory_space<vmem>>, vector<1x1x16x16xf32>
    %88 = vector.shape_cast %87 : vector<1x1x16x16xf32> to vector<16x16xf32>
    %89 = vector.shape_cast %86 : vector<16x16xf32> to vector<1x1x16x16xf32>
    tpu.vector_store %arg9[%c0_34, %c1, %c0_35, %c0_36], %89 {strides = array<i32>} : memref<1x2x16x16xf32, #tpu.memory_space<vmem>>, vector<1x1x16x16xf32>,
    return
  }
  func.func @transform_0(%arg0: i32) -> (i32, i32, i32, i32) {
    %c0_i32 = arith.constant 0 : i32
    %c0_i32_0 = arith.constant 0 : i32
    %c0_i32_1 = arith.constant 0 : i32
    %c0_i32_2 = arith.constant 0 : i32
    return %arg0, %c0_i32, %c0_i32_0, %c0_i32_1 : i32, i32, i32, i32
  }
  func.func @transform_1(%arg0: i32) -> (i32, i32, i32, i32) {
    %c0_i32 = arith.constant 0 : i32
    %c0_i32_0 = arith.constant 0 : i32
    %c0_i32_1 = arith.constant 0 : i32
    %c0_i32_2 = arith.constant 0 : i32
    return %arg0, %c0_i32, %c0_i32_0, %c0_i32_1 : i32, i32, i32, i32
  }
  func.func @transform_2(%arg0: i32) -> (i32, i32, i32, i32) {
    %c0_i32 = arith.constant 0 : i32
    %c0_i32_0 = arith.constant 0 : i32
    %c0_i32_1 = arith.constant 0 : i32
    %c0_i32_2 = arith.constant 0 : i32
    return %arg0, %c0_i32, %c0_i32_0, %c0_i32_1 : i32, i32, i32, i32
  }
  func.func @transform_3(%arg0: i32) -> (i32, i32, i32, i32) {
    %c0_i32 = arith.constant 0 : i32
    %c0_i32_0 = arith.constant 0 : i32
    %c0_i32_1 = arith.constant 0 : i32
    %c0_i32_2 = arith.constant 0 : i32
    return %arg0, %c0_i32, %c0_i32_0, %c0_i32_1 : i32, i32, i32, i32
  }
  func.func @transform_4(%arg0: i32) -> (i32, i32) {
    %c0_i32 = arith.constant 0 : i32
    %c0_i32_0 = arith.constant 0 : i32
    %c0_i32_1 = arith.constant 0 : i32
    return %c0_i32, %c0_i32_0 : i32, i32
  }
  func.func @transform_5(%arg0: i32) -> (i32, i32) {
    %c0_i32 = arith.constant 0 : i32
    %c0_i32_0 = arith.constant 0 : i32
    %c0_i32_1 = arith.constant 0 : i32
    return %c0_i32, %c0_i32_0 : i32, i32
  }
  func.func @transform_6(%arg0: i32) -> (i32, i32) {
    %c0_i32 = arith.constant 0 : i32
    %c0_i32_0 = arith.constant 0 : i32
    %c0_i32_1 = arith.constant 0 : i32
    return %c0_i32, %c0_i32_0 : i32, i32
  }
  func.func @transform_7(%arg0: i32) -> (i32, i32) {
    %c0_i32 = arith.constant 0 : i32
    %c0_i32_0 = arith.constant 0 : i32
    %c0_i32_1 = arith.constant 0 : i32
    return %c0_i32, %c0_i32_0 : i32, i32
  }
  func.func @transform_8(%arg0: i32) -> (i32, i32, i32, i32) {
    %c0_i32 = arith.constant 0 : i32
    %c0_i32_0 = arith.constant 0 : i32
    %c0_i32_1 = arith.constant 0 : i32
    %c0_i32_2 = arith.constant 0 : i32
    return %arg0, %c0_i32, %c0_i32_0, %c0_i32_1 : i32, i32, i32, i32
  }
}

module attributes {stable_mosaic.version = 11 : i64} {
  func.func @_conv_gru_layer_kernel(%arg0: i32, %arg1: memref<1x50x256xbf16, #tpu.memory_space<vmem>>, %arg2: memref<1x1x32x256xf32, #tpu.memory_space<vmem>>, %arg3: memref<32x50xbf16, #tpu.memory_space<vmem>>, %arg4: memref<32x1xf32, #tpu.memory_space<vmem>>, %arg5: memref<96x32xbf16, #tpu.memory_space<vmem>>, %arg6: memref<64x32xbf16, #tpu.memory_space<vmem>>, %arg7: memref<32x32xbf16, #tpu.memory_space<vmem>>, %arg8: memref<96x1xf32, #tpu.memory_space<vmem>>, %arg9: memref<1x32x256xf32, #tpu.memory_space<vmem>>, %arg10: memref<1x32x256xbf16, #tpu.memory_space<vmem>>) attributes {dimension_semantics = [#tpu.dimension_semantics<parallel>], iteration_bounds = array<i64: 2>, scalar_prefetch = 0 : i64, scratch_operands = 0 : i64, tpu.core_type = #tpu.core_type<tc>, window_params = [{transform_indices = @transform_0, window_bounds = array<i64: 1, 50, 256>}, {transform_indices = @transform_1, window_bounds = array<i64: 1, 1, 32, 256>}, {pipeline_mode = #tpu.pipeline_mode<synchronous>, transform_indices = @transform_2, window_bounds = array<i64: 32, 50>}, {pipeline_mode = #tpu.pipeline_mode<synchronous>, transform_indices = @transform_3, window_bounds = array<i64: 32, 1>}, {pipeline_mode = #tpu.pipeline_mode<synchronous>, transform_indices = @transform_4, window_bounds = array<i64: 96, 32>}, {pipeline_mode = #tpu.pipeline_mode<synchronous>, transform_indices = @transform_5, window_bounds = array<i64: 64, 32>}, {pipeline_mode = #tpu.pipeline_mode<synchronous>, transform_indices = @transform_6, window_bounds = array<i64: 32, 32>}, {pipeline_mode = #tpu.pipeline_mode<synchronous>, transform_indices = @transform_7, window_bounds = array<i64: 96, 1>}, {transform_indices = @transform_8, window_bounds = array<i64: 1, 32, 256>}, {transform_indices = @transform_9, window_bounds = array<i64: 1, 32, 256>}]} {
    %c0 = arith.constant 0 : index
    %c0_0 = arith.constant 0 : index
    %c0_1 = arith.constant 0 : index
    %0 = vector.load %arg1[%c0, %c0_0, %c0_1] : memref<1x50x256xbf16, #tpu.memory_space<vmem>>, vector<1x50x256xbf16>
    %1 = vector.shape_cast %0 : vector<1x50x256xbf16> to vector<50x256xbf16>
    %c0_2 = arith.constant 0 : index
    %c0_3 = arith.constant 0 : index
    %c0_4 = arith.constant 0 : index
    %c0_5 = arith.constant 0 : index
    %2 = vector.load %arg2[%c0_2, %c0_3, %c0_4, %c0_5] : memref<1x1x32x256xf32, #tpu.memory_space<vmem>>, vector<1x1x32x256xf32>
    %3 = vector.shape_cast %2 : vector<1x1x32x256xf32> to vector<32x256xf32>
    %c0_6 = arith.constant 0 : index
    %c0_7 = arith.constant 0 : index
    %4 = vector.load %arg3[%c0_6, %c0_7] : memref<32x50xbf16, #tpu.memory_space<vmem>>, vector<32x50xbf16>
    %cst = arith.constant dense<0.000000e+00> : vector<32x256xf32>
    %5 = tpu.matmul %4, %1, %cst {dimension_numbers = #tpu.dot_dimension_numbers<[1], [0], [0], [1], [0, 0, 1, 1], [], []>} : vector<32x50xbf16>, vector<50x256xbf16>, vector<32x256xf32> -> vector<32x256xf32>
    %c0_8 = arith.constant 0 : index
    %c0_9 = arith.constant 0 : index
    %6 = vector.load %arg4[%c0_8, %c0_9] : memref<32x1xf32, #tpu.memory_space<vmem>>, vector<32x1xf32>
    %7 = vector.broadcast %6 : vector<32x1xf32> to vector<32x256xf32>
    %8 = arith.addf %5, %7 : vector<32x256xf32>
    %cst_10 = arith.constant 0.000000e+00 : f32
    %9 = vector.broadcast %cst_10 : f32 to vector<32x256xf32>
    %10 = arith.maximumf %8, %9 : vector<32x256xf32>
    %11 = arith.truncf %10 : vector<32x256xf32> to vector<32x256xbf16>
    %12 = arith.truncf %3 : vector<32x256xf32> to vector<32x256xbf16>
    %c0_11 = arith.constant 0 : index
    %c0_12 = arith.constant 0 : index
    %13 = vector.load %arg5[%c0_11, %c0_12] : memref<96x32xbf16, #tpu.memory_space<vmem>>, vector<96x32xbf16>
    %cst_13 = arith.constant dense<0.000000e+00> : vector<96x256xf32>
    %14 = tpu.matmul %13, %11, %cst_13 {dimension_numbers = #tpu.dot_dimension_numbers<[1], [0], [0], [1], [0, 0, 1, 1], [], []>} : vector<96x32xbf16>, vector<32x256xbf16>, vector<96x256xf32> -> vector<96x256xf32>
    %c0_14 = arith.constant 0 : index
    %c0_15 = arith.constant 0 : index
    %15 = vector.load %arg8[%c0_14, %c0_15] : memref<96x1xf32, #tpu.memory_space<vmem>>, vector<96x1xf32>
    %16 = vector.broadcast %15 : vector<96x1xf32> to vector<96x256xf32>
    %17 = arith.addf %14, %16 : vector<96x256xf32>
    %c0_16 = arith.constant 0 : index
    %c0_17 = arith.constant 0 : index
    %18 = vector.load %arg6[%c0_16, %c0_17] : memref<64x32xbf16, #tpu.memory_space<vmem>>, vector<64x32xbf16>
    %cst_18 = arith.constant dense<0.000000e+00> : vector<64x256xf32>
    %19 = tpu.matmul %18, %12, %cst_18 {dimension_numbers = #tpu.dot_dimension_numbers<[1], [0], [0], [1], [0, 0, 1, 1], [], []>} : vector<64x32xbf16>, vector<32x256xbf16>, vector<64x256xf32> -> vector<64x256xf32>
    %20 = vector.extract_strided_slice %17 {offsets = [0, 0], sizes = [32, 256], strides = [1, 1]} : vector<96x256xf32> to vector<32x256xf32>
    %21 = vector.extract_strided_slice %19 {offsets = [0, 0], sizes = [32, 256], strides = [1, 1]} : vector<64x256xf32> to vector<32x256xf32>
    %22 = arith.addf %20, %21 : vector<32x256xf32>
    %23 = arith.negf %22 : vector<32x256xf32>
    %24 = math.exp %23 : vector<32x256xf32>
    %cst_19 = arith.constant 1.000000e+00 : f32
    %25 = vector.broadcast %cst_19 : f32 to vector<32x256xf32>
    %26 = arith.addf %25, %24 : vector<32x256xf32>
    %27 = arith.divf %25, %26 : vector<32x256xf32>
    %28 = vector.extract_strided_slice %17 {offsets = [32, 0], sizes = [32, 256], strides = [1, 1]} : vector<96x256xf32> to vector<32x256xf32>
    %29 = vector.extract_strided_slice %19 {offsets = [32, 0], sizes = [32, 256], strides = [1, 1]} : vector<64x256xf32> to vector<32x256xf32>
    %30 = arith.addf %28, %29 : vector<32x256xf32>
    %31 = arith.negf %30 : vector<32x256xf32>
    %32 = math.exp %31 : vector<32x256xf32>
    %cst_20 = arith.constant 1.000000e+00 : f32
    %33 = vector.broadcast %cst_20 : f32 to vector<32x256xf32>
    %34 = arith.addf %33, %32 : vector<32x256xf32>
    %35 = arith.divf %33, %34 : vector<32x256xf32>
    %36 = arith.mulf %3, %35 : vector<32x256xf32>
    %37 = arith.truncf %36 : vector<32x256xf32> to vector<32x256xbf16>
    %38 = vector.extract_strided_slice %17 {offsets = [64, 0], sizes = [32, 256], strides = [1, 1]} : vector<96x256xf32> to vector<32x256xf32>
    %c0_21 = arith.constant 0 : index
    %c0_22 = arith.constant 0 : index
    %39 = vector.load %arg7[%c0_21, %c0_22] : memref<32x32xbf16, #tpu.memory_space<vmem>>, vector<32x32xbf16>
    %cst_23 = arith.constant dense<0.000000e+00> : vector<32x256xf32>
    %40 = tpu.matmul %39, %37, %cst_23 {dimension_numbers = #tpu.dot_dimension_numbers<[1], [0], [0], [1], [0, 0, 1, 1], [], []>} : vector<32x32xbf16>, vector<32x256xbf16>, vector<32x256xf32> -> vector<32x256xf32>
    %41 = arith.addf %38, %40 : vector<32x256xf32>
    %42 = math.tanh %41 : vector<32x256xf32>
    %cst_24 = arith.constant 1.000000e+00 : f32
    %43 = vector.broadcast %cst_24 : f32 to vector<32x256xf32>
    %44 = arith.subf %43, %27 : vector<32x256xf32>
    %45 = arith.mulf %3, %44 : vector<32x256xf32>
    %46 = arith.mulf %42, %27 : vector<32x256xf32>
    %47 = arith.addf %45, %46 : vector<32x256xf32>
    %c0_25 = arith.constant 0 : index
    %c0_26 = arith.constant 0 : index
    %c0_27 = arith.constant 0 : index
    %48 = vector.load %arg9[%c0_25, %c0_26, %c0_27] : memref<1x32x256xf32, #tpu.memory_space<vmem>>, vector<1x32x256xf32>
    %49 = vector.shape_cast %48 : vector<1x32x256xf32> to vector<32x256xf32>
    %50 = vector.shape_cast %47 : vector<32x256xf32> to vector<1x32x256xf32>
    tpu.vector_store %arg9[%c0_25, %c0_26, %c0_27], %50 {strides = array<i32>} : memref<1x32x256xf32, #tpu.memory_space<vmem>>, vector<1x32x256xf32>,
    %cst_28 = arith.constant 0.000000e+00 : f32
    %51 = vector.broadcast %cst_28 : f32 to vector<32x256xf32>
    %52 = arith.maximumf %47, %51 : vector<32x256xf32>
    %53 = arith.truncf %52 : vector<32x256xf32> to vector<32x256xbf16>
    %c0_29 = arith.constant 0 : index
    %c0_30 = arith.constant 0 : index
    %c0_31 = arith.constant 0 : index
    %54 = vector.load %arg10[%c0_29, %c0_30, %c0_31] : memref<1x32x256xbf16, #tpu.memory_space<vmem>>, vector<1x32x256xbf16>
    %55 = vector.shape_cast %54 : vector<1x32x256xbf16> to vector<32x256xbf16>
    %56 = vector.shape_cast %53 : vector<32x256xbf16> to vector<1x32x256xbf16>
    tpu.vector_store %arg10[%c0_29, %c0_30, %c0_31], %56 {strides = array<i32>} : memref<1x32x256xbf16, #tpu.memory_space<vmem>>, vector<1x32x256xbf16>,
    return
  }
  func.func @transform_0(%arg0: i32) -> (i32, i32, i32) {
    %c0_i32 = arith.constant 0 : i32
    %c0_i32_0 = arith.constant 0 : i32
    %c0_i32_1 = arith.constant 0 : i32
    return %arg0, %c0_i32, %c0_i32_0 : i32, i32, i32
  }
  func.func @transform_1(%arg0: i32) -> (i32, i32, i32, i32) {
    %c0_i32 = arith.constant 0 : i32
    %c0_i32_0 = arith.constant 0 : i32
    %c0_i32_1 = arith.constant 0 : i32
    %c0_i32_2 = arith.constant 0 : i32
    return %c0_i32, %arg0, %c0_i32_0, %c0_i32_1 : i32, i32, i32, i32
  }
  func.func @transform_2(%arg0: i32) -> (i32, i32) {
    %c0_i32 = arith.constant 0 : i32
    %c0_i32_0 = arith.constant 0 : i32
    %c0_i32_1 = arith.constant 0 : i32
    return %c0_i32, %c0_i32_0 : i32, i32
  }
  func.func @transform_3(%arg0: i32) -> (i32, i32) {
    %c0_i32 = arith.constant 0 : i32
    %c0_i32_0 = arith.constant 0 : i32
    %c0_i32_1 = arith.constant 0 : i32
    return %c0_i32, %c0_i32_0 : i32, i32
  }
  func.func @transform_4(%arg0: i32) -> (i32, i32) {
    %c0_i32 = arith.constant 0 : i32
    %c0_i32_0 = arith.constant 0 : i32
    %c0_i32_1 = arith.constant 0 : i32
    return %c0_i32, %c0_i32_0 : i32, i32
  }
  func.func @transform_5(%arg0: i32) -> (i32, i32) {
    %c0_i32 = arith.constant 0 : i32
    %c0_i32_0 = arith.constant 0 : i32
    %c0_i32_1 = arith.constant 0 : i32
    return %c0_i32, %c0_i32_0 : i32, i32
  }
  func.func @transform_6(%arg0: i32) -> (i32, i32) {
    %c0_i32 = arith.constant 0 : i32
    %c0_i32_0 = arith.constant 0 : i32
    %c0_i32_1 = arith.constant 0 : i32
    return %c0_i32, %c0_i32_0 : i32, i32
  }
  func.func @transform_7(%arg0: i32) -> (i32, i32) {
    %c0_i32 = arith.constant 0 : i32
    %c0_i32_0 = arith.constant 0 : i32
    %c0_i32_1 = arith.constant 0 : i32
    return %c0_i32, %c0_i32_0 : i32, i32
  }
  func.func @transform_8(%arg0: i32) -> (i32, i32, i32) {
    %c0_i32 = arith.constant 0 : i32
    %c0_i32_0 = arith.constant 0 : i32
    %c0_i32_1 = arith.constant 0 : i32
    return %arg0, %c0_i32, %c0_i32_0 : i32, i32, i32
  }
  func.func @transform_9(%arg0: i32) -> (i32, i32, i32) {
    %c0_i32 = arith.constant 0 : i32
    %c0_i32_0 = arith.constant 0 : i32
    %c0_i32_1 = arith.constant 0 : i32
    return %arg0, %c0_i32, %c0_i32_0 : i32, i32, i32
  }
}

module attributes {stable_mosaic.version = 11 : i64} {
  func.func @_conv_gru_layer_kernel(%arg0: i32, %arg1: memref<1x288x256xbf16, #tpu.memory_space<vmem>>, %arg2: memref<1x1x32x256xf32, #tpu.memory_space<vmem>>, %arg3: memref<32x288xbf16, #tpu.memory_space<vmem>>, %arg4: memref<32x1xf32, #tpu.memory_space<vmem>>, %arg5: memref<96x32xbf16, #tpu.memory_space<vmem>>, %arg6: memref<64x32xbf16, #tpu.memory_space<vmem>>, %arg7: memref<32x32xbf16, #tpu.memory_space<vmem>>, %arg8: memref<96x1xf32, #tpu.memory_space<vmem>>, %arg9: memref<1x32x256xf32, #tpu.memory_space<vmem>>, %arg10: memref<1x32x256xbf16, #tpu.memory_space<vmem>>) attributes {dimension_semantics = [#tpu.dimension_semantics<parallel>], iteration_bounds = array<i64: 2>, scalar_prefetch = 0 : i64, scratch_operands = 0 : i64, tpu.core_type = #tpu.core_type<tc>, window_params = [{transform_indices = @transform_0, window_bounds = array<i64: 1, 288, 256>}, {transform_indices = @transform_1, window_bounds = array<i64: 1, 1, 32, 256>}, {pipeline_mode = #tpu.pipeline_mode<synchronous>, transform_indices = @transform_2, window_bounds = array<i64: 32, 288>}, {pipeline_mode = #tpu.pipeline_mode<synchronous>, transform_indices = @transform_3, window_bounds = array<i64: 32, 1>}, {pipeline_mode = #tpu.pipeline_mode<synchronous>, transform_indices = @transform_4, window_bounds = array<i64: 96, 32>}, {pipeline_mode = #tpu.pipeline_mode<synchronous>, transform_indices = @transform_5, window_bounds = array<i64: 64, 32>}, {pipeline_mode = #tpu.pipeline_mode<synchronous>, transform_indices = @transform_6, window_bounds = array<i64: 32, 32>}, {pipeline_mode = #tpu.pipeline_mode<synchronous>, transform_indices = @transform_7, window_bounds = array<i64: 96, 1>}, {transform_indices = @transform_8, window_bounds = array<i64: 1, 32, 256>}, {transform_indices = @transform_9, window_bounds = array<i64: 1, 32, 256>}]} {
    %c0 = arith.constant 0 : index
    %c0_0 = arith.constant 0 : index
    %c0_1 = arith.constant 0 : index
    %0 = vector.load %arg1[%c0, %c0_0, %c0_1] : memref<1x288x256xbf16, #tpu.memory_space<vmem>>, vector<1x288x256xbf16>
    %1 = vector.shape_cast %0 : vector<1x288x256xbf16> to vector<288x256xbf16>
    %c0_2 = arith.constant 0 : index
    %c0_3 = arith.constant 0 : index
    %c0_4 = arith.constant 0 : index
    %c0_5 = arith.constant 0 : index
    %2 = vector.load %arg2[%c0_2, %c0_3, %c0_4, %c0_5] : memref<1x1x32x256xf32, #tpu.memory_space<vmem>>, vector<1x1x32x256xf32>
    %3 = vector.shape_cast %2 : vector<1x1x32x256xf32> to vector<32x256xf32>
    %c0_6 = arith.constant 0 : index
    %c0_7 = arith.constant 0 : index
    %4 = vector.load %arg3[%c0_6, %c0_7] : memref<32x288xbf16, #tpu.memory_space<vmem>>, vector<32x288xbf16>
    %cst = arith.constant dense<0.000000e+00> : vector<32x256xf32>
    %5 = tpu.matmul %4, %1, %cst {dimension_numbers = #tpu.dot_dimension_numbers<[1], [0], [0], [1], [0, 0, 1, 1], [], []>} : vector<32x288xbf16>, vector<288x256xbf16>, vector<32x256xf32> -> vector<32x256xf32>
    %c0_8 = arith.constant 0 : index
    %c0_9 = arith.constant 0 : index
    %6 = vector.load %arg4[%c0_8, %c0_9] : memref<32x1xf32, #tpu.memory_space<vmem>>, vector<32x1xf32>
    %7 = vector.broadcast %6 : vector<32x1xf32> to vector<32x256xf32>
    %8 = arith.addf %5, %7 : vector<32x256xf32>
    %cst_10 = arith.constant 0.000000e+00 : f32
    %9 = vector.broadcast %cst_10 : f32 to vector<32x256xf32>
    %10 = arith.maximumf %8, %9 : vector<32x256xf32>
    %11 = arith.truncf %10 : vector<32x256xf32> to vector<32x256xbf16>
    %12 = arith.truncf %3 : vector<32x256xf32> to vector<32x256xbf16>
    %c0_11 = arith.constant 0 : index
    %c0_12 = arith.constant 0 : index
    %13 = vector.load %arg5[%c0_11, %c0_12] : memref<96x32xbf16, #tpu.memory_space<vmem>>, vector<96x32xbf16>
    %cst_13 = arith.constant dense<0.000000e+00> : vector<96x256xf32>
    %14 = tpu.matmul %13, %11, %cst_13 {dimension_numbers = #tpu.dot_dimension_numbers<[1], [0], [0], [1], [0, 0, 1, 1], [], []>} : vector<96x32xbf16>, vector<32x256xbf16>, vector<96x256xf32> -> vector<96x256xf32>
    %c0_14 = arith.constant 0 : index
    %c0_15 = arith.constant 0 : index
    %15 = vector.load %arg8[%c0_14, %c0_15] : memref<96x1xf32, #tpu.memory_space<vmem>>, vector<96x1xf32>
    %16 = vector.broadcast %15 : vector<96x1xf32> to vector<96x256xf32>
    %17 = arith.addf %14, %16 : vector<96x256xf32>
    %c0_16 = arith.constant 0 : index
    %c0_17 = arith.constant 0 : index
    %18 = vector.load %arg6[%c0_16, %c0_17] : memref<64x32xbf16, #tpu.memory_space<vmem>>, vector<64x32xbf16>
    %cst_18 = arith.constant dense<0.000000e+00> : vector<64x256xf32>
    %19 = tpu.matmul %18, %12, %cst_18 {dimension_numbers = #tpu.dot_dimension_numbers<[1], [0], [0], [1], [0, 0, 1, 1], [], []>} : vector<64x32xbf16>, vector<32x256xbf16>, vector<64x256xf32> -> vector<64x256xf32>
    %20 = vector.extract_strided_slice %17 {offsets = [0, 0], sizes = [32, 256], strides = [1, 1]} : vector<96x256xf32> to vector<32x256xf32>
    %21 = vector.extract_strided_slice %19 {offsets = [0, 0], sizes = [32, 256], strides = [1, 1]} : vector<64x256xf32> to vector<32x256xf32>
    %22 = arith.addf %20, %21 : vector<32x256xf32>
    %23 = arith.negf %22 : vector<32x256xf32>
    %24 = math.exp %23 : vector<32x256xf32>
    %cst_19 = arith.constant 1.000000e+00 : f32
    %25 = vector.broadcast %cst_19 : f32 to vector<32x256xf32>
    %26 = arith.addf %25, %24 : vector<32x256xf32>
    %27 = arith.divf %25, %26 : vector<32x256xf32>
    %28 = vector.extract_strided_slice %17 {offsets = [32, 0], sizes = [32, 256], strides = [1, 1]} : vector<96x256xf32> to vector<32x256xf32>
    %29 = vector.extract_strided_slice %19 {offsets = [32, 0], sizes = [32, 256], strides = [1, 1]} : vector<64x256xf32> to vector<32x256xf32>
    %30 = arith.addf %28, %29 : vector<32x256xf32>
    %31 = arith.negf %30 : vector<32x256xf32>
    %32 = math.exp %31 : vector<32x256xf32>
    %cst_20 = arith.constant 1.000000e+00 : f32
    %33 = vector.broadcast %cst_20 : f32 to vector<32x256xf32>
    %34 = arith.addf %33, %32 : vector<32x256xf32>
    %35 = arith.divf %33, %34 : vector<32x256xf32>
    %36 = arith.mulf %3, %35 : vector<32x256xf32>
    %37 = arith.truncf %36 : vector<32x256xf32> to vector<32x256xbf16>
    %38 = vector.extract_strided_slice %17 {offsets = [64, 0], sizes = [32, 256], strides = [1, 1]} : vector<96x256xf32> to vector<32x256xf32>
    %c0_21 = arith.constant 0 : index
    %c0_22 = arith.constant 0 : index
    %39 = vector.load %arg7[%c0_21, %c0_22] : memref<32x32xbf16, #tpu.memory_space<vmem>>, vector<32x32xbf16>
    %cst_23 = arith.constant dense<0.000000e+00> : vector<32x256xf32>
    %40 = tpu.matmul %39, %37, %cst_23 {dimension_numbers = #tpu.dot_dimension_numbers<[1], [0], [0], [1], [0, 0, 1, 1], [], []>} : vector<32x32xbf16>, vector<32x256xbf16>, vector<32x256xf32> -> vector<32x256xf32>
    %41 = arith.addf %38, %40 : vector<32x256xf32>
    %42 = math.tanh %41 : vector<32x256xf32>
    %cst_24 = arith.constant 1.000000e+00 : f32
    %43 = vector.broadcast %cst_24 : f32 to vector<32x256xf32>
    %44 = arith.subf %43, %27 : vector<32x256xf32>
    %45 = arith.mulf %3, %44 : vector<32x256xf32>
    %46 = arith.mulf %42, %27 : vector<32x256xf32>
    %47 = arith.addf %45, %46 : vector<32x256xf32>
    %c0_25 = arith.constant 0 : index
    %c0_26 = arith.constant 0 : index
    %c0_27 = arith.constant 0 : index
    %48 = vector.load %arg9[%c0_25, %c0_26, %c0_27] : memref<1x32x256xf32, #tpu.memory_space<vmem>>, vector<1x32x256xf32>
    %49 = vector.shape_cast %48 : vector<1x32x256xf32> to vector<32x256xf32>
    %50 = vector.shape_cast %47 : vector<32x256xf32> to vector<1x32x256xf32>
    tpu.vector_store %arg9[%c0_25, %c0_26, %c0_27], %50 {strides = array<i32>} : memref<1x32x256xf32, #tpu.memory_space<vmem>>, vector<1x32x256xf32>,
    %cst_28 = arith.constant 0.000000e+00 : f32
    %51 = vector.broadcast %cst_28 : f32 to vector<32x256xf32>
    %52 = arith.maximumf %47, %51 : vector<32x256xf32>
    %53 = arith.truncf %52 : vector<32x256xf32> to vector<32x256xbf16>
    %c0_29 = arith.constant 0 : index
    %c0_30 = arith.constant 0 : index
    %c0_31 = arith.constant 0 : index
    %54 = vector.load %arg10[%c0_29, %c0_30, %c0_31] : memref<1x32x256xbf16, #tpu.memory_space<vmem>>, vector<1x32x256xbf16>
    %55 = vector.shape_cast %54 : vector<1x32x256xbf16> to vector<32x256xbf16>
    %56 = vector.shape_cast %53 : vector<32x256xbf16> to vector<1x32x256xbf16>
    tpu.vector_store %arg10[%c0_29, %c0_30, %c0_31], %56 {strides = array<i32>} : memref<1x32x256xbf16, #tpu.memory_space<vmem>>, vector<1x32x256xbf16>,
    return
  }
  func.func @transform_0(%arg0: i32) -> (i32, i32, i32) {
    %c0_i32 = arith.constant 0 : i32
    %c0_i32_0 = arith.constant 0 : i32
    %c0_i32_1 = arith.constant 0 : i32
    return %arg0, %c0_i32, %c0_i32_0 : i32, i32, i32
  }
  func.func @transform_1(%arg0: i32) -> (i32, i32, i32, i32) {
    %c1_i32 = arith.constant 1 : i32
    %c0_i32 = arith.constant 0 : i32
    %c0_i32_0 = arith.constant 0 : i32
    %c0_i32_1 = arith.constant 0 : i32
    return %c1_i32, %arg0, %c0_i32, %c0_i32_0 : i32, i32, i32, i32
  }
  func.func @transform_2(%arg0: i32) -> (i32, i32) {
    %c0_i32 = arith.constant 0 : i32
    %c0_i32_0 = arith.constant 0 : i32
    %c0_i32_1 = arith.constant 0 : i32
    return %c0_i32, %c0_i32_0 : i32, i32
  }
  func.func @transform_3(%arg0: i32) -> (i32, i32) {
    %c0_i32 = arith.constant 0 : i32
    %c0_i32_0 = arith.constant 0 : i32
    %c0_i32_1 = arith.constant 0 : i32
    return %c0_i32, %c0_i32_0 : i32, i32
  }
  func.func @transform_4(%arg0: i32) -> (i32, i32) {
    %c0_i32 = arith.constant 0 : i32
    %c0_i32_0 = arith.constant 0 : i32
    %c0_i32_1 = arith.constant 0 : i32
    return %c0_i32, %c0_i32_0 : i32, i32
  }
  func.func @transform_5(%arg0: i32) -> (i32, i32) {
    %c0_i32 = arith.constant 0 : i32
    %c0_i32_0 = arith.constant 0 : i32
    %c0_i32_1 = arith.constant 0 : i32
    return %c0_i32, %c0_i32_0 : i32, i32
  }
  func.func @transform_6(%arg0: i32) -> (i32, i32) {
    %c0_i32 = arith.constant 0 : i32
    %c0_i32_0 = arith.constant 0 : i32
    %c0_i32_1 = arith.constant 0 : i32
    return %c0_i32, %c0_i32_0 : i32, i32
  }
  func.func @transform_7(%arg0: i32) -> (i32, i32) {
    %c0_i32 = arith.constant 0 : i32
    %c0_i32_0 = arith.constant 0 : i32
    %c0_i32_1 = arith.constant 0 : i32
    return %c0_i32, %c0_i32_0 : i32, i32
  }
  func.func @transform_8(%arg0: i32) -> (i32, i32, i32) {
    %c0_i32 = arith.constant 0 : i32
    %c0_i32_0 = arith.constant 0 : i32
    %c0_i32_1 = arith.constant 0 : i32
    return %arg0, %c0_i32, %c0_i32_0 : i32, i32, i32
  }
  func.func @transform_9(%arg0: i32) -> (i32, i32, i32) {
    %c0_i32 = arith.constant 0 : i32
    %c0_i32_0 = arith.constant 0 : i32
    %c0_i32_1 = arith.constant 0 : i32
    return %arg0, %c0_i32, %c0_i32_0 : i32, i32, i32
  }
}

module attributes {stable_mosaic.version = 11 : i64} {
  func.func @_conv_gru_layer_kernel(%arg0: i32, %arg1: memref<1x288x256xbf16, #tpu.memory_space<vmem>>, %arg2: memref<1x1x32x256xf32, #tpu.memory_space<vmem>>, %arg3: memref<32x288xbf16, #tpu.memory_space<vmem>>, %arg4: memref<32x1xf32, #tpu.memory_space<vmem>>, %arg5: memref<96x32xbf16, #tpu.memory_space<vmem>>, %arg6: memref<64x32xbf16, #tpu.memory_space<vmem>>, %arg7: memref<32x32xbf16, #tpu.memory_space<vmem>>, %arg8: memref<96x1xf32, #tpu.memory_space<vmem>>, %arg9: memref<1x32x256xf32, #tpu.memory_space<vmem>>, %arg10: memref<1x32x256xbf16, #tpu.memory_space<vmem>>) attributes {dimension_semantics = [#tpu.dimension_semantics<parallel>], iteration_bounds = array<i64: 2>, scalar_prefetch = 0 : i64, scratch_operands = 0 : i64, tpu.core_type = #tpu.core_type<tc>, window_params = [{transform_indices = @transform_0, window_bounds = array<i64: 1, 288, 256>}, {transform_indices = @transform_1, window_bounds = array<i64: 1, 1, 32, 256>}, {pipeline_mode = #tpu.pipeline_mode<synchronous>, transform_indices = @transform_2, window_bounds = array<i64: 32, 288>}, {pipeline_mode = #tpu.pipeline_mode<synchronous>, transform_indices = @transform_3, window_bounds = array<i64: 32, 1>}, {pipeline_mode = #tpu.pipeline_mode<synchronous>, transform_indices = @transform_4, window_bounds = array<i64: 96, 32>}, {pipeline_mode = #tpu.pipeline_mode<synchronous>, transform_indices = @transform_5, window_bounds = array<i64: 64, 32>}, {pipeline_mode = #tpu.pipeline_mode<synchronous>, transform_indices = @transform_6, window_bounds = array<i64: 32, 32>}, {pipeline_mode = #tpu.pipeline_mode<synchronous>, transform_indices = @transform_7, window_bounds = array<i64: 96, 1>}, {transform_indices = @transform_8, window_bounds = array<i64: 1, 32, 256>}, {transform_indices = @transform_9, window_bounds = array<i64: 1, 32, 256>}]} {
    %c0 = arith.constant 0 : index
    %c0_0 = arith.constant 0 : index
    %c0_1 = arith.constant 0 : index
    %0 = vector.load %arg1[%c0, %c0_0, %c0_1] : memref<1x288x256xbf16, #tpu.memory_space<vmem>>, vector<1x288x256xbf16>
    %1 = vector.shape_cast %0 : vector<1x288x256xbf16> to vector<288x256xbf16>
    %c0_2 = arith.constant 0 : index
    %c0_3 = arith.constant 0 : index
    %c0_4 = arith.constant 0 : index
    %c0_5 = arith.constant 0 : index
    %2 = vector.load %arg2[%c0_2, %c0_3, %c0_4, %c0_5] : memref<1x1x32x256xf32, #tpu.memory_space<vmem>>, vector<1x1x32x256xf32>
    %3 = vector.shape_cast %2 : vector<1x1x32x256xf32> to vector<32x256xf32>
    %c0_6 = arith.constant 0 : index
    %c0_7 = arith.constant 0 : index
    %4 = vector.load %arg3[%c0_6, %c0_7] : memref<32x288xbf16, #tpu.memory_space<vmem>>, vector<32x288xbf16>
    %cst = arith.constant dense<0.000000e+00> : vector<32x256xf32>
    %5 = tpu.matmul %4, %1, %cst {dimension_numbers = #tpu.dot_dimension_numbers<[1], [0], [0], [1], [0, 0, 1, 1], [], []>} : vector<32x288xbf16>, vector<288x256xbf16>, vector<32x256xf32> -> vector<32x256xf32>
    %c0_8 = arith.constant 0 : index
    %c0_9 = arith.constant 0 : index
    %6 = vector.load %arg4[%c0_8, %c0_9] : memref<32x1xf32, #tpu.memory_space<vmem>>, vector<32x1xf32>
    %7 = vector.broadcast %6 : vector<32x1xf32> to vector<32x256xf32>
    %8 = arith.addf %5, %7 : vector<32x256xf32>
    %cst_10 = arith.constant 0.000000e+00 : f32
    %9 = vector.broadcast %cst_10 : f32 to vector<32x256xf32>
    %10 = arith.maximumf %8, %9 : vector<32x256xf32>
    %11 = arith.truncf %10 : vector<32x256xf32> to vector<32x256xbf16>
    %12 = arith.truncf %3 : vector<32x256xf32> to vector<32x256xbf16>
    %c0_11 = arith.constant 0 : index
    %c0_12 = arith.constant 0 : index
    %13 = vector.load %arg5[%c0_11, %c0_12] : memref<96x32xbf16, #tpu.memory_space<vmem>>, vector<96x32xbf16>
    %cst_13 = arith.constant dense<0.000000e+00> : vector<96x256xf32>
    %14 = tpu.matmul %13, %11, %cst_13 {dimension_numbers = #tpu.dot_dimension_numbers<[1], [0], [0], [1], [0, 0, 1, 1], [], []>} : vector<96x32xbf16>, vector<32x256xbf16>, vector<96x256xf32> -> vector<96x256xf32>
    %c0_14 = arith.constant 0 : index
    %c0_15 = arith.constant 0 : index
    %15 = vector.load %arg8[%c0_14, %c0_15] : memref<96x1xf32, #tpu.memory_space<vmem>>, vector<96x1xf32>
    %16 = vector.broadcast %15 : vector<96x1xf32> to vector<96x256xf32>
    %17 = arith.addf %14, %16 : vector<96x256xf32>
    %c0_16 = arith.constant 0 : index
    %c0_17 = arith.constant 0 : index
    %18 = vector.load %arg6[%c0_16, %c0_17] : memref<64x32xbf16, #tpu.memory_space<vmem>>, vector<64x32xbf16>
    %cst_18 = arith.constant dense<0.000000e+00> : vector<64x256xf32>
    %19 = tpu.matmul %18, %12, %cst_18 {dimension_numbers = #tpu.dot_dimension_numbers<[1], [0], [0], [1], [0, 0, 1, 1], [], []>} : vector<64x32xbf16>, vector<32x256xbf16>, vector<64x256xf32> -> vector<64x256xf32>
    %20 = vector.extract_strided_slice %17 {offsets = [0, 0], sizes = [32, 256], strides = [1, 1]} : vector<96x256xf32> to vector<32x256xf32>
    %21 = vector.extract_strided_slice %19 {offsets = [0, 0], sizes = [32, 256], strides = [1, 1]} : vector<64x256xf32> to vector<32x256xf32>
    %22 = arith.addf %20, %21 : vector<32x256xf32>
    %23 = arith.negf %22 : vector<32x256xf32>
    %24 = math.exp %23 : vector<32x256xf32>
    %cst_19 = arith.constant 1.000000e+00 : f32
    %25 = vector.broadcast %cst_19 : f32 to vector<32x256xf32>
    %26 = arith.addf %25, %24 : vector<32x256xf32>
    %27 = arith.divf %25, %26 : vector<32x256xf32>
    %28 = vector.extract_strided_slice %17 {offsets = [32, 0], sizes = [32, 256], strides = [1, 1]} : vector<96x256xf32> to vector<32x256xf32>
    %29 = vector.extract_strided_slice %19 {offsets = [32, 0], sizes = [32, 256], strides = [1, 1]} : vector<64x256xf32> to vector<32x256xf32>
    %30 = arith.addf %28, %29 : vector<32x256xf32>
    %31 = arith.negf %30 : vector<32x256xf32>
    %32 = math.exp %31 : vector<32x256xf32>
    %cst_20 = arith.constant 1.000000e+00 : f32
    %33 = vector.broadcast %cst_20 : f32 to vector<32x256xf32>
    %34 = arith.addf %33, %32 : vector<32x256xf32>
    %35 = arith.divf %33, %34 : vector<32x256xf32>
    %36 = arith.mulf %3, %35 : vector<32x256xf32>
    %37 = arith.truncf %36 : vector<32x256xf32> to vector<32x256xbf16>
    %38 = vector.extract_strided_slice %17 {offsets = [64, 0], sizes = [32, 256], strides = [1, 1]} : vector<96x256xf32> to vector<32x256xf32>
    %c0_21 = arith.constant 0 : index
    %c0_22 = arith.constant 0 : index
    %39 = vector.load %arg7[%c0_21, %c0_22] : memref<32x32xbf16, #tpu.memory_space<vmem>>, vector<32x32xbf16>
    %cst_23 = arith.constant dense<0.000000e+00> : vector<32x256xf32>
    %40 = tpu.matmul %39, %37, %cst_23 {dimension_numbers = #tpu.dot_dimension_numbers<[1], [0], [0], [1], [0, 0, 1, 1], [], []>} : vector<32x32xbf16>, vector<32x256xbf16>, vector<32x256xf32> -> vector<32x256xf32>
    %41 = arith.addf %38, %40 : vector<32x256xf32>
    %42 = math.tanh %41 : vector<32x256xf32>
    %cst_24 = arith.constant 1.000000e+00 : f32
    %43 = vector.broadcast %cst_24 : f32 to vector<32x256xf32>
    %44 = arith.subf %43, %27 : vector<32x256xf32>
    %45 = arith.mulf %3, %44 : vector<32x256xf32>
    %46 = arith.mulf %42, %27 : vector<32x256xf32>
    %47 = arith.addf %45, %46 : vector<32x256xf32>
    %c0_25 = arith.constant 0 : index
    %c0_26 = arith.constant 0 : index
    %c0_27 = arith.constant 0 : index
    %48 = vector.load %arg9[%c0_25, %c0_26, %c0_27] : memref<1x32x256xf32, #tpu.memory_space<vmem>>, vector<1x32x256xf32>
    %49 = vector.shape_cast %48 : vector<1x32x256xf32> to vector<32x256xf32>
    %50 = vector.shape_cast %47 : vector<32x256xf32> to vector<1x32x256xf32>
    tpu.vector_store %arg9[%c0_25, %c0_26, %c0_27], %50 {strides = array<i32>} : memref<1x32x256xf32, #tpu.memory_space<vmem>>, vector<1x32x256xf32>,
    %cst_28 = arith.constant 0.000000e+00 : f32
    %51 = vector.broadcast %cst_28 : f32 to vector<32x256xf32>
    %52 = arith.maximumf %47, %51 : vector<32x256xf32>
    %53 = arith.truncf %52 : vector<32x256xf32> to vector<32x256xbf16>
    %c0_29 = arith.constant 0 : index
    %c0_30 = arith.constant 0 : index
    %c0_31 = arith.constant 0 : index
    %54 = vector.load %arg10[%c0_29, %c0_30, %c0_31] : memref<1x32x256xbf16, #tpu.memory_space<vmem>>, vector<1x32x256xbf16>
    %55 = vector.shape_cast %54 : vector<1x32x256xbf16> to vector<32x256xbf16>
    %56 = vector.shape_cast %53 : vector<32x256xbf16> to vector<1x32x256xbf16>
    tpu.vector_store %arg10[%c0_29, %c0_30, %c0_31], %56 {strides = array<i32>} : memref<1x32x256xbf16, #tpu.memory_space<vmem>>, vector<1x32x256xbf16>,
    return
  }
  func.func @transform_0(%arg0: i32) -> (i32, i32, i32) {
    %c0_i32 = arith.constant 0 : i32
    %c0_i32_0 = arith.constant 0 : i32
    %c0_i32_1 = arith.constant 0 : i32
    return %arg0, %c0_i32, %c0_i32_0 : i32, i32, i32
  }
  func.func @transform_1(%arg0: i32) -> (i32, i32, i32, i32) {
    %c3_i32 = arith.constant 3 : i32
    %c0_i32 = arith.constant 0 : i32
    %c0_i32_0 = arith.constant 0 : i32
    %c0_i32_1 = arith.constant 0 : i32
    return %c3_i32, %arg0, %c0_i32, %c0_i32_0 : i32, i32, i32, i32
  }
  func.func @transform_2(%arg0: i32) -> (i32, i32) {
    %c0_i32 = arith.constant 0 : i32
    %c0_i32_0 = arith.constant 0 : i32
    %c0_i32_1 = arith.constant 0 : i32
    return %c0_i32, %c0_i32_0 : i32, i32
  }
  func.func @transform_3(%arg0: i32) -> (i32, i32) {
    %c0_i32 = arith.constant 0 : i32
    %c0_i32_0 = arith.constant 0 : i32
    %c0_i32_1 = arith.constant 0 : i32
    return %c0_i32, %c0_i32_0 : i32, i32
  }
  func.func @transform_4(%arg0: i32) -> (i32, i32) {
    %c0_i32 = arith.constant 0 : i32
    %c0_i32_0 = arith.constant 0 : i32
    %c0_i32_1 = arith.constant 0 : i32
    return %c0_i32, %c0_i32_0 : i32, i32
  }
  func.func @transform_5(%arg0: i32) -> (i32, i32) {
    %c0_i32 = arith.constant 0 : i32
    %c0_i32_0 = arith.constant 0 : i32
    %c0_i32_1 = arith.constant 0 : i32
    return %c0_i32, %c0_i32_0 : i32, i32
  }
  func.func @transform_6(%arg0: i32) -> (i32, i32) {
    %c0_i32 = arith.constant 0 : i32
    %c0_i32_0 = arith.constant 0 : i32
    %c0_i32_1 = arith.constant 0 : i32
    return %c0_i32, %c0_i32_0 : i32, i32
  }
  func.func @transform_7(%arg0: i32) -> (i32, i32) {
    %c0_i32 = arith.constant 0 : i32
    %c0_i32_0 = arith.constant 0 : i32
    %c0_i32_1 = arith.constant 0 : i32
    return %c0_i32, %c0_i32_0 : i32, i32
  }
  func.func @transform_8(%arg0: i32) -> (i32, i32, i32) {
    %c0_i32 = arith.constant 0 : i32
    %c0_i32_0 = arith.constant 0 : i32
    %c0_i32_1 = arith.constant 0 : i32
    return %arg0, %c0_i32, %c0_i32_0 : i32, i32, i32
  }
  func.func @transform_9(%arg0: i32) -> (i32, i32, i32) {
    %c0_i32 = arith.constant 0 : i32
    %c0_i32_0 = arith.constant 0 : i32
    %c0_i32_1 = arith.constant 0 : i32
    return %arg0, %c0_i32, %c0_i32_0 : i32, i32, i32
  }
}

module attributes {stable_mosaic.version = 11 : i64} {
  func.func @_conv_gru_layer_kernel(%arg0: i32, %arg1: memref<1x288x256xbf16, #tpu.memory_space<vmem>>, %arg2: memref<1x1x32x256xf32, #tpu.memory_space<vmem>>, %arg3: memref<32x288xbf16, #tpu.memory_space<vmem>>, %arg4: memref<32x1xf32, #tpu.memory_space<vmem>>, %arg5: memref<96x32xbf16, #tpu.memory_space<vmem>>, %arg6: memref<64x32xbf16, #tpu.memory_space<vmem>>, %arg7: memref<32x32xbf16, #tpu.memory_space<vmem>>, %arg8: memref<96x1xf32, #tpu.memory_space<vmem>>, %arg9: memref<1x32x256xf32, #tpu.memory_space<vmem>>, %arg10: memref<1x32x256xbf16, #tpu.memory_space<vmem>>) attributes {dimension_semantics = [#tpu.dimension_semantics<parallel>], iteration_bounds = array<i64: 2>, scalar_prefetch = 0 : i64, scratch_operands = 0 : i64, tpu.core_type = #tpu.core_type<tc>, window_params = [{transform_indices = @transform_0, window_bounds = array<i64: 1, 288, 256>}, {transform_indices = @transform_1, window_bounds = array<i64: 1, 1, 32, 256>}, {pipeline_mode = #tpu.pipeline_mode<synchronous>, transform_indices = @transform_2, window_bounds = array<i64: 32, 288>}, {pipeline_mode = #tpu.pipeline_mode<synchronous>, transform_indices = @transform_3, window_bounds = array<i64: 32, 1>}, {pipeline_mode = #tpu.pipeline_mode<synchronous>, transform_indices = @transform_4, window_bounds = array<i64: 96, 32>}, {pipeline_mode = #tpu.pipeline_mode<synchronous>, transform_indices = @transform_5, window_bounds = array<i64: 64, 32>}, {pipeline_mode = #tpu.pipeline_mode<synchronous>, transform_indices = @transform_6, window_bounds = array<i64: 32, 32>}, {pipeline_mode = #tpu.pipeline_mode<synchronous>, transform_indices = @transform_7, window_bounds = array<i64: 96, 1>}, {transform_indices = @transform_8, window_bounds = array<i64: 1, 32, 256>}, {transform_indices = @transform_9, window_bounds = array<i64: 1, 32, 256>}]} {
    %c0 = arith.constant 0 : index
    %c0_0 = arith.constant 0 : index
    %c0_1 = arith.constant 0 : index
    %0 = vector.load %arg1[%c0, %c0_0, %c0_1] : memref<1x288x256xbf16, #tpu.memory_space<vmem>>, vector<1x288x256xbf16>
    %1 = vector.shape_cast %0 : vector<1x288x256xbf16> to vector<288x256xbf16>
    %c0_2 = arith.constant 0 : index
    %c0_3 = arith.constant 0 : index
    %c0_4 = arith.constant 0 : index
    %c0_5 = arith.constant 0 : index
    %2 = vector.load %arg2[%c0_2, %c0_3, %c0_4, %c0_5] : memref<1x1x32x256xf32, #tpu.memory_space<vmem>>, vector<1x1x32x256xf32>
    %3 = vector.shape_cast %2 : vector<1x1x32x256xf32> to vector<32x256xf32>
    %c0_6 = arith.constant 0 : index
    %c0_7 = arith.constant 0 : index
    %4 = vector.load %arg3[%c0_6, %c0_7] : memref<32x288xbf16, #tpu.memory_space<vmem>>, vector<32x288xbf16>
    %cst = arith.constant dense<0.000000e+00> : vector<32x256xf32>
    %5 = tpu.matmul %4, %1, %cst {dimension_numbers = #tpu.dot_dimension_numbers<[1], [0], [0], [1], [0, 0, 1, 1], [], []>} : vector<32x288xbf16>, vector<288x256xbf16>, vector<32x256xf32> -> vector<32x256xf32>
    %c0_8 = arith.constant 0 : index
    %c0_9 = arith.constant 0 : index
    %6 = vector.load %arg4[%c0_8, %c0_9] : memref<32x1xf32, #tpu.memory_space<vmem>>, vector<32x1xf32>
    %7 = vector.broadcast %6 : vector<32x1xf32> to vector<32x256xf32>
    %8 = arith.addf %5, %7 : vector<32x256xf32>
    %cst_10 = arith.constant 0.000000e+00 : f32
    %9 = vector.broadcast %cst_10 : f32 to vector<32x256xf32>
    %10 = arith.maximumf %8, %9 : vector<32x256xf32>
    %11 = arith.truncf %10 : vector<32x256xf32> to vector<32x256xbf16>
    %12 = arith.truncf %3 : vector<32x256xf32> to vector<32x256xbf16>
    %c0_11 = arith.constant 0 : index
    %c0_12 = arith.constant 0 : index
    %13 = vector.load %arg5[%c0_11, %c0_12] : memref<96x32xbf16, #tpu.memory_space<vmem>>, vector<96x32xbf16>
    %cst_13 = arith.constant dense<0.000000e+00> : vector<96x256xf32>
    %14 = tpu.matmul %13, %11, %cst_13 {dimension_numbers = #tpu.dot_dimension_numbers<[1], [0], [0], [1], [0, 0, 1, 1], [], []>} : vector<96x32xbf16>, vector<32x256xbf16>, vector<96x256xf32> -> vector<96x256xf32>
    %c0_14 = arith.constant 0 : index
    %c0_15 = arith.constant 0 : index
    %15 = vector.load %arg8[%c0_14, %c0_15] : memref<96x1xf32, #tpu.memory_space<vmem>>, vector<96x1xf32>
    %16 = vector.broadcast %15 : vector<96x1xf32> to vector<96x256xf32>
    %17 = arith.addf %14, %16 : vector<96x256xf32>
    %c0_16 = arith.constant 0 : index
    %c0_17 = arith.constant 0 : index
    %18 = vector.load %arg6[%c0_16, %c0_17] : memref<64x32xbf16, #tpu.memory_space<vmem>>, vector<64x32xbf16>
    %cst_18 = arith.constant dense<0.000000e+00> : vector<64x256xf32>
    %19 = tpu.matmul %18, %12, %cst_18 {dimension_numbers = #tpu.dot_dimension_numbers<[1], [0], [0], [1], [0, 0, 1, 1], [], []>} : vector<64x32xbf16>, vector<32x256xbf16>, vector<64x256xf32> -> vector<64x256xf32>
    %20 = vector.extract_strided_slice %17 {offsets = [0, 0], sizes = [32, 256], strides = [1, 1]} : vector<96x256xf32> to vector<32x256xf32>
    %21 = vector.extract_strided_slice %19 {offsets = [0, 0], sizes = [32, 256], strides = [1, 1]} : vector<64x256xf32> to vector<32x256xf32>
    %22 = arith.addf %20, %21 : vector<32x256xf32>
    %23 = arith.negf %22 : vector<32x256xf32>
    %24 = math.exp %23 : vector<32x256xf32>
    %cst_19 = arith.constant 1.000000e+00 : f32
    %25 = vector.broadcast %cst_19 : f32 to vector<32x256xf32>
    %26 = arith.addf %25, %24 : vector<32x256xf32>
    %27 = arith.divf %25, %26 : vector<32x256xf32>
    %28 = vector.extract_strided_slice %17 {offsets = [32, 0], sizes = [32, 256], strides = [1, 1]} : vector<96x256xf32> to vector<32x256xf32>
    %29 = vector.extract_strided_slice %19 {offsets = [32, 0], sizes = [32, 256], strides = [1, 1]} : vector<64x256xf32> to vector<32x256xf32>
    %30 = arith.addf %28, %29 : vector<32x256xf32>
    %31 = arith.negf %30 : vector<32x256xf32>
    %32 = math.exp %31 : vector<32x256xf32>
    %cst_20 = arith.constant 1.000000e+00 : f32
    %33 = vector.broadcast %cst_20 : f32 to vector<32x256xf32>
    %34 = arith.addf %33, %32 : vector<32x256xf32>
    %35 = arith.divf %33, %34 : vector<32x256xf32>
    %36 = arith.mulf %3, %35 : vector<32x256xf32>
    %37 = arith.truncf %36 : vector<32x256xf32> to vector<32x256xbf16>
    %38 = vector.extract_strided_slice %17 {offsets = [64, 0], sizes = [32, 256], strides = [1, 1]} : vector<96x256xf32> to vector<32x256xf32>
    %c0_21 = arith.constant 0 : index
    %c0_22 = arith.constant 0 : index
    %39 = vector.load %arg7[%c0_21, %c0_22] : memref<32x32xbf16, #tpu.memory_space<vmem>>, vector<32x32xbf16>
    %cst_23 = arith.constant dense<0.000000e+00> : vector<32x256xf32>
    %40 = tpu.matmul %39, %37, %cst_23 {dimension_numbers = #tpu.dot_dimension_numbers<[1], [0], [0], [1], [0, 0, 1, 1], [], []>} : vector<32x32xbf16>, vector<32x256xbf16>, vector<32x256xf32> -> vector<32x256xf32>
    %41 = arith.addf %38, %40 : vector<32x256xf32>
    %42 = math.tanh %41 : vector<32x256xf32>
    %cst_24 = arith.constant 1.000000e+00 : f32
    %43 = vector.broadcast %cst_24 : f32 to vector<32x256xf32>
    %44 = arith.subf %43, %27 : vector<32x256xf32>
    %45 = arith.mulf %3, %44 : vector<32x256xf32>
    %46 = arith.mulf %42, %27 : vector<32x256xf32>
    %47 = arith.addf %45, %46 : vector<32x256xf32>
    %c0_25 = arith.constant 0 : index
    %c0_26 = arith.constant 0 : index
    %c0_27 = arith.constant 0 : index
    %48 = vector.load %arg9[%c0_25, %c0_26, %c0_27] : memref<1x32x256xf32, #tpu.memory_space<vmem>>, vector<1x32x256xf32>
    %49 = vector.shape_cast %48 : vector<1x32x256xf32> to vector<32x256xf32>
    %50 = vector.shape_cast %47 : vector<32x256xf32> to vector<1x32x256xf32>
    tpu.vector_store %arg9[%c0_25, %c0_26, %c0_27], %50 {strides = array<i32>} : memref<1x32x256xf32, #tpu.memory_space<vmem>>, vector<1x32x256xf32>,
    %cst_28 = arith.constant 0.000000e+00 : f32
    %51 = vector.broadcast %cst_28 : f32 to vector<32x256xf32>
    %52 = arith.maximumf %47, %51 : vector<32x256xf32>
    %53 = arith.truncf %52 : vector<32x256xf32> to vector<32x256xbf16>
    %c0_29 = arith.constant 0 : index
    %c0_30 = arith.constant 0 : index
    %c0_31 = arith.constant 0 : index
    %54 = vector.load %arg10[%c0_29, %c0_30, %c0_31] : memref<1x32x256xbf16, #tpu.memory_space<vmem>>, vector<1x32x256xbf16>
    %55 = vector.shape_cast %54 : vector<1x32x256xbf16> to vector<32x256xbf16>
    %56 = vector.shape_cast %53 : vector<32x256xbf16> to vector<1x32x256xbf16>
    tpu.vector_store %arg10[%c0_29, %c0_30, %c0_31], %56 {strides = array<i32>} : memref<1x32x256xbf16, #tpu.memory_space<vmem>>, vector<1x32x256xbf16>,
    return
  }
  func.func @transform_0(%arg0: i32) -> (i32, i32, i32) {
    %c0_i32 = arith.constant 0 : i32
    %c0_i32_0 = arith.constant 0 : i32
    %c0_i32_1 = arith.constant 0 : i32
    return %arg0, %c0_i32, %c0_i32_0 : i32, i32, i32
  }
  func.func @transform_1(%arg0: i32) -> (i32, i32, i32, i32) {
    %c2_i32 = arith.constant 2 : i32
    %c0_i32 = arith.constant 0 : i32
    %c0_i32_0 = arith.constant 0 : i32
    %c0_i32_1 = arith.constant 0 : i32
    return %c2_i32, %arg0, %c0_i32, %c0_i32_0 : i32, i32, i32, i32
  }
  func.func @transform_2(%arg0: i32) -> (i32, i32) {
    %c0_i32 = arith.constant 0 : i32
    %c0_i32_0 = arith.constant 0 : i32
    %c0_i32_1 = arith.constant 0 : i32
    return %c0_i32, %c0_i32_0 : i32, i32
  }
  func.func @transform_3(%arg0: i32) -> (i32, i32) {
    %c0_i32 = arith.constant 0 : i32
    %c0_i32_0 = arith.constant 0 : i32
    %c0_i32_1 = arith.constant 0 : i32
    return %c0_i32, %c0_i32_0 : i32, i32
  }
  func.func @transform_4(%arg0: i32) -> (i32, i32) {
    %c0_i32 = arith.constant 0 : i32
    %c0_i32_0 = arith.constant 0 : i32
    %c0_i32_1 = arith.constant 0 : i32
    return %c0_i32, %c0_i32_0 : i32, i32
  }
  func.func @transform_5(%arg0: i32) -> (i32, i32) {
    %c0_i32 = arith.constant 0 : i32
    %c0_i32_0 = arith.constant 0 : i32
    %c0_i32_1 = arith.constant 0 : i32
    return %c0_i32, %c0_i32_0 : i32, i32
  }
  func.func @transform_6(%arg0: i32) -> (i32, i32) {
    %c0_i32 = arith.constant 0 : i32
    %c0_i32_0 = arith.constant 0 : i32
    %c0_i32_1 = arith.constant 0 : i32
    return %c0_i32, %c0_i32_0 : i32, i32
  }
  func.func @transform_7(%arg0: i32) -> (i32, i32) {
    %c0_i32 = arith.constant 0 : i32
    %c0_i32_0 = arith.constant 0 : i32
    %c0_i32_1 = arith.constant 0 : i32
    return %c0_i32, %c0_i32_0 : i32, i32
  }
  func.func @transform_8(%arg0: i32) -> (i32, i32, i32) {
    %c0_i32 = arith.constant 0 : i32
    %c0_i32_0 = arith.constant 0 : i32
    %c0_i32_1 = arith.constant 0 : i32
    return %arg0, %c0_i32, %c0_i32_0 : i32, i32, i32
  }
  func.func @transform_9(%arg0: i32) -> (i32, i32, i32) {
    %c0_i32 = arith.constant 0 : i32
    %c0_i32_0 = arith.constant 0 : i32
    %c0_i32_1 = arith.constant 0 : i32
    return %arg0, %c0_i32, %c0_i32_0 : i32, i32, i32
  }
}

module attributes {stable_mosaic.version = 11 : i64} {
  func.func @_final_conv_kernel(%arg0: i32, %arg1: memref<1x288x256xbf16, #tpu.memory_space<vmem>>, %arg2: memref<2x288xbf16, #tpu.memory_space<vmem>>, %arg3: memref<2x1xf32, #tpu.memory_space<vmem>>, %arg4: memref<1x2x256xf32, #tpu.memory_space<vmem>>) attributes {dimension_semantics = [#tpu.dimension_semantics<parallel>], iteration_bounds = array<i64: 2>, scalar_prefetch = 0 : i64, scratch_operands = 0 : i64, tpu.core_type = #tpu.core_type<tc>, window_params = [{transform_indices = @transform_0, window_bounds = array<i64: 1, 288, 256>}, {pipeline_mode = #tpu.pipeline_mode<synchronous>, transform_indices = @transform_1, window_bounds = array<i64: 2, 288>}, {pipeline_mode = #tpu.pipeline_mode<synchronous>, transform_indices = @transform_2, window_bounds = array<i64: 2, 1>}, {transform_indices = @transform_3, window_bounds = array<i64: 1, 2, 256>}]} {
    %c0 = arith.constant 0 : index
    %c0_0 = arith.constant 0 : index
    %0 = vector.load %arg2[%c0, %c0_0] : memref<2x288xbf16, #tpu.memory_space<vmem>>, vector<2x288xbf16>
    %c0_1 = arith.constant 0 : index
    %c0_2 = arith.constant 0 : index
    %c0_3 = arith.constant 0 : index
    %1 = vector.load %arg1[%c0_1, %c0_2, %c0_3] : memref<1x288x256xbf16, #tpu.memory_space<vmem>>, vector<1x288x256xbf16>
    %2 = vector.shape_cast %1 : vector<1x288x256xbf16> to vector<288x256xbf16>
    %cst = arith.constant dense<0.000000e+00> : vector<2x256xf32>
    %3 = tpu.matmul %0, %2, %cst {dimension_numbers = #tpu.dot_dimension_numbers<[1], [0], [0], [1], [0, 0, 1, 1], [], []>} : vector<2x288xbf16>, vector<288x256xbf16>, vector<2x256xf32> -> vector<2x256xf32>
    %c0_4 = arith.constant 0 : index
    %c0_5 = arith.constant 0 : index
    %4 = vector.load %arg3[%c0_4, %c0_5] : memref<2x1xf32, #tpu.memory_space<vmem>>, vector<2x1xf32>
    %5 = vector.broadcast %4 : vector<2x1xf32> to vector<2x256xf32>
    %6 = arith.addf %3, %5 : vector<2x256xf32>
    %c0_6 = arith.constant 0 : index
    %c0_7 = arith.constant 0 : index
    %c0_8 = arith.constant 0 : index
    %7 = vector.load %arg4[%c0_6, %c0_7, %c0_8] : memref<1x2x256xf32, #tpu.memory_space<vmem>>, vector<1x2x256xf32>
    %8 = vector.shape_cast %7 : vector<1x2x256xf32> to vector<2x256xf32>
    %9 = vector.shape_cast %6 : vector<2x256xf32> to vector<1x2x256xf32>
    tpu.vector_store %arg4[%c0_6, %c0_7, %c0_8], %9 {strides = array<i32>} : memref<1x2x256xf32, #tpu.memory_space<vmem>>, vector<1x2x256xf32>,
    return
  }
  func.func @transform_0(%arg0: i32) -> (i32, i32, i32) {
    %c0_i32 = arith.constant 0 : i32
    %c0_i32_0 = arith.constant 0 : i32
    %c0_i32_1 = arith.constant 0 : i32
    return %arg0, %c0_i32, %c0_i32_0 : i32, i32, i32
  }
  func.func @transform_1(%arg0: i32) -> (i32, i32) {
    %c0_i32 = arith.constant 0 : i32
    %c0_i32_0 = arith.constant 0 : i32
    %c0_i32_1 = arith.constant 0 : i32
    return %c0_i32, %c0_i32_0 : i32, i32
  }
  func.func @transform_2(%arg0: i32) -> (i32, i32) {
    %c0_i32 = arith.constant 0 : i32
    %c0_i32_0 = arith.constant 0 : i32
    %c0_i32_1 = arith.constant 0 : i32
    return %c0_i32, %c0_i32_0 : i32, i32
  }
  func.func @transform_3(%arg0: i32) -> (i32, i32, i32) {
    %c0_i32 = arith.constant 0 : i32
    %c0_i32_0 = arith.constant 0 : i32
    %c0_i32_1 = arith.constant 0 : i32
    return %arg0, %c0_i32, %c0_i32_0 : i32, i32, i32
  }
}

module attributes {stable_mosaic.version = 11 : i64} {
  func.func @_expand_update_kernel(%arg0: i32, %arg1: memref<1x2x16x16xf32, #tpu.memory_space<vmem>>, %arg2: memref<1x4x16x16xf32, #tpu.memory_space<vmem>>, %arg3: memref<1x4x16x16xf32, #tpu.memory_space<vmem>>, %arg4: memref<1x4x16x16xf32, #tpu.memory_space<vmem>>, %arg5: memref<1x4x16x16xf32, #tpu.memory_space<vmem>>, %arg6: memref<1x4x16x16xf32, #tpu.memory_space<vmem>>, %arg7: memref<1x4x16x16xf32, #tpu.memory_space<vmem>>, %arg8: memref<1x16x16xf32, #tpu.memory_space<vmem>>, %arg9: memref<16x16xf32, #tpu.memory_space<vmem>>, %arg10: memref<16x16xf32, #tpu.memory_space<vmem>>, %arg11: memref<16x16xf32, #tpu.memory_space<vmem>>, %arg12: memref<16x16xf32, #tpu.memory_space<vmem>>, %arg13: memref<1xf32, #tpu.memory_space<smem>>, %arg14: memref<1x4x16x16xf32, #tpu.memory_space<vmem>>, %arg15: memref<1x4x16x16xf32, #tpu.memory_space<vmem>>) attributes {dimension_semantics = [#tpu.dimension_semantics<parallel>], iteration_bounds = array<i64: 2>, scalar_prefetch = 0 : i64, scratch_operands = 0 : i64, tpu.core_type = #tpu.core_type<tc>, window_params = [{transform_indices = @transform_0, window_bounds = array<i64: 1, 2, 16, 16>}, {transform_indices = @transform_1, window_bounds = array<i64: 1, 4, 16, 16>}, {transform_indices = @transform_2, window_bounds = array<i64: 1, 4, 16, 16>}, {transform_indices = @transform_3, window_bounds = array<i64: 1, 4, 16, 16>}, {transform_indices = @transform_4, window_bounds = array<i64: 1, 4, 16, 16>}, {transform_indices = @transform_5, window_bounds = array<i64: 1, 4, 16, 16>}, {transform_indices = @transform_6, window_bounds = array<i64: 1, 4, 16, 16>}, {transform_indices = @transform_7, window_bounds = array<i64: 1, 16, 16>}, {pipeline_mode = #tpu.pipeline_mode<synchronous>, transform_indices = @transform_8, window_bounds = array<i64: 16, 16>}, {pipeline_mode = #tpu.pipeline_mode<synchronous>, transform_indices = @transform_9, window_bounds = array<i64: 16, 16>}, {pipeline_mode = #tpu.pipeline_mode<synchronous>, transform_indices = @transform_10, window_bounds = array<i64: 16, 16>}, {pipeline_mode = #tpu.pipeline_mode<synchronous>, transform_indices = @transform_11, window_bounds = array<i64: 16, 16>}, {transform_indices = @transform_12, window_bounds = array<i64: 1>}, {transform_indices = @transform_13, window_bounds = array<i64: 1, 4, 16, 16>}, {transform_indices = @transform_14, window_bounds = array<i64: 1, 4, 16, 16>}]} {
    %c0 = arith.constant 0 : index
    %c0_0 = arith.constant 0 : index
    %c0_1 = arith.constant 0 : index
    %c0_2 = arith.constant 0 : index
    %0 = vector.load %arg1[%c0, %c0_0, %c0_1, %c0_2] : memref<1x2x16x16xf32, #tpu.memory_space<vmem>>, vector<1x1x16x16xf32>
    %1 = vector.shape_cast %0 : vector<1x1x16x16xf32> to vector<16x16xf32>
    %c0_3 = arith.constant 0 : index
    %c1 = arith.constant 1 : index
    %c0_4 = arith.constant 0 : index
    %c0_5 = arith.constant 0 : index
    %2 = vector.load %arg1[%c0_3, %c1, %c0_4, %c0_5] : memref<1x2x16x16xf32, #tpu.memory_space<vmem>>, vector<1x1x16x16xf32>
    %3 = vector.shape_cast %2 : vector<1x1x16x16xf32> to vector<16x16xf32>
    %c0_6 = arith.constant 0 : index
    %c0_7 = arith.constant 0 : index
    %c0_8 = arith.constant 0 : index
    %c0_9 = arith.constant 0 : index
    %4 = vector.load %arg2[%c0_6, %c0_7, %c0_8, %c0_9] : memref<1x4x16x16xf32, #tpu.memory_space<vmem>>, vector<1x4x16x16xf32>
    %5 = vector.shape_cast %4 : vector<1x4x16x16xf32> to vector<4x16x16xf32>
    %c0_10 = arith.constant 0 : index
    %c0_11 = arith.constant 0 : index
    %c0_12 = arith.constant 0 : index
    %c0_13 = arith.constant 0 : index
    %6 = vector.load %arg3[%c0_10, %c0_11, %c0_12, %c0_13] : memref<1x4x16x16xf32, #tpu.memory_space<vmem>>, vector<1x4x16x16xf32>
    %7 = vector.shape_cast %6 : vector<1x4x16x16xf32> to vector<4x16x16xf32>
    %8 = vector.shape_cast %1 : vector<16x16xf32> to vector<1x16x16xf32>
    %9 = vector.broadcast %8 : vector<1x16x16xf32> to vector<4x16x16xf32>
    %10 = arith.mulf %9, %5 : vector<4x16x16xf32>
    %11 = vector.shape_cast %3 : vector<16x16xf32> to vector<1x16x16xf32>
    %12 = vector.broadcast %11 : vector<1x16x16xf32> to vector<4x16x16xf32>
    %13 = arith.mulf %12, %7 : vector<4x16x16xf32>
    %14 = arith.subf %10, %13 : vector<4x16x16xf32>
    %15 = vector.shape_cast %14 : vector<4x16x16xf32> to vector<64x16xf32>
    %16 = vector.shape_cast %1 : vector<16x16xf32> to vector<1x16x16xf32>
    %17 = vector.broadcast %16 : vector<1x16x16xf32> to vector<4x16x16xf32>
    %18 = arith.mulf %17, %7 : vector<4x16x16xf32>
    %19 = vector.shape_cast %3 : vector<16x16xf32> to vector<1x16x16xf32>
    %20 = vector.broadcast %19 : vector<1x16x16xf32> to vector<4x16x16xf32>
    %21 = arith.mulf %20, %5 : vector<4x16x16xf32>
    %22 = arith.addf %18, %21 : vector<4x16x16xf32>
    %23 = vector.shape_cast %22 : vector<4x16x16xf32> to vector<64x16xf32>
    %c0_14 = arith.constant 0 : index
    %c0_15 = arith.constant 0 : index
    %24 = vector.load %arg9[%c0_14, %c0_15] : memref<16x16xf32, #tpu.memory_space<vmem>>, vector<16x16xf32>
    %c0_16 = arith.constant 0 : index
    %c0_17 = arith.constant 0 : index
    %25 = vector.load %arg10[%c0_16, %c0_17] : memref<16x16xf32, #tpu.memory_space<vmem>>, vector<16x16xf32>
    %c0_18 = arith.constant 0 : index
    %c0_19 = arith.constant 0 : index
    %26 = vector.load %arg11[%c0_18, %c0_19] : memref<16x16xf32, #tpu.memory_space<vmem>>, vector<16x16xf32>
    %c0_20 = arith.constant 0 : index
    %c0_21 = arith.constant 0 : index
    %27 = vector.load %arg12[%c0_20, %c0_21] : memref<16x16xf32, #tpu.memory_space<vmem>>, vector<16x16xf32>
    %cst = arith.constant dense<0.000000e+00> : vector<64x16xf32>
    %28 = tpu.matmul %15, %26, %cst {dimension_numbers = #tpu.dot_dimension_numbers<[1], [0], [0], [1], [0, 0, 1, 1], [], []>} : vector<64x16xf32>, vector<16x16xf32>, vector<64x16xf32> -> vector<64x16xf32>
    %cst_22 = arith.constant dense<0.000000e+00> : vector<64x16xf32>
    %29 = tpu.matmul %23, %27, %cst_22 {dimension_numbers = #tpu.dot_dimension_numbers<[1], [0], [0], [1], [0, 0, 1, 1], [], []>} : vector<64x16xf32>, vector<16x16xf32>, vector<64x16xf32> -> vector<64x16xf32>
    %30 = arith.subf %28, %29 : vector<64x16xf32>
    %cst_23 = arith.constant dense<0.000000e+00> : vector<64x16xf32>
    %31 = tpu.matmul %15, %27, %cst_23 {dimension_numbers = #tpu.dot_dimension_numbers<[1], [0], [0], [1], [0, 0, 1, 1], [], []>} : vector<64x16xf32>, vector<16x16xf32>, vector<64x16xf32> -> vector<64x16xf32>
    %cst_24 = arith.constant dense<0.000000e+00> : vector<64x16xf32>
    %32 = tpu.matmul %23, %26, %cst_24 {dimension_numbers = #tpu.dot_dimension_numbers<[1], [0], [0], [1], [0, 0, 1, 1], [], []>} : vector<64x16xf32>, vector<16x16xf32>, vector<64x16xf32> -> vector<64x16xf32>
    %33 = arith.addf %31, %32 : vector<64x16xf32>
    %34 = vector.extract_strided_slice %30 {offsets = [0, 0], sizes = [16, 16], strides = [1, 1]} : vector<64x16xf32> to vector<16x16xf32>
    %35 = tpu.transpose %34, [1, 0] : vector<16x16xf32> -> vector<16x16xf32>
    %36 = vector.extract_strided_slice %30 {offsets = [16, 0], sizes = [16, 16], strides = [1, 1]} : vector<64x16xf32> to vector<16x16xf32>
    %37 = tpu.transpose %36, [1, 0] : vector<16x16xf32> -> vector<16x16xf32>
    %38 = vector.extract_strided_slice %30 {offsets = [32, 0], sizes = [16, 16], strides = [1, 1]} : vector<64x16xf32> to vector<16x16xf32>
    %39 = tpu.transpose %38, [1, 0] : vector<16x16xf32> -> vector<16x16xf32>
    %40 = vector.extract_strided_slice %30 {offsets = [48, 0], sizes = [16, 16], strides = [1, 1]} : vector<64x16xf32> to vector<16x16xf32>
    %41 = tpu.transpose %40, [1, 0] : vector<16x16xf32> -> vector<16x16xf32>
    %42 = tpu.concatenate %35, %37, %39, %41 in 0 : vector<16x16xf32>, vector<16x16xf32>, vector<16x16xf32>, vector<16x16xf32> -> vector<64x16xf32>
    %43 = vector.extract_strided_slice %33 {offsets = [0, 0], sizes = [16, 16], strides = [1, 1]} : vector<64x16xf32> to vector<16x16xf32>
    %44 = tpu.transpose %43, [1, 0] : vector<16x16xf32> -> vector<16x16xf32>
    %45 = vector.extract_strided_slice %33 {offsets = [16, 0], sizes = [16, 16], strides = [1, 1]} : vector<64x16xf32> to vector<16x16xf32>
    %46 = tpu.transpose %45, [1, 0] : vector<16x16xf32> -> vector<16x16xf32>
    %47 = vector.extract_strided_slice %33 {offsets = [32, 0], sizes = [16, 16], strides = [1, 1]} : vector<64x16xf32> to vector<16x16xf32>
    %48 = tpu.transpose %47, [1, 0] : vector<16x16xf32> -> vector<16x16xf32>
    %49 = vector.extract_strided_slice %33 {offsets = [48, 0], sizes = [16, 16], strides = [1, 1]} : vector<64x16xf32> to vector<16x16xf32>
    %50 = tpu.transpose %49, [1, 0] : vector<16x16xf32> -> vector<16x16xf32>
    %51 = tpu.concatenate %44, %46, %48, %50 in 0 : vector<16x16xf32>, vector<16x16xf32>, vector<16x16xf32>, vector<16x16xf32> -> vector<64x16xf32>
    %cst_25 = arith.constant dense<0.000000e+00> : vector<64x16xf32>
    %52 = tpu.matmul %42, %24, %cst_25 {dimension_numbers = #tpu.dot_dimension_numbers<[1], [0], [0], [1], [0, 0, 1, 1], [], []>} : vector<64x16xf32>, vector<16x16xf32>, vector<64x16xf32> -> vector<64x16xf32>
    %cst_26 = arith.constant dense<0.000000e+00> : vector<64x16xf32>
    %53 = tpu.matmul %51, %25, %cst_26 {dimension_numbers = #tpu.dot_dimension_numbers<[1], [0], [0], [1], [0, 0, 1, 1], [], []>} : vector<64x16xf32>, vector<16x16xf32>, vector<64x16xf32> -> vector<64x16xf32>
    %54 = arith.subf %52, %53 : vector<64x16xf32>
    %cst_27 = arith.constant dense<0.000000e+00> : vector<64x16xf32>
    %55 = tpu.matmul %42, %25, %cst_27 {dimension_numbers = #tpu.dot_dimension_numbers<[1], [0], [0], [1], [0, 0, 1, 1], [], []>} : vector<64x16xf32>, vector<16x16xf32>, vector<64x16xf32> -> vector<64x16xf32>
    %cst_28 = arith.constant dense<0.000000e+00> : vector<64x16xf32>
    %56 = tpu.matmul %51, %24, %cst_28 {dimension_numbers = #tpu.dot_dimension_numbers<[1], [0], [0], [1], [0, 0, 1, 1], [], []>} : vector<64x16xf32>, vector<16x16xf32>, vector<64x16xf32> -> vector<64x16xf32>
    %57 = arith.addf %55, %56 : vector<64x16xf32>
    %58 = vector.extract_strided_slice %54 {offsets = [0, 0], sizes = [16, 16], strides = [1, 1]} : vector<64x16xf32> to vector<16x16xf32>
    %59 = tpu.transpose %58, [1, 0] : vector<16x16xf32> -> vector<16x16xf32>
    %60 = vector.extract_strided_slice %54 {offsets = [16, 0], sizes = [16, 16], strides = [1, 1]} : vector<64x16xf32> to vector<16x16xf32>
    %61 = tpu.transpose %60, [1, 0] : vector<16x16xf32> -> vector<16x16xf32>
    %62 = vector.extract_strided_slice %54 {offsets = [32, 0], sizes = [16, 16], strides = [1, 1]} : vector<64x16xf32> to vector<16x16xf32>
    %63 = tpu.transpose %62, [1, 0] : vector<16x16xf32> -> vector<16x16xf32>
    %64 = vector.extract_strided_slice %54 {offsets = [48, 0], sizes = [16, 16], strides = [1, 1]} : vector<64x16xf32> to vector<16x16xf32>
    %65 = tpu.transpose %64, [1, 0] : vector<16x16xf32> -> vector<16x16xf32>
    %66 = tpu.concatenate %59, %61, %63, %65 in 0 : vector<16x16xf32>, vector<16x16xf32>, vector<16x16xf32>, vector<16x16xf32> -> vector<64x16xf32>
    %67 = vector.extract_strided_slice %57 {offsets = [0, 0], sizes = [16, 16], strides = [1, 1]} : vector<64x16xf32> to vector<16x16xf32>
    %68 = tpu.transpose %67, [1, 0] : vector<16x16xf32> -> vector<16x16xf32>
    %69 = vector.extract_strided_slice %57 {offsets = [16, 0], sizes = [16, 16], strides = [1, 1]} : vector<64x16xf32> to vector<16x16xf32>
    %70 = tpu.transpose %69, [1, 0] : vector<16x16xf32> -> vector<16x16xf32>
    %71 = vector.extract_strided_slice %57 {offsets = [32, 0], sizes = [16, 16], strides = [1, 1]} : vector<64x16xf32> to vector<16x16xf32>
    %72 = tpu.transpose %71, [1, 0] : vector<16x16xf32> -> vector<16x16xf32>
    %73 = vector.extract_strided_slice %57 {offsets = [48, 0], sizes = [16, 16], strides = [1, 1]} : vector<64x16xf32> to vector<16x16xf32>
    %74 = tpu.transpose %73, [1, 0] : vector<16x16xf32> -> vector<16x16xf32>
    %75 = tpu.concatenate %68, %70, %72, %74 in 0 : vector<16x16xf32>, vector<16x16xf32>, vector<16x16xf32>, vector<16x16xf32> -> vector<64x16xf32>
    %76 = vector.shape_cast %66 : vector<64x16xf32> to vector<4x16x16xf32>
    %77 = vector.shape_cast %75 : vector<64x16xf32> to vector<4x16x16xf32>
    %c0_29 = arith.constant 0 : index
    %c0_30 = arith.constant 0 : index
    %c0_31 = arith.constant 0 : index
    %c0_32 = arith.constant 0 : index
    %78 = vector.load %arg4[%c0_29, %c0_30, %c0_31, %c0_32] : memref<1x4x16x16xf32, #tpu.memory_space<vmem>>, vector<1x4x16x16xf32>
    %79 = vector.shape_cast %78 : vector<1x4x16x16xf32> to vector<4x16x16xf32>
    %c0_33 = arith.constant 0 : index
    %c0_34 = arith.constant 0 : index
    %c0_35 = arith.constant 0 : index
    %c0_36 = arith.constant 0 : index
    %80 = vector.load %arg5[%c0_33, %c0_34, %c0_35, %c0_36] : memref<1x4x16x16xf32, #tpu.memory_space<vmem>>, vector<1x4x16x16xf32>
    %81 = vector.shape_cast %80 : vector<1x4x16x16xf32> to vector<4x16x16xf32>
    %c0_37 = arith.constant 0 : index
    %c0_38 = arith.constant 0 : index
    %c0_39 = arith.constant 0 : index
    %82 = vector.load %arg8[%c0_37, %c0_38, %c0_39] : memref<1x16x16xf32, #tpu.memory_space<vmem>>, vector<1x16x16xf32>
    %83 = vector.shape_cast %82 : vector<1x16x16xf32> to vector<16x16xf32>
    %84 = vector.shape_cast %83 : vector<16x16xf32> to vector<1x16x16xf32>
    %cst_40 = arith.constant 0.000000e+00 : f32
    %85 = vector.broadcast %cst_40 : f32 to vector<1x16x16xf32>
    %86 = arith.cmpf oeq, %84, %85 : vector<1x16x16xf32>
    %c0_41 = arith.constant 0 : index
    %c0_42 = arith.constant 0 : index
    %c0_43 = arith.constant 0 : index
    %c0_44 = arith.constant 0 : index
    %87 = vector.load %arg6[%c0_41, %c0_42, %c0_43, %c0_44] : memref<1x4x16x16xf32, #tpu.memory_space<vmem>>, vector<1x4x16x16xf32>
    %88 = vector.shape_cast %87 : vector<1x4x16x16xf32> to vector<4x16x16xf32>
    %89 = arith.subf %79, %88 : vector<4x16x16xf32>
    %cst_45 = arith.constant 0.000000e+00 : f32
    %90 = vector.shape_cast %86 : vector<1x16x16xi1> to vector<1x16x16xi1>
    %91 = vector.broadcast %90 : vector<1x16x16xi1> to vector<4x16x16xi1>
    %92 = vector.broadcast %cst_45 : f32 to vector<4x16x16xf32>
    %93 = arith.select %91, %92, %89 : vector<4x16x16xi1>, vector<4x16x16xf32>
    %cst_46 = arith.constant 0.000000e+00 : f32
    %94 = vector.broadcast %cst_46 : f32 to vector<1x16x16xf32>
    %95 = arith.cmpf oeq, %84, %94 : vector<1x16x16xf32>
    %c0_47 = arith.constant 0 : index
    %c0_48 = arith.constant 0 : index
    %c0_49 = arith.constant 0 : index
    %c0_50 = arith.constant 0 : index
    %96 = vector.load %arg7[%c0_47, %c0_48, %c0_49, %c0_50] : memref<1x4x16x16xf32, #tpu.memory_space<vmem>>, vector<1x4x16x16xf32>
    %97 = vector.shape_cast %96 : vector<1x4x16x16xf32> to vector<4x16x16xf32>
    %98 = arith.subf %81, %97 : vector<4x16x16xf32>
    %cst_51 = arith.constant 0.000000e+00 : f32
    %99 = vector.shape_cast %95 : vector<1x16x16xi1> to vector<1x16x16xi1>
    %100 = vector.broadcast %99 : vector<1x16x16xi1> to vector<4x16x16xi1>
    %101 = vector.broadcast %cst_51 : f32 to vector<4x16x16xf32>
    %102 = arith.select %100, %101, %98 : vector<4x16x16xi1>, vector<4x16x16xf32>
    %c0_52 = arith.constant 0 : index
    %103 = memref.load %arg13[%c0_52] : memref<1xf32, #tpu.memory_space<smem>>
    %104 = vector.broadcast %103 : f32 to vector<4x16x16xf32>
    %105 = arith.mulf %104, %93 : vector<4x16x16xf32>
    %106 = arith.subf %79, %105 : vector<4x16x16xf32>
    %107 = arith.addf %106, %76 : vector<4x16x16xf32>
    %c0_53 = arith.constant 0 : index
    %c0_54 = arith.constant 0 : index
    %c0_55 = arith.constant 0 : index
    %c0_56 = arith.constant 0 : index
    %108 = vector.load %arg14[%c0_53, %c0_54, %c0_55, %c0_56] : memref<1x4x16x16xf32, #tpu.memory_space<vmem>>, vector<1x4x16x16xf32>
    %109 = vector.shape_cast %108 : vector<1x4x16x16xf32> to vector<4x16x16xf32>
    %110 = vector.shape_cast %107 : vector<4x16x16xf32> to vector<1x4x16x16xf32>
    tpu.vector_store %arg14[%c0_53, %c0_54, %c0_55, %c0_56], %110 {strides = array<i32>} : memref<1x4x16x16xf32, #tpu.memory_space<vmem>>, vector<1x4x16x16xf32>,
    %111 = vector.broadcast %103 : f32 to vector<4x16x16xf32>
    %112 = arith.mulf %111, %102 : vector<4x16x16xf32>
    %113 = arith.subf %81, %112 : vector<4x16x16xf32>
    %114 = arith.addf %113, %77 : vector<4x16x16xf32>
    %c0_57 = arith.constant 0 : index
    %c0_58 = arith.constant 0 : index
    %c0_59 = arith.constant 0 : index
    %c0_60 = arith.constant 0 : index
    %115 = vector.load %arg15[%c0_57, %c0_58, %c0_59, %c0_60] : memref<1x4x16x16xf32, #tpu.memory_space<vmem>>, vector<1x4x16x16xf32>
    %116 = vector.shape_cast %115 : vector<1x4x16x16xf32> to vector<4x16x16xf32>
    %117 = vector.shape_cast %114 : vector<4x16x16xf32> to vector<1x4x16x16xf32>
    tpu.vector_store %arg15[%c0_57, %c0_58, %c0_59, %c0_60], %117 {strides = array<i32>} : memref<1x4x16x16xf32, #tpu.memory_space<vmem>>, vector<1x4x16x16xf32>,
    return
  }
  func.func @transform_0(%arg0: i32) -> (i32, i32, i32, i32) {
    %c0_i32 = arith.constant 0 : i32
    %c0_i32_0 = arith.constant 0 : i32
    %c0_i32_1 = arith.constant 0 : i32
    %c0_i32_2 = arith.constant 0 : i32
    return %arg0, %c0_i32, %c0_i32_0, %c0_i32_1 : i32, i32, i32, i32
  }
  func.func @transform_1(%arg0: i32) -> (i32, i32, i32, i32) {
    %c0_i32 = arith.constant 0 : i32
    %c0_i32_0 = arith.constant 0 : i32
    %c0_i32_1 = arith.constant 0 : i32
    %c0_i32_2 = arith.constant 0 : i32
    return %arg0, %c0_i32, %c0_i32_0, %c0_i32_1 : i32, i32, i32, i32
  }
  func.func @transform_2(%arg0: i32) -> (i32, i32, i32, i32) {
    %c0_i32 = arith.constant 0 : i32
    %c0_i32_0 = arith.constant 0 : i32
    %c0_i32_1 = arith.constant 0 : i32
    %c0_i32_2 = arith.constant 0 : i32
    return %arg0, %c0_i32, %c0_i32_0, %c0_i32_1 : i32, i32, i32, i32
  }
  func.func @transform_3(%arg0: i32) -> (i32, i32, i32, i32) {
    %c0_i32 = arith.constant 0 : i32
    %c0_i32_0 = arith.constant 0 : i32
    %c0_i32_1 = arith.constant 0 : i32
    %c0_i32_2 = arith.constant 0 : i32
    return %arg0, %c0_i32, %c0_i32_0, %c0_i32_1 : i32, i32, i32, i32
  }
  func.func @transform_4(%arg0: i32) -> (i32, i32, i32, i32) {
    %c0_i32 = arith.constant 0 : i32
    %c0_i32_0 = arith.constant 0 : i32
    %c0_i32_1 = arith.constant 0 : i32
    %c0_i32_2 = arith.constant 0 : i32
    return %arg0, %c0_i32, %c0_i32_0, %c0_i32_1 : i32, i32, i32, i32
  }
  func.func @transform_5(%arg0: i32) -> (i32, i32, i32, i32) {
    %c0_i32 = arith.constant 0 : i32
    %c0_i32_0 = arith.constant 0 : i32
    %c0_i32_1 = arith.constant 0 : i32
    %c0_i32_2 = arith.constant 0 : i32
    return %arg0, %c0_i32, %c0_i32_0, %c0_i32_1 : i32, i32, i32, i32
  }
  func.func @transform_6(%arg0: i32) -> (i32, i32, i32, i32) {
    %c0_i32 = arith.constant 0 : i32
    %c0_i32_0 = arith.constant 0 : i32
    %c0_i32_1 = arith.constant 0 : i32
    %c0_i32_2 = arith.constant 0 : i32
    return %arg0, %c0_i32, %c0_i32_0, %c0_i32_1 : i32, i32, i32, i32
  }
  func.func @transform_7(%arg0: i32) -> (i32, i32, i32) {
    %c0_i32 = arith.constant 0 : i32
    %c0_i32_0 = arith.constant 0 : i32
    %c0_i32_1 = arith.constant 0 : i32
    return %arg0, %c0_i32, %c0_i32_0 : i32, i32, i32
  }
  func.func @transform_8(%arg0: i32) -> (i32, i32) {
    %c0_i32 = arith.constant 0 : i32
    %c0_i32_0 = arith.constant 0 : i32
    %c0_i32_1 = arith.constant 0 : i32
    return %c0_i32, %c0_i32_0 : i32, i32
  }
  func.func @transform_9(%arg0: i32) -> (i32, i32) {
    %c0_i32 = arith.constant 0 : i32
    %c0_i32_0 = arith.constant 0 : i32
    %c0_i32_1 = arith.constant 0 : i32
    return %c0_i32, %c0_i32_0 : i32, i32
  }
  func.func @transform_10(%arg0: i32) -> (i32, i32) {
    %c0_i32 = arith.constant 0 : i32
    %c0_i32_0 = arith.constant 0 : i32
    %c0_i32_1 = arith.constant 0 : i32
    return %c0_i32, %c0_i32_0 : i32, i32
  }
  func.func @transform_11(%arg0: i32) -> (i32, i32) {
    %c0_i32 = arith.constant 0 : i32
    %c0_i32_0 = arith.constant 0 : i32
    %c0_i32_1 = arith.constant 0 : i32
    return %c0_i32, %c0_i32_0 : i32, i32
  }
  func.func @transform_12(%arg0: i32) -> i32 {
    %c0_i32 = arith.constant 0 : i32
    %c0_i32_0 = arith.constant 0 : i32
    return %c0_i32 : i32
  }
  func.func @transform_13(%arg0: i32) -> (i32, i32, i32, i32) {
    %c0_i32 = arith.constant 0 : i32
    %c0_i32_0 = arith.constant 0 : i32
    %c0_i32_1 = arith.constant 0 : i32
    %c0_i32_2 = arith.constant 0 : i32
    return %arg0, %c0_i32, %c0_i32_0, %c0_i32_1 : i32, i32, i32, i32
  }
  func.func @transform_14(%arg0: i32) -> (i32, i32, i32, i32) {
    %c0_i32 = arith.constant 0 : i32
    %c0_i32_0 = arith.constant 0 : i32
    %c0_i32_1 = arith.constant 0 : i32
    %c0_i32_2 = arith.constant 0 : i32
    return %arg0, %c0_i32, %c0_i32_0, %c0_i32_1 : i32, i32, i32, i32
  }
}

</mosaic_0001>

<bundles_post_ra>
// kernel: recurrent_varnet_block.7
= control target key start
LH: loop header
LB: loop body
LE: loop exit
PB: predicated region body
PF: predicated region fallthrough
CT: control target
= control target key end

     0   :  { %13 = vsyncpa [#allocation3], 0  ;;  %s3003_s0 = inlined_call_operand.vmem [shape: f32[2,4,16,16], index: 0, kind: input, shape index: {}]   ;;  %s3004_s1 = inlined_call_operand.vmem [shape: f32[2,4,16,16], index: 1, kind: input, shape index: {}]   ;;  %s3005_s2 = inlined_call_operand.vmem [shape: f32[2,4,16,16], index: 2, kind: input, shape index: {}]   ;;  %s3006_s3 = inlined_call_operand.vmem [shape: f32[2,4,16,16], index: 3, kind: input, shape index: {}]   ;;  %s3007_s4 = inlined_call_operand.hbm [shape: f32[16,16], index: 4, kind: input, shape index: {}, may-alias: {4,6}]   ;;  %s3008_s5 = inlined_call_operand.hbm [shape: f32[16,16], index: 5, kind: input, shape index: {}, may-alias: {5,7}]   ;;  %s3009_s6 = inlined_call_operand.hbm [shape: f32[16,16], index: 6, kind: input, shape index: {}, may-alias: {4,6}]   ;;  %s3010_s7 = inlined_call_operand.hbm [shape: f32[16,16], index: 7, kind: input, shape index: {}, may-alias: {5,7}]   ;;  %s3011_s8 = inlined_call_operand.vmem [shape: f32[2,2,16,16], index: 8, kind: output, shape index: {}]  }
   0x1   :  { %14 = vsyncpa [#allocation5], 0 }
   0x2   :  { %15 = vsyncpa [#allocation8], 0  ;;  %s2714_s27 = smov 0  }
   0x3 LB: > { %s2720_s28 = sadd.s32 4294967295, %s2661_s27   ;;  %p2129_p0 = scmp.ge.s32.totalorder %s2661_s27, 1  ;;  %s2661_s27 = sphi %s2714_s27, %s21_s27  }
   0x4   : > { %p240_p1 = scmp.lt.s32.totalorder %s2661_s27, 3  ;;  %p3012_p2 = scmp.eq.s32.totalorder %s2720_s28, 0 }
   0x5   : > { %s2663_s30 = smov [#allocation4]   ;;  %s2664_s10 = smov [#allocation2]  }
   0x6   : > { %p2725_p3 = pnand %p2129_p0, %p240_p1  ;;  %s265_s9 = sshll.u32 %s2663_s30, 4  ;;  %s2729_s9 = int_to_ptr.vmem [resolvable:$true] %s265_s9 }
   0x7   : > { %s252_s11 = sshll.u32 %s2664_s10, 4  ;;  %s2665_s13 = smov [#allocation6]   ;;  %s2733_s11 = int_to_ptr.vmem [resolvable:$true] %s252_s11 }
   0x8   : > { %s3014_s29 = scalar_select %p2725_p3, 1, 0 }
   0x9   : > { %p2495_p4 = pneg %p2725_p3  ;;  %s278_s14 = sshll.u32 %s2665_s13, 4  ;;  %s2741_s14 = int_to_ptr.vmem [resolvable:$true] %s278_s14 }
   0xa   : > { %s2666_s15 = smov [#allocation7]   ;;  %s2531_s19 = scalar_lea.hbm %s3008_s5, 256 }
   0xb   : > { %p2737_p5 = pnand %p3012_p2, %p2495_p4  ;;  %s2743_s16 = sshll.u32 %s2666_s15, 4  ;;  %s292_s16 = int_to_ptr.vmem [resolvable:$true] %s2743_s16 }
   0xc   : > { %p2532_p6 = scmp.ne.s32.totalorder %s3008_s5, %s2531_s19  ;;  %p2538_p10 = scmp.lt.u32.totalorder %s2531_s19, %s3008_s5 }
   0xd   : > { %p2753_p7 = pneg %p2737_p5 }
   0xf   : > { %p2534_p8 = pnand %p2753_p7, %p2532_p6 }
  0x11   : > { %p2535_p9 = pneg %p2534_p8 }
  0x13   : > { %p2540_p11 = pnand %p2538_p10, %p2535_p9 }
  0x15   : > { %2543 = shalt.err (!%p2540_p11)
}
  0x16   : > { %s2544_s25 = scalar_lea.vmem %s2729_s9, 256  ;;  %p2552_p1 = scmp.lt.s32.totalorder %s2729_s9, %s2729_s9 }
  0x17   : > { %p2545_p12 = scmp.ne.s32.totalorder %s2729_s9, %s2544_s25  ;;  %p2553_p4 = scmp.lt.s32.totalorder %s2544_s25, %s2544_s25 }
  0x19   : > { %p2547_p13 = pnand %p2545_p12, %p2753_p7  ;;  %p2554_p6 = por %p2553_p4, %p2552_p1 }
  0x1b   : > { %p2548_p0 = pneg %p2547_p13 }
  0x1d   : > { %p2555_p8 = pnand %p2554_p6, %p2548_p0 }
  0x1f   : > { %2558 = shalt.err (!%p2555_p8)
}
  0x20   : > { %s2667_s26 = smov 128   ;;  %s2668_s30 = smov 8  }
  0x21   : > { %2501 = dma.hbm_to_vmem [thread:$0]  (!%p2737_p5), %s3008_s5, 256, %s2729_s9, [#allocation5], %s2667_s26, %s2667_s26, %s2668_s30  }
  0x22   : > { %s2559_s18 = scalar_lea.hbm %s3007_s4, 256 }
  0x23   : > { %p2560_p9 = scmp.ne.s32.totalorder %s3007_s4, %s2559_s18  ;;  %p2566_p12 = scmp.lt.u32.totalorder %s2559_s18, %s3007_s4 }
  0x25   : > { %p2562_p10 = pnand %p2560_p9, %p2753_p7 }
  0x27   : > { %p2563_p11 = pneg %p2562_p10 }
  0x29   : > { %p2568_p13 = pnand %p2566_p12, %p2563_p11 }
  0x2b   : > { %2571 = shalt.err (!%p2568_p13)
}
  0x2c   : > { %s2572_s9 = scalar_lea.vmem %s2733_s11, 256  ;;  %p2580_p6 = scmp.lt.s32.totalorder %s2733_s11, %s2733_s11 }
  0x2d   : > { %p2573_p0 = scmp.ne.s32.totalorder %s2733_s11, %s2572_s9  ;;  %p2581_p8 = scmp.lt.s32.totalorder %s2572_s9, %s2572_s9 }
  0x2f   : > { %p2575_p1 = pnand %p2573_p0, %p2753_p7  ;;  %p2582_p9 = por %p2581_p8, %p2580_p6 }
  0x31   : > { %p2576_p4 = pneg %p2575_p1 }
  0x33   : > { %p2583_p10 = pnand %p2582_p9, %p2576_p4 }
  0x35   : > { %2586 = shalt.err (!%p2583_p10)
}
  0x36   : > { %2498 = dma.hbm_to_vmem [thread:$0]  (!%p2737_p5), %s3007_s4, 256, %s2733_s11, [#allocation3], %s2667_s26, %s2667_s26, %s2668_s30  }
  0x37   : > { %s2587_s15 = scalar_lea.hbm %s3009_s6, 256 }
  0x38   : > { %p2588_p11 = scmp.ne.s32.totalorder %s3009_s6, %s2587_s15  ;;  %p2594_p0 = scmp.lt.u32.totalorder %s2587_s15, %s3009_s6 }
  0x3a   : > { %p2590_p12 = pnand %p2588_p11, %p2753_p7 }
  0x3c   : > { %p2591_p13 = pneg %p2590_p12 }
  0x3e   : > { %p2596_p1 = pnand %p2594_p0, %p2591_p13 }
  0x40   : > { %2599 = shalt.err (!%p2596_p1)
}
  0x41   : > { %s2600_s11 = scalar_lea.vmem %s2741_s14, 256  ;;  %p2608_p9 = scmp.lt.s32.totalorder %s2741_s14, %s2741_s14 }
  0x42   : > { %p2601_p4 = scmp.ne.s32.totalorder %s2741_s14, %s2600_s11  ;;  %p2609_p10 = scmp.lt.s32.totalorder %s2600_s11, %s2600_s11 }
  0x44   : > { %p2603_p6 = pnand %p2601_p4, %p2753_p7  ;;  %p2610_p11 = por %p2609_p10, %p2608_p9 }
  0x46   : > { %p2604_p8 = pneg %p2603_p6 }
  0x48   : > { %p2611_p12 = pnand %p2610_p11, %p2604_p8 }
  0x4a   : > { %2614 = shalt.err (!%p2611_p12)
}
  0x4b   : > { %2504 = dma.hbm_to_vmem [thread:$0]  (!%p2737_p5), %s3009_s6, 256, %s2741_s14, [#allocation5], %s2667_s26, %s2667_s26, %s2668_s30  }
  0x4c   : > { %s2615_s25 = scalar_lea.hbm %s3010_s7, 256 }
  0x4d   : > { %p2616_p13 = scmp.ne.s32.totalorder %s3010_s7, %s2615_s25  ;;  %p2622_p4 = scmp.lt.u32.totalorder %s2615_s25, %s3010_s7 }
  0x4f   : > { %p2618_p0 = pnand %p2616_p13, %p2753_p7 }
  0x51   : > { %p2619_p1 = pneg %p2618_p0 }
  0x53   : > { %p2624_p6 = pnand %p2622_p4, %p2619_p1 }
  0x55   : > { %2627 = shalt.err (!%p2624_p6)
}
  0x56   : > { %s2628_s18 = scalar_lea.vmem %s292_s16, 256  ;;  %p2636_p11 = scmp.lt.s32.totalorder %s292_s16, %s292_s16 }
  0x57   : > { %p2629_p8 = scmp.ne.s32.totalorder %s292_s16, %s2628_s18  ;;  %p2637_p12 = scmp.lt.s32.totalorder %s2628_s18, %s2628_s18 }
  0x59   : > { %p2631_p9 = pnand %p2629_p8, %p2753_p7  ;;  %p2638_p2 = por %p2637_p12, %p2636_p11 }
  0x5b   : > { %p2632_p10 = pneg %p2631_p9 }
  0x5d   : > { %p2639_p3 = pnand %p2638_p2, %p2632_p10 }
  0x5f   : > { %2642 = shalt.err (!%p2639_p3)
}
  0x60   : > { %2507 = dma.hbm_to_vmem [thread:$0]  (!%p2737_p5), %s3010_s7, 256, %s292_s16, [#allocation8], %s2667_s26, %s2667_s26, %s2668_s30  }
  0x61   : > { %p3017_p13 = scmp.ne.s32.totalorder %s3014_s29, 0 }
  0x62   : > { %p3018_p7 = scmp.eq.s32.totalorder (!%p3017_p13), %s2720_s28, 0 }
  0x63   : > { %339 = sbr.rel (%p3017_p13) target bundleno = 893 (0x37d), region = 52 }
  0x6a   : > { %2648 = dma.done.wait (%p3018_p7), [#allocation3], 256   ;;  %p3019_p0 = pmov %p3018_p7 }
  0x6c   : > { %2650 = vsyncadd (%p3019_p0), [#allocation3], 4294967040  ;;  %p3020_p2 = pmov %p3019_p0 }
  0x6d   : > { %p3021_p3 = pmov %p3019_p0 }
  0x6e   : > { %2652 = dma.done.wait (%p3020_p2), [#allocation5], 512  }
  0x6f   : > { %2654 = vsyncadd (%p3021_p3), [#allocation5], 4294966784  ;;  %p3022_p1 = pmov %p3019_p0 }
  0x70   : > { %p3023_p5 = pmov %p3019_p0 }
  0x71   : > { %2656 = dma.done.wait (%p3022_p1), [#allocation8], 256  }
  0x72   : > { %2658 = vsyncadd (%p3023_p5), [#allocation8], 4294967040  ;;  %p400_p4 = scmp.lt.s32.totalorder %s2720_s28, 1  ;;  %vm449_vm0 = vcmask 130048   ;;  %v445_v0 = vld [vmem:[#allocation6] sm:$0xff]  ;;  %v446_v1 = vld [vmem:[#allocation6 + $0x8] sm:$0xff] }
  0x73   : > { %v2431_v3 = vpack.c.bf16 %v446_v1, %v445_v0  ;;  %v447_v5 = vld [vmem:[#allocation7] sm:$0xff]  ;;  %v448_v6 = vld [vmem:[#allocation7 + $0x8] sm:$0xff]  ;;  %v441_v32 = vld [vmem:[#allocation2] sm:$0xff] }
  0x74   : > { %s3025_s28 = smov (!%p400_p4, %s2720_s28), 1  ;;  %v2435_v7 = vpack.c.bf16 %v448_v6, %v447_v5  ;;  %v442_v33 = vld [vmem:[#allocation2 + $0x8] sm:$0xff]  ;;  %v443_v57 = vld [vmem:[#allocation4] sm:$0xff]  ;;  %v444_v58 = vld [vmem:[#allocation4 + $0x8] sm:$0xff] }
  0x75   : > { %s2870_s29 = sshll.u32 %s3025_s28, 6  ;;  %2432 = vmatprep.subr.bf16.mxu1 %v2431_v3  ;;  %2440 = vmatprep.subr.bf16.mxu0 %v2431_v3  ;;  %v2447_v37 = vpack.c.bf16 %v442_v33, %v441_v32  ;;  %v2451_v59 = vpack.c.bf16 %v444_v58, %v443_v57  ;;  %s2222_s10 = sshll.u32 %s3025_s28, 5 }
  0x76   : > { %s2876_s22 = scalar_lea.vmem %s3003_s0, %s2870_s29  ;;  %s2882_s20 = scalar_lea.vmem %s3004_s1, %s2870_s29  ;;  %2434 = vmatpush3.bf16.msra.mxu1 %v2431_v3  ;;  %2442 = vmatpush3.bf16.msra.mxu0 %v2431_v3 }
  0x77   : > { %v425_v2 = vld [vmem:[%s2876_s22] sm:$0xff]  ;;  %v426_v8 = vld [vmem:[%s2876_s22 + $0x8] sm:$0xff]  ;;  %2444 = vmatprep.subr.bf16.mxu0 %v2435_v7  ;;  %v427_v10 = vld [vmem:[%s2876_s22 + $0x10] sm:$0xff]  ;;  %2436 = vmatprep.subr.bf16.mxu1 %v2435_v7  ;;  %s2968_s23 = scalar_lea.vmem %s3005_s2, %s2870_s29  ;;  %s2974_s25 = scalar_lea.vmem %s3006_s3, %s2870_s29 }
  0x78   : > { %2307 = vmatprep.mubr.msk.f32.mxu1 %vm449_vm0, %v425_v2  ;;  %v433_v4 = vld [vmem:[%s2882_s20] sm:$0xff]  ;;  %v434_v9 = vld [vmem:[%s2882_s20 + $0x8] sm:$0xff]  ;;  %v435_v11 = vld [vmem:[%s2882_s20 + $0x10] sm:$0xff]  ;;  %s424_s17 = scalar_lea.vmem %s3011_s8, %s2222_s10 }
  0x79   : > { %2339 = vmatprep.mubr.msk.f32.mxu0 %vm449_vm0, %v433_v4  ;;  %2308 = vmatmul.mubr.msk.f32.vlgmr.msra.gmra.mrb[0].mxu1 %vm449_vm0, %v426_v8  ;;  %v428_v12 = vld [vmem:[%s2876_s22 + $0x18] sm:$0xff]  ;;  %v429_v14 = vld [vmem:[%s2876_s22 + $0x20] sm:$0xff]  ;;  %v430_v16 = vld [vmem:[%s2876_s22 + $0x28] sm:$0xff] }
  0x7a   : > { %2340 = vmatmul.mubr.msk.f32.vlgmr.msra.gmra.mrb[0].mxu0 %vm449_vm0, %v434_v9  ;;  %2310 = vmatprep.mubr.msk.f32.mxu1 %vm449_vm0, %v427_v10  ;;  %v436_v13 = vld [vmem:[%s2882_s20 + $0x18] sm:$0xff]  ;;  %v437_v15 = vld [vmem:[%s2882_s20 + $0x20] sm:$0xff]  ;;  %v438_v17 = vld [vmem:[%s2882_s20 + $0x28] sm:$0xff] }
  0x7b   : > { %2446 = vmatpush3.bf16.msra.mxu0 %v2435_v7  ;;  %2342 = vmatprep.mubr.msk.f32.mxu0 %vm449_vm0, %v435_v11  ;;  %v431_v18 = vld [vmem:[%s2876_s22 + $0x30] sm:$0xff]  ;;  %v432_v20 = vld [vmem:[%s2876_s22 + $0x38] sm:$0xff] }
  0x7c   : > { %2438 = vmatpush3.bf16.msra.mxu1 %v2435_v7  ;;  %v439_v19 = vld [vmem:[%s2882_s20 + $0x30] sm:$0xff]  ;;  %v440_v21 = vld [vmem:[%s2882_s20 + $0x38] sm:$0xff]  ;;  %2456 = vmatprep.subr.bf16.mxu0 %v2447_v37 }
  0x7d   : > { %2311 = vmatmul.mubr.msk.f32.gmra.mrb[2].mxu1 %vm449_vm0, %v428_v12  ;;  %2448 = vmatprep.subr.bf16.mxu1 %v2447_v37 }
  0x7e   : > { %2343 = vmatmul.mubr.msk.f32.gmra.mrb[2].mxu0 %vm449_vm0, %v436_v13  ;;  %2313 = vmatprep.mubr.msk.f32.mxu1 %vm449_vm0, %v429_v14 }
  0x7f   : > { %2345 = vmatprep.mubr.msk.f32.mxu0 %vm449_vm0, %v437_v15 }
  0x81   : > { %2314 = vmatmul.mubr.msk.f32.gmra.mrb[4].mxu1 %vm449_vm0, %v430_v16 }
  0x82   : > { %2346 = vmatmul.mubr.msk.f32.gmra.mrb[4].mxu0 %vm449_vm0, %v438_v17  ;;  %2316 = vmatprep.mubr.msk.f32.mxu1 %vm449_vm0, %v431_v18 }
  0x83   : > { %2348 = vmatprep.mubr.msk.f32.mxu0 %vm449_vm0, %v439_v19 }
  0x85   : > { %2317 = vmatmul.mubr.msk.f32.gmra.mrb[6].mxu1 %vm449_vm0, %v432_v20 }
  0x86   : > { %2349 = vmatmul.mubr.msk.f32.gmra.mrb[6].mxu0 %vm449_vm0, %v440_v21  ;;  %2323 = vmatprep.mubr.msk.f32.mxu1 %vm449_vm0, %v433_v4 }
  0x87   : > { %2355 = vmatprep.mubr.msk.f32.mxu0 %vm449_vm0, %v425_v2 }
  0x89   : > { %2324 = vmatmul.mubr.msk.f32.vlgmr.msra.gmra.mrb[8].mxu1 %vm449_vm0, %v434_v9 }
  0x8a   : > { %2356 = vmatmul.mubr.msk.f32.vlgmr.msra.gmra.mrb[0].mxu0 %vm449_vm0, %v426_v8  ;;  %2326 = vmatprep.mubr.msk.f32.mxu1 %vm449_vm0, %v435_v11 }
  0x8b   : > { %2358 = vmatprep.mubr.msk.f32.mxu0 %vm449_vm0, %v427_v10  ;;  %2458 = vmatpush3.bf16.msra.mxu0 %v2447_v37 }
  0x8c   : > { %2450 = vmatpush3.bf16.msra.mxu1 %v2447_v37  ;;  %2460 = vmatprep.subr.bf16.mxu0 %v2451_v59 }
  0x8d   : > { %2327 = vmatmul.mubr.msk.f32.gmra.mrb[10].mxu1 %vm449_vm0, %v436_v13  ;;  %2452 = vmatprep.subr.bf16.mxu1 %v2451_v59 }
  0x8e   : > { %2359 = vmatmul.mubr.msk.f32.gmra.mrb[2].mxu0 %vm449_vm0, %v428_v12  ;;  %2329 = vmatprep.mubr.msk.f32.mxu1 %vm449_vm0, %v437_v15 }
  0x8f   : > { %2361 = vmatprep.mubr.msk.f32.mxu0 %vm449_vm0, %v429_v14 }
  0x91   : > { %2330 = vmatmul.mubr.msk.f32.gmra.mrb[12].mxu1 %vm449_vm0, %v438_v17 }
  0x92   : > { %2362 = vmatmul.mubr.msk.f32.gmra.mrb[4].mxu0 %vm449_vm0, %v430_v16  ;;  %2332 = vmatprep.mubr.msk.f32.mxu1 %vm449_vm0, %v439_v19 }
  0x93   : > { %2364 = vmatprep.mubr.msk.f32.mxu0 %vm449_vm0, %v431_v18 }
  0x95   : > { %2333 = vmatmul.mubr.msk.f32.gmra.mrb[14].mxu1 %vm449_vm0, %v440_v21 }
  0x96   : > { %2365 = vmatmul.mubr.msk.f32.gmra.mrb[6].mxu0 %vm449_vm0, %v432_v20 }
 0x14c   : > { %v2309_v22 = vpop.f32.mrb[0].mxu1 }
 0x14d   : > { %v540_v23 = vpop.f32.mrb[1].mxu1 }
 0x150   : > { %v2312_v24 = vpop.f32.mrb[2].mxu1 }
 0x151   : > { %v550_v25 = vpop.f32.mrb[3].mxu1 }
 0x154   : > { %v2315_v26 = vpop.f32.mrb[4].mxu1 }
 0x155   : > { %v560_v27 = vpop.f32.mrb[5].mxu1 }
 0x158   : > { %v2318_v28 = vpop.f32.mrb[6].mxu1 }
 0x159   : > { %v570_v29 = vpop.f32.mrb[7].mxu1 }
 0x15c   : > { %v2325_v30 = vpop.f32.mrb[8].mxu1 }
 0x15d   : > { %v2357_v31 = vpop.f32.mrb[0].mxu0  ;;  %v709_v34 = vsub.f32 %v2309_v22, %v2325_v30  ;;  %v669_v35 = vpop.f32.mrb[9].mxu1 }
 0x15e   : > { %v887_v36 = vpop.f32.mrb[1].mxu0  ;;  %v708_v38 = vsub.f32 %v540_v23, %v669_v35 }
 0x15f   : > { %1054 = vxpose.xlu1.b32.start [1/2] (short) (narrow) %v887_v36, 16 }
 0x160   : > { %926 = vxpose.xlu0.b32.start [1/2] (short) (narrow) %v708_v38, 16  ;;  %v2328_v40 = vpop.f32.mrb[10].mxu1 }
 0x161   : > { %v2360_v39 = vpop.f32.mrb[2].mxu0  ;;  %v711_v41 = vsub.f32 %v2312_v24, %v2328_v40  ;;  %v679_v42 = vpop.f32.mrb[11].mxu1 }
 0x162   : > { %v897_v43 = vpop.f32.mrb[3].mxu0  ;;  %v710_v44 = vsub.f32 %v550_v25, %v679_v42 }
 0x163   : > { %1055 = vxpose.xlu1.b32.end [2/2] (short) (narrow) %v2357_v31, 16 }
 0x164   : > { %927 = vxpose.xlu0.b32.end [2/2] (short) (narrow) %v709_v34, 16  ;;  %v2331_v46 = vpop.f32.mrb[12].mxu1 }
 0x165   : > { %v2363_v45 = vpop.f32.mrb[4].mxu0  ;;  %v713_v47 = vsub.f32 %v2315_v26, %v2331_v46  ;;  %v689_v48 = vpop.f32.mrb[13].mxu1 }
 0x166   : > { %v907_v49 = vpop.f32.mrb[5].mxu0  ;;  %v712_v50 = vsub.f32 %v560_v27, %v689_v48 }
 0x167   : > { %1086 = vxpose.xlu1.b32.start [1/2] (short) (narrow) %v897_v43, 16 }
 0x168   : > { %958 = vxpose.xlu0.b32.start [1/2] (short) (narrow) %v710_v44, 16  ;;  %v2334_v52 = vpop.f32.mrb[14].mxu1 }
 0x169   : > { %v2366_v51 = vpop.f32.mrb[6].mxu0  ;;  %v715_v53 = vsub.f32 %v2318_v28, %v2334_v52  ;;  %v699_v54 = vpop.f32.mrb[15].mxu1 }
 0x16a   : > { %v917_v55 = vpop.f32.mrb[7].mxu0  ;;  %v714_v56 = vsub.f32 %v570_v29, %v699_v54  ;;  %v1922_v54 = vld [vmem:[%s2974_s25] sm:$0xff] }
 0x16b   : > { %1087 = vxpose.xlu1.b32.end [2/2] (short) (narrow) %v2360_v39, 16 }
 0x16c   : > { %959 = vxpose.xlu0.b32.end [2/2] (short) (narrow) %v711_v41, 16 }
 0x16f   : > { %1118 = vxpose.xlu1.b32.start [1/2] (short) (narrow) %v907_v49, 16 }
 0x170   : > { %990 = vxpose.xlu0.b32.start [1/2] (short) (narrow) %v712_v50, 16 }
 0x173   : > { %1119 = vxpose.xlu1.b32.end [2/2] (short) (narrow) %v2363_v45, 16 }
 0x174   : > { %991 = vxpose.xlu0.b32.end [2/2] (short) (narrow) %v713_v47, 16 }
 0x177   : > { %1150 = vxpose.xlu1.b32.start [1/2] (short) (narrow) %v917_v55, 16  ;;  %v1916_v55 = vld [vmem:[%s2968_s23 + $0x10] sm:$0xff] }
 0x178   : > { %1022 = vxpose.xlu0.b32.start [1/2] (short) (narrow) %v714_v56, 16  ;;  %v1924_v56 = vld [vmem:[%s2974_s25 + $0x10] sm:$0xff] }
 0x17b   : > { %1151 = vxpose.xlu1.b32.end [2/2] (short) (narrow) %v2366_v51, 16 }
 0x17c   : > { %1023 = vxpose.xlu0.b32.end [2/2] (short) (narrow) %v715_v53, 16  ;;  %v1914_v53 = vld [vmem:[%s2968_s23] sm:$0xff] }
 0x1df   : > { %v1070_v60 = vpop.trf.xlu1 }
 0x1e0   : > { %2403 = vmatprep.mubr.msk.f32.mxu0 %vm449_vm0, %v1070_v60  ;;  %v942_v61 = vpop.trf.xlu0 }
 0x1e1   : > { %2371 = vmatprep.mubr.msk.f32.mxu1 %vm449_vm0, %v942_v61 }
 0x1e3   : > { %v1071_v62 = vpop.trf.xlu1 }
 0x1e4   : > { %2404 = vmatmul.mubr.msk.f32.vlgmr.msra.gmra.mrb[8].mxu0 %vm449_vm0, %v1071_v62  ;;  %v943_v63 = vpop.trf.xlu0 }
 0x1e5   : > { %2462 = vmatpush3.bf16.msra.mxu0 %v2451_v59  ;;  %2372 = vmatmul.mubr.msk.f32.vlgmr.msra.gmra.mrb[16].mxu1 %vm449_vm0, %v943_v63 }
 0x1e6   : > { %2454 = vmatpush3.bf16.msra.mxu1 %v2451_v59  ;;  %v1918_v59 = vld [vmem:[%s2968_s23 + $0x20] sm:$0xff] }
 0x1e7   : > { %v1102_v0 = vpop.trf.xlu1 }
 0x1e8   : > { %2406 = vmatprep.mubr.msk.f32.mxu0 %vm449_vm0, %v1102_v0  ;;  %v974_v1 = vpop.trf.xlu0 }
 0x1e9   : > { %2374 = vmatprep.mubr.msk.f32.mxu1 %vm449_vm0, %v974_v1 }
 0x1eb   : > { %v1103_v2 = vpop.trf.xlu1 }
 0x1ec   : > { %2407 = vmatmul.mubr.msk.f32.gmra.mrb[10].mxu0 %vm449_vm0, %v1103_v2  ;;  %v975_v3 = vpop.trf.xlu0 }
 0x1ed   : > { %2375 = vmatmul.mubr.msk.f32.gmra.mrb[18].mxu1 %vm449_vm0, %v975_v3 }
 0x1ef   : > { %v1134_v4 = vpop.trf.xlu1 }
 0x1f0   : > { %2409 = vmatprep.mubr.msk.f32.mxu0 %vm449_vm0, %v1134_v4  ;;  %v1006_v5 = vpop.trf.xlu0 }
 0x1f1   : > { %2377 = vmatprep.mubr.msk.f32.mxu1 %vm449_vm0, %v1006_v5 }
 0x1f3   : > { %v1135_v6 = vpop.trf.xlu1 }
 0x1f4   : > { %2410 = vmatmul.mubr.msk.f32.gmra.mrb[12].mxu0 %vm449_vm0, %v1135_v6  ;;  %v1007_v7 = vpop.trf.xlu0 }
 0x1f5   : > { %2378 = vmatmul.mubr.msk.f32.gmra.mrb[20].mxu1 %vm449_vm0, %v1007_v7 }
 0x1f7   : > { %v1166_v8 = vpop.trf.xlu1 }
 0x1f8   : > { %2412 = vmatprep.mubr.msk.f32.mxu0 %vm449_vm0, %v1166_v8  ;;  %v1038_v9 = vpop.trf.xlu0 }
 0x1f9   : > { %2380 = vmatprep.mubr.msk.f32.mxu1 %vm449_vm0, %v1038_v9 }
 0x1fb   : > { %v1167_v10 = vpop.trf.xlu1 }
 0x1fc   : > { %2413 = vmatmul.mubr.msk.f32.gmra.mrb[14].mxu0 %vm449_vm0, %v1167_v10  ;;  %v1039_v11 = vpop.trf.xlu0 }
 0x1fd   : > { %2419 = vmatprep.mubr.msk.f32.mxu0 %vm449_vm0, %v942_v61  ;;  %2381 = vmatmul.mubr.msk.f32.gmra.mrb[22].mxu1 %vm449_vm0, %v1039_v11  ;;  %v1917_v61 = vld [vmem:[%s2968_s23 + $0x18] sm:$0xff] }
 0x1fe   : > { %2387 = vmatprep.mubr.msk.f32.mxu1 %vm449_vm0, %v1070_v60  ;;  %v1926_v60 = vld [vmem:[%s2974_s25 + $0x20] sm:$0xff] }
 0x200   : > { %2420 = vmatmul.mubr.msk.f32.vlgmr.msra.gmra.mrb[8].mxu0 %vm449_vm0, %v943_v63 }
 0x201   : > { %2422 = vmatprep.mubr.msk.f32.mxu0 %vm449_vm0, %v974_v1  ;;  %2388 = vmatmul.mubr.msk.f32.vlgmr.msra.gmra.mrb[24].mxu1 %vm449_vm0, %v1071_v62  ;;  %v1925_v62 = vld [vmem:[%s2974_s25 + $0x18] sm:$0xff] }
 0x202   : > { %2390 = vmatprep.mubr.msk.f32.mxu1 %vm449_vm0, %v1102_v0 }
 0x204   : > { %2423 = vmatmul.mubr.msk.f32.gmra.mrb[10].mxu0 %vm449_vm0, %v975_v3 }
 0x205   : > { %2425 = vmatprep.mubr.msk.f32.mxu0 %vm449_vm0, %v1006_v5  ;;  %2391 = vmatmul.mubr.msk.f32.gmra.mrb[26].mxu1 %vm449_vm0, %v1103_v2 }
 0x206   : > { %2393 = vmatprep.mubr.msk.f32.mxu1 %vm449_vm0, %v1134_v4 }
 0x208   : > { %2426 = vmatmul.mubr.msk.f32.gmra.mrb[12].mxu0 %vm449_vm0, %v1007_v7 }
 0x209   : > { %2428 = vmatprep.mubr.msk.f32.mxu0 %vm449_vm0, %v1038_v9  ;;  %2394 = vmatmul.mubr.msk.f32.gmra.mrb[28].mxu1 %vm449_vm0, %v1135_v6 }
 0x20a   : > { %2396 = vmatprep.mubr.msk.f32.mxu1 %vm449_vm0, %v1166_v8 }
 0x20c   : > { %2429 = vmatmul.mubr.msk.f32.gmra.mrb[14].mxu0 %vm449_vm0, %v1039_v11  ;;  %v1919_v11 = vld [vmem:[%s2968_s23 + $0x28] sm:$0xff] }
 0x20d   : > { %2397 = vmatmul.mubr.msk.f32.gmra.mrb[30].mxu1 %vm449_vm0, %v1167_v10 }
 0x2b8   : > { %v2373_v12 = vpop.f32.mrb[16].mxu1 }
 0x2b9   : > { %v1272_v13 = vpop.f32.mrb[17].mxu1 }
 0x2c0   : > { %v2376_v14 = vpop.f32.mrb[18].mxu1 }
 0x2c1   : > { %v1282_v15 = vpop.f32.mrb[19].mxu1 }
 0x2c8   : > { %v2379_v16 = vpop.f32.mrb[20].mxu1 }
 0x2c9   : > { %v1292_v17 = vpop.f32.mrb[21].mxu1 }
 0x2d0   : > { %v2382_v18 = vpop.f32.mrb[22].mxu1 }
 0x2d1   : > { %v1302_v19 = vpop.f32.mrb[23].mxu1 }
 0x2d3   : > { %v2421_v20 = vpop.f32.mrb[8].mxu0 }
 0x2d4   : > { %v1619_v21 = vpop.f32.mrb[9].mxu0  ;;  %v2389_v22 = vpop.f32.mrb[24].mxu1 }
 0x2d5   : > { %1786 = vxpose.xlu0.b32.start [1/2] (short) (narrow) %v1619_v21, 16  ;;  %v1441_v23 = vsub.f32 %v2373_v12, %v2389_v22  ;;  %v1401_v24 = vpop.f32.mrb[25].mxu1  ;;  %v1927_v12 = vld [vmem:[%s2974_s25 + $0x28] sm:$0xff] }
 0x2d6   : > { %v1440_v25 = vsub.f32 %v1272_v13, %v1401_v24  ;;  %v1915_v13 = vld [vmem:[%s2968_s23 + $0x8] sm:$0xff]  ;;  %v1920_v24 = vld [vmem:[%s2968_s23 + $0x30] sm:$0xff] }
 0x2d7   : > { %v2424_v26 = vpop.f32.mrb[10].mxu0 }
 0x2d8   : > { %v1629_v27 = vpop.f32.mrb[11].mxu0  ;;  %v2392_v28 = vpop.f32.mrb[26].mxu1 }
 0x2d9   : > { %1818 = vxpose.xlu1.b32.start [1/2] (short) (narrow) %v1629_v27, 16  ;;  %1787 = vxpose.xlu0.b32.end [2/2] (short) (narrow) %v2421_v20, 16  ;;  %v1443_v29 = vsub.f32 %v2376_v14, %v2392_v28  ;;  %v1411_v30 = vpop.f32.mrb[27].mxu1 }
 0x2da   : > { %v1442_v31 = vsub.f32 %v1282_v15, %v1411_v30 }
 0x2db   : > { %v2427_v32 = vpop.f32.mrb[12].mxu0 }
 0x2dc   : > { %v1639_v33 = vpop.f32.mrb[13].mxu0  ;;  %v2395_v34 = vpop.f32.mrb[28].mxu1 }
 0x2dd   : > { %1819 = vxpose.xlu1.b32.end [2/2] (short) (narrow) %v2424_v26, 16  ;;  %1658 = vxpose.xlu0.b32.start [1/2] (short) (narrow) %v1440_v25, 16  ;;  %v1445_v35 = vsub.f32 %v2379_v16, %v2395_v34  ;;  %v1421_v36 = vpop.f32.mrb[29].mxu1  ;;  %v1928_v25 = vld [vmem:[%s2974_s25 + $0x30] sm:$0xff] }
 0x2de   : > { %v1444_v37 = vsub.f32 %v1292_v17, %v1421_v36 }
 0x2df   : > { %v2430_v38 = vpop.f32.mrb[14].mxu0 }
 0x2e0   : > { %v1649_v39 = vpop.f32.mrb[15].mxu0  ;;  %v2398_v40 = vpop.f32.mrb[30].mxu1 }
 0x2e1   : > { %1659 = vxpose.xlu0.b32.end [2/2] (short) (narrow) %v1441_v23, 16  ;;  %1690 = vxpose.xlu1.b32.start [1/2] (short) (narrow) %v1442_v31, 16  ;;  %v1447_v41 = vsub.f32 %v2382_v18, %v2398_v40  ;;  %v1431_v42 = vpop.f32.mrb[31].mxu1  ;;  %v1923_v18 = vld [vmem:[%s2974_s25 + $0x8] sm:$0xff] }
 0x2e2   : > { %v1446_v43 = vsub.f32 %v1302_v19, %v1431_v42 }
 0x2e5   : > { %1691 = vxpose.xlu1.b32.end [2/2] (short) (narrow) %v1443_v29, 16  ;;  %1722 = vxpose.xlu0.b32.start [1/2] (short) (narrow) %v1444_v37, 16 }
 0x2e9   : > { %1850 = vxpose.xlu1.b32.start [1/2] (short) (narrow) %v1639_v33, 16  ;;  %1723 = vxpose.xlu0.b32.end [2/2] (short) (narrow) %v1445_v35, 16 }
 0x2ed   : > { %1851 = vxpose.xlu1.b32.end [2/2] (short) (narrow) %v2427_v32, 16  ;;  %1754 = vxpose.xlu0.b32.start [1/2] (short) (narrow) %v1446_v43, 16 }
 0x2f1   : > { %1882 = vxpose.xlu1.b32.start [1/2] (short) (narrow) %v1649_v39, 16  ;;  %1755 = vxpose.xlu0.b32.end [2/2] (short) (narrow) %v1447_v41, 16 }
 0x2f5   : > { %1883 = vxpose.xlu1.b32.end [2/2] (short) (narrow) %v2430_v38, 16 }
 0x355   : > { %v1802_v44 = vpop.trf.xlu0 }
 0x356   : > { %v1938_v3 = vmul.f32 %v1922_v54, %v1802_v44  ;;  %v1954_v4 = vmul.f32 %v1914_v53, %v1802_v44  ;;  %v1921_v44 = vld [vmem:[%s2968_s23 + $0x38] sm:$0xff] }
 0x359   : > { %v1834_v45 = vpop.trf.xlu1  ;;  %v1803_v46 = vpop.trf.xlu0 }
 0x35a   : > { %v1940_v5 = vmul.f32 %v1924_v56, %v1834_v45  ;;  %v1956_v6 = vmul.f32 %v1916_v55, %v1834_v45  ;;  %v1939_v35 = vmul.f32 %v1923_v18, %v1803_v46  ;;  %v1955_v36 = vmul.f32 %v1915_v13, %v1803_v46  ;;  %v1929_v45 = vld [vmem:[%s2974_s25 + $0x38] sm:$0xff] }
 0x35d   : > { %v1835_v47 = vpop.trf.xlu1  ;;  %v1674_v48 = vpop.trf.xlu0 }
 0x35e   : > { %v1930_v57 = vmul.f32 %v1914_v53, %v1674_v48  ;;  %v1962_v58 = vmul.f32 %v1922_v54, %v1674_v48  ;;  %v1941_v14 = vmul.f32 %v1925_v62, %v1835_v47  ;;  %v1957_v15 = vmul.f32 %v1917_v61, %v1835_v47 }
 0x360   : > { %v1946_v16 = vadd.f32 %v1938_v3, %v1930_v57  ;;  %v1970_v17 = vsub.f32 %v1954_v4, %v1962_v58 }
 0x361   : > { %v1706_v49 = vpop.trf.xlu1  ;;  %v1675_v50 = vpop.trf.xlu0 }
 0x362   : > { %v1932_v63 = vmul.f32 %v1916_v55, %v1706_v49  ;;  %v1964_v0 = vmul.f32 %v1924_v56, %v1706_v49  ;;  %v1931_v27 = vmul.f32 %v1915_v13, %v1675_v50  ;;  %v1963_v28 = vmul.f32 %v1923_v18, %v1675_v50 }
 0x364   : > { %v1948_v19 = vadd.f32 %v1940_v5, %v1932_v63  ;;  %v1972_v20 = vsub.f32 %v1956_v6, %v1964_v0  ;;  %v1947_v48 = vadd.f32 %v1939_v35, %v1931_v27  ;;  %v1971_v49 = vsub.f32 %v1955_v36, %v1963_v28 }
 0x365   : > { %v1707_v51 = vpop.trf.xlu1  ;;  %v1738_v52 = vpop.trf.xlu0 }
 0x366   : > { %v1934_v9 = vmul.f32 %v1918_v59, %v1738_v52  ;;  %v1966_v10 = vmul.f32 %v1926_v60, %v1738_v52  ;;  %v1933_v21 = vmul.f32 %v1917_v61, %v1707_v51  ;;  %v1965_v22 = vmul.f32 %v1925_v62, %v1707_v51 }
 0x367   : > { %v1978_v39 = vadd.f32 %v1948_v19, %v1946_v16  ;;  %v1986_v40 = vadd.f32 %v1972_v20, %v1970_v17 }
 0x368   : > { %v1949_v41 = vadd.f32 %v1941_v14, %v1933_v21  ;;  %v1973_v42 = vsub.f32 %v1957_v15, %v1965_v22 }
 0x369   : > { %v1866_v1 = vpop.trf.xlu1  ;;  %v1739_v2 = vpop.trf.xlu0 }
 0x36a   : > { %v1942_v7 = vmul.f32 %v1926_v60, %v1866_v1  ;;  %v1958_v8 = vmul.f32 %v1918_v59, %v1866_v1  ;;  %v1935_v29 = vmul.f32 %v1919_v11, %v1739_v2  ;;  %v1967_v30 = vmul.f32 %v1927_v12, %v1739_v2 }
 0x36b   : > { %v1979_v59 = vadd.f32 %v1949_v41, %v1947_v48  ;;  %v1987_v60 = vadd.f32 %v1973_v42, %v1971_v49 }
 0x36c   : > { %v1950_v31 = vadd.f32 %v1942_v7, %v1934_v9  ;;  %v1974_v32 = vsub.f32 %v1958_v8, %v1966_v10 }
 0x36d   : > { %v1867_v23 = vpop.trf.xlu1  ;;  %v1770_v26 = vpop.trf.xlu0 }
 0x36e   : > { %v1943_v33 = vmul.f32 %v1927_v12, %v1867_v23  ;;  %v1959_v34 = vmul.f32 %v1919_v11, %v1867_v23  ;;  %v1936_v37 = vmul.f32 %v1920_v24, %v1770_v26  ;;  %v1968_v38 = vmul.f32 %v1928_v25, %v1770_v26 }
 0x36f   : > { %v1980_v52 = vadd.f32 %v1978_v39, %v1950_v31  ;;  %v1988_v53 = vadd.f32 %v1986_v40, %v1974_v32 }
 0x370   : > { %v1951_v54 = vadd.f32 %v1943_v33, %v1935_v29  ;;  %v1975_v55 = vsub.f32 %v1959_v34, %v1967_v30 }
 0x371   : > { %v1898_v43 = vpop.trf.xlu1  ;;  %v1771_v47 = vpop.trf.xlu0 }
 0x372   : > { %v1944_v50 = vmul.f32 %v1928_v25, %v1898_v43  ;;  %v1960_v51 = vmul.f32 %v1920_v24, %v1898_v43  ;;  %v1937_v57 = vmul.f32 %v1921_v44, %v1771_v47  ;;  %v1969_v58 = vmul.f32 %v1929_v45, %v1771_v47 }
 0x373   : > { %v1981_v2 = vadd.f32 %v1979_v59, %v1951_v54  ;;  %v1989_v3 = vadd.f32 %v1987_v60, %v1975_v55 }
 0x374   : > { %v1952_v46 = vadd.f32 %v1944_v50, %v1936_v37  ;;  %v1976_v56 = vsub.f32 %v1960_v51, %v1968_v38 }
 0x375   : > { %v1899_v61 = vpop.trf.xlu1 }
 0x376   : > { %v1982_v62 = vadd.f32 %v1980_v52, %v1952_v46  ;;  %v1990_v63 = vadd.f32 %v1988_v53, %v1976_v56  ;;  %v1945_v0 = vmul.f32 %v1929_v45, %v1899_v61  ;;  %v1961_v1 = vmul.f32 %v1921_v44, %v1899_v61 }
 0x378   : > { %1984 = vst.msk [vmem:[%s424_s17] sm:$0xff] %vm449_vm0, %v1982_v62  ;;  %2214 = vst.msk [vmem:[%s424_s17 + $0x10] sm:$0xff] %vm449_vm0, %v1990_v63  ;;  %v1953_v4 = vadd.f32 %v1945_v0, %v1937_v57  ;;  %v1977_v5 = vsub.f32 %v1961_v1, %v1969_v58 }
 0x37a   : > { %v1983_v6 = vadd.f32 %v1981_v2, %v1953_v4  ;;  %v1991_v7 = vadd.f32 %v1989_v3, %v1977_v5 }
 0x37c   : > { %1985 = vst.msk [vmem:[%s424_s17 + $0x8] sm:$0xff] %vm449_vm0, %v1983_v6  ;;  %2215 = vst.msk [vmem:[%s424_s17 + $0x18] sm:$0xff] %vm449_vm0, %v1991_v7 }
 0x37d PF: > { %s21_s27 = sadd.s32 1, %s2661_s27  }
 0x37e   : > { %p18_p6 = scmp.ge.s32.totalorder %s21_s27, 4  }
 0x380   :  { %20 = sbr.rel (!%p18_p6) target bundleno = 3 (0x3), region = 109 }
 0x387   :  { %2016 = vsyncpa [#allocation3], 1 }
 0x388   :  { %2018 = vsyncpa [#allocation3 + $0x1], 1 }
 0x389   :  { %2019 = vsyncpa [#allocation5], 1 }
 0x38a   :  { %2020 = vsyncpa [#allocation8], 1 }

// kernel: recurrent_varnet_block.8
= control target key start
LH: loop header
LB: loop body
LE: loop exit
PB: predicated region body
PF: predicated region fallthrough
CT: control target
= control target key end

     0   :  { %s1572_s30 = smov 0   ;;  %s1822_s0 = inlined_call_operand.vmem [shape: bf16[2,50,256], index: 0, kind: input, shape index: {}]   ;;  %s1823_s1 = inlined_call_operand.vmem [shape: f32[4,2,32,256], index: 1, kind: input, shape index: {}]   ;;  %s1824_s2 = inlined_call_operand.vmem [shape: bf16[32,50], index: 2, kind: input, shape index: {}]   ;;  %s1825_s3 = inlined_call_operand.vmem [shape: f32[32,1], index: 3, kind: input, shape index: {}]   ;;  %s1826_s4 = inlined_call_operand.vmem [shape: bf16[96,32], index: 4, kind: input, shape index: {}]   ;;  %s1827_s5 = inlined_call_operand.vmem [shape: bf16[64,32], index: 5, kind: input, shape index: {}]   ;;  %s1828_s6 = inlined_call_operand.vmem [shape: bf16[32,32], index: 6, kind: input, shape index: {}]   ;;  %s1829_s7 = inlined_call_operand.vmem [shape: f32[96,1], index: 7, kind: input, shape index: {}]   ;;  %s1830_s8 = inlined_call_operand.vmem [shape: f32[2,32,256], index: 8, kind: output, shape index: {0}]   ;;  %s1831_s9 = inlined_call_operand.vmem [shape: bf16[2,32,256], index: 9, kind: output, shape index: {1}]  }
   0x1 LB: > { %s1266_s10 = sadd.s32 4294967295, %s1519_s30   ;;  %p1270_p0 = scmp.ge.s32.totalorder %s1519_s30, 1  ;;  %s1519_s30 = sphi %s1572_s30, %s20_s30  }
   0x2   : > { %p300_p1 = scmp.lt.s32.totalorder %s1519_s30, 3 }
   0x4   : > { %p301_p2 = pnand %p1270_p0, %p300_p1 }
   0x5   : > { %p346_p3 = scmp.lt.s32.totalorder (!%p301_p2), %s1266_s10, 1  ;;  %v1521_v0 = vmov (!%p301_p2), 0   ;;  %v386_v1 = vld [vmem:[%s1825_s3] sm:$0xff] (!%p301_p2)  ;;  %v388_v2 = vld [vmem:[%s1825_s3 + $0x10] sm:$0xff] (!%p301_p2)  ;;  %v387_v3 = vld [vmem:[%s1825_s3 + $0x8] sm:$0xff] (!%p301_p2)  ;;  %vm462_vm0 = vcmask (!%p301_p2), 1040384  }
   0x6   : > { %304 = sbr.rel (%p301_p2) target bundleno = 795 (0x31b), region = 52  ;;  %501 = vmatprep.mubr.bf16.mxu0 (!%p301_p2), %v1521_v0  ;;  %1406 = vset.pattern.permute.xlu0 (!%p301_p2), %v1521_v0  ;;  %v389_v4 = vld [vmem:[%s1825_s3 + $0x18] sm:$0xff] (!%p301_p2)  ;;  %v554_v5 = vld [vmem:[%s1829_s7 + $0x20] sm:$0xff] (!%p301_p2)  ;;  %v555_v9 = vld [vmem:[%s1829_s7 + $0x28] sm:$0xff] (!%p301_p2)  ;;  %vm455_vm1 = vcmask (!%p301_p2), 408576   ;;  %vm652_vm2 = vcmask (!%p301_p2), 261120  }
   0x7   : > { %1407 = vset.pattern.permute.xlu1 (!%p301_p2), %v1521_v0  ;;  %753 = vmatprep.mubr.bf16.mxu1 (!%p301_p2), %v1521_v0  ;;  %v556_v11 = vld [vmem:[%s1829_s7 + $0x30] sm:$0xff] (!%p301_p2)  ;;  %v557_v14 = vld [vmem:[%s1829_s7 + $0x38] sm:$0xff] (!%p301_p2)  ;;  %v550_v18 = vld [vmem:[%s1829_s7] sm:$0xff] (!%p301_p2) }
   0x8   : > { %392 = vperm.xlu0 (!%p301_p2), %1406, %v386_v1   ;;  %402 = vperm.xlu1 (!%p301_p2), %1407, %v388_v2   ;;  %v551_v20 = vld [vmem:[%s1829_s7 + $0x8] sm:$0xff] (!%p301_p2)  ;;  %v552_v21 = vld [vmem:[%s1829_s7 + $0x10] sm:$0xff] (!%p301_p2)  ;;  %v1419_v22 = vld [vmem:[%s1824_s2] sm:$0xff] (!%p301_p2)  }
   0x9   : > { %v553_v23 = vld [vmem:[%s1829_s7 + $0x18] sm:$0xff] (!%p301_p2)  ;;  %v558_v24 = vld [vmem:[%s1829_s7 + $0x40] sm:$0xff] (!%p301_p2)  ;;  %v559_v25 = vld [vmem:[%s1829_s7 + $0x48] sm:$0xff] (!%p301_p2) }
   0xa   : > { %v560_v26 = vld [vmem:[%s1829_s7 + $0x50] sm:$0xff] (!%p301_p2)  ;;  %v1420_v27 = vld [vmem:[%s1824_s2 + $0x8] sm:$0xff] (!%p301_p2)   ;;  %v561_v28 = vld [vmem:[%s1829_s7 + $0x58] sm:$0xff] (!%p301_p2) }
   0xc   : > { %397 = vperm.xlu0 (!%p301_p2), %1406, %v387_v3   ;;  %407 = vperm.xlu1 (!%p301_p2), %1407, %v389_v4  }
   0xd   : > { %s1833_s10 = smov (!%p346_p3, %s1266_s10), 1 }
   0xe   : > { %s1396_s15 = smul.u32 56, %s1833_s10  ;;  %s1337_s13 = sshll.u32 %s1833_s10, 6 }
   0xf   : > { %s355_s16 = scalar_lea.vmem %s1823_s1, %s1337_s13  ;;  %s1792_s25 = scalar_lea.vmem %s1830_s8, %s1337_s13 }
  0x10   : > { %s350_s22 = scalar_lea.vmem %s1822_s0, %s1396_s15  ;;  %584 = vperm.xlu0 %1406, %v554_v5   ;;  %589 = vperm.xlu1 %1407, %v555_v9   ;;  %v1652_v57 = vld [vmem:[%s355_s16 + $0x8] sm:$0xff]  ;;  %v1654_v58 = vld [vmem:[%s355_s16 + $0x18] sm:$0xff]  ;;  %v1658_v1 = vld [vmem:[%s355_s16] sm:$0xff]  ;;  %s1339_s26 = sshll.u32 %s1833_s10, 5 }
  0x11   : > { %v1408_v6 = vld [vmem:[%s350_s22 + $0x4] ss:$8 sps:$4 sm:$0xff]   ;;  %v1410_v7 = vld [vmem:[%s350_s22] ss:$8 sps:$4 sm:$0xff]   ;;  %v1411_v8 = vld [vmem:[%s350_s22 + $0x14] ss:$8 sps:$4 sm:$0xff]   ;;  %v535_v63 = vpack.c.bf16 %v1654_v58, %v1652_v57  ;;  %s1803_s28 = scalar_lea.vmem %s1831_s9, %s1339_s26 }
  0x12   : > { %469 = vmatprep.subr.bf16.mxu0 %v1408_v6  ;;  %v1413_v10 = vld [vmem:[%s350_s22 + $0x10] ss:$8 sps:$4 sm:$0xff]   ;;  %v1414_v12 = vld [vmem:[%s350_s22 + $0x24] ss:$8 sps:$4 sm:$0xff]   ;;  %v1416_v15 = vld [vmem:[%s350_s22 + $0x20] ss:$8 sps:$4 sm:$0xff]  }
  0x13   : > { %470 = vmatpush1.bf16.msra.mxu0 %v1410_v7  ;;  %v373_v13 = vld [vmem:[%s350_s22 + $0x30] sm:$0x11]  ;;  %v1662_v3 = vld [vmem:[%s355_s16 + $0x28] sm:$0xff]  ;;  %v1664_v4 = vld [vmem:[%s355_s16 + $0x38] sm:$0xff] }
  0x14   : > { %471 = vmatprep.subr.bf16.mxu0 %v1411_v8  ;;  %v1286_v16 = vcombine.low %v373_v13, %v373_v13  ;;  %v1287_v19 = vcombine.high %v373_v13, %v373_v13  ;;  %594 = vperm.xlu0 %1406, %v556_v11   ;;  %v1660_v2 = vld [vmem:[%s355_s16 + $0x10] sm:$0xff]  ;;  %v1421_v5 = vld [vmem:[%s1826_s4] sm:$0xff]   ;;  %v1422_v6 = vld [vmem:[%s1826_s4 + $0x28] sm:$0xff]   ;;  %v537_v8 = vpack.c.bf16 %v1664_v4, %v1662_v3 }
  0x15   : > { %599 = vperm.xlu1 %1407, %v557_v14   ;;  %v534_v7 = vpack.c.bf16 %v1660_v2, %v1658_v1  ;;  %v1676_v9 = vld [vmem:[%s355_s16 + $0x20] sm:$0xff]  ;;  %v1425_v14 = vld [vmem:[%s1826_s4 + $0x10] sm:$0xff]  }
  0x16   : > { %v464_v17 = vsel %vm462_vm0, %v1286_v16, 0  ;;  %v1424_v13 = vld [vmem:[%s1827_s5] sm:$0xff]   ;;  %v1427_v16 = vld [vmem:[%s1826_s4 + $0x18] sm:$0xff]  }
  0x17   : > { %472 = vmatpush1.bf16.msra.mxu0 %v1413_v10  ;;  %v1678_v10 = vld [vmem:[%s355_s16 + $0x30] sm:$0xff] }
  0x18   : > { %473 = vmatprep.subr.bf16.mxu0 %v1414_v12  ;;  %564 = vperm.xlu0 %1406, %v550_v18   ;;  %v536_v11 = vpack.c.bf16 %v1678_v10, %v1676_v9  ;;  %v1423_v12 = vld [vmem:[%s1826_s4 + $0x8] sm:$0xff]   ;;  %v1429_v18 = vld [vmem:[%s1826_s4 + $0x20] sm:$0xff]  }
  0x19   : > { %569 = vperm.xlu1 %1407, %v551_v20  }
  0x1b   : > { %474 = vmatpush1.bf16.msra.mxu0 %v1416_v15  ;;  %v1426_v15 = vld [vmem:[%s1827_s5 + $0x8] sm:$0xff]  }
  0x1c   : > { %1288 = vmatprep.subr.msk.bf16.mxu0 %vm462_vm0, %v1287_v19  ;;  %574 = vperm.xlu0 %1406, %v552_v21   ;;  %v1430_v19 = vld [vmem:[%s1827_s5 + $0x18] sm:$0xff]  }
  0x1d   : > { %579 = vperm.xlu1 %1407, %v553_v23  }
  0x1f   : > { %476 = vmatpush1.bf16.msra.mxu0 %v464_v17  ;;  %v1428_v17 = vld [vmem:[%s1827_s5 + $0x10] sm:$0xff]  }
  0x20   : > { %604 = vperm.xlu0 %1406, %v558_v24  }
  0x21   : > { %609 = vperm.xlu1 %1407, %v559_v25  }
  0x22   : > { %1289 = vmatmul.mubr.msk.bf16.vlgmr.msra.gmra.mrb[0].mxu0 %vm455_vm1, %v1419_v22 }
  0x23   : > { %511 = vmatprep.mubr.bf16.mxu0 %v1521_v0 }
  0x24   : > { %614 = vperm.xlu0 %1406, %v560_v26  }
  0x25   : > { %619 = vperm.xlu1 %1407, %v561_v28  }
  0x2a   : > { %1290 = vmatmul.mubr.msk.bf16.gmra.mrb[4].mxu0 %vm455_vm1, %v1420_v27 }
  0x2b   : > { %703 = vmatprep.mubr.bf16.mxu0 %v1521_v0 }
  0x87   : > { %v393_v29 = vpop.permute.xlu0 %392  ;;  %v403_v38 = vpop.permute.xlu1 %402 }
  0x8b   : > { %v398_v33 = vpop.permute.xlu0 %397  ;;  %v408_v49 = vpop.permute.xlu1 %407 }
  0x8f   : > { %v585_v20 = vpop.permute.xlu0 %584  ;;  %v590_v21 = vpop.permute.xlu1 %589 }
  0x93   : > { %v1725_v22 = vpop.permute.xlu0 %594 }
  0x94   : > { %v1727_v24 = vpop.permute.xlu1 %599 }
  0x97   : > { %v565_v28 = vpop.permute.xlu0 %564 }
  0xf5   : > { %v503_v30 = vpop.f32.mrb[0].mxu0 }
  0xf6   : > { %v504_v31 = vadd.f32 %v503_v30, %v393_v29  ;;  %v505_v32 = vpop.f32.mrb[1].mxu0 }
  0xf7   : > { %v506_v34 = vadd.f32 %v505_v32, %v393_v29  ;;  %v507_v35 = vpop.f32.mrb[2].mxu0  ;;  %v570_v29 = vpop.permute.xlu1 %569 }
  0xf8   : > { %v508_v36 = vadd.f32 %v507_v35, %v398_v33  ;;  %v509_v37 = vpop.f32.mrb[3].mxu0  ;;  %v522_v40 = vmax.f32 %v504_v31, 0.0 }
  0xf9   : > { %v510_v39 = vadd.f32 %v509_v37, %v398_v33  ;;  %v523_v42 = vmax.f32 %v506_v34, 0.0 }
  0xfa   : > { %v524_v41 = vmax.f32 %v508_v36, 0.0 }
  0xfb   : > { %v525_v43 = vmax.f32 %v510_v39, 0.0 }
  0xfc   : > { %v530_v44 = vpack.c.bf16 %v524_v41, %v522_v40 }
  0xfd   : > { %v531_v45 = vpack.c.bf16 %v525_v43, %v523_v42  ;;  %v513_v46 = vpop.f32.mrb[4].mxu0 }
  0xfe   : > { %v514_v47 = vadd.f32 %v513_v46, %v403_v38  ;;  %v515_v48 = vpop.f32.mrb[5].mxu0  ;;  %v575_v46 = vpop.permute.xlu0 %574 }
  0xff   : > { %v516_v50 = vadd.f32 %v515_v48, %v403_v38  ;;  %v517_v51 = vpop.f32.mrb[6].mxu0  ;;  %671 = vmatprep.subr.bf16.mxu0 %v531_v45  ;;  %1344 = vmatprep.subr.bf16.mxu1 %v531_v45 }
 0x100   : > { %v518_v52 = vadd.f32 %v517_v51, %v408_v49  ;;  %v519_v53 = vpop.f32.mrb[7].mxu0  ;;  %672 = vmatpush1.bf16.msra.mxu0 %v530_v44  ;;  %1346 = vmatpush1.bf16.msra.mxu1 %v530_v44  ;;  %v526_v55 = vmax.f32 %v514_v47, 0.0  ;;  %v580_v47 = vpop.permute.xlu1 %579 }
 0x101   : > { %v520_v54 = vadd.f32 %v519_v53, %v408_v49  ;;  %v527_v59 = vmax.f32 %v516_v50, 0.0 }
 0x102   : > { %v528_v56 = vmax.f32 %v518_v52, 0.0 }
 0x103   : > { %v529_v60 = vmax.f32 %v520_v54, 0.0 }
 0x104   : > { %v532_v61 = vpack.c.bf16 %v528_v56, %v526_v55 }
 0x105   : > { %v533_v62 = vpack.c.bf16 %v529_v60, %v527_v59 }
 0x107   : > { %673 = vmatprep.subr.bf16.mxu0 %v533_v62  ;;  %1345 = vmatprep.subr.bf16.mxu1 %v533_v62 }
 0x108   : > { %674 = vmatpush1.bf16.msra.mxu0 %v532_v61  ;;  %1347 = vmatpush1.bf16.msra.mxu1 %v532_v61 }
 0x109   : > { %804 = vmatprep.subr.bf16.mxu1 %v535_v63 }
 0x10b   : > { %1297 = vmatmul.mubr.msk.bf16.vlgmr.msra.gmra.mrb[8].mxu0 %vm652_vm2, %v1421_v5  ;;  %1302 = vmatmul.mubr.msk.bf16.vlgmr.msra.gmra.mrb[0].mxu1 %vm652_vm2, %v1422_v6 }
 0x10c   : > { %805 = vmatpush1.bf16.msra.mxu1 %v534_v7  ;;  %713 = vmatprep.mubr.bf16.mxu0 %v1521_v0 }
 0x10d   : > { %806 = vmatprep.subr.bf16.mxu1 %v537_v8  ;;  %836 = vmatprep.mubr.bf16.mxu1 %v1521_v0 }
 0x110   : > { %807 = vmatpush1.bf16.msra.mxu1 %v536_v11 }
 0x113   : > { %1298 = vmatmul.mubr.msk.bf16.gmra.mrb[12].mxu0 %vm652_vm2, %v1423_v12  ;;  %1307 = vmatmul.mubr.msk.bf16.vlgmr.msra.gmra.mrb[4].mxu1 %vm652_vm2, %v1424_v13 }
 0x114   : > { %723 = vmatprep.mubr.bf16.mxu0 %v1521_v0  ;;  %846 = vmatprep.mubr.bf16.mxu1 %v1521_v0 }
 0x11b   : > { %1299 = vmatmul.mubr.msk.bf16.gmra.mrb[16].mxu0 %vm652_vm2, %v1425_v14  ;;  %1308 = vmatmul.mubr.msk.bf16.gmra.mrb[8].mxu1 %vm652_vm2, %v1426_v15 }
 0x11c   : > { %733 = vmatprep.mubr.bf16.mxu0 %v1521_v0  ;;  %856 = vmatprep.mubr.bf16.mxu1 %v1521_v0 }
 0x123   : > { %1300 = vmatmul.mubr.msk.bf16.gmra.mrb[20].mxu0 %vm652_vm2, %v1427_v16  ;;  %1309 = vmatmul.mubr.msk.bf16.gmra.mrb[12].mxu1 %vm652_vm2, %v1428_v17 }
 0x124   : > { %743 = vmatprep.mubr.bf16.mxu0 %v1521_v0  ;;  %866 = vmatprep.mubr.bf16.mxu1 %v1521_v0 }
 0x12b   : > { %1301 = vmatmul.mubr.msk.bf16.gmra.mrb[24].mxu0 %vm652_vm2, %v1429_v18  ;;  %1310 = vmatmul.mubr.msk.bf16.gmra.mrb[16].mxu1 %vm652_vm2, %v1430_v19 }
 0x12c   : > { %1053 = vmatprep.mubr.bf16.mxu1 %v1521_v0 }
 0x1de   : > { %v705_v23 = vpop.f32.mrb[8].mxu0 }
 0x1df   : > { %v707_v25 = vpop.f32.mrb[9].mxu0  ;;  %v706_v30 = vadd.f32 %v705_v23, %v565_v28 }
 0x1e0   : > { %v709_v26 = vpop.f32.mrb[10].mxu0  ;;  %v708_v31 = vadd.f32 %v707_v25, %v565_v28 }
 0x1e1   : > { %v711_v27 = vpop.f32.mrb[11].mxu0  ;;  %v710_v34 = vadd.f32 %v709_v26, %v570_v29 }
 0x1e2   : > { %v712_v38 = vadd.f32 %v711_v27, %v570_v29 }
 0x1e6   : > { %v715_v32 = vpop.f32.mrb[12].mxu0  ;;  %v838_v33 = vpop.f32.mrb[4].mxu1 }
 0x1e7   : > { %v1729_v35 = vadd.f32 %v838_v33, %v706_v30  ;;  %v717_v36 = vpop.f32.mrb[13].mxu0  ;;  %v840_v37 = vpop.f32.mrb[5].mxu1  ;;  %v716_v48 = vadd.f32 %v715_v32, %v575_v46 }
 0x1e8   : > { %v1731_v39 = vadd.f32 %v840_v37, %v708_v31  ;;  %v719_v40 = vpop.f32.mrb[14].mxu0  ;;  %v842_v41 = vpop.f32.mrb[6].mxu1  ;;  %v718_v49 = vadd.f32 %v717_v36, %v575_v46 }
 0x1e9   : > { %v1733_v42 = vadd.f32 %v842_v41, %v710_v34  ;;  %v721_v43 = vpop.f32.mrb[15].mxu0  ;;  %v844_v44 = vpop.f32.mrb[7].mxu1  ;;  %v720_v52 = vadd.f32 %v719_v40, %v580_v47 }
 0x1ea   : > { %v1735_v45 = vadd.f32 %v844_v44, %v712_v38  ;;  %v722_v56 = vadd.f32 %v721_v43, %v580_v47 }
 0x1ee   : > { %v725_v50 = vpop.f32.mrb[16].mxu0  ;;  %v848_v51 = vpop.f32.mrb[8].mxu1 }
 0x1ef   : > { %v1737_v53 = vadd.f32 %v848_v51, %v716_v48  ;;  %v727_v54 = vpop.f32.mrb[17].mxu0  ;;  %v850_v55 = vpop.f32.mrb[9].mxu1  ;;  %v726_v7 = vadd.f32 %v725_v50, %v585_v20 }
 0x1f0   : > { %v1739_v59 = vadd.f32 %v850_v55, %v718_v49  ;;  %v729_v60 = vpop.f32.mrb[18].mxu0  ;;  %v852_v61 = vpop.f32.mrb[10].mxu1  ;;  %v728_v8 = vadd.f32 %v727_v54, %v585_v20 }
 0x1f1   : > { %v1741_v62 = vadd.f32 %v852_v61, %v720_v52  ;;  %v731_v63 = vpop.f32.mrb[19].mxu0  ;;  %v854_v5 = vpop.f32.mrb[11].mxu1  ;;  %v730_v16 = vadd.f32 %v729_v60, %v590_v21 }
 0x1f2   : > { %v1743_v6 = vadd.f32 %v854_v5, %v722_v56  ;;  %v732_v23 = vadd.f32 %v731_v63, %v590_v21 }
 0x1f6   : > { %v735_v11 = vpop.f32.mrb[20].mxu0  ;;  %v858_v12 = vpop.f32.mrb[12].mxu1 }
 0x1f7   : > { %v933_v13 = vadd.f32 %v858_v12, %v726_v7  ;;  %v737_v14 = vpop.f32.mrb[21].mxu0  ;;  %v860_v15 = vpop.f32.mrb[13].mxu1  ;;  %v736_v20 = vadd.f32 %v735_v11, %v1725_v22 }
 0x1f8   : > { %v934_v17 = vadd.f32 %v860_v15, %v728_v8  ;;  %v739_v18 = vpop.f32.mrb[22].mxu0  ;;  %v862_v19 = vpop.f32.mrb[14].mxu1  ;;  %v738_v33 = vadd.f32 %v737_v14, %v1725_v22 }
 0x1f9   : > { %v1319_v25 = vmul.f32 -1.442695, %v933_v13  ;;  %v741_v26 = vpop.f32.mrb[23].mxu0  ;;  %v864_v27 = vpop.f32.mrb[15].mxu1  ;;  %v935_v29 = vadd.f32 %v862_v19, %v730_v16  ;;  %v740_v40 = vadd.f32 %v739_v18, %v1727_v24 }
 0x1fa   : > { %v1320_v28 = vmul.f32 -1.442695, %v934_v17  ;;  %v936_v30 = vadd.f32 %v864_v27, %v732_v23  ;;  %v742_v46 = vadd.f32 %v741_v26, %v1727_v24 }
 0x1fb   : > { %1433 = vpow2.f32 %v1319_v25  ;;  %v1321_v31 = vmul.f32 -1.442695, %v935_v29 }
 0x1fc   : > { %1435 = vpow2.f32 %v1320_v28  ;;  %v1322_v32 = vmul.f32 -1.442695, %v936_v30 }
 0x1fd   : > { %1437 = vpow2.f32 %v1321_v31 }
 0x1fe   : > { %v1747_v34 = vpop.f32.mrb[24].mxu0  ;;  %v868_v36 = vpop.f32.mrb[16].mxu1  ;;  %1439 = vpow2.f32 %v1322_v32 }
 0x1ff   : > { %v937_v21 = vadd.f32 %v868_v36, %v736_v20  ;;  %v1749_v37 = vpop.f32.mrb[25].mxu0  ;;  %v870_v38 = vpop.f32.mrb[17].mxu1 }
 0x200   : > { %v938_v41 = vadd.f32 %v870_v38, %v738_v33  ;;  %v1752_v43 = vpop.f32.mrb[26].mxu0  ;;  %v872_v44 = vpop.f32.mrb[18].mxu1 }
 0x201   : > { %v1323_v47 = vmul.f32 -1.442695, %v937_v21  ;;  %v1755_v48 = vpop.f32.mrb[27].mxu0  ;;  %v874_v22 = vpop.f32.mrb[19].mxu1  ;;  %v939_v50 = vadd.f32 %v872_v44, %v740_v40 }
 0x202   : > { %v1324_v49 = vmul.f32 -1.442695, %v938_v41  ;;  %v940_v51 = vadd.f32 %v874_v22, %v742_v46  ;;  %v1432_v22 = vld [vmem:[%s1828_s6 + $0x8] sm:$0xff]  }
 0x203   : > { %1441 = vpow2.f32 %v1323_v47  ;;  %v1325_v52 = vmul.f32 -1.442695, %v939_v50  ;;  %v1431_v47 = vld [vmem:[%s1828_s6] sm:$0xff]   ;;  %v1312_v50 = vmul.f32 -1.442695, %v1731_v39 }
 0x204   : > { %1443 = vpow2.f32 %v1324_v49  ;;  %v1326_v54 = vmul.f32 -1.442695, %v940_v51  ;;  %v1311_v49 = vmul.f32 -1.442695, %v1729_v35  ;;  %v1313_v51 = vmul.f32 -1.442695, %v1733_v42 }
 0x205   : > { %v1434_v55 = vpop.eup %1433  ;;  %1445 = vpow2.f32 %v1325_v52  ;;  %v1314_v52 = vmul.f32 -1.442695, %v1735_v45  ;;  %v1318_v35 = vmul.f32 -1.442695, %v1743_v6 }
 0x206   : > { %v1436_v56 = vpop.eup %1435  ;;  %v965_v60 = vadd.f32 1.0, %v1434_v55  ;;  %1447 = vpow2.f32 %v1326_v54  ;;  %v1315_v54 = vmul.f32 -1.442695, %v1737_v53  ;;  %v1317_v55 = vmul.f32 -1.442695, %v1741_v62 }
 0x207   : > { %v1438_v61 = vpop.eup %1437  ;;  %v966_v63 = vadd.f32 1.0, %v1436_v56 }
 0x208   : > { %v1440_v5 = vpop.eup %1439  ;;  %1449 = vrcp.f32 %v965_v60  ;;  %v967_v24 = vadd.f32 1.0, %v1438_v61 }
 0x209   : > { %1451 = vrcp.f32 %v966_v63  ;;  %v968_v7 = vadd.f32 1.0, %v1440_v5 }
 0x20a   : > { %1453 = vrcp.f32 %v967_v24 }
 0x20b   : > { %1455 = vrcp.f32 %v968_v7  ;;  %v605_v7 = vpop.permute.xlu0 %604 }
 0x20c   : > { %v746_v62 = vadd.f32 %v1747_v34, %v605_v7 }
 0x20d   : > { %v1442_v8 = vpop.eup %1441 }
 0x20e   : > { %v1444_v11 = vpop.eup %1443  ;;  %v969_v12 = vadd.f32 1.0, %v1442_v8 }
 0x20f   : > { %v1446_v13 = vpop.eup %1445  ;;  %v970_v14 = vadd.f32 1.0, %v1444_v11  ;;  %v610_v11 = vpop.permute.xlu1 %609 }
 0x210   : > { %v1448_v15 = vpop.eup %1447  ;;  %1457 = vrcp.f32 %v969_v12  ;;  %v971_v16 = vadd.f32 1.0, %v1446_v13  ;;  %v748_v12 = vadd.f32 %v1749_v37, %v605_v7 }
 0x211   : > { %1459 = vrcp.f32 %v970_v14  ;;  %v972_v17 = vadd.f32 1.0, %v1448_v15  ;;  %v750_v15 = vadd.f32 %v1752_v43, %v610_v11  ;;  %v615_v43 = vpop.permute.xlu0 %614 }
 0x212   : > { %v1450_v18 = vpop.eup %1449  ;;  %1461 = vrcp.f32 %v971_v16 }
 0x213   : > { %v1452_v19 = vpop.eup %1451  ;;  %1463 = vrcp.f32 %v972_v17  ;;  %v989_v26 = vmul.f32 %v1450_v18, %v1658_v1  ;;  %v752_v18 = vadd.f32 %v1755_v48, %v610_v11 }
 0x214   : > { %v1454_v23 = vpop.eup %1453  ;;  %v990_v28 = vmul.f32 %v1452_v19, %v1652_v57  ;;  %1465 = vpow2.f32 %v1311_v49 }
 0x215   : > { %v1456_v25 = vpop.eup %1455  ;;  %v991_v27 = vmul.f32 %v1454_v23, %v1660_v2  ;;  %1467 = vpow2.f32 %v1312_v50 }
 0x216   : > { %v992_v29 = vmul.f32 %v1456_v25, %v1654_v58  ;;  %1469 = vpow2.f32 %v1313_v51 }
 0x217   : > { %v997_v30 = vpack.c.bf16 %v991_v27, %v989_v26  ;;  %1471 = vpow2.f32 %v1314_v52 }
 0x218   : > { %v998_v31 = vpack.c.bf16 %v992_v29, %v990_v28  ;;  %1473 = vpow2.f32 %v1315_v54 }
 0x21a   : > { %v1458_v20 = vpop.eup %1457  ;;  %1021 = vmatprep.subr.bf16.mxu1 %v998_v31 }
 0x21b   : > { %v1460_v32 = vpop.eup %1459  ;;  %1022 = vmatpush1.bf16.msra.mxu1 %v997_v30  ;;  %v993_v21 = vmul.f32 %v1458_v20, %v1676_v9 }
 0x21c   : > { %v1462_v33 = vpop.eup %1461  ;;  %v994_v40 = vmul.f32 %v1460_v32, %v1662_v3 }
 0x21d   : > { %v1464_v36 = vpop.eup %1463  ;;  %v995_v38 = vmul.f32 %v1462_v33, %v1678_v10  ;;  %v620_v33 = vpop.permute.xlu1 %619 }
 0x21e   : > { %v996_v41 = vmul.f32 %v1464_v36, %v1664_v4  ;;  %v1466_v56 = vpop.eup %1465 }
 0x21f   : > { %v999_v44 = vpack.c.bf16 %v995_v38, %v993_v21  ;;  %v1468_v39 = vpop.eup %1467  ;;  %v909_v60 = vadd.f32 1.0, %v1466_v56 }
 0x220   : > { %v1000_v46 = vpack.c.bf16 %v996_v41, %v994_v40  ;;  %v1470_v42 = vpop.eup %1469  ;;  %v910_v53 = vadd.f32 1.0, %v1468_v39 }
 0x221   : > { %v1472_v45 = vpop.eup %1471  ;;  %v911_v5 = vadd.f32 1.0, %v1470_v42 }
 0x222   : > { %1023 = vmatprep.subr.bf16.mxu1 %v1000_v46  ;;  %v1474_v61 = vpop.eup %1473 }
 0x223   : > { %1024 = vmatpush1.bf16.msra.mxu1 %v999_v44  ;;  %v913_v24 = vadd.f32 1.0, %v1474_v61 }
 0x226   : > { %1329 = vmatmul.mubr.msk.bf16.vlgmr.msra.gmra.mrb[20].mxu1 %vm652_vm2, %v1431_v47 }
 0x227   : > { %1063 = vmatprep.mubr.bf16.mxu1 %v1521_v0  ;;  %v1316_v0 = vmul.f32 -1.442695, %v1739_v59  ;;  %v912_v59 = vadd.f32 1.0, %v1472_v45 }
 0x229   : > { %1475 = vpow2.f32 %v1316_v0 }
 0x22a   : > { %1477 = vpow2.f32 %v1317_v55 }
 0x22b   : > { %1479 = vpow2.f32 %v1318_v35 }
 0x22c   : > { %1481 = vrcp.f32 %v909_v60 }
 0x22d   : > { %1483 = vrcp.f32 %v910_v53 }
 0x22e   : > { %1330 = vmatmul.mubr.msk.bf16.gmra.mrb[0].mxu1 %vm652_vm2, %v1432_v22  ;;  %1485 = vrcp.f32 %v911_v5 }
 0x22f   : > { %1487 = vrcp.f32 %v912_v59 }
 0x230   : > { %1489 = vrcp.f32 %v913_v24 }
 0x233   : > { %v1476_v63 = vpop.eup %1475 }
 0x234   : > { %v914_v8 = vadd.f32 1.0, %v1476_v63  ;;  %v1478_v6 = vpop.eup %1477 }
 0x235   : > { %v1480_v14 = vpop.eup %1479  ;;  %v915_v25 = vadd.f32 1.0, %v1478_v6 }
 0x236   : > { %1491 = vrcp.f32 %v914_v8  ;;  %v916_v27 = vadd.f32 1.0, %v1480_v14  ;;  %v1482_v37 = vpop.eup %1481 }
 0x237   : > { %v1484_v29 = vpop.eup %1483  ;;  %v1090_v36 = vsub.f32 1.0, %v1482_v37 }
 0x238   : > { %v1486_v31 = vpop.eup %1485  ;;  %v1091_v41 = vsub.f32 1.0, %v1484_v29 }
 0x239   : > { %v1488_v32 = vpop.eup %1487  ;;  %v1092_v22 = vsub.f32 1.0, %v1486_v31  ;;  %v1098_v54 = vmul.f32 %v1090_v36, %v1658_v1 }
 0x23a   : > { %v1490_v40 = vpop.eup %1489  ;;  %v1093_v51 = vsub.f32 1.0, %v1488_v32  ;;  %v1099_v35 = vmul.f32 %v1091_v41, %v1652_v57 }
 0x23b   : > { %v1100_v45 = vmul.f32 %v1092_v22, %v1660_v2  ;;  %v1094_v59 = vsub.f32 1.0, %v1490_v40 }
 0x23c   : > { %v1101_v53 = vmul.f32 %v1093_v51, %v1654_v58 }
 0x240   : > { %v1492_v47 = vpop.eup %1491 }
 0x241   : > { %v1095_v7 = vsub.f32 1.0, %v1492_v47 }
 0x2f9   : > { %v1055_v13 = vpop.f32.mrb[20].mxu1 }
 0x2fa   : > { %v1074_v16 = vadd.f32 %v1055_v13, %v746_v62  ;;  %v1057_v17 = vpop.f32.mrb[21].mxu1 }
 0x2fb   : > { %v1075_v19 = vadd.f32 %v1057_v17, %v748_v12  ;;  %v1059_v23 = vpop.f32.mrb[22].mxu1 }
 0x2fc   : > { %1493 = vtanh.f32 %v1074_v16  ;;  %v1076_v34 = vadd.f32 %v1059_v23, %v750_v15  ;;  %v1061_v26 = vpop.f32.mrb[23].mxu1  ;;  %v1102_v15 = vmul.f32 %v1094_v59, %v1676_v9 }
 0x2fd   : > { %1495 = vtanh.f32 %v1075_v19  ;;  %v1077_v28 = vadd.f32 %v1061_v26, %v752_v18  ;;  %v1103_v19 = vmul.f32 %v1095_v7, %v1662_v3 }
 0x2fe   : > { %1497 = vtanh.f32 %v1076_v34 }
 0x2ff   : > { %1499 = vtanh.f32 %v1077_v28 }
 0x300   : > { %1501 = vrcp.f32 %v915_v25 }
 0x301   : > { %1503 = vrcp.f32 %v916_v27  ;;  %v1065_v30 = vpop.f32.mrb[0].mxu1 }
 0x302   : > { %v1388_v20 = vadd.f32 %v1065_v30, %v615_v43  ;;  %v1067_v48 = vpop.f32.mrb[1].mxu1 }
 0x303   : > { %v1389_v21 = vadd.f32 %v1067_v48, %v615_v43  ;;  %v1069_v38 = vpop.f32.mrb[2].mxu1 }
 0x304   : > { %1505 = vtanh.f32 %v1388_v20  ;;  %v1390_v44 = vadd.f32 %v1069_v38, %v620_v33  ;;  %v1071_v46 = vpop.f32.mrb[3].mxu1 }
 0x305   : > { %1507 = vtanh.f32 %v1389_v21  ;;  %v1391_v49 = vadd.f32 %v1071_v46, %v620_v33 }
 0x306   : > { %v1494_v50 = vpop.eup %1493  ;;  %1509 = vtanh.f32 %v1390_v44 }
 0x307   : > { %v1496_v52 = vpop.eup %1495  ;;  %v1106_v0 = vmul.f32 %v1494_v50, %v1482_v37  ;;  %1511 = vtanh.f32 %v1391_v49 }
 0x308   : > { %v1498_v55 = vpop.eup %1497  ;;  %v1107_v56 = vmul.f32 %v1496_v52, %v1484_v29 }
 0x309   : > { %v1500_v39 = vpop.eup %1499  ;;  %v1114_v42 = vadd.f32 %v1106_v0, %v1098_v54  ;;  %v1108_v60 = vmul.f32 %v1498_v55, %v1486_v31 }
 0x30a   : > { %v1502_v1 = vpop.eup %1501  ;;  %v1115_v61 = vadd.f32 %v1107_v56, %v1099_v35  ;;  %v1109_v63 = vmul.f32 %v1500_v39, %v1488_v32 }
 0x30b   : > { %v1504_v5 = vpop.eup %1503  ;;  %1122 = vst [vmem:[%s1792_s25] sm:$0xff] %v1114_v42  ;;  %v1130_v24 = vmax.f32 %v1114_v42, 0.0  ;;  %v1116_v57 = vadd.f32 %v1108_v60, %v1100_v45  ;;  %v1096_v2 = vsub.f32 1.0, %v1502_v1 }
 0x30c   : > { %1123 = vst [vmem:[%s1792_s25 + $0x8] sm:$0xff] %v1115_v61  ;;  %v1131_v8 = vmax.f32 %v1115_v61, 0.0  ;;  %v1117_v62 = vadd.f32 %v1109_v63, %v1101_v53  ;;  %v1097_v11 = vsub.f32 1.0, %v1504_v5 }
 0x30d   : > { %1124 = vst [vmem:[%s1792_s25 + $0x10] sm:$0xff] %v1116_v57  ;;  %v1132_v58 = vmax.f32 %v1116_v57, 0.0  ;;  %v1104_v26 = vmul.f32 %v1096_v2, %v1678_v10 }
 0x30e   : > { %v1506_v6 = vpop.eup %1505  ;;  %v1340_v12 = vpack.c.bf16 %v1131_v8, %v1130_v24  ;;  %1125 = vst [vmem:[%s1792_s25 + $0x18] sm:$0xff] %v1117_v62  ;;  %v1133_v13 = vmax.f32 %v1117_v62, 0.0  ;;  %v1105_v9 = vmul.f32 %v1097_v11, %v1664_v4 }
 0x30f   : > { %v1508_v14 = vpop.eup %1507  ;;  %v1110_v16 = vmul.f32 %v1506_v6, %v1490_v40 }
 0x310   : > { %v1510_v17 = vpop.eup %1509  ;;  %1162 = vst [vmem:[%s1803_s28] sm:$0xff] %v1340_v12  ;;  %v1341_v18 = vpack.c.bf16 %v1133_v13, %v1132_v58  ;;  %v1111_v23 = vmul.f32 %v1508_v14, %v1492_v47 }
 0x311   : > { %v1512_v25 = vpop.eup %1511  ;;  %v1118_v34 = vadd.f32 %v1110_v16, %v1102_v15  ;;  %v1112_v27 = vmul.f32 %v1510_v17, %v1502_v1 }
 0x312   : > { %1163 = vst [vmem:[%s1803_s28 + $0x8] sm:$0xff] %v1341_v18  ;;  %v1119_v28 = vadd.f32 %v1111_v23, %v1103_v19  ;;  %v1113_v37 = vmul.f32 %v1512_v25, %v1504_v5 }
 0x313   : > { %1126 = vst [vmem:[%s1792_s25 + $0x20] sm:$0xff] %v1118_v34  ;;  %v1134_v29 = vmax.f32 %v1118_v34, 0.0  ;;  %v1120_v43 = vadd.f32 %v1112_v27, %v1104_v26 }
 0x314   : > { %1127 = vst [vmem:[%s1792_s25 + $0x28] sm:$0xff] %v1119_v28  ;;  %v1135_v3 = vmax.f32 %v1119_v28, 0.0  ;;  %v1121_v30 = vadd.f32 %v1113_v37, %v1105_v9 }
 0x315   : > { %1128 = vst [vmem:[%s1792_s25 + $0x30] sm:$0xff] %v1120_v43  ;;  %v1136_v31 = vmax.f32 %v1120_v43, 0.0 }
 0x316   : > { %v1342_v20 = vpack.c.bf16 %v1135_v3, %v1134_v29  ;;  %1129 = vst [vmem:[%s1792_s25 + $0x38] sm:$0xff] %v1121_v30  ;;  %v1137_v48 = vmax.f32 %v1121_v30, 0.0 }
 0x318   : > { %1164 = vst [vmem:[%s1803_s28 + $0x10] sm:$0xff] %v1342_v20  ;;  %v1343_v10 = vpack.c.bf16 %v1137_v48, %v1136_v31 }
 0x31a   : > { %1165 = vst [vmem:[%s1803_s28 + $0x18] sm:$0xff] %v1343_v10 }
 0x31b PF: > { %s20_s30 = sadd.s32 1, %s1519_s30  }
 0x31c   : > { %p17_p4 = scmp.ge.s32.totalorder %s20_s30, 4  }
 0x31e   :  { %19 = sbr.rel (!%p17_p4) target bundleno = 1 (0x1), region = 97 }

// kernel: recurrent_varnet_block.9
= control target key start
LH: loop header
LB: loop body
LE: loop exit
PB: predicated region body
PF: predicated region fallthrough
CT: control target
= control target key end

     0   :  { %s1924_s30 = smov 0   ;;  %s2206_s0 = inlined_call_operand.vmem [shape: bf16[2,288,256], index: 0, kind: input, shape index: {}]   ;;  %s2207_s1 = inlined_call_operand.vmem [shape: f32[4,2,32,256], index: 1, kind: input, shape index: {}]   ;;  %s2208_s2 = inlined_call_operand.vmem [shape: bf16[32,288], index: 2, kind: input, shape index: {}]   ;;  %s2209_s3 = inlined_call_operand.vmem [shape: f32[32,1], index: 3, kind: input, shape index: {}]   ;;  %s2210_s4 = inlined_call_operand.vmem [shape: bf16[96,32], index: 4, kind: input, shape index: {}]   ;;  %s2211_s5 = inlined_call_operand.vmem [shape: bf16[64,32], index: 5, kind: input, shape index: {}]   ;;  %s2212_s6 = inlined_call_operand.vmem [shape: bf16[32,32], index: 6, kind: input, shape index: {}]   ;;  %s2213_s7 = inlined_call_operand.vmem [shape: f32[96,1], index: 7, kind: input, shape index: {}]   ;;  %s2214_s8 = inlined_call_operand.vmem [shape: f32[2,32,256], index: 8, kind: output, shape index: {0}]   ;;  %s2215_s9 = inlined_call_operand.vmem [shape: bf16[2,32,256], index: 9, kind: output, shape index: {1}]  }
   0x1 LB: > { %s1518_s10 = sadd.s32 4294967295, %s1871_s30   ;;  %p1522_p0 = scmp.ge.s32.totalorder %s1871_s30, 1  ;;  %s1871_s30 = sphi %s1924_s30, %s20_s30  }
   0x2   : > { %p301_p1 = scmp.lt.s32.totalorder %s1871_s30, 3 }
   0x4   : > { %p302_p2 = pnand %p1522_p0, %p301_p1 }
   0x5   : > { %p348_p3 = scmp.lt.s32.totalorder (!%p302_p2), %s1518_s10, 1  ;;  %v1761_v0 = vld [vmem:[%s2208_s2 + $0x4] ss:$12 sps:$4 sm:$0xff] (!%p302_p2)   ;;  %v1873_v1 = vmov (!%p302_p2), 0   ;;  %v423_v4 = vld [vmem:[%s2209_s3 + $0x8] sm:$0xff] (!%p302_p2)  ;;  %v425_v5 = vld [vmem:[%s2209_s3 + $0x18] sm:$0xff] (!%p302_p2) }
   0x6   : > { %305 = sbr.rel (%p302_p2) target bundleno = 899 (0x383), region = 52  ;;  %1709 = vset.pattern.permute.xlu0 (!%p302_p2), %v1873_v1  ;;  %1710 = vset.pattern.permute.xlu1 (!%p302_p2), %v1873_v1  ;;  %v422_v2 = vld [vmem:[%s2209_s3] sm:$0xff] (!%p302_p2)  ;;  %v424_v3 = vld [vmem:[%s2209_s3 + $0x10] sm:$0xff] (!%p302_p2)  ;;  %v802_v11 = vld [vmem:[%s2213_s7 + $0x28] sm:$0xff] (!%p302_p2)  ;;  %vm656_vm0 = vcmask (!%p302_p2), 261120  }
   0x7   : > { %949 = vmatprep.mubr.bf16.mxu1 (!%p302_p2), %v1873_v1  ;;  %695 = vmatprep.mubr.bf16.mxu0 (!%p302_p2), %v1761_v0  ;;  %v801_v6 = vld [vmem:[%s2213_s7 + $0x20] sm:$0xff] (!%p302_p2)  ;;  %v803_v13 = vld [vmem:[%s2213_s7 + $0x30] sm:$0xff] (!%p302_p2)  ;;  %v804_v24 = vld [vmem:[%s2213_s7 + $0x38] sm:$0xff] (!%p302_p2) }
   0x8   : > { %428 = vperm.xlu0 (!%p302_p2), %1709, %v422_v2   ;;  %438 = vperm.xlu1 (!%p302_p2), %1710, %v424_v3   ;;  %v797_v25 = vld [vmem:[%s2213_s7] sm:$0xff] (!%p302_p2)  ;;  %v798_v28 = vld [vmem:[%s2213_s7 + $0x8] sm:$0xff] (!%p302_p2)  ;;  %v799_v29 = vld [vmem:[%s2213_s7 + $0x10] sm:$0xff] (!%p302_p2) }
   0x9   : > { %v800_v30 = vld [vmem:[%s2213_s7 + $0x18] sm:$0xff] (!%p302_p2)  ;;  %v805_v31 = vld [vmem:[%s2213_s7 + $0x40] sm:$0xff] (!%p302_p2)  ;;  %v806_v34 = vld [vmem:[%s2213_s7 + $0x48] sm:$0xff] (!%p302_p2) }
   0xa   : > { %v807_v35 = vld [vmem:[%s2213_s7 + $0x50] sm:$0xff] (!%p302_p2)  ;;  %v808_v38 = vld [vmem:[%s2213_s7 + $0x58] sm:$0xff] (!%p302_p2)  ;;  %v1759_v51 = vld [vmem:[%s2208_s2] ss:$12 sps:$4 sm:$0xff] (!%p302_p2)  }
   0xb   : > { %v1762_v52 = vld [vmem:[%s2208_s2 + $0x1c] ss:$12 sps:$4 sm:$0xff] (!%p302_p2)   ;;  %v1764_v56 = vld [vmem:[%s2208_s2 + $0x18] ss:$12 sps:$4 sm:$0xff] (!%p302_p2)   ;;  %v1772_v58 = vld [vmem:[%s2208_s2 + $0x20] ss:$12 sps:$4 sm:$0xff] (!%p302_p2)  }
   0xc   : > { %433 = vperm.xlu0 (!%p302_p2), %1709, %v423_v4   ;;  %443 = vperm.xlu1 (!%p302_p2), %1710, %v425_v5   ;;  %v1771_v57 = vld [vmem:[%s2208_s2 + $0x8] ss:$12 sps:$4 sm:$0xff] (!%p302_p2)  }
   0xd   : > { %s2217_s10 = smov (!%p348_p3, %s1518_s10), 1 }
   0xe   : > { %s1699_s15 = smul.u32 288, %s2217_s10  ;;  %s1628_s21 = sshll.u32 %s2217_s10, 6 }
   0xf   : > { %s1469_s25 = scalar_lea.vmem %s2207_s1, %s1628_s21  ;;  %s1630_s16 = sshll.u32 %s2217_s10, 5 }
  0x10   : > { %s1953_s22 = scalar_lea.vmem %s2206_s0, %s1699_s15  ;;  %831 = vperm.xlu0 %1709, %v801_v6   ;;  %836 = vperm.xlu1 %1710, %v802_v11   ;;  %s2176_s15 = scalar_lea.vmem %s2214_s8, %s1628_s21 }
  0x11   : > { %v1711_v7 = vld [vmem:[%s1953_s22 + $0x4] ss:$8 sps:$4 sm:$0xff]   ;;  %v1713_v8 = vld [vmem:[%s1953_s22] ss:$8 sps:$4 sm:$0xff]   ;;  %v1714_v9 = vld [vmem:[%s1953_s22 + $0x14] ss:$8 sps:$4 sm:$0xff]   ;;  %s2187_s18 = scalar_lea.vmem %s2215_s9, %s1630_s16 }
  0x12   : > { %663 = vmatprep.subr.bf16.mxu0 %v1711_v7  ;;  %v1716_v10 = vld [vmem:[%s1953_s22 + $0x10] ss:$8 sps:$4 sm:$0xff]   ;;  %v1717_v12 = vld [vmem:[%s1953_s22 + $0x24] ss:$8 sps:$4 sm:$0xff]   ;;  %v1719_v14 = vld [vmem:[%s1953_s22 + $0x20] ss:$8 sps:$4 sm:$0xff]  }
  0x13   : > { %664 = vmatpush1.bf16.msra.mxu0 %v1713_v8  ;;  %v1720_v15 = vld [vmem:[%s1953_s22 + $0x34] ss:$8 sps:$4 sm:$0xff]   ;;  %v1722_v16 = vld [vmem:[%s1953_s22 + $0x30] ss:$8 sps:$4 sm:$0xff]   ;;  %v1723_v17 = vld [vmem:[%s1953_s22 + $0x44] ss:$8 sps:$4 sm:$0xff]  }
  0x14   : > { %665 = vmatprep.subr.bf16.mxu0 %v1714_v9  ;;  %841 = vperm.xlu0 %1709, %v803_v13   ;;  %v1725_v18 = vld [vmem:[%s1953_s22 + $0x40] ss:$8 sps:$4 sm:$0xff]   ;;  %v1726_v19 = vld [vmem:[%s1953_s22 + $0x54] ss:$8 sps:$4 sm:$0xff]   ;;  %v1728_v20 = vld [vmem:[%s1953_s22 + $0x50] ss:$8 sps:$4 sm:$0xff]  }
  0x15   : > { %v1729_v21 = vld [vmem:[%s1953_s22 + $0x64] ss:$8 sps:$4 sm:$0xff]   ;;  %v1731_v22 = vld [vmem:[%s1953_s22 + $0x60] ss:$8 sps:$4 sm:$0xff]   ;;  %v1732_v23 = vld [vmem:[%s1953_s22 + $0x74] ss:$8 sps:$4 sm:$0xff]   ;;  %846 = vperm.xlu1 %1710, %v804_v24  }
  0x16   : > { %v1734_v26 = vld [vmem:[%s1953_s22 + $0x70] ss:$8 sps:$4 sm:$0xff]   ;;  %v1735_v27 = vld [vmem:[%s1953_s22 + $0x84] ss:$8 sps:$4 sm:$0xff]   ;;  %v1737_v32 = vld [vmem:[%s1953_s22 + $0x80] ss:$8 sps:$4 sm:$0xff]  }
  0x17   : > { %666 = vmatpush1.bf16.msra.mxu0 %v1716_v10  ;;  %v1738_v33 = vld [vmem:[%s1953_s22 + $0x94] ss:$8 sps:$4 sm:$0xff]   ;;  %v1740_v36 = vld [vmem:[%s1953_s22 + $0x90] ss:$8 sps:$4 sm:$0xff]   ;;  %v1741_v37 = vld [vmem:[%s1953_s22 + $0xa4] ss:$8 sps:$4 sm:$0xff]  }
  0x18   : > { %667 = vmatprep.subr.bf16.mxu0 %v1717_v12  ;;  %811 = vperm.xlu0 %1709, %v797_v25   ;;  %v1743_v39 = vld [vmem:[%s1953_s22 + $0xa0] ss:$8 sps:$4 sm:$0xff]   ;;  %v1744_v40 = vld [vmem:[%s1953_s22 + $0xb4] ss:$8 sps:$4 sm:$0xff]   ;;  %v1746_v41 = vld [vmem:[%s1953_s22 + $0xb0] ss:$8 sps:$4 sm:$0xff]  }
  0x19   : > { %816 = vperm.xlu1 %1710, %v798_v28   ;;  %v1747_v42 = vld [vmem:[%s1953_s22 + $0xc4] ss:$8 sps:$4 sm:$0xff]   ;;  %v1749_v43 = vld [vmem:[%s1953_s22 + $0xc0] ss:$8 sps:$4 sm:$0xff]   ;;  %v1750_v44 = vld [vmem:[%s1953_s22 + $0xd4] ss:$8 sps:$4 sm:$0xff]  }
  0x1a   : > { %v1752_v45 = vld [vmem:[%s1953_s22 + $0xd0] ss:$8 sps:$4 sm:$0xff]   ;;  %v1753_v46 = vld [vmem:[%s1953_s22 + $0xe4] ss:$8 sps:$4 sm:$0xff]   ;;  %v1755_v47 = vld [vmem:[%s1953_s22 + $0xe0] ss:$8 sps:$4 sm:$0xff]  }
  0x1b   : > { %668 = vmatpush1.bf16.msra.mxu0 %v1719_v14  ;;  %v1756_v48 = vld [vmem:[%s1953_s22 + $0xf4] ss:$8 sps:$4 sm:$0xff]   ;;  %v1758_v49 = vld [vmem:[%s1953_s22 + $0xf0] ss:$8 sps:$4 sm:$0xff]   ;;  %v1767_v50 = vld [vmem:[%s1953_s22 + $0x104] ss:$8 sps:$4 sm:$0xff]  }
  0x1c   : > { %669 = vmatprep.subr.bf16.mxu0 %v1720_v15  ;;  %821 = vperm.xlu0 %1709, %v799_v29   ;;  %v1765_v53 = vld [vmem:[%s1953_s22 + $0x100] ss:$8 sps:$4 sm:$0xff]   ;;  %v1770_v54 = vld [vmem:[%s1953_s22 + $0x114] ss:$8 sps:$4 sm:$0xff]   ;;  %v1768_v55 = vld [vmem:[%s1953_s22 + $0x110] ss:$8 sps:$4 sm:$0xff]  }
  0x1d   : > { %826 = vperm.xlu1 %1710, %v800_v30   ;;  %v2055_v24 = vld [vmem:[%s1469_s25 + $0x88] sm:$0xff]  ;;  %v2057_v25 = vld [vmem:[%s1469_s25 + $0x98] sm:$0xff] }
  0x1e   : > { %v782_v30 = vpack.c.bf16 %v2057_v25, %v2055_v24 }
  0x1f   : > { %670 = vmatpush1.bf16.msra.mxu0 %v1722_v16 }
  0x20   : > { %671 = vmatprep.subr.bf16.mxu0 %v1723_v17  ;;  %851 = vperm.xlu0 %1709, %v805_v31   ;;  %v2061_v31 = vld [vmem:[%s1469_s25 + $0x80] sm:$0xff] }
  0x21   : > { %856 = vperm.xlu1 %1710, %v806_v34   ;;  %v2067_v34 = vld [vmem:[%s1469_s25 + $0xb8] sm:$0xff] }
  0x23   : > { %672 = vmatpush1.bf16.msra.mxu0 %v1725_v18 }
  0x24   : > { %673 = vmatprep.subr.bf16.mxu0 %v1726_v19  ;;  %861 = vperm.xlu0 %1709, %v807_v35   ;;  %v1773_v35 = vld [vmem:[%s2210_s4] sm:$0xff]  }
  0x25   : > { %866 = vperm.xlu1 %1710, %v808_v38   ;;  %v2076_v38 = vld [vmem:[%s1469_s25 + $0xa0] sm:$0xff] }
  0x27   : > { %674 = vmatpush1.bf16.msra.mxu0 %v1728_v20 }
  0x28   : > { %675 = vmatprep.subr.bf16.mxu0 %v1729_v21 }
  0x2b   : > { %676 = vmatpush1.bf16.msra.mxu0 %v1731_v22 }
  0x2c   : > { %677 = vmatprep.subr.bf16.mxu0 %v1732_v23 }
  0x2f   : > { %678 = vmatpush1.bf16.msra.mxu0 %v1734_v26 }
  0x30   : > { %679 = vmatprep.subr.bf16.mxu0 %v1735_v27 }
  0x33   : > { %680 = vmatpush1.bf16.msra.mxu0 %v1737_v32  ;;  %v2063_v32 = vld [vmem:[%s1469_s25 + $0x90] sm:$0xff] }
  0x34   : > { %681 = vmatprep.subr.bf16.mxu0 %v1738_v33  ;;  %v2065_v33 = vld [vmem:[%s1469_s25 + $0xa8] sm:$0xff] }
  0x37   : > { %682 = vmatpush1.bf16.msra.mxu0 %v1740_v36  ;;  %v781_v36 = vpack.c.bf16 %v2063_v32, %v2061_v31 }
  0x38   : > { %683 = vmatprep.subr.bf16.mxu0 %v1741_v37  ;;  %v784_v37 = vpack.c.bf16 %v2067_v34, %v2065_v33 }
  0x3b   : > { %684 = vmatpush1.bf16.msra.mxu0 %v1743_v39  ;;  %v2078_v39 = vld [vmem:[%s1469_s25 + $0xb0] sm:$0xff] }
  0x3c   : > { %685 = vmatprep.subr.bf16.mxu0 %v1744_v40  ;;  %v783_v40 = vpack.c.bf16 %v2078_v39, %v2076_v38 }
  0x3f   : > { %686 = vmatpush1.bf16.msra.mxu0 %v1746_v41  ;;  %v1774_v41 = vld [vmem:[%s2210_s4 + $0x8] sm:$0xff]  }
  0x40   : > { %687 = vmatprep.subr.bf16.mxu0 %v1747_v42  ;;  %v1775_v42 = vld [vmem:[%s2210_s4 + $0x10] sm:$0xff]  }
  0x43   : > { %688 = vmatpush1.bf16.msra.mxu0 %v1749_v43  ;;  %v1776_v43 = vld [vmem:[%s2210_s4 + $0x18] sm:$0xff]  }
  0x44   : > { %689 = vmatprep.subr.bf16.mxu0 %v1750_v44  ;;  %v1777_v44 = vld [vmem:[%s2210_s4 + $0x20] sm:$0xff]  }
  0x47   : > { %690 = vmatpush1.bf16.msra.mxu0 %v1752_v45  ;;  %v1778_v45 = vld [vmem:[%s2210_s4 + $0x28] sm:$0xff]  }
  0x48   : > { %691 = vmatprep.subr.bf16.mxu0 %v1753_v46  ;;  %v1779_v46 = vld [vmem:[%s2211_s5] sm:$0xff]  }
  0x4b   : > { %692 = vmatpush1.bf16.msra.mxu0 %v1755_v47  ;;  %v1780_v47 = vld [vmem:[%s2211_s5 + $0x8] sm:$0xff]  }
  0x4c   : > { %693 = vmatprep.subr.bf16.mxu0 %v1756_v48  ;;  %v1781_v48 = vld [vmem:[%s2211_s5 + $0x10] sm:$0xff]  }
  0x4f   : > { %694 = vmatpush1.bf16.msra.mxu0 %v1758_v49  ;;  %v1782_v49 = vld [vmem:[%s2211_s5 + $0x18] sm:$0xff]  }
  0x50   : > { %716 = vmatprep.subr.bf16.mxu0 %v1767_v50 }
  0x52   : > { %696 = vmatmul.mubr.bf16.vlgmr.msra.gmra.mrb[0].mxu0 %v1759_v51 }
  0x53   : > { %705 = vmatprep.mubr.bf16.mxu0 %v1762_v52  ;;  %717 = vmatpush1.bf16.msra.mxu0 %v1765_v53 }
  0x54   : > { %718 = vmatprep.subr.bf16.mxu0 %v1770_v54 }
  0x57   : > { %719 = vmatpush1.bf16.msra.mxu0 %v1768_v55 }
  0x5a   : > { %706 = vmatmul.mubr.bf16.gmra.mrb[4].mxu0 %v1764_v56 }
  0x5b   : > { %748 = vmatprep.mubr.bf16.mxu0 %v1873_v1 }
  0x62   : > { %1580 = vmatmul.mubr.msk.bf16.vlgmr.msra.gmra.mrb[0].mxu0 %vm656_vm0, %v1771_v57 }
  0x63   : > { %758 = vmatprep.mubr.bf16.mxu0 %v1873_v1 }
  0x6a   : > { %1581 = vmatmul.mubr.msk.bf16.gmra.mrb[4].mxu0 %vm656_vm0, %v1772_v58 }
  0x87   : > { %v429_v59 = vpop.permute.xlu0 %428  ;;  %v439_v5 = vpop.permute.xlu1 %438 }
  0x8b   : > { %v434_v63 = vpop.permute.xlu0 %433  ;;  %v444_v16 = vpop.permute.xlu1 %443 }
  0x8f   : > { %v832_v58 = vpop.permute.xlu0 %831 }
 0x135   : > { %v750_v60 = vpop.f32.mrb[0].mxu0 }
 0x136   : > { %v1635_v61 = vadd.f32 %v750_v60, %v429_v59  ;;  %v752_v62 = vpop.f32.mrb[1].mxu0 }
 0x137   : > { %v1636_v0 = vadd.f32 %v752_v62, %v429_v59  ;;  %v754_v2 = vpop.f32.mrb[2].mxu0  ;;  %v837_v62 = vpop.permute.xlu1 %836 }
 0x138   : > { %v1637_v3 = vadd.f32 %v754_v2, %v434_v63  ;;  %v756_v4 = vpop.f32.mrb[3].mxu0  ;;  %v769_v7 = vmax.f32 %v1635_v61, 0.0 }
 0x139   : > { %v1638_v6 = vadd.f32 %v756_v4, %v434_v63  ;;  %v770_v9 = vmax.f32 %v1636_v0, 0.0 }
 0x13a   : > { %v771_v8 = vmax.f32 %v1637_v3, 0.0 }
 0x13b   : > { %v772_v10 = vmax.f32 %v1638_v6, 0.0 }
 0x13c   : > { %v777_v11 = vpack.c.bf16 %v771_v8, %v769_v7 }
 0x13d   : > { %v760_v12 = vpop.f32.mrb[4].mxu0  ;;  %v778_v13 = vpack.c.bf16 %v772_v10, %v770_v9  ;;  %v842_v9 = vpop.permute.xlu0 %841 }
 0x13e   : > { %v1639_v14 = vadd.f32 %v760_v12, %v439_v5  ;;  %v762_v15 = vpop.f32.mrb[5].mxu0 }
 0x13f   : > { %v1640_v17 = vadd.f32 %v762_v15, %v439_v5  ;;  %v764_v18 = vpop.f32.mrb[6].mxu0  ;;  %917 = vmatprep.subr.bf16.mxu1 %v778_v13  ;;  %v847_v13 = vpop.permute.xlu1 %846 }
 0x140   : > { %v1641_v19 = vadd.f32 %v764_v18, %v444_v16  ;;  %v766_v20 = vpop.f32.mrb[7].mxu0  ;;  %918 = vmatpush1.bf16.msra.mxu1 %v777_v11  ;;  %v773_v22 = vmax.f32 %v1639_v14, 0.0 }
 0x141   : > { %v1642_v21 = vadd.f32 %v766_v20, %v444_v16  ;;  %v774_v26 = vmax.f32 %v1640_v17, 0.0 }
 0x142   : > { %v775_v23 = vmax.f32 %v1641_v19, 0.0 }
 0x143   : > { %v776_v27 = vmax.f32 %v1642_v21, 0.0 }
 0x144   : > { %v779_v28 = vpack.c.bf16 %v775_v23, %v773_v22 }
 0x145   : > { %v780_v29 = vpack.c.bf16 %v776_v27, %v774_v26 }
 0x147   : > { %919 = vmatprep.subr.bf16.mxu1 %v780_v29 }
 0x148   : > { %920 = vmatpush1.bf16.msra.mxu1 %v779_v28 }
 0x149   : > { %1050 = vmatprep.subr.bf16.mxu1 %v782_v30 }
 0x14b   : > { %1588 = vmatmul.mubr.msk.bf16.vlgmr.msra.gmra.mrb[0].mxu1 %vm656_vm0, %v1773_v35 }
 0x14c   : > { %959 = vmatprep.mubr.bf16.mxu1 %v1873_v1  ;;  %1051 = vmatpush1.bf16.msra.mxu1 %v781_v36 }
 0x14d   : > { %1052 = vmatprep.subr.bf16.mxu1 %v784_v37 }
 0x150   : > { %1053 = vmatpush1.bf16.msra.mxu1 %v783_v40 }
 0x153   : > { %1589 = vmatmul.mubr.msk.bf16.gmra.mrb[4].mxu1 %vm656_vm0, %v1774_v41 }
 0x154   : > { %969 = vmatprep.mubr.bf16.mxu1 %v1873_v1 }
 0x15b   : > { %1590 = vmatmul.mubr.msk.bf16.gmra.mrb[8].mxu1 %vm656_vm0, %v1775_v42 }
 0x15c   : > { %979 = vmatprep.mubr.bf16.mxu1 %v1873_v1 }
 0x163   : > { %1591 = vmatmul.mubr.msk.bf16.gmra.mrb[12].mxu1 %vm656_vm0, %v1776_v43 }
 0x164   : > { %989 = vmatprep.mubr.bf16.mxu1 %v1873_v1 }
 0x16b   : > { %1592 = vmatmul.mubr.msk.bf16.gmra.mrb[16].mxu1 %vm656_vm0, %v1777_v44 }
 0x16c   : > { %999 = vmatprep.mubr.bf16.mxu1 %v1873_v1 }
 0x173   : > { %1593 = vmatmul.mubr.msk.bf16.gmra.mrb[20].mxu1 %vm656_vm0, %v1778_v45 }
 0x174   : > { %1082 = vmatprep.mubr.bf16.mxu1 %v1873_v1 }
 0x17b   : > { %1598 = vmatmul.mubr.msk.bf16.vlgmr.msra.gmra.mrb[0].mxu1 %vm656_vm0, %v1779_v46 }
 0x17c   : > { %1092 = vmatprep.mubr.bf16.mxu1 %v1873_v1 }
 0x183   : > { %1599 = vmatmul.mubr.msk.bf16.gmra.mrb[4].mxu1 %vm656_vm0, %v1780_v47 }
 0x184   : > { %1102 = vmatprep.mubr.bf16.mxu1 %v1873_v1 }
 0x18b   : > { %1600 = vmatmul.mubr.msk.bf16.gmra.mrb[8].mxu1 %vm656_vm0, %v1781_v48 }
 0x18c   : > { %1112 = vmatprep.mubr.bf16.mxu1 %v1873_v1 }
 0x193   : > { %1601 = vmatmul.mubr.msk.bf16.gmra.mrb[12].mxu1 %vm656_vm0, %v1782_v49 }
 0x194   : > { %1299 = vmatprep.mubr.bf16.mxu1 %v1873_v1 }
 0x24e   : > { %v2129_v50 = vpop.f32.mrb[0].mxu1 }
 0x24f   : > { %v2131_v51 = vpop.f32.mrb[1].mxu1 }
 0x250   : > { %v2133_v52 = vpop.f32.mrb[2].mxu1 }
 0x251   : > { %v2135_v53 = vpop.f32.mrb[3].mxu1 }
 0x256   : > { %v2137_v54 = vpop.f32.mrb[4].mxu1 }
 0x257   : > { %v2139_v55 = vpop.f32.mrb[5].mxu1 }
 0x258   : > { %v2141_v56 = vpop.f32.mrb[6].mxu1 }
 0x259   : > { %v2143_v57 = vpop.f32.mrb[7].mxu1 }
 0x25e   : > { %v1104_v59 = vpop.f32.mrb[8].mxu1 }
 0x25f   : > { %v1651_v60 = vadd.f32 %v1104_v59, %v832_v58  ;;  %v1106_v61 = vpop.f32.mrb[9].mxu1 }
 0x260   : > { %v1652_v63 = vadd.f32 %v1106_v61, %v832_v58  ;;  %v1108_v0 = vpop.f32.mrb[10].mxu1 }
 0x261   : > { %v1610_v2 = vmul.f32 -1.442695, %v1651_v60  ;;  %v1653_v3 = vadd.f32 %v1108_v0, %v837_v62  ;;  %v1110_v4 = vpop.f32.mrb[11].mxu1 }
 0x262   : > { %v1611_v5 = vmul.f32 -1.442695, %v1652_v63  ;;  %v1654_v6 = vadd.f32 %v1110_v4, %v837_v62 }
 0x263   : > { %v1612_v7 = vmul.f32 -1.442695, %v1653_v3  ;;  %1785 = vpow2.f32 %v1610_v2 }
 0x264   : > { %v1613_v8 = vmul.f32 -1.442695, %v1654_v6  ;;  %1787 = vpow2.f32 %v1611_v5 }
 0x265   : > { %1789 = vpow2.f32 %v1612_v7 }
 0x266   : > { %v1114_v10 = vpop.f32.mrb[12].mxu1  ;;  %1791 = vpow2.f32 %v1613_v8 }
 0x267   : > { %v1655_v11 = vadd.f32 %v1114_v10, %v842_v9  ;;  %v1116_v12 = vpop.f32.mrb[13].mxu1 }
 0x268   : > { %v1656_v14 = vadd.f32 %v1116_v12, %v842_v9  ;;  %v1118_v15 = vpop.f32.mrb[14].mxu1  ;;  %v1783_v12 = vld [vmem:[%s2212_s6] sm:$0xff]  }
 0x269   : > { %v1614_v16 = vmul.f32 -1.442695, %v1655_v11  ;;  %v1657_v17 = vadd.f32 %v1118_v15, %v847_v13  ;;  %v1120_v18 = vpop.f32.mrb[15].mxu1 }
 0x26a   : > { %v1615_v19 = vmul.f32 -1.442695, %v1656_v14  ;;  %v1658_v20 = vadd.f32 %v1120_v18, %v847_v13  ;;  %v1784_v13 = vld [vmem:[%s2212_s6 + $0x8] sm:$0xff]   ;;  %v812_v14 = vpop.permute.xlu0 %811 }
 0x26b   : > { %v1616_v21 = vmul.f32 -1.442695, %v1657_v17  ;;  %1793 = vpow2.f32 %v1614_v16  ;;  %v1643_v15 = vadd.f32 %v2129_v50, %v812_v14  ;;  %v817_v16 = vpop.permute.xlu1 %816  ;;  %v1644_v17 = vadd.f32 %v2131_v51, %v812_v14 }
 0x26c   : > { %v1617_v22 = vmul.f32 -1.442695, %v1658_v20  ;;  %1795 = vpow2.f32 %v1615_v19  ;;  %v1645_v18 = vadd.f32 %v2133_v52, %v817_v16  ;;  %v1646_v20 = vadd.f32 %v2135_v53, %v817_v16 }
 0x26d   : > { %v1786_v23 = vpop.eup %1785  ;;  %1797 = vpow2.f32 %v1616_v21  ;;  %v1602_v21 = vmul.f32 -1.442695, %v1643_v15 }
 0x26e   : > { %v1788_v26 = vpop.eup %1787  ;;  %v1211_v27 = vadd.f32 1.0, %v1786_v23  ;;  %1799 = vpow2.f32 %v1617_v22  ;;  %v822_v19 = vpop.permute.xlu0 %821  ;;  %v1603_v22 = vmul.f32 -1.442695, %v1644_v17 }
 0x26f   : > { %v1790_v28 = vpop.eup %1789  ;;  %v1212_v29 = vadd.f32 1.0, %v1788_v26  ;;  %v1648_v23 = vadd.f32 %v2139_v55, %v822_v19  ;;  %v1604_v26 = vmul.f32 -1.442695, %v1645_v18 }
 0x270   : > { %v1792_v30 = vpop.eup %1791  ;;  %1801 = vrcp.f32 %v1211_v27  ;;  %v1213_v35 = vadd.f32 1.0, %v1790_v28  ;;  %v1605_v27 = vmul.f32 -1.442695, %v1646_v20 }
 0x271   : > { %1803 = vrcp.f32 %v1212_v29  ;;  %v1214_v36 = vadd.f32 1.0, %v1792_v30  ;;  %v827_v29 = vpop.permute.xlu1 %826  ;;  %v1607_v50 = vmul.f32 -1.442695, %v1648_v23 }
 0x272   : > { %1805 = vrcp.f32 %v1213_v35  ;;  %v1649_v51 = vadd.f32 %v2141_v56, %v827_v29  ;;  %v1650_v52 = vadd.f32 %v2143_v57, %v827_v29 }
 0x273   : > { %1807 = vrcp.f32 %v1214_v36 }
 0x274   : > { %v1608_v53 = vmul.f32 -1.442695, %v1649_v51 }
 0x275   : > { %v1794_v37 = vpop.eup %1793 }
 0x276   : > { %v1796_v40 = vpop.eup %1795  ;;  %v1215_v41 = vadd.f32 1.0, %v1794_v37 }
 0x277   : > { %v1798_v42 = vpop.eup %1797  ;;  %v1216_v43 = vadd.f32 1.0, %v1796_v40 }
 0x278   : > { %v1800_v44 = vpop.eup %1799  ;;  %1809 = vrcp.f32 %v1215_v41  ;;  %v1217_v45 = vadd.f32 1.0, %v1798_v42 }
 0x279   : > { %1811 = vrcp.f32 %v1216_v43  ;;  %v1218_v46 = vadd.f32 1.0, %v1800_v44 }
 0x27a   : > { %v1802_v47 = vpop.eup %1801  ;;  %1813 = vrcp.f32 %v1217_v45 }
 0x27b   : > { %v1804_v48 = vpop.eup %1803  ;;  %1815 = vrcp.f32 %v1218_v46  ;;  %v1235_v59 = vmul.f32 %v1802_v47, %v2061_v31  ;;  %v852_v46 = vpop.permute.xlu0 %851 }
 0x27c   : > { %v1806_v49 = vpop.eup %1805  ;;  %v1236_v61 = vmul.f32 %v1804_v48, %v2055_v24  ;;  %1817 = vpow2.f32 %v1602_v21 }
 0x27d   : > { %v1808_v58 = vpop.eup %1807  ;;  %v1237_v60 = vmul.f32 %v1806_v49, %v2063_v32  ;;  %1819 = vpow2.f32 %v1603_v22 }
 0x27e   : > { %v1238_v62 = vmul.f32 %v1808_v58, %v2057_v25  ;;  %1821 = vpow2.f32 %v1604_v26 }
 0x27f   : > { %v1243_v63 = vpack.c.bf16 %v1237_v60, %v1235_v59  ;;  %1823 = vpow2.f32 %v1605_v27  ;;  %v857_v59 = vpop.permute.xlu1 %856 }
 0x280   : > { %v1244_v0 = vpack.c.bf16 %v1238_v62, %v1236_v61 }
 0x282   : > { %v1810_v2 = vpop.eup %1809  ;;  %1267 = vmatprep.subr.bf16.mxu1 %v1244_v0 }
 0x283   : > { %v1812_v3 = vpop.eup %1811  ;;  %1268 = vmatpush1.bf16.msra.mxu1 %v1243_v63  ;;  %v1239_v6 = vmul.f32 %v1810_v2, %v2076_v38 }
 0x284   : > { %v1814_v4 = vpop.eup %1813  ;;  %v1240_v8 = vmul.f32 %v1812_v3, %v2065_v33 }
 0x285   : > { %v1816_v5 = vpop.eup %1815  ;;  %v1241_v7 = vmul.f32 %v1814_v4, %v2078_v39 }
 0x286   : > { %v1242_v9 = vmul.f32 %v1816_v5, %v2067_v34  ;;  %v1818_v30 = vpop.eup %1817 }
 0x287   : > { %v1245_v10 = vpack.c.bf16 %v1241_v7, %v1239_v6  ;;  %v1820_v55 = vpop.eup %1819  ;;  %v1155_v37 = vadd.f32 1.0, %v1818_v30  ;;  %v862_v6 = vpop.permute.xlu0 %861 }
 0x288   : > { %v1246_v11 = vpack.c.bf16 %v1242_v9, %v1240_v8  ;;  %v1822_v35 = vpop.eup %1821  ;;  %v1156_v41 = vadd.f32 1.0, %v1820_v55 }
 0x289   : > { %v1824_v36 = vpop.eup %1823  ;;  %v1157_v43 = vadd.f32 1.0, %v1822_v35 }
 0x28a   : > { %1269 = vmatprep.subr.bf16.mxu1 %v1246_v11  ;;  %v1158_v44 = vadd.f32 1.0, %v1824_v36 }
 0x28b   : > { %1270 = vmatpush1.bf16.msra.mxu1 %v1245_v10 }
 0x28e   : > { %1620 = vmatmul.mubr.msk.bf16.vlgmr.msra.gmra.mrb[16].mxu1 %vm656_vm0, %v1783_v12  ;;  %v867_v12 = vpop.permute.xlu1 %866 }
 0x28f   : > { %1309 = vmatprep.mubr.bf16.mxu1 %v1873_v1  ;;  %v1647_v1 = vadd.f32 %v2137_v54, %v822_v19  ;;  %v1609_v54 = vmul.f32 -1.442695, %v1650_v52 }
 0x291   : > { %v1606_v28 = vmul.f32 -1.442695, %v1647_v1 }
 0x293   : > { %1825 = vpow2.f32 %v1606_v28 }
 0x294   : > { %1827 = vpow2.f32 %v1607_v50 }
 0x295   : > { %1829 = vpow2.f32 %v1608_v53 }
 0x296   : > { %1621 = vmatmul.mubr.msk.bf16.gmra.mrb[20].mxu1 %vm656_vm0, %v1784_v13  ;;  %1831 = vpow2.f32 %v1609_v54 }
 0x297   : > { %1833 = vrcp.f32 %v1155_v37 }
 0x298   : > { %1835 = vrcp.f32 %v1156_v41 }
 0x299   : > { %1837 = vrcp.f32 %v1157_v43 }
 0x29a   : > { %1839 = vrcp.f32 %v1158_v44 }
 0x29d   : > { %v1826_v40 = vpop.eup %1825 }
 0x29e   : > { %v1828_v42 = vpop.eup %1827  ;;  %v1159_v56 = vadd.f32 1.0, %v1826_v40 }
 0x29f   : > { %v1160_v57 = vadd.f32 1.0, %v1828_v42  ;;  %v1830_v45 = vpop.eup %1829 }
 0x2a0   : > { %v1832_v48 = vpop.eup %1831  ;;  %1841 = vrcp.f32 %v1159_v56  ;;  %v1161_v62 = vadd.f32 1.0, %v1830_v45 }
 0x2a1   : > { %1843 = vrcp.f32 %v1160_v57  ;;  %v1162_v2 = vadd.f32 1.0, %v1832_v48  ;;  %v1834_v4 = vpop.eup %1833 }
 0x2a2   : > { %v1836_v5 = vpop.eup %1835  ;;  %v1336_v13 = vsub.f32 1.0, %v1834_v4 }
 0x2a3   : > { %v1838_v8 = vpop.eup %1837  ;;  %v1337_v17 = vsub.f32 1.0, %v1836_v5 }
 0x2a4   : > { %v1840_v11 = vpop.eup %1839  ;;  %v1338_v21 = vsub.f32 1.0, %v1838_v8  ;;  %v1344_v27 = vmul.f32 %v2061_v31, %v1336_v13 }
 0x2a5   : > { %v1339_v23 = vsub.f32 1.0, %v1840_v11  ;;  %v1345_v50 = vmul.f32 %v2055_v24, %v1337_v17 }
 0x2a6   : > { %v1346_v54 = vmul.f32 %v2063_v32, %v1338_v21 }
 0x2a7   : > { %v1347_v35 = vmul.f32 %v2057_v25, %v1339_v23 }
 0x2aa   : > { %v1842_v16 = vpop.eup %1841 }
 0x2ab   : > { %v1844_v20 = vpop.eup %1843  ;;  %v1340_v40 = vsub.f32 1.0, %v1842_v16 }
 0x2ac   : > { %v1341_v42 = vsub.f32 1.0, %v1844_v20 }
 0x2ad   : > { %v1348_v48 = vmul.f32 %v2076_v38, %v1340_v40 }
 0x361   : > { %v1301_v47 = vpop.f32.mrb[16].mxu1 }
 0x362   : > { %v1659_v49 = vadd.f32 %v1301_v47, %v852_v46  ;;  %v1303_v58 = vpop.f32.mrb[17].mxu1 }
 0x363   : > { %v1660_v60 = vadd.f32 %v1303_v58, %v852_v46  ;;  %v1305_v61 = vpop.f32.mrb[18].mxu1 }
 0x364   : > { %1845 = vtanh.f32 %v1659_v49  ;;  %v1661_v63 = vadd.f32 %v1305_v61, %v857_v59  ;;  %v1307_v0 = vpop.f32.mrb[19].mxu1 }
 0x365   : > { %1847 = vtanh.f32 %v1660_v60  ;;  %v1662_v3 = vadd.f32 %v1307_v0, %v857_v59  ;;  %v1349_v60 = vmul.f32 %v2065_v33, %v1341_v42 }
 0x366   : > { %1849 = vtanh.f32 %v1661_v63 }
 0x367   : > { %1851 = vtanh.f32 %v1662_v3 }
 0x368   : > { %1853 = vrcp.f32 %v1161_v62 }
 0x369   : > { %1855 = vrcp.f32 %v1162_v2  ;;  %v1311_v7 = vpop.f32.mrb[20].mxu1 }
 0x36a   : > { %v1663_v9 = vadd.f32 %v1311_v7, %v862_v6  ;;  %v1313_v10 = vpop.f32.mrb[21].mxu1 }
 0x36b   : > { %v1664_v14 = vadd.f32 %v1313_v10, %v862_v6  ;;  %v1315_v15 = vpop.f32.mrb[22].mxu1 }
 0x36c   : > { %1857 = vtanh.f32 %v1663_v9  ;;  %v1665_v18 = vadd.f32 %v1315_v15, %v867_v12  ;;  %v1317_v19 = vpop.f32.mrb[23].mxu1 }
 0x36d   : > { %1859 = vtanh.f32 %v1664_v14  ;;  %v1666_v1 = vadd.f32 %v1317_v19, %v867_v12 }
 0x36e   : > { %v1846_v22 = vpop.eup %1845  ;;  %1861 = vtanh.f32 %v1665_v18 }
 0x36f   : > { %v1848_v26 = vpop.eup %1847  ;;  %v1352_v28 = vmul.f32 %v1846_v22, %v1834_v4  ;;  %1863 = vtanh.f32 %v1666_v1 }
 0x370   : > { %v1850_v29 = vpop.eup %1849  ;;  %v1353_v51 = vmul.f32 %v1848_v26, %v1836_v5 }
 0x371   : > { %v1852_v52 = vpop.eup %1851  ;;  %v1360_v53 = vadd.f32 %v1352_v28, %v1344_v27  ;;  %v1354_v30 = vmul.f32 %v1850_v29, %v1838_v8 }
 0x372   : > { %v1854_v31 = vpop.eup %1853  ;;  %v1361_v55 = vadd.f32 %v1353_v51, %v1345_v50  ;;  %v1355_v36 = vmul.f32 %v1852_v52, %v1840_v11 }
 0x373   : > { %v1856_v37 = vpop.eup %1855  ;;  %1368 = vst [vmem:[%s2176_s15] sm:$0xff] %v1360_v53  ;;  %v1376_v41 = vmax.f32 %v1360_v53, 0.0  ;;  %v1362_v24 = vadd.f32 %v1354_v30, %v1346_v54  ;;  %v1342_v56 = vsub.f32 1.0, %v1854_v31 }
 0x374   : > { %1369 = vst [vmem:[%s2176_s15 + $0x8] sm:$0xff] %v1361_v55  ;;  %v1377_v43 = vmax.f32 %v1361_v55, 0.0  ;;  %v1363_v44 = vadd.f32 %v1355_v36, %v1347_v35  ;;  %v1343_v57 = vsub.f32 1.0, %v1856_v37 }
 0x375   : > { %1370 = vst [vmem:[%s2176_s15 + $0x10] sm:$0xff] %v1362_v24  ;;  %v1378_v25 = vmax.f32 %v1362_v24, 0.0  ;;  %v1350_v0 = vmul.f32 %v2078_v39, %v1342_v56 }
 0x376   : > { %v1858_v32 = vpop.eup %1857  ;;  %v1631_v45 = vpack.c.bf16 %v1377_v43, %v1376_v41  ;;  %1371 = vst [vmem:[%s2176_s15 + $0x18] sm:$0xff] %v1363_v44  ;;  %v1379_v46 = vmax.f32 %v1363_v44, 0.0  ;;  %v1351_v38 = vmul.f32 %v2067_v34, %v1343_v57 }
 0x377   : > { %v1860_v47 = vpop.eup %1859  ;;  %v1356_v49 = vmul.f32 %v1858_v32, %v1842_v16 }
 0x378   : > { %v1862_v58 = vpop.eup %1861  ;;  %1408 = vst [vmem:[%s2187_s18] sm:$0xff] %v1631_v45  ;;  %v1632_v59 = vpack.c.bf16 %v1379_v46, %v1378_v25  ;;  %v1357_v61 = vmul.f32 %v1860_v47, %v1844_v20 }
 0x379   : > { %v1864_v62 = vpop.eup %1863  ;;  %v1364_v63 = vadd.f32 %v1356_v49, %v1348_v48  ;;  %v1358_v2 = vmul.f32 %v1862_v58, %v1854_v31 }
 0x37a   : > { %1409 = vst [vmem:[%s2187_s18 + $0x8] sm:$0xff] %v1632_v59  ;;  %v1365_v3 = vadd.f32 %v1357_v61, %v1349_v60  ;;  %v1359_v4 = vmul.f32 %v1864_v62, %v1856_v37 }
 0x37b   : > { %1372 = vst [vmem:[%s2176_s15 + $0x20] sm:$0xff] %v1364_v63  ;;  %v1380_v5 = vmax.f32 %v1364_v63, 0.0  ;;  %v1366_v6 = vadd.f32 %v1358_v2, %v1350_v0 }
 0x37c   : > { %1373 = vst [vmem:[%s2176_s15 + $0x28] sm:$0xff] %v1365_v3  ;;  %v1381_v33 = vmax.f32 %v1365_v3, 0.0  ;;  %v1367_v7 = vadd.f32 %v1359_v4, %v1351_v38 }
 0x37d   : > { %1374 = vst [vmem:[%s2176_s15 + $0x30] sm:$0xff] %v1366_v6  ;;  %v1382_v8 = vmax.f32 %v1366_v6, 0.0 }
 0x37e   : > { %v1633_v9 = vpack.c.bf16 %v1381_v33, %v1380_v5  ;;  %1375 = vst [vmem:[%s2176_s15 + $0x38] sm:$0xff] %v1367_v7  ;;  %v1383_v10 = vmax.f32 %v1367_v7, 0.0 }
 0x380   : > { %1410 = vst [vmem:[%s2187_s18 + $0x10] sm:$0xff] %v1633_v9  ;;  %v1634_v39 = vpack.c.bf16 %v1383_v10, %v1382_v8 }
 0x382   : > { %1411 = vst [vmem:[%s2187_s18 + $0x18] sm:$0xff] %v1634_v39 }
 0x383 PF: > { %s20_s30 = sadd.s32 1, %s1871_s30  }
 0x384   : > { %p17_p4 = scmp.ge.s32.totalorder %s20_s30, 4  }
 0x386   :  { %19 = sbr.rel (!%p17_p4) target bundleno = 1 (0x1), region = 97 }

// kernel: recurrent_varnet_block.11
= control target key start
LH: loop header
LB: loop body
LE: loop exit
PB: predicated region body
PF: predicated region fallthrough
CT: control target
= control target key end

     0   :  { %s1924_s30 = smov 0   ;;  %s2206_s0 = inlined_call_operand.vmem [shape: bf16[2,288,256], index: 0, kind: input, shape index: {}]   ;;  %s2207_s1 = inlined_call_operand.vmem [shape: f32[4,2,32,256], index: 1, kind: input, shape index: {}]   ;;  %s2208_s2 = inlined_call_operand.vmem [shape: bf16[32,288], index: 2, kind: input, shape index: {}]   ;;  %s2209_s3 = inlined_call_operand.vmem [shape: f32[32,1], index: 3, kind: input, shape index: {}]   ;;  %s2210_s4 = inlined_call_operand.vmem [shape: bf16[96,32], index: 4, kind: input, shape index: {}]   ;;  %s2211_s5 = inlined_call_operand.vmem [shape: bf16[64,32], index: 5, kind: input, shape index: {}]   ;;  %s2212_s6 = inlined_call_operand.vmem [shape: bf16[32,32], index: 6, kind: input, shape index: {}]   ;;  %s2213_s7 = inlined_call_operand.vmem [shape: f32[96,1], index: 7, kind: input, shape index: {}]   ;;  %s2214_s8 = inlined_call_operand.vmem [shape: f32[2,32,256], index: 8, kind: output, shape index: {0}]   ;;  %s2215_s9 = inlined_call_operand.vmem [shape: bf16[2,32,256], index: 9, kind: output, shape index: {1}]  }
   0x1 LB: > { %s1518_s10 = sadd.s32 4294967295, %s1871_s30   ;;  %p1522_p0 = scmp.ge.s32.totalorder %s1871_s30, 1  ;;  %s1871_s30 = sphi %s1924_s30, %s20_s30  }
   0x2   : > { %p301_p1 = scmp.lt.s32.totalorder %s1871_s30, 3 }
   0x4   : > { %p302_p2 = pnand %p1522_p0, %p301_p1 }
   0x5   : > { %p348_p3 = scmp.lt.s32.totalorder (!%p302_p2), %s1518_s10, 1  ;;  %v1761_v0 = vld [vmem:[%s2208_s2 + $0x4] ss:$12 sps:$4 sm:$0xff] (!%p302_p2)   ;;  %v1873_v1 = vmov (!%p302_p2), 0   ;;  %v423_v4 = vld [vmem:[%s2209_s3 + $0x8] sm:$0xff] (!%p302_p2)  ;;  %v425_v5 = vld [vmem:[%s2209_s3 + $0x18] sm:$0xff] (!%p302_p2) }
   0x6   : > { %305 = sbr.rel (%p302_p2) target bundleno = 899 (0x383), region = 52  ;;  %1709 = vset.pattern.permute.xlu0 (!%p302_p2), %v1873_v1  ;;  %1710 = vset.pattern.permute.xlu1 (!%p302_p2), %v1873_v1  ;;  %v422_v2 = vld [vmem:[%s2209_s3] sm:$0xff] (!%p302_p2)  ;;  %v424_v3 = vld [vmem:[%s2209_s3 + $0x10] sm:$0xff] (!%p302_p2)  ;;  %v802_v11 = vld [vmem:[%s2213_s7 + $0x28] sm:$0xff] (!%p302_p2)  ;;  %vm656_vm0 = vcmask (!%p302_p2), 261120  }
   0x7   : > { %949 = vmatprep.mubr.bf16.mxu1 (!%p302_p2), %v1873_v1  ;;  %695 = vmatprep.mubr.bf16.mxu0 (!%p302_p2), %v1761_v0  ;;  %v801_v6 = vld [vmem:[%s2213_s7 + $0x20] sm:$0xff] (!%p302_p2)  ;;  %v803_v13 = vld [vmem:[%s2213_s7 + $0x30] sm:$0xff] (!%p302_p2)  ;;  %v804_v24 = vld [vmem:[%s2213_s7 + $0x38] sm:$0xff] (!%p302_p2) }
   0x8   : > { %428 = vperm.xlu0 (!%p302_p2), %1709, %v422_v2   ;;  %438 = vperm.xlu1 (!%p302_p2), %1710, %v424_v3   ;;  %v797_v25 = vld [vmem:[%s2213_s7] sm:$0xff] (!%p302_p2)  ;;  %v798_v28 = vld [vmem:[%s2213_s7 + $0x8] sm:$0xff] (!%p302_p2)  ;;  %v799_v29 = vld [vmem:[%s2213_s7 + $0x10] sm:$0xff] (!%p302_p2) }
   0x9   : > { %v800_v30 = vld [vmem:[%s2213_s7 + $0x18] sm:$0xff] (!%p302_p2)  ;;  %v805_v31 = vld [vmem:[%s2213_s7 + $0x40] sm:$0xff] (!%p302_p2)  ;;  %v806_v34 = vld [vmem:[%s2213_s7 + $0x48] sm:$0xff] (!%p302_p2) }
   0xa   : > { %v807_v35 = vld [vmem:[%s2213_s7 + $0x50] sm:$0xff] (!%p302_p2)  ;;  %v808_v38 = vld [vmem:[%s2213_s7 + $0x58] sm:$0xff] (!%p302_p2)  ;;  %v1759_v51 = vld [vmem:[%s2208_s2] ss:$12 sps:$4 sm:$0xff] (!%p302_p2)  }
   0xb   : > { %v1762_v52 = vld [vmem:[%s2208_s2 + $0x1c] ss:$12 sps:$4 sm:$0xff] (!%p302_p2)   ;;  %v1764_v56 = vld [vmem:[%s2208_s2 + $0x18] ss:$12 sps:$4 sm:$0xff] (!%p302_p2)   ;;  %v1772_v58 = vld [vmem:[%s2208_s2 + $0x20] ss:$12 sps:$4 sm:$0xff] (!%p302_p2)  }
   0xc   : > { %433 = vperm.xlu0 (!%p302_p2), %1709, %v423_v4   ;;  %443 = vperm.xlu1 (!%p302_p2), %1710, %v425_v5   ;;  %v1771_v57 = vld [vmem:[%s2208_s2 + $0x8] ss:$12 sps:$4 sm:$0xff] (!%p302_p2)  }
   0xd   : > { %s2217_s10 = smov (!%p348_p3, %s1518_s10), 1 }
   0xe   : > { %s1699_s15 = smul.u32 288, %s2217_s10  ;;  %s1628_s21 = sshll.u32 %s2217_s10, 6 }
   0xf   : > { %s1469_s25 = scalar_lea.vmem %s2207_s1, %s1628_s21  ;;  %s1630_s16 = sshll.u32 %s2217_s10, 5 }
  0x10   : > { %s1953_s22 = scalar_lea.vmem %s2206_s0, %s1699_s15  ;;  %831 = vperm.xlu0 %1709, %v801_v6   ;;  %836 = vperm.xlu1 %1710, %v802_v11   ;;  %s2176_s15 = scalar_lea.vmem %s2214_s8, %s1628_s21 }
  0x11   : > { %v1711_v7 = vld [vmem:[%s1953_s22 + $0x4] ss:$8 sps:$4 sm:$0xff]   ;;  %v1713_v8 = vld [vmem:[%s1953_s22] ss:$8 sps:$4 sm:$0xff]   ;;  %v1714_v9 = vld [vmem:[%s1953_s22 + $0x14] ss:$8 sps:$4 sm:$0xff]   ;;  %s2187_s18 = scalar_lea.vmem %s2215_s9, %s1630_s16 }
  0x12   : > { %663 = vmatprep.subr.bf16.mxu0 %v1711_v7  ;;  %v1716_v10 = vld [vmem:[%s1953_s22 + $0x10] ss:$8 sps:$4 sm:$0xff]   ;;  %v1717_v12 = vld [vmem:[%s1953_s22 + $0x24] ss:$8 sps:$4 sm:$0xff]   ;;  %v1719_v14 = vld [vmem:[%s1953_s22 + $0x20] ss:$8 sps:$4 sm:$0xff]  }
  0x13   : > { %664 = vmatpush1.bf16.msra.mxu0 %v1713_v8  ;;  %v1720_v15 = vld [vmem:[%s1953_s22 + $0x34] ss:$8 sps:$4 sm:$0xff]   ;;  %v1722_v16 = vld [vmem:[%s1953_s22 + $0x30] ss:$8 sps:$4 sm:$0xff]   ;;  %v1723_v17 = vld [vmem:[%s1953_s22 + $0x44] ss:$8 sps:$4 sm:$0xff]  }
  0x14   : > { %665 = vmatprep.subr.bf16.mxu0 %v1714_v9  ;;  %841 = vperm.xlu0 %1709, %v803_v13   ;;  %v1725_v18 = vld [vmem:[%s1953_s22 + $0x40] ss:$8 sps:$4 sm:$0xff]   ;;  %v1726_v19 = vld [vmem:[%s1953_s22 + $0x54] ss:$8 sps:$4 sm:$0xff]   ;;  %v1728_v20 = vld [vmem:[%s1953_s22 + $0x50] ss:$8 sps:$4 sm:$0xff]  }
  0x15   : > { %v1729_v21 = vld [vmem:[%s1953_s22 + $0x64] ss:$8 sps:$4 sm:$0xff]   ;;  %v1731_v22 = vld [vmem:[%s1953_s22 + $0x60] ss:$8 sps:$4 sm:$0xff]   ;;  %v1732_v23 = vld [vmem:[%s1953_s22 + $0x74] ss:$8 sps:$4 sm:$0xff]   ;;  %846 = vperm.xlu1 %1710, %v804_v24  }
  0x16   : > { %v1734_v26 = vld [vmem:[%s1953_s22 + $0x70] ss:$8 sps:$4 sm:$0xff]   ;;  %v1735_v27 = vld [vmem:[%s1953_s22 + $0x84] ss:$8 sps:$4 sm:$0xff]   ;;  %v1737_v32 = vld [vmem:[%s1953_s22 + $0x80] ss:$8 sps:$4 sm:$0xff]  }
  0x17   : > { %666 = vmatpush1.bf16.msra.mxu0 %v1716_v10  ;;  %v1738_v33 = vld [vmem:[%s1953_s22 + $0x94] ss:$8 sps:$4 sm:$0xff]   ;;  %v1740_v36 = vld [vmem:[%s1953_s22 + $0x90] ss:$8 sps:$4 sm:$0xff]   ;;  %v1741_v37 = vld [vmem:[%s1953_s22 + $0xa4] ss:$8 sps:$4 sm:$0xff]  }
  0x18   : > { %667 = vmatprep.subr.bf16.mxu0 %v1717_v12  ;;  %811 = vperm.xlu0 %1709, %v797_v25   ;;  %v1743_v39 = vld [vmem:[%s1953_s22 + $0xa0] ss:$8 sps:$4 sm:$0xff]   ;;  %v1744_v40 = vld [vmem:[%s1953_s22 + $0xb4] ss:$8 sps:$4 sm:$0xff]   ;;  %v1746_v41 = vld [vmem:[%s1953_s22 + $0xb0] ss:$8 sps:$4 sm:$0xff]  }
  0x19   : > { %816 = vperm.xlu1 %1710, %v798_v28   ;;  %v1747_v42 = vld [vmem:[%s1953_s22 + $0xc4] ss:$8 sps:$4 sm:$0xff]   ;;  %v1749_v43 = vld [vmem:[%s1953_s22 + $0xc0] ss:$8 sps:$4 sm:$0xff]   ;;  %v1750_v44 = vld [vmem:[%s1953_s22 + $0xd4] ss:$8 sps:$4 sm:$0xff]  }
  0x1a   : > { %v1752_v45 = vld [vmem:[%s1953_s22 + $0xd0] ss:$8 sps:$4 sm:$0xff]   ;;  %v1753_v46 = vld [vmem:[%s1953_s22 + $0xe4] ss:$8 sps:$4 sm:$0xff]   ;;  %v1755_v47 = vld [vmem:[%s1953_s22 + $0xe0] ss:$8 sps:$4 sm:$0xff]  }
  0x1b   : > { %668 = vmatpush1.bf16.msra.mxu0 %v1719_v14  ;;  %v1756_v48 = vld [vmem:[%s1953_s22 + $0xf4] ss:$8 sps:$4 sm:$0xff]   ;;  %v1758_v49 = vld [vmem:[%s1953_s22 + $0xf0] ss:$8 sps:$4 sm:$0xff]   ;;  %v1767_v50 = vld [vmem:[%s1953_s22 + $0x104] ss:$8 sps:$4 sm:$0xff]  }
  0x1c   : > { %669 = vmatprep.subr.bf16.mxu0 %v1720_v15  ;;  %821 = vperm.xlu0 %1709, %v799_v29   ;;  %v1765_v53 = vld [vmem:[%s1953_s22 + $0x100] ss:$8 sps:$4 sm:$0xff]   ;;  %v1770_v54 = vld [vmem:[%s1953_s22 + $0x114] ss:$8 sps:$4 sm:$0xff]   ;;  %v1768_v55 = vld [vmem:[%s1953_s22 + $0x110] ss:$8 sps:$4 sm:$0xff]  }
  0x1d   : > { %826 = vperm.xlu1 %1710, %v800_v30   ;;  %v2055_v24 = vld [vmem:[%s1469_s25 + $0x188] sm:$0xff]  ;;  %v2057_v25 = vld [vmem:[%s1469_s25 + $0x198] sm:$0xff] }
  0x1e   : > { %v782_v30 = vpack.c.bf16 %v2057_v25, %v2055_v24 }
  0x1f   : > { %670 = vmatpush1.bf16.msra.mxu0 %v1722_v16 }
  0x20   : > { %671 = vmatprep.subr.bf16.mxu0 %v1723_v17  ;;  %851 = vperm.xlu0 %1709, %v805_v31   ;;  %v2061_v31 = vld [vmem:[%s1469_s25 + $0x180] sm:$0xff] }
  0x21   : > { %856 = vperm.xlu1 %1710, %v806_v34   ;;  %v2067_v34 = vld [vmem:[%s1469_s25 + $0x1b8] sm:$0xff] }
  0x23   : > { %672 = vmatpush1.bf16.msra.mxu0 %v1725_v18 }
  0x24   : > { %673 = vmatprep.subr.bf16.mxu0 %v1726_v19  ;;  %861 = vperm.xlu0 %1709, %v807_v35   ;;  %v1773_v35 = vld [vmem:[%s2210_s4] sm:$0xff]  }
  0x25   : > { %866 = vperm.xlu1 %1710, %v808_v38   ;;  %v2076_v38 = vld [vmem:[%s1469_s25 + $0x1a0] sm:$0xff] }
  0x27   : > { %674 = vmatpush1.bf16.msra.mxu0 %v1728_v20 }
  0x28   : > { %675 = vmatprep.subr.bf16.mxu0 %v1729_v21 }
  0x2b   : > { %676 = vmatpush1.bf16.msra.mxu0 %v1731_v22 }
  0x2c   : > { %677 = vmatprep.subr.bf16.mxu0 %v1732_v23 }
  0x2f   : > { %678 = vmatpush1.bf16.msra.mxu0 %v1734_v26 }
  0x30   : > { %679 = vmatprep.subr.bf16.mxu0 %v1735_v27 }
  0x33   : > { %680 = vmatpush1.bf16.msra.mxu0 %v1737_v32  ;;  %v2063_v32 = vld [vmem:[%s1469_s25 + $0x190] sm:$0xff] }
  0x34   : > { %681 = vmatprep.subr.bf16.mxu0 %v1738_v33  ;;  %v2065_v33 = vld [vmem:[%s1469_s25 + $0x1a8] sm:$0xff] }
  0x37   : > { %682 = vmatpush1.bf16.msra.mxu0 %v1740_v36  ;;  %v781_v36 = vpack.c.bf16 %v2063_v32, %v2061_v31 }
  0x38   : > { %683 = vmatprep.subr.bf16.mxu0 %v1741_v37  ;;  %v784_v37 = vpack.c.bf16 %v2067_v34, %v2065_v33 }
  0x3b   : > { %684 = vmatpush1.bf16.msra.mxu0 %v1743_v39  ;;  %v2078_v39 = vld [vmem:[%s1469_s25 + $0x1b0] sm:$0xff] }
  0x3c   : > { %685 = vmatprep.subr.bf16.mxu0 %v1744_v40  ;;  %v783_v40 = vpack.c.bf16 %v2078_v39, %v2076_v38 }
  0x3f   : > { %686 = vmatpush1.bf16.msra.mxu0 %v1746_v41  ;;  %v1774_v41 = vld [vmem:[%s2210_s4 + $0x8] sm:$0xff]  }
  0x40   : > { %687 = vmatprep.subr.bf16.mxu0 %v1747_v42  ;;  %v1775_v42 = vld [vmem:[%s2210_s4 + $0x10] sm:$0xff]  }
  0x43   : > { %688 = vmatpush1.bf16.msra.mxu0 %v1749_v43  ;;  %v1776_v43 = vld [vmem:[%s2210_s4 + $0x18] sm:$0xff]  }
  0x44   : > { %689 = vmatprep.subr.bf16.mxu0 %v1750_v44  ;;  %v1777_v44 = vld [vmem:[%s2210_s4 + $0x20] sm:$0xff]  }
  0x47   : > { %690 = vmatpush1.bf16.msra.mxu0 %v1752_v45  ;;  %v1778_v45 = vld [vmem:[%s2210_s4 + $0x28] sm:$0xff]  }
  0x48   : > { %691 = vmatprep.subr.bf16.mxu0 %v1753_v46  ;;  %v1779_v46 = vld [vmem:[%s2211_s5] sm:$0xff]  }
  0x4b   : > { %692 = vmatpush1.bf16.msra.mxu0 %v1755_v47  ;;  %v1780_v47 = vld [vmem:[%s2211_s5 + $0x8] sm:$0xff]  }
  0x4c   : > { %693 = vmatprep.subr.bf16.mxu0 %v1756_v48  ;;  %v1781_v48 = vld [vmem:[%s2211_s5 + $0x10] sm:$0xff]  }
  0x4f   : > { %694 = vmatpush1.bf16.msra.mxu0 %v1758_v49  ;;  %v1782_v49 = vld [vmem:[%s2211_s5 + $0x18] sm:$0xff]  }
  0x50   : > { %716 = vmatprep.subr.bf16.mxu0 %v1767_v50 }
  0x52   : > { %696 = vmatmul.mubr.bf16.vlgmr.msra.gmra.mrb[0].mxu0 %v1759_v51 }
  0x53   : > { %705 = vmatprep.mubr.bf16.mxu0 %v1762_v52  ;;  %717 = vmatpush1.bf16.msra.mxu0 %v1765_v53 }
  0x54   : > { %718 = vmatprep.subr.bf16.mxu0 %v1770_v54 }
  0x57   : > { %719 = vmatpush1.bf16.msra.mxu0 %v1768_v55 }
  0x5a   : > { %706 = vmatmul.mubr.bf16.gmra.mrb[4].mxu0 %v1764_v56 }
  0x5b   : > { %748 = vmatprep.mubr.bf16.mxu0 %v1873_v1 }
  0x62   : > { %1580 = vmatmul.mubr.msk.bf16.vlgmr.msra.gmra.mrb[0].mxu0 %vm656_vm0, %v1771_v57 }
  0x63   : > { %758 = vmatprep.mubr.bf16.mxu0 %v1873_v1 }
  0x6a   : > { %1581 = vmatmul.mubr.msk.bf16.gmra.mrb[4].mxu0 %vm656_vm0, %v1772_v58 }
  0x87   : > { %v429_v59 = vpop.permute.xlu0 %428  ;;  %v439_v5 = vpop.permute.xlu1 %438 }
  0x8b   : > { %v434_v63 = vpop.permute.xlu0 %433  ;;  %v444_v16 = vpop.permute.xlu1 %443 }
  0x8f   : > { %v832_v58 = vpop.permute.xlu0 %831 }
 0x135   : > { %v750_v60 = vpop.f32.mrb[0].mxu0 }
 0x136   : > { %v1635_v61 = vadd.f32 %v750_v60, %v429_v59  ;;  %v752_v62 = vpop.f32.mrb[1].mxu0 }
 0x137   : > { %v1636_v0 = vadd.f32 %v752_v62, %v429_v59  ;;  %v754_v2 = vpop.f32.mrb[2].mxu0  ;;  %v837_v62 = vpop.permute.xlu1 %836 }
 0x138   : > { %v1637_v3 = vadd.f32 %v754_v2, %v434_v63  ;;  %v756_v4 = vpop.f32.mrb[3].mxu0  ;;  %v769_v7 = vmax.f32 %v1635_v61, 0.0 }
 0x139   : > { %v1638_v6 = vadd.f32 %v756_v4, %v434_v63  ;;  %v770_v9 = vmax.f32 %v1636_v0, 0.0 }
 0x13a   : > { %v771_v8 = vmax.f32 %v1637_v3, 0.0 }
 0x13b   : > { %v772_v10 = vmax.f32 %v1638_v6, 0.0 }
 0x13c   : > { %v777_v11 = vpack.c.bf16 %v771_v8, %v769_v7 }
 0x13d   : > { %v760_v12 = vpop.f32.mrb[4].mxu0  ;;  %v778_v13 = vpack.c.bf16 %v772_v10, %v770_v9  ;;  %v842_v9 = vpop.permute.xlu0 %841 }
 0x13e   : > { %v1639_v14 = vadd.f32 %v760_v12, %v439_v5  ;;  %v762_v15 = vpop.f32.mrb[5].mxu0 }
 0x13f   : > { %v1640_v17 = vadd.f32 %v762_v15, %v439_v5  ;;  %v764_v18 = vpop.f32.mrb[6].mxu0  ;;  %917 = vmatprep.subr.bf16.mxu1 %v778_v13  ;;  %v847_v13 = vpop.permute.xlu1 %846 }
 0x140   : > { %v1641_v19 = vadd.f32 %v764_v18, %v444_v16  ;;  %v766_v20 = vpop.f32.mrb[7].mxu0  ;;  %918 = vmatpush1.bf16.msra.mxu1 %v777_v11  ;;  %v773_v22 = vmax.f32 %v1639_v14, 0.0 }
 0x141   : > { %v1642_v21 = vadd.f32 %v766_v20, %v444_v16  ;;  %v774_v26 = vmax.f32 %v1640_v17, 0.0 }
 0x142   : > { %v775_v23 = vmax.f32 %v1641_v19, 0.0 }
 0x143   : > { %v776_v27 = vmax.f32 %v1642_v21, 0.0 }
 0x144   : > { %v779_v28 = vpack.c.bf16 %v775_v23, %v773_v22 }
 0x145   : > { %v780_v29 = vpack.c.bf16 %v776_v27, %v774_v26 }
 0x147   : > { %919 = vmatprep.subr.bf16.mxu1 %v780_v29 }
 0x148   : > { %920 = vmatpush1.bf16.msra.mxu1 %v779_v28 }
 0x149   : > { %1050 = vmatprep.subr.bf16.mxu1 %v782_v30 }
 0x14b   : > { %1588 = vmatmul.mubr.msk.bf16.vlgmr.msra.gmra.mrb[0].mxu1 %vm656_vm0, %v1773_v35 }
 0x14c   : > { %959 = vmatprep.mubr.bf16.mxu1 %v1873_v1  ;;  %1051 = vmatpush1.bf16.msra.mxu1 %v781_v36 }
 0x14d   : > { %1052 = vmatprep.subr.bf16.mxu1 %v784_v37 }
 0x150   : > { %1053 = vmatpush1.bf16.msra.mxu1 %v783_v40 }
 0x153   : > { %1589 = vmatmul.mubr.msk.bf16.gmra.mrb[4].mxu1 %vm656_vm0, %v1774_v41 }
 0x154   : > { %969 = vmatprep.mubr.bf16.mxu1 %v1873_v1 }
 0x15b   : > { %1590 = vmatmul.mubr.msk.bf16.gmra.mrb[8].mxu1 %vm656_vm0, %v1775_v42 }
 0x15c   : > { %979 = vmatprep.mubr.bf16.mxu1 %v1873_v1 }
 0x163   : > { %1591 = vmatmul.mubr.msk.bf16.gmra.mrb[12].mxu1 %vm656_vm0, %v1776_v43 }
 0x164   : > { %989 = vmatprep.mubr.bf16.mxu1 %v1873_v1 }
 0x16b   : > { %1592 = vmatmul.mubr.msk.bf16.gmra.mrb[16].mxu1 %vm656_vm0, %v1777_v44 }
 0x16c   : > { %999 = vmatprep.mubr.bf16.mxu1 %v1873_v1 }
 0x173   : > { %1593 = vmatmul.mubr.msk.bf16.gmra.mrb[20].mxu1 %vm656_vm0, %v1778_v45 }
 0x174   : > { %1082 = vmatprep.mubr.bf16.mxu1 %v1873_v1 }
 0x17b   : > { %1598 = vmatmul.mubr.msk.bf16.vlgmr.msra.gmra.mrb[0].mxu1 %vm656_vm0, %v1779_v46 }
 0x17c   : > { %1092 = vmatprep.mubr.bf16.mxu1 %v1873_v1 }
 0x183   : > { %1599 = vmatmul.mubr.msk.bf16.gmra.mrb[4].mxu1 %vm656_vm0, %v1780_v47 }
 0x184   : > { %1102 = vmatprep.mubr.bf16.mxu1 %v1873_v1 }
 0x18b   : > { %1600 = vmatmul.mubr.msk.bf16.gmra.mrb[8].mxu1 %vm656_vm0, %v1781_v48 }
 0x18c   : > { %1112 = vmatprep.mubr.bf16.mxu1 %v1873_v1 }
 0x193   : > { %1601 = vmatmul.mubr.msk.bf16.gmra.mrb[12].mxu1 %vm656_vm0, %v1782_v49 }
 0x194   : > { %1299 = vmatprep.mubr.bf16.mxu1 %v1873_v1 }
 0x24e   : > { %v2129_v50 = vpop.f32.mrb[0].mxu1 }
 0x24f   : > { %v2131_v51 = vpop.f32.mrb[1].mxu1 }
 0x250   : > { %v2133_v52 = vpop.f32.mrb[2].mxu1 }
 0x251   : > { %v2135_v53 = vpop.f32.mrb[3].mxu1 }
 0x256   : > { %v2137_v54 = vpop.f32.mrb[4].mxu1 }
 0x257   : > { %v2139_v55 = vpop.f32.mrb[5].mxu1 }
 0x258   : > { %v2141_v56 = vpop.f32.mrb[6].mxu1 }
 0x259   : > { %v2143_v57 = vpop.f32.mrb[7].mxu1 }
 0x25e   : > { %v1104_v59 = vpop.f32.mrb[8].mxu1 }
 0x25f   : > { %v1651_v60 = vadd.f32 %v1104_v59, %v832_v58  ;;  %v1106_v61 = vpop.f32.mrb[9].mxu1 }
 0x260   : > { %v1652_v63 = vadd.f32 %v1106_v61, %v832_v58  ;;  %v1108_v0 = vpop.f32.mrb[10].mxu1 }
 0x261   : > { %v1610_v2 = vmul.f32 -1.442695, %v1651_v60  ;;  %v1653_v3 = vadd.f32 %v1108_v0, %v837_v62  ;;  %v1110_v4 = vpop.f32.mrb[11].mxu1 }
 0x262   : > { %v1611_v5 = vmul.f32 -1.442695, %v1652_v63  ;;  %v1654_v6 = vadd.f32 %v1110_v4, %v837_v62 }
 0x263   : > { %v1612_v7 = vmul.f32 -1.442695, %v1653_v3  ;;  %1785 = vpow2.f32 %v1610_v2 }
 0x264   : > { %v1613_v8 = vmul.f32 -1.442695, %v1654_v6  ;;  %1787 = vpow2.f32 %v1611_v5 }
 0x265   : > { %1789 = vpow2.f32 %v1612_v7 }
 0x266   : > { %v1114_v10 = vpop.f32.mrb[12].mxu1  ;;  %1791 = vpow2.f32 %v1613_v8 }
 0x267   : > { %v1655_v11 = vadd.f32 %v1114_v10, %v842_v9  ;;  %v1116_v12 = vpop.f32.mrb[13].mxu1 }
 0x268   : > { %v1656_v14 = vadd.f32 %v1116_v12, %v842_v9  ;;  %v1118_v15 = vpop.f32.mrb[14].mxu1  ;;  %v1783_v12 = vld [vmem:[%s2212_s6] sm:$0xff]  }
 0x269   : > { %v1614_v16 = vmul.f32 -1.442695, %v1655_v11  ;;  %v1657_v17 = vadd.f32 %v1118_v15, %v847_v13  ;;  %v1120_v18 = vpop.f32.mrb[15].mxu1 }
 0x26a   : > { %v1615_v19 = vmul.f32 -1.442695, %v1656_v14  ;;  %v1658_v20 = vadd.f32 %v1120_v18, %v847_v13  ;;  %v1784_v13 = vld [vmem:[%s2212_s6 + $0x8] sm:$0xff]   ;;  %v812_v14 = vpop.permute.xlu0 %811 }
 0x26b   : > { %v1616_v21 = vmul.f32 -1.442695, %v1657_v17  ;;  %1793 = vpow2.f32 %v1614_v16  ;;  %v1643_v15 = vadd.f32 %v2129_v50, %v812_v14  ;;  %v817_v16 = vpop.permute.xlu1 %816  ;;  %v1644_v17 = vadd.f32 %v2131_v51, %v812_v14 }
 0x26c   : > { %v1617_v22 = vmul.f32 -1.442695, %v1658_v20  ;;  %1795 = vpow2.f32 %v1615_v19  ;;  %v1645_v18 = vadd.f32 %v2133_v52, %v817_v16  ;;  %v1646_v20 = vadd.f32 %v2135_v53, %v817_v16 }
 0x26d   : > { %v1786_v23 = vpop.eup %1785  ;;  %1797 = vpow2.f32 %v1616_v21  ;;  %v1602_v21 = vmul.f32 -1.442695, %v1643_v15 }
 0x26e   : > { %v1788_v26 = vpop.eup %1787  ;;  %v1211_v27 = vadd.f32 1.0, %v1786_v23  ;;  %1799 = vpow2.f32 %v1617_v22  ;;  %v822_v19 = vpop.permute.xlu0 %821  ;;  %v1603_v22 = vmul.f32 -1.442695, %v1644_v17 }
 0x26f   : > { %v1790_v28 = vpop.eup %1789  ;;  %v1212_v29 = vadd.f32 1.0, %v1788_v26  ;;  %v1648_v23 = vadd.f32 %v2139_v55, %v822_v19  ;;  %v1604_v26 = vmul.f32 -1.442695, %v1645_v18 }
 0x270   : > { %v1792_v30 = vpop.eup %1791  ;;  %1801 = vrcp.f32 %v1211_v27  ;;  %v1213_v35 = vadd.f32 1.0, %v1790_v28  ;;  %v1605_v27 = vmul.f32 -1.442695, %v1646_v20 }
 0x271   : > { %1803 = vrcp.f32 %v1212_v29  ;;  %v1214_v36 = vadd.f32 1.0, %v1792_v30  ;;  %v827_v29 = vpop.permute.xlu1 %826  ;;  %v1607_v50 = vmul.f32 -1.442695, %v1648_v23 }
 0x272   : > { %1805 = vrcp.f32 %v1213_v35  ;;  %v1649_v51 = vadd.f32 %v2141_v56, %v827_v29  ;;  %v1650_v52 = vadd.f32 %v2143_v57, %v827_v29 }
 0x273   : > { %1807 = vrcp.f32 %v1214_v36 }
 0x274   : > { %v1608_v53 = vmul.f32 -1.442695, %v1649_v51 }
 0x275   : > { %v1794_v37 = vpop.eup %1793 }
 0x276   : > { %v1796_v40 = vpop.eup %1795  ;;  %v1215_v41 = vadd.f32 1.0, %v1794_v37 }
 0x277   : > { %v1798_v42 = vpop.eup %1797  ;;  %v1216_v43 = vadd.f32 1.0, %v1796_v40 }
 0x278   : > { %v1800_v44 = vpop.eup %1799  ;;  %1809 = vrcp.f32 %v1215_v41  ;;  %v1217_v45 = vadd.f32 1.0, %v1798_v42 }
 0x279   : > { %1811 = vrcp.f32 %v1216_v43  ;;  %v1218_v46 = vadd.f32 1.0, %v1800_v44 }
 0x27a   : > { %v1802_v47 = vpop.eup %1801  ;;  %1813 = vrcp.f32 %v1217_v45 }
 0x27b   : > { %v1804_v48 = vpop.eup %1803  ;;  %1815 = vrcp.f32 %v1218_v46  ;;  %v1235_v59 = vmul.f32 %v1802_v47, %v2061_v31  ;;  %v852_v46 = vpop.permute.xlu0 %851 }
 0x27c   : > { %v1806_v49 = vpop.eup %1805  ;;  %v1236_v61 = vmul.f32 %v1804_v48, %v2055_v24  ;;  %1817 = vpow2.f32 %v1602_v21 }
 0x27d   : > { %v1808_v58 = vpop.eup %1807  ;;  %v1237_v60 = vmul.f32 %v1806_v49, %v2063_v32  ;;  %1819 = vpow2.f32 %v1603_v22 }
 0x27e   : > { %v1238_v62 = vmul.f32 %v1808_v58, %v2057_v25  ;;  %1821 = vpow2.f32 %v1604_v26 }
 0x27f   : > { %v1243_v63 = vpack.c.bf16 %v1237_v60, %v1235_v59  ;;  %1823 = vpow2.f32 %v1605_v27  ;;  %v857_v59 = vpop.permute.xlu1 %856 }
 0x280   : > { %v1244_v0 = vpack.c.bf16 %v1238_v62, %v1236_v61 }
 0x282   : > { %v1810_v2 = vpop.eup %1809  ;;  %1267 = vmatprep.subr.bf16.mxu1 %v1244_v0 }
 0x283   : > { %v1812_v3 = vpop.eup %1811  ;;  %1268 = vmatpush1.bf16.msra.mxu1 %v1243_v63  ;;  %v1239_v6 = vmul.f32 %v1810_v2, %v2076_v38 }
 0x284   : > { %v1814_v4 = vpop.eup %1813  ;;  %v1240_v8 = vmul.f32 %v1812_v3, %v2065_v33 }
 0x285   : > { %v1816_v5 = vpop.eup %1815  ;;  %v1241_v7 = vmul.f32 %v1814_v4, %v2078_v39 }
 0x286   : > { %v1242_v9 = vmul.f32 %v1816_v5, %v2067_v34  ;;  %v1818_v30 = vpop.eup %1817 }
 0x287   : > { %v1245_v10 = vpack.c.bf16 %v1241_v7, %v1239_v6  ;;  %v1820_v55 = vpop.eup %1819  ;;  %v1155_v37 = vadd.f32 1.0, %v1818_v30  ;;  %v862_v6 = vpop.permute.xlu0 %861 }
 0x288   : > { %v1246_v11 = vpack.c.bf16 %v1242_v9, %v1240_v8  ;;  %v1822_v35 = vpop.eup %1821  ;;  %v1156_v41 = vadd.f32 1.0, %v1820_v55 }
 0x289   : > { %v1824_v36 = vpop.eup %1823  ;;  %v1157_v43 = vadd.f32 1.0, %v1822_v35 }
 0x28a   : > { %1269 = vmatprep.subr.bf16.mxu1 %v1246_v11  ;;  %v1158_v44 = vadd.f32 1.0, %v1824_v36 }
 0x28b   : > { %1270 = vmatpush1.bf16.msra.mxu1 %v1245_v10 }
 0x28e   : > { %1620 = vmatmul.mubr.msk.bf16.vlgmr.msra.gmra.mrb[16].mxu1 %vm656_vm0, %v1783_v12  ;;  %v867_v12 = vpop.permute.xlu1 %866 }
 0x28f   : > { %1309 = vmatprep.mubr.bf16.mxu1 %v1873_v1  ;;  %v1647_v1 = vadd.f32 %v2137_v54, %v822_v19  ;;  %v1609_v54 = vmul.f32 -1.442695, %v1650_v52 }
 0x291   : > { %v1606_v28 = vmul.f32 -1.442695, %v1647_v1 }
 0x293   : > { %1825 = vpow2.f32 %v1606_v28 }
 0x294   : > { %1827 = vpow2.f32 %v1607_v50 }
 0x295   : > { %1829 = vpow2.f32 %v1608_v53 }
 0x296   : > { %1621 = vmatmul.mubr.msk.bf16.gmra.mrb[20].mxu1 %vm656_vm0, %v1784_v13  ;;  %1831 = vpow2.f32 %v1609_v54 }
 0x297   : > { %1833 = vrcp.f32 %v1155_v37 }
 0x298   : > { %1835 = vrcp.f32 %v1156_v41 }
 0x299   : > { %1837 = vrcp.f32 %v1157_v43 }
 0x29a   : > { %1839 = vrcp.f32 %v1158_v44 }
 0x29d   : > { %v1826_v40 = vpop.eup %1825 }
 0x29e   : > { %v1828_v42 = vpop.eup %1827  ;;  %v1159_v56 = vadd.f32 1.0, %v1826_v40 }
 0x29f   : > { %v1160_v57 = vadd.f32 1.0, %v1828_v42  ;;  %v1830_v45 = vpop.eup %1829 }
 0x2a0   : > { %v1832_v48 = vpop.eup %1831  ;;  %1841 = vrcp.f32 %v1159_v56  ;;  %v1161_v62 = vadd.f32 1.0, %v1830_v45 }
 0x2a1   : > { %1843 = vrcp.f32 %v1160_v57  ;;  %v1162_v2 = vadd.f32 1.0, %v1832_v48  ;;  %v1834_v4 = vpop.eup %1833 }
 0x2a2   : > { %v1836_v5 = vpop.eup %1835  ;;  %v1336_v13 = vsub.f32 1.0, %v1834_v4 }
 0x2a3   : > { %v1838_v8 = vpop.eup %1837  ;;  %v1337_v17 = vsub.f32 1.0, %v1836_v5 }
 0x2a4   : > { %v1840_v11 = vpop.eup %1839  ;;  %v1338_v21 = vsub.f32 1.0, %v1838_v8  ;;  %v1344_v27 = vmul.f32 %v2061_v31, %v1336_v13 }
 0x2a5   : > { %v1339_v23 = vsub.f32 1.0, %v1840_v11  ;;  %v1345_v50 = vmul.f32 %v2055_v24, %v1337_v17 }
 0x2a6   : > { %v1346_v54 = vmul.f32 %v2063_v32, %v1338_v21 }
 0x2a7   : > { %v1347_v35 = vmul.f32 %v2057_v25, %v1339_v23 }
 0x2aa   : > { %v1842_v16 = vpop.eup %1841 }
 0x2ab   : > { %v1844_v20 = vpop.eup %1843  ;;  %v1340_v40 = vsub.f32 1.0, %v1842_v16 }
 0x2ac   : > { %v1341_v42 = vsub.f32 1.0, %v1844_v20 }
 0x2ad   : > { %v1348_v48 = vmul.f32 %v2076_v38, %v1340_v40 }
 0x361   : > { %v1301_v47 = vpop.f32.mrb[16].mxu1 }
 0x362   : > { %v1659_v49 = vadd.f32 %v1301_v47, %v852_v46  ;;  %v1303_v58 = vpop.f32.mrb[17].mxu1 }
 0x363   : > { %v1660_v60 = vadd.f32 %v1303_v58, %v852_v46  ;;  %v1305_v61 = vpop.f32.mrb[18].mxu1 }
 0x364   : > { %1845 = vtanh.f32 %v1659_v49  ;;  %v1661_v63 = vadd.f32 %v1305_v61, %v857_v59  ;;  %v1307_v0 = vpop.f32.mrb[19].mxu1 }
 0x365   : > { %1847 = vtanh.f32 %v1660_v60  ;;  %v1662_v3 = vadd.f32 %v1307_v0, %v857_v59  ;;  %v1349_v60 = vmul.f32 %v2065_v33, %v1341_v42 }
 0x366   : > { %1849 = vtanh.f32 %v1661_v63 }
 0x367   : > { %1851 = vtanh.f32 %v1662_v3 }
 0x368   : > { %1853 = vrcp.f32 %v1161_v62 }
 0x369   : > { %1855 = vrcp.f32 %v1162_v2  ;;  %v1311_v7 = vpop.f32.mrb[20].mxu1 }
 0x36a   : > { %v1663_v9 = vadd.f32 %v1311_v7, %v862_v6  ;;  %v1313_v10 = vpop.f32.mrb[21].mxu1 }
 0x36b   : > { %v1664_v14 = vadd.f32 %v1313_v10, %v862_v6  ;;  %v1315_v15 = vpop.f32.mrb[22].mxu1 }
 0x36c   : > { %1857 = vtanh.f32 %v1663_v9  ;;  %v1665_v18 = vadd.f32 %v1315_v15, %v867_v12  ;;  %v1317_v19 = vpop.f32.mrb[23].mxu1 }
 0x36d   : > { %1859 = vtanh.f32 %v1664_v14  ;;  %v1666_v1 = vadd.f32 %v1317_v19, %v867_v12 }
 0x36e   : > { %v1846_v22 = vpop.eup %1845  ;;  %1861 = vtanh.f32 %v1665_v18 }
 0x36f   : > { %v1848_v26 = vpop.eup %1847  ;;  %v1352_v28 = vmul.f32 %v1846_v22, %v1834_v4  ;;  %1863 = vtanh.f32 %v1666_v1 }
 0x370   : > { %v1850_v29 = vpop.eup %1849  ;;  %v1353_v51 = vmul.f32 %v1848_v26, %v1836_v5 }
 0x371   : > { %v1852_v52 = vpop.eup %1851  ;;  %v1360_v53 = vadd.f32 %v1352_v28, %v1344_v27  ;;  %v1354_v30 = vmul.f32 %v1850_v29, %v1838_v8 }
 0x372   : > { %v1854_v31 = vpop.eup %1853  ;;  %v1361_v55 = vadd.f32 %v1353_v51, %v1345_v50  ;;  %v1355_v36 = vmul.f32 %v1852_v52, %v1840_v11 }
 0x373   : > { %v1856_v37 = vpop.eup %1855  ;;  %1368 = vst [vmem:[%s2176_s15] sm:$0xff] %v1360_v53  ;;  %v1376_v41 = vmax.f32 %v1360_v53, 0.0  ;;  %v1362_v24 = vadd.f32 %v1354_v30, %v1346_v54  ;;  %v1342_v56 = vsub.f32 1.0, %v1854_v31 }
 0x374   : > { %1369 = vst [vmem:[%s2176_s15 + $0x8] sm:$0xff] %v1361_v55  ;;  %v1377_v43 = vmax.f32 %v1361_v55, 0.0  ;;  %v1363_v44 = vadd.f32 %v1355_v36, %v1347_v35  ;;  %v1343_v57 = vsub.f32 1.0, %v1856_v37 }
 0x375   : > { %1370 = vst [vmem:[%s2176_s15 + $0x10] sm:$0xff] %v1362_v24  ;;  %v1378_v25 = vmax.f32 %v1362_v24, 0.0  ;;  %v1350_v0 = vmul.f32 %v2078_v39, %v1342_v56 }
 0x376   : > { %v1858_v32 = vpop.eup %1857  ;;  %v1631_v45 = vpack.c.bf16 %v1377_v43, %v1376_v41  ;;  %1371 = vst [vmem:[%s2176_s15 + $0x18] sm:$0xff] %v1363_v44  ;;  %v1379_v46 = vmax.f32 %v1363_v44, 0.0  ;;  %v1351_v38 = vmul.f32 %v2067_v34, %v1343_v57 }
 0x377   : > { %v1860_v47 = vpop.eup %1859  ;;  %v1356_v49 = vmul.f32 %v1858_v32, %v1842_v16 }
 0x378   : > { %v1862_v58 = vpop.eup %1861  ;;  %1408 = vst [vmem:[%s2187_s18] sm:$0xff] %v1631_v45  ;;  %v1632_v59 = vpack.c.bf16 %v1379_v46, %v1378_v25  ;;  %v1357_v61 = vmul.f32 %v1860_v47, %v1844_v20 }
 0x379   : > { %v1864_v62 = vpop.eup %1863  ;;  %v1364_v63 = vadd.f32 %v1356_v49, %v1348_v48  ;;  %v1358_v2 = vmul.f32 %v1862_v58, %v1854_v31 }
 0x37a   : > { %1409 = vst [vmem:[%s2187_s18 + $0x8] sm:$0xff] %v1632_v59  ;;  %v1365_v3 = vadd.f32 %v1357_v61, %v1349_v60  ;;  %v1359_v4 = vmul.f32 %v1864_v62, %v1856_v37 }
 0x37b   : > { %1372 = vst [vmem:[%s2176_s15 + $0x20] sm:$0xff] %v1364_v63  ;;  %v1380_v5 = vmax.f32 %v1364_v63, 0.0  ;;  %v1366_v6 = vadd.f32 %v1358_v2, %v1350_v0 }
 0x37c   : > { %1373 = vst [vmem:[%s2176_s15 + $0x28] sm:$0xff] %v1365_v3  ;;  %v1381_v33 = vmax.f32 %v1365_v3, 0.0  ;;  %v1367_v7 = vadd.f32 %v1359_v4, %v1351_v38 }
 0x37d   : > { %1374 = vst [vmem:[%s2176_s15 + $0x30] sm:$0xff] %v1366_v6  ;;  %v1382_v8 = vmax.f32 %v1366_v6, 0.0 }
 0x37e   : > { %v1633_v9 = vpack.c.bf16 %v1381_v33, %v1380_v5  ;;  %1375 = vst [vmem:[%s2176_s15 + $0x38] sm:$0xff] %v1367_v7  ;;  %v1383_v10 = vmax.f32 %v1367_v7, 0.0 }
 0x380   : > { %1410 = vst [vmem:[%s2187_s18 + $0x10] sm:$0xff] %v1633_v9  ;;  %v1634_v39 = vpack.c.bf16 %v1383_v10, %v1382_v8 }
 0x382   : > { %1411 = vst [vmem:[%s2187_s18 + $0x18] sm:$0xff] %v1634_v39 }
 0x383 PF: > { %s20_s30 = sadd.s32 1, %s1871_s30  }
 0x384   : > { %p17_p4 = scmp.ge.s32.totalorder %s20_s30, 4  }
 0x386   :  { %19 = sbr.rel (!%p17_p4) target bundleno = 1 (0x1), region = 97 }

// kernel: recurrent_varnet_block.10
= control target key start
LH: loop header
LB: loop body
LE: loop exit
PB: predicated region body
PF: predicated region fallthrough
CT: control target
= control target key end

     0   :  { %s1924_s30 = smov 0   ;;  %s2206_s0 = inlined_call_operand.vmem [shape: bf16[2,288,256], index: 0, kind: input, shape index: {}]   ;;  %s2207_s1 = inlined_call_operand.vmem [shape: f32[4,2,32,256], index: 1, kind: input, shape index: {}]   ;;  %s2208_s2 = inlined_call_operand.vmem [shape: bf16[32,288], index: 2, kind: input, shape index: {}]   ;;  %s2209_s3 = inlined_call_operand.vmem [shape: f32[32,1], index: 3, kind: input, shape index: {}]   ;;  %s2210_s4 = inlined_call_operand.vmem [shape: bf16[96,32], index: 4, kind: input, shape index: {}]   ;;  %s2211_s5 = inlined_call_operand.vmem [shape: bf16[64,32], index: 5, kind: input, shape index: {}]   ;;  %s2212_s6 = inlined_call_operand.vmem [shape: bf16[32,32], index: 6, kind: input, shape index: {}]   ;;  %s2213_s7 = inlined_call_operand.vmem [shape: f32[96,1], index: 7, kind: input, shape index: {}]   ;;  %s2214_s8 = inlined_call_operand.vmem [shape: f32[2,32,256], index: 8, kind: output, shape index: {0}]   ;;  %s2215_s9 = inlined_call_operand.vmem [shape: bf16[2,32,256], index: 9, kind: output, shape index: {1}]  }
   0x1 LB: > { %s1518_s10 = sadd.s32 4294967295, %s1871_s30   ;;  %p1522_p0 = scmp.ge.s32.totalorder %s1871_s30, 1  ;;  %s1871_s30 = sphi %s1924_s30, %s20_s30  }
   0x2   : > { %p301_p1 = scmp.lt.s32.totalorder %s1871_s30, 3 }
   0x4   : > { %p302_p2 = pnand %p1522_p0, %p301_p1 }
   0x5   : > { %p348_p3 = scmp.lt.s32.totalorder (!%p302_p2), %s1518_s10, 1  ;;  %v1761_v0 = vld [vmem:[%s2208_s2 + $0x4] ss:$12 sps:$4 sm:$0xff] (!%p302_p2)   ;;  %v1873_v1 = vmov (!%p302_p2), 0   ;;  %v423_v4 = vld [vmem:[%s2209_s3 + $0x8] sm:$0xff] (!%p302_p2)  ;;  %v425_v5 = vld [vmem:[%s2209_s3 + $0x18] sm:$0xff] (!%p302_p2) }
   0x6   : > { %305 = sbr.rel (%p302_p2) target bundleno = 899 (0x383), region = 52  ;;  %1709 = vset.pattern.permute.xlu0 (!%p302_p2), %v1873_v1  ;;  %1710 = vset.pattern.permute.xlu1 (!%p302_p2), %v1873_v1  ;;  %v422_v2 = vld [vmem:[%s2209_s3] sm:$0xff] (!%p302_p2)  ;;  %v424_v3 = vld [vmem:[%s2209_s3 + $0x10] sm:$0xff] (!%p302_p2)  ;;  %v802_v11 = vld [vmem:[%s2213_s7 + $0x28] sm:$0xff] (!%p302_p2)  ;;  %vm656_vm0 = vcmask (!%p302_p2), 261120  }
   0x7   : > { %949 = vmatprep.mubr.bf16.mxu1 (!%p302_p2), %v1873_v1  ;;  %695 = vmatprep.mubr.bf16.mxu0 (!%p302_p2), %v1761_v0  ;;  %v801_v6 = vld [vmem:[%s2213_s7 + $0x20] sm:$0xff] (!%p302_p2)  ;;  %v803_v13 = vld [vmem:[%s2213_s7 + $0x30] sm:$0xff] (!%p302_p2)  ;;  %v804_v24 = vld [vmem:[%s2213_s7 + $0x38] sm:$0xff] (!%p302_p2) }
   0x8   : > { %428 = vperm.xlu0 (!%p302_p2), %1709, %v422_v2   ;;  %438 = vperm.xlu1 (!%p302_p2), %1710, %v424_v3   ;;  %v797_v25 = vld [vmem:[%s2213_s7] sm:$0xff] (!%p302_p2)  ;;  %v798_v28 = vld [vmem:[%s2213_s7 + $0x8] sm:$0xff] (!%p302_p2)  ;;  %v799_v29 = vld [vmem:[%s2213_s7 + $0x10] sm:$0xff] (!%p302_p2) }
   0x9   : > { %v800_v30 = vld [vmem:[%s2213_s7 + $0x18] sm:$0xff] (!%p302_p2)  ;;  %v805_v31 = vld [vmem:[%s2213_s7 + $0x40] sm:$0xff] (!%p302_p2)  ;;  %v806_v34 = vld [vmem:[%s2213_s7 + $0x48] sm:$0xff] (!%p302_p2) }
   0xa   : > { %v807_v35 = vld [vmem:[%s2213_s7 + $0x50] sm:$0xff] (!%p302_p2)  ;;  %v808_v38 = vld [vmem:[%s2213_s7 + $0x58] sm:$0xff] (!%p302_p2)  ;;  %v1759_v51 = vld [vmem:[%s2208_s2] ss:$12 sps:$4 sm:$0xff] (!%p302_p2)  }
   0xb   : > { %v1762_v52 = vld [vmem:[%s2208_s2 + $0x1c] ss:$12 sps:$4 sm:$0xff] (!%p302_p2)   ;;  %v1764_v56 = vld [vmem:[%s2208_s2 + $0x18] ss:$12 sps:$4 sm:$0xff] (!%p302_p2)   ;;  %v1772_v58 = vld [vmem:[%s2208_s2 + $0x20] ss:$12 sps:$4 sm:$0xff] (!%p302_p2)  }
   0xc   : > { %433 = vperm.xlu0 (!%p302_p2), %1709, %v423_v4   ;;  %443 = vperm.xlu1 (!%p302_p2), %1710, %v425_v5   ;;  %v1771_v57 = vld [vmem:[%s2208_s2 + $0x8] ss:$12 sps:$4 sm:$0xff] (!%p302_p2)  }
   0xd   : > { %s2217_s10 = smov (!%p348_p3, %s1518_s10), 1 }
   0xe   : > { %s1699_s15 = smul.u32 288, %s2217_s10  ;;  %s1628_s21 = sshll.u32 %s2217_s10, 6 }
   0xf   : > { %s1469_s25 = scalar_lea.vmem %s2207_s1, %s1628_s21  ;;  %s1630_s16 = sshll.u32 %s2217_s10, 5 }
  0x10   : > { %s1953_s22 = scalar_lea.vmem %s2206_s0, %s1699_s15  ;;  %831 = vperm.xlu0 %1709, %v801_v6   ;;  %836 = vperm.xlu1 %1710, %v802_v11   ;;  %s2176_s15 = scalar_lea.vmem %s2214_s8, %s1628_s21 }
  0x11   : > { %v1711_v7 = vld [vmem:[%s1953_s22 + $0x4] ss:$8 sps:$4 sm:$0xff]   ;;  %v1713_v8 = vld [vmem:[%s1953_s22] ss:$8 sps:$4 sm:$0xff]   ;;  %v1714_v9 = vld [vmem:[%s1953_s22 + $0x14] ss:$8 sps:$4 sm:$0xff]   ;;  %s2187_s18 = scalar_lea.vmem %s2215_s9, %s1630_s16 }
  0x12   : > { %663 = vmatprep.subr.bf16.mxu0 %v1711_v7  ;;  %v1716_v10 = vld [vmem:[%s1953_s22 + $0x10] ss:$8 sps:$4 sm:$0xff]   ;;  %v1717_v12 = vld [vmem:[%s1953_s22 + $0x24] ss:$8 sps:$4 sm:$0xff]   ;;  %v1719_v14 = vld [vmem:[%s1953_s22 + $0x20] ss:$8 sps:$4 sm:$0xff]  }
  0x13   : > { %664 = vmatpush1.bf16.msra.mxu0 %v1713_v8  ;;  %v1720_v15 = vld [vmem:[%s1953_s22 + $0x34] ss:$8 sps:$4 sm:$0xff]   ;;  %v1722_v16 = vld [vmem:[%s1953_s22 + $0x30] ss:$8 sps:$4 sm:$0xff]   ;;  %v1723_v17 = vld [vmem:[%s1953_s22 + $0x44] ss:$8 sps:$4 sm:$0xff]  }
  0x14   : > { %665 = vmatprep.subr.bf16.mxu0 %v1714_v9  ;;  %841 = vperm.xlu0 %1709, %v803_v13   ;;  %v1725_v18 = vld [vmem:[%s1953_s22 + $0x40] ss:$8 sps:$4 sm:$0xff]   ;;  %v1726_v19 = vld [vmem:[%s1953_s22 + $0x54] ss:$8 sps:$4 sm:$0xff]   ;;  %v1728_v20 = vld [vmem:[%s1953_s22 + $0x50] ss:$8 sps:$4 sm:$0xff]  }
  0x15   : > { %v1729_v21 = vld [vmem:[%s1953_s22 + $0x64] ss:$8 sps:$4 sm:$0xff]   ;;  %v1731_v22 = vld [vmem:[%s1953_s22 + $0x60] ss:$8 sps:$4 sm:$0xff]   ;;  %v1732_v23 = vld [vmem:[%s1953_s22 + $0x74] ss:$8 sps:$4 sm:$0xff]   ;;  %846 = vperm.xlu1 %1710, %v804_v24  }
  0x16   : > { %v1734_v26 = vld [vmem:[%s1953_s22 + $0x70] ss:$8 sps:$4 sm:$0xff]   ;;  %v1735_v27 = vld [vmem:[%s1953_s22 + $0x84] ss:$8 sps:$4 sm:$0xff]   ;;  %v1737_v32 = vld [vmem:[%s1953_s22 + $0x80] ss:$8 sps:$4 sm:$0xff]  }
  0x17   : > { %666 = vmatpush1.bf16.msra.mxu0 %v1716_v10  ;;  %v1738_v33 = vld [vmem:[%s1953_s22 + $0x94] ss:$8 sps:$4 sm:$0xff]   ;;  %v1740_v36 = vld [vmem:[%s1953_s22 + $0x90] ss:$8 sps:$4 sm:$0xff]   ;;  %v1741_v37 = vld [vmem:[%s1953_s22 + $0xa4] ss:$8 sps:$4 sm:$0xff]  }
  0x18   : > { %667 = vmatprep.subr.bf16.mxu0 %v1717_v12  ;;  %811 = vperm.xlu0 %1709, %v797_v25   ;;  %v1743_v39 = vld [vmem:[%s1953_s22 + $0xa0] ss:$8 sps:$4 sm:$0xff]   ;;  %v1744_v40 = vld [vmem:[%s1953_s22 + $0xb4] ss:$8 sps:$4 sm:$0xff]   ;;  %v1746_v41 = vld [vmem:[%s1953_s22 + $0xb0] ss:$8 sps:$4 sm:$0xff]  }
  0x19   : > { %816 = vperm.xlu1 %1710, %v798_v28   ;;  %v1747_v42 = vld [vmem:[%s1953_s22 + $0xc4] ss:$8 sps:$4 sm:$0xff]   ;;  %v1749_v43 = vld [vmem:[%s1953_s22 + $0xc0] ss:$8 sps:$4 sm:$0xff]   ;;  %v1750_v44 = vld [vmem:[%s1953_s22 + $0xd4] ss:$8 sps:$4 sm:$0xff]  }
  0x1a   : > { %v1752_v45 = vld [vmem:[%s1953_s22 + $0xd0] ss:$8 sps:$4 sm:$0xff]   ;;  %v1753_v46 = vld [vmem:[%s1953_s22 + $0xe4] ss:$8 sps:$4 sm:$0xff]   ;;  %v1755_v47 = vld [vmem:[%s1953_s22 + $0xe0] ss:$8 sps:$4 sm:$0xff]  }
  0x1b   : > { %668 = vmatpush1.bf16.msra.mxu0 %v1719_v14  ;;  %v1756_v48 = vld [vmem:[%s1953_s22 + $0xf4] ss:$8 sps:$4 sm:$0xff]   ;;  %v1758_v49 = vld [vmem:[%s1953_s22 + $0xf0] ss:$8 sps:$4 sm:$0xff]   ;;  %v1767_v50 = vld [vmem:[%s1953_s22 + $0x104] ss:$8 sps:$4 sm:$0xff]  }
  0x1c   : > { %669 = vmatprep.subr.bf16.mxu0 %v1720_v15  ;;  %821 = vperm.xlu0 %1709, %v799_v29   ;;  %v1765_v53 = vld [vmem:[%s1953_s22 + $0x100] ss:$8 sps:$4 sm:$0xff]   ;;  %v1770_v54 = vld [vmem:[%s1953_s22 + $0x114] ss:$8 sps:$4 sm:$0xff]   ;;  %v1768_v55 = vld [vmem:[%s1953_s22 + $0x110] ss:$8 sps:$4 sm:$0xff]  }
  0x1d   : > { %826 = vperm.xlu1 %1710, %v800_v30   ;;  %v2055_v24 = vld [vmem:[%s1469_s25 + $0x108] sm:$0xff]  ;;  %v2057_v25 = vld [vmem:[%s1469_s25 + $0x118] sm:$0xff] }
  0x1e   : > { %v782_v30 = vpack.c.bf16 %v2057_v25, %v2055_v24 }
  0x1f   : > { %670 = vmatpush1.bf16.msra.mxu0 %v1722_v16 }
  0x20   : > { %671 = vmatprep.subr.bf16.mxu0 %v1723_v17  ;;  %851 = vperm.xlu0 %1709, %v805_v31   ;;  %v2061_v31 = vld [vmem:[%s1469_s25 + $0x100] sm:$0xff] }
  0x21   : > { %856 = vperm.xlu1 %1710, %v806_v34   ;;  %v2067_v34 = vld [vmem:[%s1469_s25 + $0x138] sm:$0xff] }
  0x23   : > { %672 = vmatpush1.bf16.msra.mxu0 %v1725_v18 }
  0x24   : > { %673 = vmatprep.subr.bf16.mxu0 %v1726_v19  ;;  %861 = vperm.xlu0 %1709, %v807_v35   ;;  %v1773_v35 = vld [vmem:[%s2210_s4] sm:$0xff]  }
  0x25   : > { %866 = vperm.xlu1 %1710, %v808_v38   ;;  %v2076_v38 = vld [vmem:[%s1469_s25 + $0x120] sm:$0xff] }
  0x27   : > { %674 = vmatpush1.bf16.msra.mxu0 %v1728_v20 }
  0x28   : > { %675 = vmatprep.subr.bf16.mxu0 %v1729_v21 }
  0x2b   : > { %676 = vmatpush1.bf16.msra.mxu0 %v1731_v22 }
  0x2c   : > { %677 = vmatprep.subr.bf16.mxu0 %v1732_v23 }
  0x2f   : > { %678 = vmatpush1.bf16.msra.mxu0 %v1734_v26 }
  0x30   : > { %679 = vmatprep.subr.bf16.mxu0 %v1735_v27 }
  0x33   : > { %680 = vmatpush1.bf16.msra.mxu0 %v1737_v32  ;;  %v2063_v32 = vld [vmem:[%s1469_s25 + $0x110] sm:$0xff] }
  0x34   : > { %681 = vmatprep.subr.bf16.mxu0 %v1738_v33  ;;  %v2065_v33 = vld [vmem:[%s1469_s25 + $0x128] sm:$0xff] }
  0x37   : > { %682 = vmatpush1.bf16.msra.mxu0 %v1740_v36  ;;  %v781_v36 = vpack.c.bf16 %v2063_v32, %v2061_v31 }
  0x38   : > { %683 = vmatprep.subr.bf16.mxu0 %v1741_v37  ;;  %v784_v37 = vpack.c.bf16 %v2067_v34, %v2065_v33 }
  0x3b   : > { %684 = vmatpush1.bf16.msra.mxu0 %v1743_v39  ;;  %v2078_v39 = vld [vmem:[%s1469_s25 + $0x130] sm:$0xff] }
  0x3c   : > { %685 = vmatprep.subr.bf16.mxu0 %v1744_v40  ;;  %v783_v40 = vpack.c.bf16 %v2078_v39, %v2076_v38 }
  0x3f   : > { %686 = vmatpush1.bf16.msra.mxu0 %v1746_v41  ;;  %v1774_v41 = vld [vmem:[%s2210_s4 + $0x8] sm:$0xff]  }
  0x40   : > { %687 = vmatprep.subr.bf16.mxu0 %v1747_v42  ;;  %v1775_v42 = vld [vmem:[%s2210_s4 + $0x10] sm:$0xff]  }
  0x43   : > { %688 = vmatpush1.bf16.msra.mxu0 %v1749_v43  ;;  %v1776_v43 = vld [vmem:[%s2210_s4 + $0x18] sm:$0xff]  }
  0x44   : > { %689 = vmatprep.subr.bf16.mxu0 %v1750_v44  ;;  %v1777_v44 = vld [vmem:[%s2210_s4 + $0x20] sm:$0xff]  }
  0x47   : > { %690 = vmatpush1.bf16.msra.mxu0 %v1752_v45  ;;  %v1778_v45 = vld [vmem:[%s2210_s4 + $0x28] sm:$0xff]  }
  0x48   : > { %691 = vmatprep.subr.bf16.mxu0 %v1753_v46  ;;  %v1779_v46 = vld [vmem:[%s2211_s5] sm:$0xff]  }
  0x4b   : > { %692 = vmatpush1.bf16.msra.mxu0 %v1755_v47  ;;  %v1780_v47 = vld [vmem:[%s2211_s5 + $0x8] sm:$0xff]  }
  0x4c   : > { %693 = vmatprep.subr.bf16.mxu0 %v1756_v48  ;;  %v1781_v48 = vld [vmem:[%s2211_s5 + $0x10] sm:$0xff]  }
  0x4f   : > { %694 = vmatpush1.bf16.msra.mxu0 %v1758_v49  ;;  %v1782_v49 = vld [vmem:[%s2211_s5 + $0x18] sm:$0xff]  }
  0x50   : > { %716 = vmatprep.subr.bf16.mxu0 %v1767_v50 }
  0x52   : > { %696 = vmatmul.mubr.bf16.vlgmr.msra.gmra.mrb[0].mxu0 %v1759_v51 }
  0x53   : > { %705 = vmatprep.mubr.bf16.mxu0 %v1762_v52  ;;  %717 = vmatpush1.bf16.msra.mxu0 %v1765_v53 }
  0x54   : > { %718 = vmatprep.subr.bf16.mxu0 %v1770_v54 }
  0x57   : > { %719 = vmatpush1.bf16.msra.mxu0 %v1768_v55 }
  0x5a   : > { %706 = vmatmul.mubr.bf16.gmra.mrb[4].mxu0 %v1764_v56 }
  0x5b   : > { %748 = vmatprep.mubr.bf16.mxu0 %v1873_v1 }
  0x62   : > { %1580 = vmatmul.mubr.msk.bf16.vlgmr.msra.gmra.mrb[0].mxu0 %vm656_vm0, %v1771_v57 }
  0x63   : > { %758 = vmatprep.mubr.bf16.mxu0 %v1873_v1 }
  0x6a   : > { %1581 = vmatmul.mubr.msk.bf16.gmra.mrb[4].mxu0 %vm656_vm0, %v1772_v58 }
  0x87   : > { %v429_v59 = vpop.permute.xlu0 %428  ;;  %v439_v5 = vpop.permute.xlu1 %438 }
  0x8b   : > { %v434_v63 = vpop.permute.xlu0 %433  ;;  %v444_v16 = vpop.permute.xlu1 %443 }
  0x8f   : > { %v832_v58 = vpop.permute.xlu0 %831 }
 0x135   : > { %v750_v60 = vpop.f32.mrb[0].mxu0 }
 0x136   : > { %v1635_v61 = vadd.f32 %v750_v60, %v429_v59  ;;  %v752_v62 = vpop.f32.mrb[1].mxu0 }
 0x137   : > { %v1636_v0 = vadd.f32 %v752_v62, %v429_v59  ;;  %v754_v2 = vpop.f32.mrb[2].mxu0  ;;  %v837_v62 = vpop.permute.xlu1 %836 }
 0x138   : > { %v1637_v3 = vadd.f32 %v754_v2, %v434_v63  ;;  %v756_v4 = vpop.f32.mrb[3].mxu0  ;;  %v769_v7 = vmax.f32 %v1635_v61, 0.0 }
 0x139   : > { %v1638_v6 = vadd.f32 %v756_v4, %v434_v63  ;;  %v770_v9 = vmax.f32 %v1636_v0, 0.0 }
 0x13a   : > { %v771_v8 = vmax.f32 %v1637_v3, 0.0 }
 0x13b   : > { %v772_v10 = vmax.f32 %v1638_v6, 0.0 }
 0x13c   : > { %v777_v11 = vpack.c.bf16 %v771_v8, %v769_v7 }
 0x13d   : > { %v760_v12 = vpop.f32.mrb[4].mxu0  ;;  %v778_v13 = vpack.c.bf16 %v772_v10, %v770_v9  ;;  %v842_v9 = vpop.permute.xlu0 %841 }
 0x13e   : > { %v1639_v14 = vadd.f32 %v760_v12, %v439_v5  ;;  %v762_v15 = vpop.f32.mrb[5].mxu0 }
 0x13f   : > { %v1640_v17 = vadd.f32 %v762_v15, %v439_v5  ;;  %v764_v18 = vpop.f32.mrb[6].mxu0  ;;  %917 = vmatprep.subr.bf16.mxu1 %v778_v13  ;;  %v847_v13 = vpop.permute.xlu1 %846 }
 0x140   : > { %v1641_v19 = vadd.f32 %v764_v18, %v444_v16  ;;  %v766_v20 = vpop.f32.mrb[7].mxu0  ;;  %918 = vmatpush1.bf16.msra.mxu1 %v777_v11  ;;  %v773_v22 = vmax.f32 %v1639_v14, 0.0 }
 0x141   : > { %v1642_v21 = vadd.f32 %v766_v20, %v444_v16  ;;  %v774_v26 = vmax.f32 %v1640_v17, 0.0 }
 0x142   : > { %v775_v23 = vmax.f32 %v1641_v19, 0.0 }
 0x143   : > { %v776_v27 = vmax.f32 %v1642_v21, 0.0 }
 0x144   : > { %v779_v28 = vpack.c.bf16 %v775_v23, %v773_v22 }
 0x145   : > { %v780_v29 = vpack.c.bf16 %v776_v27, %v774_v26 }
 0x147   : > { %919 = vmatprep.subr.bf16.mxu1 %v780_v29 }
 0x148   : > { %920 = vmatpush1.bf16.msra.mxu1 %v779_v28 }
 0x149   : > { %1050 = vmatprep.subr.bf16.mxu1 %v782_v30 }
 0x14b   : > { %1588 = vmatmul.mubr.msk.bf16.vlgmr.msra.gmra.mrb[0].mxu1 %vm656_vm0, %v1773_v35 }
 0x14c   : > { %959 = vmatprep.mubr.bf16.mxu1 %v1873_v1  ;;  %1051 = vmatpush1.bf16.msra.mxu1 %v781_v36 }
 0x14d   : > { %1052 = vmatprep.subr.bf16.mxu1 %v784_v37 }
 0x150   : > { %1053 = vmatpush1.bf16.msra.mxu1 %v783_v40 }
 0x153   : > { %1589 = vmatmul.mubr.msk.bf16.gmra.mrb[4].mxu1 %vm656_vm0, %v1774_v41 }
 0x154   : > { %969 = vmatprep.mubr.bf16.mxu1 %v1873_v1 }
 0x15b   : > { %1590 = vmatmul.mubr.msk.bf16.gmra.mrb[8].mxu1 %vm656_vm0, %v1775_v42 }
 0x15c   : > { %979 = vmatprep.mubr.bf16.mxu1 %v1873_v1 }
 0x163   : > { %1591 = vmatmul.mubr.msk.bf16.gmra.mrb[12].mxu1 %vm656_vm0, %v1776_v43 }
 0x164   : > { %989 = vmatprep.mubr.bf16.mxu1 %v1873_v1 }
 0x16b   : > { %1592 = vmatmul.mubr.msk.bf16.gmra.mrb[16].mxu1 %vm656_vm0, %v1777_v44 }
 0x16c   : > { %999 = vmatprep.mubr.bf16.mxu1 %v1873_v1 }
 0x173   : > { %1593 = vmatmul.mubr.msk.bf16.gmra.mrb[20].mxu1 %vm656_vm0, %v1778_v45 }
 0x174   : > { %1082 = vmatprep.mubr.bf16.mxu1 %v1873_v1 }
 0x17b   : > { %1598 = vmatmul.mubr.msk.bf16.vlgmr.msra.gmra.mrb[0].mxu1 %vm656_vm0, %v1779_v46 }
 0x17c   : > { %1092 = vmatprep.mubr.bf16.mxu1 %v1873_v1 }
 0x183   : > { %1599 = vmatmul.mubr.msk.bf16.gmra.mrb[4].mxu1 %vm656_vm0, %v1780_v47 }
 0x184   : > { %1102 = vmatprep.mubr.bf16.mxu1 %v1873_v1 }
 0x18b   : > { %1600 = vmatmul.mubr.msk.bf16.gmra.mrb[8].mxu1 %vm656_vm0, %v1781_v48 }
 0x18c   : > { %1112 = vmatprep.mubr.bf16.mxu1 %v1873_v1 }
 0x193   : > { %1601 = vmatmul.mubr.msk.bf16.gmra.mrb[12].mxu1 %vm656_vm0, %v1782_v49 }
 0x194   : > { %1299 = vmatprep.mubr.bf16.mxu1 %v1873_v1 }
 0x24e   : > { %v2129_v50 = vpop.f32.mrb[0].mxu1 }
 0x24f   : > { %v2131_v51 = vpop.f32.mrb[1].mxu1 }
 0x250   : > { %v2133_v52 = vpop.f32.mrb[2].mxu1 }
 0x251   : > { %v2135_v53 = vpop.f32.mrb[3].mxu1 }
 0x256   : > { %v2137_v54 = vpop.f32.mrb[4].mxu1 }
 0x257   : > { %v2139_v55 = vpop.f32.mrb[5].mxu1 }
 0x258   : > { %v2141_v56 = vpop.f32.mrb[6].mxu1 }
 0x259   : > { %v2143_v57 = vpop.f32.mrb[7].mxu1 }
 0x25e   : > { %v1104_v59 = vpop.f32.mrb[8].mxu1 }
 0x25f   : > { %v1651_v60 = vadd.f32 %v1104_v59, %v832_v58  ;;  %v1106_v61 = vpop.f32.mrb[9].mxu1 }
 0x260   : > { %v1652_v63 = vadd.f32 %v1106_v61, %v832_v58  ;;  %v1108_v0 = vpop.f32.mrb[10].mxu1 }
 0x261   : > { %v1610_v2 = vmul.f32 -1.442695, %v1651_v60  ;;  %v1653_v3 = vadd.f32 %v1108_v0, %v837_v62  ;;  %v1110_v4 = vpop.f32.mrb[11].mxu1 }
 0x262   : > { %v1611_v5 = vmul.f32 -1.442695, %v1652_v63  ;;  %v1654_v6 = vadd.f32 %v1110_v4, %v837_v62 }
 0x263   : > { %v1612_v7 = vmul.f32 -1.442695, %v1653_v3  ;;  %1785 = vpow2.f32 %v1610_v2 }
 0x264   : > { %v1613_v8 = vmul.f32 -1.442695, %v1654_v6  ;;  %1787 = vpow2.f32 %v1611_v5 }
 0x265   : > { %1789 = vpow2.f32 %v1612_v7 }
 0x266   : > { %v1114_v10 = vpop.f32.mrb[12].mxu1  ;;  %1791 = vpow2.f32 %v1613_v8 }
 0x267   : > { %v1655_v11 = vadd.f32 %v1114_v10, %v842_v9  ;;  %v1116_v12 = vpop.f32.mrb[13].mxu1 }
 0x268   : > { %v1656_v14 = vadd.f32 %v1116_v12, %v842_v9  ;;  %v1118_v15 = vpop.f32.mrb[14].mxu1  ;;  %v1783_v12 = vld [vmem:[%s2212_s6] sm:$0xff]  }
 0x269   : > { %v1614_v16 = vmul.f32 -1.442695, %v1655_v11  ;;  %v1657_v17 = vadd.f32 %v1118_v15, %v847_v13  ;;  %v1120_v18 = vpop.f32.mrb[15].mxu1 }
 0x26a   : > { %v1615_v19 = vmul.f32 -1.442695, %v1656_v14  ;;  %v1658_v20 = vadd.f32 %v1120_v18, %v847_v13  ;;  %v1784_v13 = vld [vmem:[%s2212_s6 + $0x8] sm:$0xff]   ;;  %v812_v14 = vpop.permute.xlu0 %811 }
 0x26b   : > { %v1616_v21 = vmul.f32 -1.442695, %v1657_v17  ;;  %1793 = vpow2.f32 %v1614_v16  ;;  %v1643_v15 = vadd.f32 %v2129_v50, %v812_v14  ;;  %v817_v16 = vpop.permute.xlu1 %816  ;;  %v1644_v17 = vadd.f32 %v2131_v51, %v812_v14 }
 0x26c   : > { %v1617_v22 = vmul.f32 -1.442695, %v1658_v20  ;;  %1795 = vpow2.f32 %v1615_v19  ;;  %v1645_v18 = vadd.f32 %v2133_v52, %v817_v16  ;;  %v1646_v20 = vadd.f32 %v2135_v53, %v817_v16 }
 0x26d   : > { %v1786_v23 = vpop.eup %1785  ;;  %1797 = vpow2.f32 %v1616_v21  ;;  %v1602_v21 = vmul.f32 -1.442695, %v1643_v15 }
 0x26e   : > { %v1788_v26 = vpop.eup %1787  ;;  %v1211_v27 = vadd.f32 1.0, %v1786_v23  ;;  %1799 = vpow2.f32 %v1617_v22  ;;  %v822_v19 = vpop.permute.xlu0 %821  ;;  %v1603_v22 = vmul.f32 -1.442695, %v1644_v17 }
 0x26f   : > { %v1790_v28 = vpop.eup %1789  ;;  %v1212_v29 = vadd.f32 1.0, %v1788_v26  ;;  %v1648_v23 = vadd.f32 %v2139_v55, %v822_v19  ;;  %v1604_v26 = vmul.f32 -1.442695, %v1645_v18 }
 0x270   : > { %v1792_v30 = vpop.eup %1791  ;;  %1801 = vrcp.f32 %v1211_v27  ;;  %v1213_v35 = vadd.f32 1.0, %v1790_v28  ;;  %v1605_v27 = vmul.f32 -1.442695, %v1646_v20 }
 0x271   : > { %1803 = vrcp.f32 %v1212_v29  ;;  %v1214_v36 = vadd.f32 1.0, %v1792_v30  ;;  %v827_v29 = vpop.permute.xlu1 %826  ;;  %v1607_v50 = vmul.f32 -1.442695, %v1648_v23 }
 0x272   : > { %1805 = vrcp.f32 %v1213_v35  ;;  %v1649_v51 = vadd.f32 %v2141_v56, %v827_v29  ;;  %v1650_v52 = vadd.f32 %v2143_v57, %v827_v29 }
 0x273   : > { %1807 = vrcp.f32 %v1214_v36 }
 0x274   : > { %v1608_v53 = vmul.f32 -1.442695, %v1649_v51 }
 0x275   : > { %v1794_v37 = vpop.eup %1793 }
 0x276   : > { %v1796_v40 = vpop.eup %1795  ;;  %v1215_v41 = vadd.f32 1.0, %v1794_v37 }
 0x277   : > { %v1798_v42 = vpop.eup %1797  ;;  %v1216_v43 = vadd.f32 1.0, %v1796_v40 }
 0x278   : > { %v1800_v44 = vpop.eup %1799  ;;  %1809 = vrcp.f32 %v1215_v41  ;;  %v1217_v45 = vadd.f32 1.0, %v1798_v42 }
 0x279   : > { %1811 = vrcp.f32 %v1216_v43  ;;  %v1218_v46 = vadd.f32 1.0, %v1800_v44 }
 0x27a   : > { %v1802_v47 = vpop.eup %1801  ;;  %1813 = vrcp.f32 %v1217_v45 }
 0x27b   : > { %v1804_v48 = vpop.eup %1803  ;;  %1815 = vrcp.f32 %v1218_v46  ;;  %v1235_v59 = vmul.f32 %v1802_v47, %v2061_v31  ;;  %v852_v46 = vpop.permute.xlu0 %851 }
 0x27c   : > { %v1806_v49 = vpop.eup %1805  ;;  %v1236_v61 = vmul.f32 %v1804_v48, %v2055_v24  ;;  %1817 = vpow2.f32 %v1602_v21 }
 0x27d   : > { %v1808_v58 = vpop.eup %1807  ;;  %v1237_v60 = vmul.f32 %v1806_v49, %v2063_v32  ;;  %1819 = vpow2.f32 %v1603_v22 }
 0x27e   : > { %v1238_v62 = vmul.f32 %v1808_v58, %v2057_v25  ;;  %1821 = vpow2.f32 %v1604_v26 }
 0x27f   : > { %v1243_v63 = vpack.c.bf16 %v1237_v60, %v1235_v59  ;;  %1823 = vpow2.f32 %v1605_v27  ;;  %v857_v59 = vpop.permute.xlu1 %856 }
 0x280   : > { %v1244_v0 = vpack.c.bf16 %v1238_v62, %v1236_v61 }
 0x282   : > { %v1810_v2 = vpop.eup %1809  ;;  %1267 = vmatprep.subr.bf16.mxu1 %v1244_v0 }
 0x283   : > { %v1812_v3 = vpop.eup %1811  ;;  %1268 = vmatpush1.bf16.msra.mxu1 %v1243_v63  ;;  %v1239_v6 = vmul.f32 %v1810_v2, %v2076_v38 }
 0x284   : > { %v1814_v4 = vpop.eup %1813  ;;  %v1240_v8 = vmul.f32 %v1812_v3, %v2065_v33 }
 0x285   : > { %v1816_v5 = vpop.eup %1815  ;;  %v1241_v7 = vmul.f32 %v1814_v4, %v2078_v39 }
 0x286   : > { %v1242_v9 = vmul.f32 %v1816_v5, %v2067_v34  ;;  %v1818_v30 = vpop.eup %1817 }
 0x287   : > { %v1245_v10 = vpack.c.bf16 %v1241_v7, %v1239_v6  ;;  %v1820_v55 = vpop.eup %1819  ;;  %v1155_v37 = vadd.f32 1.0, %v1818_v30  ;;  %v862_v6 = vpop.permute.xlu0 %861 }
 0x288   : > { %v1246_v11 = vpack.c.bf16 %v1242_v9, %v1240_v8  ;;  %v1822_v35 = vpop.eup %1821  ;;  %v1156_v41 = vadd.f32 1.0, %v1820_v55 }
 0x289   : > { %v1824_v36 = vpop.eup %1823  ;;  %v1157_v43 = vadd.f32 1.0, %v1822_v35 }
 0x28a   : > { %1269 = vmatprep.subr.bf16.mxu1 %v1246_v11  ;;  %v1158_v44 = vadd.f32 1.0, %v1824_v36 }
 0x28b   : > { %1270 = vmatpush1.bf16.msra.mxu1 %v1245_v10 }
 0x28e   : > { %1620 = vmatmul.mubr.msk.bf16.vlgmr.msra.gmra.mrb[16].mxu1 %vm656_vm0, %v1783_v12  ;;  %v867_v12 = vpop.permute.xlu1 %866 }
 0x28f   : > { %1309 = vmatprep.mubr.bf16.mxu1 %v1873_v1  ;;  %v1647_v1 = vadd.f32 %v2137_v54, %v822_v19  ;;  %v1609_v54 = vmul.f32 -1.442695, %v1650_v52 }
 0x291   : > { %v1606_v28 = vmul.f32 -1.442695, %v1647_v1 }
 0x293   : > { %1825 = vpow2.f32 %v1606_v28 }
 0x294   : > { %1827 = vpow2.f32 %v1607_v50 }
 0x295   : > { %1829 = vpow2.f32 %v1608_v53 }
 0x296   : > { %1621 = vmatmul.mubr.msk.bf16.gmra.mrb[20].mxu1 %vm656_vm0, %v1784_v13  ;;  %1831 = vpow2.f32 %v1609_v54 }
 0x297   : > { %1833 = vrcp.f32 %v1155_v37 }
 0x298   : > { %1835 = vrcp.f32 %v1156_v41 }
 0x299   : > { %1837 = vrcp.f32 %v1157_v43 }
 0x29a   : > { %1839 = vrcp.f32 %v1158_v44 }
 0x29d   : > { %v1826_v40 = vpop.eup %1825 }
 0x29e   : > { %v1828_v42 = vpop.eup %1827  ;;  %v1159_v56 = vadd.f32 1.0, %v1826_v40 }
 0x29f   : > { %v1160_v57 = vadd.f32 1.0, %v1828_v42  ;;  %v1830_v45 = vpop.eup %1829 }
 0x2a0   : > { %v1832_v48 = vpop.eup %1831  ;;  %1841 = vrcp.f32 %v1159_v56  ;;  %v1161_v62 = vadd.f32 1.0, %v1830_v45 }
 0x2a1   : > { %1843 = vrcp.f32 %v1160_v57  ;;  %v1162_v2 = vadd.f32 1.0, %v1832_v48  ;;  %v1834_v4 = vpop.eup %1833 }
 0x2a2   : > { %v1836_v5 = vpop.eup %1835  ;;  %v1336_v13 = vsub.f32 1.0, %v1834_v4 }
 0x2a3   : > { %v1838_v8 = vpop.eup %1837  ;;  %v1337_v17 = vsub.f32 1.0, %v1836_v5 }
 0x2a4   : > { %v1840_v11 = vpop.eup %1839  ;;  %v1338_v21 = vsub.f32 1.0, %v1838_v8  ;;  %v1344_v27 = vmul.f32 %v2061_v31, %v1336_v13 }
 0x2a5   : > { %v1339_v23 = vsub.f32 1.0, %v1840_v11  ;;  %v1345_v50 = vmul.f32 %v2055_v24, %v1337_v17 }
 0x2a6   : > { %v1346_v54 = vmul.f32 %v2063_v32, %v1338_v21 }
 0x2a7   : > { %v1347_v35 = vmul.f32 %v2057_v25, %v1339_v23 }
 0x2aa   : > { %v1842_v16 = vpop.eup %1841 }
 0x2ab   : > { %v1844_v20 = vpop.eup %1843  ;;  %v1340_v40 = vsub.f32 1.0, %v1842_v16 }
 0x2ac   : > { %v1341_v42 = vsub.f32 1.0, %v1844_v20 }
 0x2ad   : > { %v1348_v48 = vmul.f32 %v2076_v38, %v1340_v40 }
 0x361   : > { %v1301_v47 = vpop.f32.mrb[16].mxu1 }
 0x362   : > { %v1659_v49 = vadd.f32 %v1301_v47, %v852_v46  ;;  %v1303_v58 = vpop.f32.mrb[17].mxu1 }
 0x363   : > { %v1660_v60 = vadd.f32 %v1303_v58, %v852_v46  ;;  %v1305_v61 = vpop.f32.mrb[18].mxu1 }
 0x364   : > { %1845 = vtanh.f32 %v1659_v49  ;;  %v1661_v63 = vadd.f32 %v1305_v61, %v857_v59  ;;  %v1307_v0 = vpop.f32.mrb[19].mxu1 }
 0x365   : > { %1847 = vtanh.f32 %v1660_v60  ;;  %v1662_v3 = vadd.f32 %v1307_v0, %v857_v59  ;;  %v1349_v60 = vmul.f32 %v2065_v33, %v1341_v42 }
 0x366   : > { %1849 = vtanh.f32 %v1661_v63 }
 0x367   : > { %1851 = vtanh.f32 %v1662_v3 }
 0x368   : > { %1853 = vrcp.f32 %v1161_v62 }
 0x369   : > { %1855 = vrcp.f32 %v1162_v2  ;;  %v1311_v7 = vpop.f32.mrb[20].mxu1 }
 0x36a   : > { %v1663_v9 = vadd.f32 %v1311_v7, %v862_v6  ;;  %v1313_v10 = vpop.f32.mrb[21].mxu1 }
 0x36b   : > { %v1664_v14 = vadd.f32 %v1313_v10, %v862_v6  ;;  %v1315_v15 = vpop.f32.mrb[22].mxu1 }
 0x36c   : > { %1857 = vtanh.f32 %v1663_v9  ;;  %v1665_v18 = vadd.f32 %v1315_v15, %v867_v12  ;;  %v1317_v19 = vpop.f32.mrb[23].mxu1 }
 0x36d   : > { %1859 = vtanh.f32 %v1664_v14  ;;  %v1666_v1 = vadd.f32 %v1317_v19, %v867_v12 }
 0x36e   : > { %v1846_v22 = vpop.eup %1845  ;;  %1861 = vtanh.f32 %v1665_v18 }
 0x36f   : > { %v1848_v26 = vpop.eup %1847  ;;  %v1352_v28 = vmul.f32 %v1846_v22, %v1834_v4  ;;  %1863 = vtanh.f32 %v1666_v1 }
 0x370   : > { %v1850_v29 = vpop.eup %1849  ;;  %v1353_v51 = vmul.f32 %v1848_v26, %v1836_v5 }
 0x371   : > { %v1852_v52 = vpop.eup %1851  ;;  %v1360_v53 = vadd.f32 %v1352_v28, %v1344_v27  ;;  %v1354_v30 = vmul.f32 %v1850_v29, %v1838_v8 }
 0x372   : > { %v1854_v31 = vpop.eup %1853  ;;  %v1361_v55 = vadd.f32 %v1353_v51, %v1345_v50  ;;  %v1355_v36 = vmul.f32 %v1852_v52, %v1840_v11 }
 0x373   : > { %v1856_v37 = vpop.eup %1855  ;;  %1368 = vst [vmem:[%s2176_s15] sm:$0xff] %v1360_v53  ;;  %v1376_v41 = vmax.f32 %v1360_v53, 0.0  ;;  %v1362_v24 = vadd.f32 %v1354_v30, %v1346_v54  ;;  %v1342_v56 = vsub.f32 1.0, %v1854_v31 }
 0x374   : > { %1369 = vst [vmem:[%s2176_s15 + $0x8] sm:$0xff] %v1361_v55  ;;  %v1377_v43 = vmax.f32 %v1361_v55, 0.0  ;;  %v1363_v44 = vadd.f32 %v1355_v36, %v1347_v35  ;;  %v1343_v57 = vsub.f32 1.0, %v1856_v37 }
 0x375   : > { %1370 = vst [vmem:[%s2176_s15 + $0x10] sm:$0xff] %v1362_v24  ;;  %v1378_v25 = vmax.f32 %v1362_v24, 0.0  ;;  %v1350_v0 = vmul.f32 %v2078_v39, %v1342_v56 }
 0x376   : > { %v1858_v32 = vpop.eup %1857  ;;  %v1631_v45 = vpack.c.bf16 %v1377_v43, %v1376_v41  ;;  %1371 = vst [vmem:[%s2176_s15 + $0x18] sm:$0xff] %v1363_v44  ;;  %v1379_v46 = vmax.f32 %v1363_v44, 0.0  ;;  %v1351_v38 = vmul.f32 %v2067_v34, %v1343_v57 }
 0x377   : > { %v1860_v47 = vpop.eup %1859  ;;  %v1356_v49 = vmul.f32 %v1858_v32, %v1842_v16 }
 0x378   : > { %v1862_v58 = vpop.eup %1861  ;;  %1408 = vst [vmem:[%s2187_s18] sm:$0xff] %v1631_v45  ;;  %v1632_v59 = vpack.c.bf16 %v1379_v46, %v1378_v25  ;;  %v1357_v61 = vmul.f32 %v1860_v47, %v1844_v20 }
 0x379   : > { %v1864_v62 = vpop.eup %1863  ;;  %v1364_v63 = vadd.f32 %v1356_v49, %v1348_v48  ;;  %v1358_v2 = vmul.f32 %v1862_v58, %v1854_v31 }
 0x37a   : > { %1409 = vst [vmem:[%s2187_s18 + $0x8] sm:$0xff] %v1632_v59  ;;  %v1365_v3 = vadd.f32 %v1357_v61, %v1349_v60  ;;  %v1359_v4 = vmul.f32 %v1864_v62, %v1856_v37 }
 0x37b   : > { %1372 = vst [vmem:[%s2176_s15 + $0x20] sm:$0xff] %v1364_v63  ;;  %v1380_v5 = vmax.f32 %v1364_v63, 0.0  ;;  %v1366_v6 = vadd.f32 %v1358_v2, %v1350_v0 }
 0x37c   : > { %1373 = vst [vmem:[%s2176_s15 + $0x28] sm:$0xff] %v1365_v3  ;;  %v1381_v33 = vmax.f32 %v1365_v3, 0.0  ;;  %v1367_v7 = vadd.f32 %v1359_v4, %v1351_v38 }
 0x37d   : > { %1374 = vst [vmem:[%s2176_s15 + $0x30] sm:$0xff] %v1366_v6  ;;  %v1382_v8 = vmax.f32 %v1366_v6, 0.0 }
 0x37e   : > { %v1633_v9 = vpack.c.bf16 %v1381_v33, %v1380_v5  ;;  %1375 = vst [vmem:[%s2176_s15 + $0x38] sm:$0xff] %v1367_v7  ;;  %v1383_v10 = vmax.f32 %v1367_v7, 0.0 }
 0x380   : > { %1410 = vst [vmem:[%s2187_s18 + $0x10] sm:$0xff] %v1633_v9  ;;  %v1634_v39 = vpack.c.bf16 %v1383_v10, %v1382_v8 }
 0x382   : > { %1411 = vst [vmem:[%s2187_s18 + $0x18] sm:$0xff] %v1634_v39 }
 0x383 PF: > { %s20_s30 = sadd.s32 1, %s1871_s30  }
 0x384   : > { %p17_p4 = scmp.ge.s32.totalorder %s20_s30, 4  }
 0x386   :  { %19 = sbr.rel (!%p17_p4) target bundleno = 1 (0x1), region = 97 }

// kernel: recurrent_varnet_block.12
= control target key start
LH: loop header
LB: loop body
LE: loop exit
PB: predicated region body
PF: predicated region fallthrough
CT: control target
= control target key end

     0   :  { %s724_s12 = smov 0   ;;  %s789_s0 = inlined_call_operand.vmem [shape: bf16[2,288,256], index: 0, kind: input, shape index: {}]   ;;  %s790_s1 = inlined_call_operand.vmem [shape: bf16[2,288], index: 1, kind: input, shape index: {}]   ;;  %s791_s2 = inlined_call_operand.vmem [shape: f32[2,1], index: 2, kind: input, shape index: {}]   ;;  %s792_s3 = inlined_call_operand.vmem [shape: f32[2,2,256], index: 3, kind: output, shape index: {}]  }
   0x1 LB: > { %s574_s13 = sadd.s32 4294967295, %s700_s12   ;;  %p578_p0 = scmp.ge.s32.totalorder %s700_s12, 1  ;;  %s700_s12 = sphi %s724_s12, %s13_s12  }
   0x2   : > { %p137_p1 = scmp.lt.s32.totalorder %s700_s12, 3 }
   0x4   : > { %p138_p2 = pnand %p578_p0, %p137_p1 }
   0x5   : > { %p161_p3 = scmp.lt.s32.totalorder (!%p138_p2), %s574_s13, 1  ;;  %v582_v0 = vld.sshfl [vmem:[%s790_s1] sm:$0x13 pattern:$0x75316420] (!%p138_p2)  ;;  %v227_v1 = vlaneseq (!%p138_p2)  ;;  %v702_v2 = vmov (!%p138_p2), 0  }
   0x6   : > { %141 = sbr.rel (%p138_p2) target bundleno = 302 (0x12e), region = 32  ;;  %498 = vmatprep.mubr.bf16.mxu0 (!%p138_p2), %v702_v2  ;;  %639 = vset.pattern.permute.xlu0 (!%p138_p2), %v702_v2  ;;  %v209_v3 = vld [vmem:[%s791_s2] sm:$0x3] (!%p138_p2)  ;;  %v703_v4 = vmov (!%p138_p2), 1966171168   ;;  %v223_v7 = vcombine.high (!%p138_p2), %v582_v0, %v582_v0  ;;  %vm421_vm0 = vcmask (!%p138_p2), 261120  }
   0x7   : > { %v225_v5 = vunpack.c.l.s4 (!%p138_p2), %v703_v4  ;;  %v228_v6 = vshrl.u32 (!%p138_p2), %v227_v1, 7  ;;  %212 = vperm.xlu0 (!%p138_p2), %639, %v209_v3  }
   0x9   : > { %v226_v8 = vunpack.c.0.s8 (!%p138_p2), %v225_v5 }
   0xb   : > { %v229_v9 = vsub.s32 (!%p138_p2), %v226_v8, %v228_v6 }
   0xd   : > { %s794_s13 = smov (!%p161_p3, %s574_s13), 1  ;;  %v237_v12 = vrot.slane %v223_v7, %v229_v9  ;;  %v230_v26 = vrot.slane %v582_v0, %v229_v9 }
   0xe   : > { %s628_s18 = smul.u32 288, %s794_s13  ;;  %s623_s22 = sshll.u32 %s794_s13, 2 }
   0xf   : > { %457 = vmatprep.mubr.bf16.mxu1 %v237_v12  ;;  %v238_v31 = vcombine.high %v230_v26, %v230_v26  ;;  %s170_s25 = scalar_lea.vmem %s792_s3, %s623_s22 }
  0x10   : > { %s744_s21 = scalar_lea.vmem %s789_s0, %s628_s18 }
  0x11   : > { %v640_v10 = vld [vmem:[%s744_s21 + $0x4] ss:$8 sps:$4 sm:$0xff]   ;;  %v642_v11 = vld [vmem:[%s744_s21] ss:$8 sps:$4 sm:$0xff]   ;;  %v643_v13 = vld [vmem:[%s744_s21 + $0x14] ss:$8 sps:$4 sm:$0xff]  }
  0x12   : > { %425 = vmatprep.subr.bf16.mxu1 %v640_v10  ;;  %v645_v14 = vld [vmem:[%s744_s21 + $0x10] ss:$8 sps:$4 sm:$0xff]   ;;  %v646_v15 = vld [vmem:[%s744_s21 + $0x24] ss:$8 sps:$4 sm:$0xff]   ;;  %v648_v16 = vld [vmem:[%s744_s21 + $0x20] ss:$8 sps:$4 sm:$0xff]  }
  0x13   : > { %426 = vmatpush1.bf16.msra.mxu1 %v642_v11  ;;  %v649_v17 = vld [vmem:[%s744_s21 + $0x34] ss:$8 sps:$4 sm:$0xff]   ;;  %v651_v18 = vld [vmem:[%s744_s21 + $0x30] ss:$8 sps:$4 sm:$0xff]   ;;  %v652_v19 = vld [vmem:[%s744_s21 + $0x44] ss:$8 sps:$4 sm:$0xff]  }
  0x14   : > { %427 = vmatprep.subr.bf16.mxu1 %v643_v13  ;;  %v654_v20 = vld [vmem:[%s744_s21 + $0x40] ss:$8 sps:$4 sm:$0xff]   ;;  %v655_v21 = vld [vmem:[%s744_s21 + $0x54] ss:$8 sps:$4 sm:$0xff]   ;;  %v657_v22 = vld [vmem:[%s744_s21 + $0x50] ss:$8 sps:$4 sm:$0xff]  }
  0x15   : > { %v682_v23 = vld [vmem:[%s744_s21 + $0x104] ss:$8 sps:$4 sm:$0xff]   ;;  %v686_v25 = vld [vmem:[%s744_s21 + $0x100] ss:$8 sps:$4 sm:$0xff]   ;;  %v688_v27 = vld [vmem:[%s744_s21 + $0x114] ss:$8 sps:$4 sm:$0xff]  }
  0x16   : > { %v658_v24 = vld [vmem:[%s744_s21 + $0x64] ss:$8 sps:$4 sm:$0xff]   ;;  %466 = vmatprep.subr.bf16.mxu0 %v682_v23  ;;  %v660_v28 = vld [vmem:[%s744_s21 + $0x60] ss:$8 sps:$4 sm:$0xff]   ;;  %v692_v29 = vld [vmem:[%s744_s21 + $0x110] ss:$8 sps:$4 sm:$0xff]  }
  0x17   : > { %428 = vmatpush1.bf16.msra.mxu1 %v645_v14  ;;  %467 = vmatpush1.bf16.msra.mxu0 %v686_v25  ;;  %v661_v30 = vld [vmem:[%s744_s21 + $0x74] ss:$8 sps:$4 sm:$0xff]   ;;  %v663_v32 = vld [vmem:[%s744_s21 + $0x70] ss:$8 sps:$4 sm:$0xff]   ;;  %v664_v33 = vld [vmem:[%s744_s21 + $0x84] ss:$8 sps:$4 sm:$0xff]  }
  0x18   : > { %429 = vmatprep.subr.bf16.mxu1 %v646_v15  ;;  %468 = vmatprep.subr.bf16.mxu0 %v688_v27  ;;  %v666_v34 = vld [vmem:[%s744_s21 + $0x80] ss:$8 sps:$4 sm:$0xff]   ;;  %v667_v35 = vld [vmem:[%s744_s21 + $0x94] ss:$8 sps:$4 sm:$0xff]   ;;  %v669_v36 = vld [vmem:[%s744_s21 + $0x90] ss:$8 sps:$4 sm:$0xff]  }
  0x19   : > { %v670_v37 = vld [vmem:[%s744_s21 + $0xa4] ss:$8 sps:$4 sm:$0xff]   ;;  %v672_v38 = vld [vmem:[%s744_s21 + $0xa0] ss:$8 sps:$4 sm:$0xff]   ;;  %v673_v39 = vld [vmem:[%s744_s21 + $0xb4] ss:$8 sps:$4 sm:$0xff]  }
  0x1a   : > { %v675_v40 = vld [vmem:[%s744_s21 + $0xb0] ss:$8 sps:$4 sm:$0xff]   ;;  %v676_v41 = vld [vmem:[%s744_s21 + $0xc4] ss:$8 sps:$4 sm:$0xff]   ;;  %v678_v42 = vld [vmem:[%s744_s21 + $0xc0] ss:$8 sps:$4 sm:$0xff]  }
  0x1b   : > { %430 = vmatpush1.bf16.msra.mxu1 %v648_v16  ;;  %469 = vmatpush1.bf16.msra.mxu0 %v692_v29  ;;  %v679_v43 = vld [vmem:[%s744_s21 + $0xd4] ss:$8 sps:$4 sm:$0xff]   ;;  %v681_v44 = vld [vmem:[%s744_s21 + $0xd0] ss:$8 sps:$4 sm:$0xff]   ;;  %v684_v45 = vld [vmem:[%s744_s21 + $0xe4] ss:$8 sps:$4 sm:$0xff]  }
  0x1c   : > { %431 = vmatprep.subr.bf16.mxu1 %v649_v17  ;;  %v687_v46 = vld [vmem:[%s744_s21 + $0xe0] ss:$8 sps:$4 sm:$0xff]   ;;  %v690_v47 = vld [vmem:[%s744_s21 + $0xf4] ss:$8 sps:$4 sm:$0xff]   ;;  %v693_v48 = vld [vmem:[%s744_s21 + $0xf0] ss:$8 sps:$4 sm:$0xff]  }
  0x1e   : > { %619 = vmatmul.mubr.msk.bf16.vlgmr.msra.gmra.mrb[0].mxu0 %vm421_vm0, %v238_v31 }
  0x1f   : > { %432 = vmatpush1.bf16.msra.mxu1 %v651_v18 }
  0x20   : > { %433 = vmatprep.subr.bf16.mxu1 %v652_v19 }
  0x23   : > { %434 = vmatpush1.bf16.msra.mxu1 %v654_v20 }
  0x24   : > { %435 = vmatprep.subr.bf16.mxu1 %v655_v21 }
  0x27   : > { %436 = vmatpush1.bf16.msra.mxu1 %v657_v22 }
  0x28   : > { %437 = vmatprep.subr.bf16.mxu1 %v658_v24 }
  0x2b   : > { %438 = vmatpush1.bf16.msra.mxu1 %v660_v28 }
  0x2c   : > { %439 = vmatprep.subr.bf16.mxu1 %v661_v30 }
  0x2f   : > { %440 = vmatpush1.bf16.msra.mxu1 %v663_v32 }
  0x30   : > { %441 = vmatprep.subr.bf16.mxu1 %v664_v33 }
  0x33   : > { %442 = vmatpush1.bf16.msra.mxu1 %v666_v34 }
  0x34   : > { %443 = vmatprep.subr.bf16.mxu1 %v667_v35 }
  0x37   : > { %444 = vmatpush1.bf16.msra.mxu1 %v669_v36 }
  0x38   : > { %445 = vmatprep.subr.bf16.mxu1 %v670_v37 }
  0x3b   : > { %446 = vmatpush1.bf16.msra.mxu1 %v672_v38 }
  0x3c   : > { %447 = vmatprep.subr.bf16.mxu1 %v673_v39 }
  0x3f   : > { %448 = vmatpush1.bf16.msra.mxu1 %v675_v40 }
  0x40   : > { %449 = vmatprep.subr.bf16.mxu1 %v676_v41 }
  0x43   : > { %450 = vmatpush1.bf16.msra.mxu1 %v678_v42 }
  0x44   : > { %451 = vmatprep.subr.bf16.mxu1 %v679_v43 }
  0x47   : > { %452 = vmatpush1.bf16.msra.mxu1 %v681_v44 }
  0x48   : > { %453 = vmatprep.subr.bf16.mxu1 %v684_v45 }
  0x4b   : > { %454 = vmatpush1.bf16.msra.mxu1 %v687_v46 }
  0x4c   : > { %455 = vmatprep.subr.bf16.mxu1 %v690_v47 }
  0x4f   : > { %456 = vmatpush1.bf16.msra.mxu1 %v693_v48 }
  0x52   : > { %458 = vmatmul.mubr.bf16.vlgmr.msra.gmra.mrb[0].mxu1 %v230_v26 }
  0x86   : > { %v213_v53 = vpop.permute.xlu0 %212 }
  0xf1   : > { %v500_v49 = vpop.f32.mrb[0].mxu0 }
  0xf2   : > { %v502_v50 = vpop.f32.mrb[1].mxu0 }
  0xf3   : > { %v504_v51 = vpop.f32.mrb[2].mxu0 }
  0xf4   : > { %v505_v52 = vpop.f32.mrb[3].mxu0 }
 0x125   : > { %v459_v54 = vpop.f32.mrb[0].mxu1 }
 0x126   : > { %v460_v55 = vadd.f32 %v459_v54, %v213_v53  ;;  %v461_v56 = vpop.f32.mrb[1].mxu1 }
 0x127   : > { %v462_v57 = vadd.f32 %v461_v56, %v213_v53  ;;  %v463_v58 = vpop.f32.mrb[2].mxu1 }
 0x128   : > { %v501_v59 = vadd.f32 %v500_v49, %v460_v55  ;;  %v464_v60 = vpop.f32.mrb[3].mxu1 }
 0x129   : > { %v503_v61 = vadd.f32 %v502_v50, %v462_v57 }
 0x12b   : > { %v509_v62 = vcombine.low %v501_v59, %v503_v61 }
 0x12d   : > { %620 = vst.sshfl [vmem:[%s170_s25] sm:$0x33 pattern:$0x76325410] %v509_v62 }
 0x12e PF: > { %s13_s12 = sadd.s32 1, %s700_s12  }
 0x12f   : > { %p10_p4 = scmp.ge.s32.totalorder %s13_s12, 4  }
 0x131   :  { %12 = sbr.rel (!%p10_p4) target bundleno = 1 (0x1), region = 62 }

// kernel: recurrent_varnet_block.13
= control target key start
LH: loop header
LB: loop body
LE: loop exit
PB: predicated region body
PF: predicated region fallthrough
CT: control target
= control target key end

     0   :  { %s2928_s15 = smov 0   ;;  %s3324_s0 = inlined_call_operand.vmem [shape: f32[2,2,16,16], index: 0, kind: input, shape index: {}]   ;;  %s3325_s1 = inlined_call_operand.vmem [shape: f32[2,4,16,16], index: 1, kind: input, shape index: {}]   ;;  %s3326_s2 = inlined_call_operand.vmem [shape: f32[2,4,16,16], index: 2, kind: input, shape index: {}]   ;;  %s3327_s3 = inlined_call_operand.vmem [shape: f32[2,4,16,16], index: 3, kind: input, shape index: {}]   ;;  %s3328_s4 = inlined_call_operand.vmem [shape: f32[2,4,16,16], index: 4, kind: input, shape index: {}]   ;;  %s3329_s5 = inlined_call_operand.vmem [shape: f32[2,4,16,16], index: 5, kind: input, shape index: {}]   ;;  %s3330_s6 = inlined_call_operand.vmem [shape: f32[2,4,16,16], index: 6, kind: input, shape index: {}]   ;;  %s3331_s7 = inlined_call_operand.vmem [shape: f32[2,16,16], index: 7, kind: input, shape index: {}]   ;;  %s3332_s8 = inlined_call_operand.vmem [shape: f32[16,16], index: 8, kind: input, shape index: {}, may-alias: {8,10}]   ;;  %s3333_s9 = inlined_call_operand.vmem [shape: f32[16,16], index: 9, kind: input, shape index: {}, may-alias: {9,11}]   ;;  %s3334_s10 = inlined_call_operand.vmem [shape: f32[16,16], index: 10, kind: input, shape index: {}, may-alias: {8,10}]   ;;  %s3335_s11 = inlined_call_operand.vmem [shape: f32[16,16], index: 11, kind: input, shape index: {}, may-alias: {9,11}]   ;;  %s3336_s12 = inlined_call_operand.<no memory space> [shape: f32[1], index: 12, kind: input, shape index: {}]   ;;  %s3337_s13 = inlined_call_operand.vmem [shape: f32[2,4,16,16], index: 13, kind: output, shape index: {0}]   ;;  %s3338_s14 = inlined_call_operand.vmem [shape: f32[2,4,16,16], index: 14, kind: output, shape index: {1}]  }
   0x1   :  { %20 = sst [smem:[#allocation2]] %s3336_s12 }
   0x2 LB: > { %s2474_s16 = sadd.s32 4294967295, %s2848_s15   ;;  %p2478_p0 = scmp.ge.s32.totalorder %s2848_s15, 1  ;;  %s2848_s15 = sphi %s2928_s15, %s26_s15  }
   0x3   : > { %p486_p1 = scmp.lt.s32.totalorder %s2848_s15, 3 }
   0x5   : > { %p487_p2 = pnand %p2478_p0, %p486_p1 }
   0x6   : > { %v695_v0 = vld [vmem:[%s3334_s10] sm:$0xff] (!%p487_p2)  ;;  %v696_v1 = vld [vmem:[%s3334_s10 + $0x8] sm:$0xff] (!%p487_p2)  ;;  %p572_p3 = scmp.lt.s32.totalorder (!%p487_p2), %s2474_s16, 1  ;;  %vm699_vm0 = vcmask (!%p487_p2), 130048   ;;  %s2236_s23 = sld [smem:[#allocation2]] (!%p487_p2) }
   0x7   : > { %490 = sbr.rel (%p487_p2) target bundleno = 792 (0x318), region = 72  ;;  %v697_v2 = vld [vmem:[%s3335_s11] sm:$0xff] (!%p487_p2)  ;;  %v2785_v3 = vpack.c.bf16 (!%p487_p2), %v696_v1, %v695_v0  ;;  %v698_v4 = vld [vmem:[%s3335_s11 + $0x8] sm:$0xff] (!%p487_p2) }
   0x8   : > { %v2789_v5 = vpack.c.bf16 (!%p487_p2), %v698_v4, %v697_v2 }
   0x9   : > { %2794 = vmatprep.subr.bf16.mxu0 (!%p487_p2), %v2785_v3  ;;  %2786 = vmatprep.subr.bf16.mxu1 (!%p487_p2), %v2785_v3 }
   0xa   : > { %2796 = vmatpush3.bf16.msra.mxu0 (!%p487_p2), %v2785_v3  ;;  %2788 = vmatpush3.bf16.msra.mxu1 (!%p487_p2), %v2785_v3 }
   0xb   : > { %2798 = vmatprep.subr.bf16.mxu0 (!%p487_p2), %v2789_v5  ;;  %2790 = vmatprep.subr.bf16.mxu1 (!%p487_p2), %v2789_v5 }
   0xe   : > { %s3340_s16 = smov (!%p572_p3, %s2474_s16), 1 }
   0xf   : > { %s2567_s24 = sshll.u32 %s3340_s16, 5  ;;  %s2952_s25 = sshll.u32 %s3340_s16, 6 }
  0x10   : > { %s576_s28 = scalar_lea.vmem %s3324_s0, %s2567_s24  ;;  %s2961_s17 = scalar_lea.vmem %s3325_s1, %s2952_s25 }
  0x11   : > { %s2967_s19 = scalar_lea.vmem %s3326_s2, %s2952_s25  ;;  %v2969_v6 = vld [vmem:[%s576_s28] sm:$0xff]  ;;  %v2971_v7 = vld [vmem:[%s576_s28 + $0x10] sm:$0xff]  ;;  %v2977_v12 = vld [vmem:[%s576_s28 + $0x8] sm:$0xff]  ;;  %s2574_s29 = sshll.u32 %s3340_s16, 4 }
  0x12   : > { %v627_v8 = vld [vmem:[%s2961_s17] sm:$0xff]  ;;  %v2979_v13 = vld [vmem:[%s576_s28 + $0x18] sm:$0xff]  ;;  %v628_v16 = vld [vmem:[%s2961_s17 + $0x8] sm:$0xff]  ;;  %s3122_s18 = scalar_lea.vmem %s3328_s4, %s2952_s25  ;;  %s3128_s20 = scalar_lea.vmem %s3330_s6, %s2952_s25 }
  0x13   : > { %v635_v9 = vld [vmem:[%s2967_s19] sm:$0xff]  ;;  %v643_v10 = vmul.f32 %v627_v8, %v2969_v6  ;;  %v675_v11 = vmul.f32 %v2971_v7, %v627_v8  ;;  %v636_v17 = vld [vmem:[%s2967_s19 + $0x8] sm:$0xff]  ;;  %v629_v18 = vld [vmem:[%s2961_s17 + $0x10] sm:$0xff]  ;;  %v644_v19 = vmul.f32 %v628_v16, %v2977_v12  ;;  %v676_v22 = vmul.f32 %v2979_v13, %v628_v16  ;;  %s611_s16 = scalar_lea.vmem %s3331_s7, %s2574_s29  ;;  %s3148_s27 = scalar_lea.vmem %s3327_s3, %s2952_s25 }
  0x14   : > { %v651_v14 = vmul.f32 %v2971_v7, %v635_v9  ;;  %v667_v15 = vmul.f32 %v635_v9, %v2969_v6  ;;  %v652_v20 = vmul.f32 %v2979_v13, %v636_v17  ;;  %v668_v21 = vmul.f32 %v636_v17, %v2977_v12  ;;  %v637_v23 = vld [vmem:[%s2967_s19 + $0x10] sm:$0xff]  ;;  %v630_v24 = vld [vmem:[%s2961_s17 + $0x18] sm:$0xff]  ;;  %v631_v34 = vld [vmem:[%s2961_s17 + $0x20] sm:$0xff]  ;;  %s3154_s30 = scalar_lea.vmem %s3329_s5, %s2952_s25 }
  0x15   : > { %v638_v25 = vld [vmem:[%s2967_s19 + $0x18] sm:$0xff]  ;;  %v645_v28 = vmul.f32 %v629_v18, %v2969_v6  ;;  %v653_v29 = vmul.f32 %v2971_v7, %v637_v23  ;;  %v669_v32 = vmul.f32 %v637_v23, %v2969_v6  ;;  %v677_v33 = vmul.f32 %v2971_v7, %v629_v18  ;;  %v639_v35 = vld [vmem:[%s2967_s19 + $0x20] sm:$0xff]  ;;  %v632_v42 = vld [vmem:[%s2961_s17 + $0x28] sm:$0xff] }
  0x16   : > { %v2993_v26 = vsub.f32 %v643_v10, %v651_v14  ;;  %v2995_v27 = vadd.f32 %v675_v11, %v667_v15  ;;  %v2999_v30 = vsub.f32 %v644_v19, %v652_v20  ;;  %v3001_v31 = vadd.f32 %v676_v22, %v668_v21  ;;  %v640_v43 = vld [vmem:[%s2967_s19 + $0x28] sm:$0xff]  ;;  %v633_v47 = vld [vmem:[%s2961_s17 + $0x30] sm:$0xff]  ;;  %v634_v56 = vld [vmem:[%s2961_s17 + $0x38] sm:$0xff] }
  0x17   : > { %v661_v36 = vsub.f32 %v645_v28, %v653_v29  ;;  %v646_v37 = vmul.f32 %v630_v24, %v2977_v12  ;;  %v654_v38 = vmul.f32 %v2979_v13, %v638_v25  ;;  %v685_v39 = vadd.f32 %v677_v33, %v669_v32  ;;  %v641_v51 = vld [vmem:[%s2967_s19 + $0x30] sm:$0xff]  ;;  %v642_v57 = vld [vmem:[%s2967_s19 + $0x38] sm:$0xff]  ;;  %v691_v10 = vld [vmem:[%s3332_s8] sm:$0xff]  ;;  %s3208_s19 = scalar_lea.vmem %s3338_s14, %s2952_s25 }
  0x18   : > { %2661 = vmatprep.mubr.msk.f32.mxu1 %vm699_vm0, %v2993_v26  ;;  %2693 = vmatprep.mubr.msk.f32.mxu0 %vm699_vm0, %v2995_v27  ;;  %v670_v40 = vmul.f32 %v638_v25, %v2977_v12  ;;  %v678_v41 = vmul.f32 %v2979_v13, %v630_v24  ;;  %v647_v45 = vmul.f32 %v631_v34, %v2969_v6  ;;  %v692_v11 = vld [vmem:[%s3332_s8 + $0x8] sm:$0xff] }
  0x19   : > { %2662 = vmatmul.mubr.msk.f32.vlgmr.msra.gmra.mrb[0].mxu1 %vm699_vm0, %v2999_v30  ;;  %2694 = vmatmul.mubr.msk.f32.vlgmr.msra.gmra.mrb[0].mxu0 %vm699_vm0, %v3001_v31  ;;  %v662_v44 = vsub.f32 %v646_v37, %v654_v38  ;;  %v655_v46 = vmul.f32 %v2971_v7, %v639_v35  ;;  %v671_v49 = vmul.f32 %v639_v35, %v2969_v6 }
  0x1a   : > { %2800 = vmatpush3.bf16.msra.mxu0 %v2789_v5  ;;  %2664 = vmatprep.mubr.msk.f32.mxu1 %vm699_vm0, %v661_v36  ;;  %v686_v48 = vadd.f32 %v678_v41, %v670_v40  ;;  %v679_v50 = vmul.f32 %v2971_v7, %v631_v34  ;;  %v648_v53 = vmul.f32 %v632_v42, %v2977_v12 }
  0x1b   : > { %2696 = vmatprep.mubr.msk.f32.mxu0 %vm699_vm0, %v685_v39  ;;  %2792 = vmatpush3.bf16.msra.mxu1 %v2789_v5  ;;  %v663_v52 = vsub.f32 %v647_v45, %v655_v46  ;;  %v656_v54 = vmul.f32 %v2979_v13, %v640_v43  ;;  %v672_v55 = vmul.f32 %v640_v43, %v2977_v12  ;;  %v693_v45 = vld [vmem:[%s3333_s9] sm:$0xff]  ;;  %v694_v46 = vld [vmem:[%s3333_s9 + $0x8] sm:$0xff] }
  0x1c   : > { %v687_v58 = vadd.f32 %v679_v50, %v671_v49  ;;  %v680_v59 = vmul.f32 %v2979_v13, %v632_v42  ;;  %v649_v60 = vmul.f32 %v633_v47, %v2969_v6  ;;  %v657_v62 = vmul.f32 %v2971_v7, %v641_v51 }
  0x1d   : > { %2665 = vmatmul.mubr.msk.f32.gmra.mrb[2].mxu1 %vm699_vm0, %v662_v44  ;;  %2697 = vmatmul.mubr.msk.f32.gmra.mrb[2].mxu0 %vm699_vm0, %v686_v48  ;;  %v664_v61 = vsub.f32 %v648_v53, %v656_v54  ;;  %v673_v63 = vmul.f32 %v641_v51, %v2969_v6  ;;  %v681_v0 = vmul.f32 %v2971_v7, %v633_v47 }
  0x1e   : > { %2667 = vmatprep.mubr.msk.f32.mxu1 %vm699_vm0, %v663_v52  ;;  %2699 = vmatprep.mubr.msk.f32.mxu0 %vm699_vm0, %v687_v58  ;;  %v688_v1 = vadd.f32 %v680_v59, %v672_v55  ;;  %v650_v2 = vmul.f32 %v634_v56, %v2977_v12  ;;  %v658_v3 = vmul.f32 %v2979_v13, %v642_v57 }
  0x1f   : > { %v674_v4 = vmul.f32 %v642_v57, %v2977_v12  ;;  %v665_v5 = vsub.f32 %v649_v60, %v657_v62  ;;  %v689_v8 = vadd.f32 %v681_v0, %v673_v63  ;;  %v682_v9 = vmul.f32 %v2979_v13, %v634_v56 }
  0x20   : > { %v666_v6 = vsub.f32 %v650_v2, %v658_v3  ;;  %v2801_v12 = vpack.c.bf16 %v692_v11, %v691_v10  ;;  %v2805_v47 = vpack.c.bf16 %v694_v46, %v693_v45 }
  0x21   : > { %2668 = vmatmul.mubr.msk.f32.gmra.mrb[4].mxu1 %vm699_vm0, %v664_v61  ;;  %2700 = vmatmul.mubr.msk.f32.gmra.mrb[4].mxu0 %vm699_vm0, %v688_v1  ;;  %v690_v7 = vadd.f32 %v682_v9, %v674_v4 }
  0x22   : > { %2670 = vmatprep.mubr.msk.f32.mxu1 %vm699_vm0, %v665_v5  ;;  %2702 = vmatprep.mubr.msk.f32.mxu0 %vm699_vm0, %v689_v8 }
  0x23   : > { %2810 = vmatprep.subr.bf16.mxu0 %v2801_v12  ;;  %2802 = vmatprep.subr.bf16.mxu1 %v2801_v12 }
  0x25   : > { %2671 = vmatmul.mubr.msk.f32.gmra.mrb[6].mxu1 %vm699_vm0, %v666_v6  ;;  %2703 = vmatmul.mubr.msk.f32.gmra.mrb[6].mxu0 %vm699_vm0, %v690_v7 }
  0x26   : > { %2677 = vmatprep.mubr.msk.f32.mxu1 %vm699_vm0, %v2995_v27  ;;  %2709 = vmatprep.mubr.msk.f32.mxu0 %vm699_vm0, %v2993_v26 }
  0x29   : > { %2678 = vmatmul.mubr.msk.f32.vlgmr.msra.gmra.mrb[8].mxu1 %vm699_vm0, %v3001_v31  ;;  %2710 = vmatmul.mubr.msk.f32.vlgmr.msra.gmra.mrb[0].mxu0 %vm699_vm0, %v2999_v30 }
  0x2a   : > { %2680 = vmatprep.mubr.msk.f32.mxu1 %vm699_vm0, %v685_v39  ;;  %2712 = vmatprep.mubr.msk.f32.mxu0 %vm699_vm0, %v661_v36 }
  0x2b   : > { %2812 = vmatpush3.bf16.msra.mxu0 %v2801_v12  ;;  %2804 = vmatpush3.bf16.msra.mxu1 %v2801_v12 }
  0x2c   : > { %2814 = vmatprep.subr.bf16.mxu0 %v2805_v47  ;;  %2806 = vmatprep.subr.bf16.mxu1 %v2805_v47 }
  0x2d   : > { %2681 = vmatmul.mubr.msk.f32.gmra.mrb[10].mxu1 %vm699_vm0, %v686_v48  ;;  %2713 = vmatmul.mubr.msk.f32.gmra.mrb[2].mxu0 %vm699_vm0, %v662_v44 }
  0x2e   : > { %2683 = vmatprep.mubr.msk.f32.mxu1 %vm699_vm0, %v687_v58  ;;  %2715 = vmatprep.mubr.msk.f32.mxu0 %vm699_vm0, %v663_v52 }
  0x31   : > { %2684 = vmatmul.mubr.msk.f32.gmra.mrb[12].mxu1 %vm699_vm0, %v688_v1  ;;  %2716 = vmatmul.mubr.msk.f32.gmra.mrb[4].mxu0 %vm699_vm0, %v664_v61 }
  0x32   : > { %2686 = vmatprep.mubr.msk.f32.mxu1 %vm699_vm0, %v689_v8  ;;  %2718 = vmatprep.mubr.msk.f32.mxu0 %vm699_vm0, %v665_v5 }
  0x35   : > { %2687 = vmatmul.mubr.msk.f32.gmra.mrb[14].mxu1 %vm699_vm0, %v690_v7  ;;  %2719 = vmatmul.mubr.msk.f32.gmra.mrb[6].mxu0 %vm699_vm0, %v666_v6 }
  0xec   : > { %v2663_v13 = vpop.f32.mrb[0].mxu1 }
  0xed   : > { %v790_v14 = vpop.f32.mrb[1].mxu1 }
  0xf0   : > { %v2666_v15 = vpop.f32.mrb[2].mxu1 }
  0xf1   : > { %v800_v16 = vpop.f32.mrb[3].mxu1 }
  0xf4   : > { %v2669_v17 = vpop.f32.mrb[4].mxu1 }
  0xf5   : > { %v810_v18 = vpop.f32.mrb[5].mxu1 }
  0xf8   : > { %v2672_v19 = vpop.f32.mrb[6].mxu1 }
  0xf9   : > { %v820_v20 = vpop.f32.mrb[7].mxu1 }
  0xfc   : > { %v2679_v21 = vpop.f32.mrb[8].mxu1  ;;  %v2711_v22 = vpop.f32.mrb[0].mxu0 }
  0xfd   : > { %v959_v23 = vsub.f32 %v2663_v13, %v2679_v21  ;;  %v919_v24 = vpop.f32.mrb[9].mxu1  ;;  %v1137_v25 = vpop.f32.mrb[1].mxu0 }
  0xfe   : > { %1304 = vxpose.xlu1.b32.start [1/2] (short) (narrow) %v1137_v25, 16  ;;  %v958_v26 = vsub.f32 %v790_v14, %v919_v24 }
 0x100   : > { %v2714_v27 = vpop.f32.mrb[2].mxu0  ;;  %1176 = vxpose.xlu0.b32.start [1/2] (short) (narrow) %v958_v26, 16  ;;  %v2682_v28 = vpop.f32.mrb[10].mxu1 }
 0x101   : > { %v961_v29 = vsub.f32 %v2666_v15, %v2682_v28  ;;  %v929_v30 = vpop.f32.mrb[11].mxu1  ;;  %v1147_v31 = vpop.f32.mrb[3].mxu0 }
 0x102   : > { %v960_v32 = vsub.f32 %v800_v16, %v929_v30  ;;  %1305 = vxpose.xlu1.b32.end [2/2] (short) (narrow) %v2711_v22, 16 }
 0x104   : > { %v2717_v33 = vpop.f32.mrb[4].mxu0  ;;  %1177 = vxpose.xlu0.b32.end [2/2] (short) (narrow) %v959_v23, 16  ;;  %v2685_v34 = vpop.f32.mrb[12].mxu1 }
 0x105   : > { %v963_v35 = vsub.f32 %v2669_v17, %v2685_v34  ;;  %v939_v36 = vpop.f32.mrb[13].mxu1  ;;  %v1157_v37 = vpop.f32.mrb[5].mxu0  ;;  %v3135_v34 = vld [vmem:[%s611_s16] sm:$0xff] }
 0x106   : > { %v962_v38 = vsub.f32 %v810_v18, %v939_v36  ;;  %1336 = vxpose.xlu1.b32.start [1/2] (short) (narrow) %v1147_v31, 16  ;;  %v2214_v36 = vld [vmem:[%s3128_s20 + $0x10] sm:$0xff]  ;;  %vm2182_vm1 = vcmp.eq.f32.partialorder %v3135_v34, 0.0 }
 0x108   : > { %v2720_v39 = vpop.f32.mrb[6].mxu0  ;;  %1208 = vxpose.xlu0.b32.start [1/2] (short) (narrow) %v960_v32, 16  ;;  %v2688_v40 = vpop.f32.mrb[14].mxu1  ;;  %v2172_v32 = vld [vmem:[%s3122_s18] sm:$0xff] }
 0x109   : > { %v965_v41 = vsub.f32 %v2672_v19, %v2688_v40  ;;  %v949_v42 = vpop.f32.mrb[15].mxu1  ;;  %v1167_v43 = vpop.f32.mrb[7].mxu0  ;;  %v3156_v40 = vld [vmem:[%s611_s16 + $0x8] sm:$0xff]  ;;  %s3255_s16 = scalar_lea.vmem %s3337_s13, %s2952_s25 }
 0x10a   : > { %v964_v44 = vsub.f32 %v820_v20, %v949_v42  ;;  %1337 = vxpose.xlu1.b32.end [2/2] (short) (narrow) %v2714_v27, 16  ;;  %v3160_v42 = vld [vmem:[%s3122_s18 + $0x18] sm:$0xff]  ;;  %vm2183_vm2 = vcmp.eq.f32.partialorder %v3156_v40, 0.0 }
 0x10c   : > { %1209 = vxpose.xlu0.b32.end [2/2] (short) (narrow) %v961_v29, 16 }
 0x10e   : > { %1368 = vxpose.xlu1.b32.start [1/2] (short) (narrow) %v1157_v37, 16 }
 0x110   : > { %1240 = vxpose.xlu0.b32.start [1/2] (short) (narrow) %v962_v38, 16  ;;  %v2173_v38 = vld [vmem:[%s3122_s18 + $0x8] sm:$0xff] }
 0x112   : > { %1369 = vxpose.xlu1.b32.end [2/2] (short) (narrow) %v2717_v33, 16  ;;  %v2212_v33 = vld [vmem:[%s3128_s20] sm:$0xff] }
 0x113   : > { %v2220_v37 = vsub.f32 %v2172_v32, %v2212_v33 }
 0x114   : > { %1241 = vxpose.xlu0.b32.end [2/2] (short) (narrow) %v963_v35, 16  ;;  %v3138_v35 = vld [vmem:[%s3122_s18 + $0x10] sm:$0xff] }
 0x115   : > { %v2228_v45 = vsel %vm2182_vm1, 0.0, %v2220_v37 }
 0x116   : > { %1400 = vxpose.xlu1.b32.start [1/2] (short) (narrow) %v1167_v43, 16  ;;  %v2215_v43 = vld [vmem:[%s3128_s20 + $0x18] sm:$0xff] }
 0x118   : > { %1272 = vxpose.xlu0.b32.start [1/2] (short) (narrow) %v964_v44, 16  ;;  %v3163_v44 = vstv %s2236_s23 }
 0x11a   : > { %1401 = vxpose.xlu1.b32.end [2/2] (short) (narrow) %v2720_v39, 16  ;;  %v2213_v39 = vld [vmem:[%s3128_s20 + $0x8] sm:$0xff] }
 0x11b   : > { %v2221_v46 = vsub.f32 %v2173_v38, %v2213_v39 }
 0x11c   : > { %1273 = vxpose.xlu0.b32.end [2/2] (short) (narrow) %v965_v41, 16  ;;  %v2222_v41 = vsub.f32 %v3138_v35, %v2214_v36  ;;  %v2216_v36 = vld [vmem:[%s3128_s20 + $0x20] sm:$0xff] }
 0x17e   : > { %v1320_v48 = vpop.trf.xlu1 }
 0x17f   : > { %2757 = vmatprep.mubr.msk.f32.mxu0 %vm699_vm0, %v1320_v48 }
 0x180   : > { %v1192_v49 = vpop.trf.xlu0 }
 0x181   : > { %2725 = vmatprep.mubr.msk.f32.mxu1 %vm699_vm0, %v1192_v49 }
 0x182   : > { %v1321_v50 = vpop.trf.xlu1 }
 0x183   : > { %2758 = vmatmul.mubr.msk.f32.vlgmr.msra.gmra.mrb[8].mxu0 %vm699_vm0, %v1321_v50 }
 0x184   : > { %v1193_v51 = vpop.trf.xlu0  ;;  %2816 = vmatpush3.bf16.msra.mxu0 %v2805_v47 }
 0x185   : > { %2726 = vmatmul.mubr.msk.f32.vlgmr.msra.gmra.mrb[16].mxu1 %vm699_vm0, %v1193_v51 }
 0x186   : > { %v1352_v52 = vpop.trf.xlu1  ;;  %2808 = vmatpush3.bf16.msra.mxu1 %v2805_v47  ;;  %v3168_v47 = vld [vmem:[%s3148_s27] sm:$0xff] }
 0x187   : > { %2760 = vmatprep.mubr.msk.f32.mxu0 %vm699_vm0, %v1352_v52 }
 0x188   : > { %v1224_v53 = vpop.trf.xlu0 }
 0x189   : > { %2728 = vmatprep.mubr.msk.f32.mxu1 %vm699_vm0, %v1224_v53 }
 0x18a   : > { %v1353_v54 = vpop.trf.xlu1 }
 0x18b   : > { %2761 = vmatmul.mubr.msk.f32.gmra.mrb[10].mxu0 %vm699_vm0, %v1353_v54 }
 0x18c   : > { %v1225_v55 = vpop.trf.xlu0 }
 0x18d   : > { %2729 = vmatmul.mubr.msk.f32.gmra.mrb[18].mxu1 %vm699_vm0, %v1225_v55 }
 0x18e   : > { %v1384_v56 = vpop.trf.xlu1 }
 0x18f   : > { %2763 = vmatprep.mubr.msk.f32.mxu0 %vm699_vm0, %v1384_v56 }
 0x190   : > { %v1256_v57 = vpop.trf.xlu0 }
 0x191   : > { %2731 = vmatprep.mubr.msk.f32.mxu1 %vm699_vm0, %v1256_v57 }
 0x192   : > { %v1385_v58 = vpop.trf.xlu1 }
 0x193   : > { %2764 = vmatmul.mubr.msk.f32.gmra.mrb[12].mxu0 %vm699_vm0, %v1385_v58 }
 0x194   : > { %v1257_v59 = vpop.trf.xlu0 }
 0x195   : > { %2732 = vmatmul.mubr.msk.f32.gmra.mrb[20].mxu1 %vm699_vm0, %v1257_v59 }
 0x196   : > { %v1416_v60 = vpop.trf.xlu1 }
 0x197   : > { %2766 = vmatprep.mubr.msk.f32.mxu0 %vm699_vm0, %v1416_v60 }
 0x198   : > { %v1288_v61 = vpop.trf.xlu0 }
 0x199   : > { %2734 = vmatprep.mubr.msk.f32.mxu1 %vm699_vm0, %v1288_v61 }
 0x19a   : > { %v1417_v62 = vpop.trf.xlu1 }
 0x19b   : > { %2767 = vmatmul.mubr.msk.f32.gmra.mrb[14].mxu0 %vm699_vm0, %v1417_v62 }
 0x19c   : > { %2773 = vmatprep.mubr.msk.f32.mxu0 %vm699_vm0, %v1192_v49  ;;  %v1289_v63 = vpop.trf.xlu0  ;;  %v2223_v49 = vsub.f32 %v3160_v42, %v2215_v43 }
 0x19d   : > { %2735 = vmatmul.mubr.msk.f32.gmra.mrb[22].mxu1 %vm699_vm0, %v1289_v63 }
 0x19e   : > { %2741 = vmatprep.mubr.msk.f32.mxu1 %vm699_vm0, %v1320_v48  ;;  %v2184_v48 = vld [vmem:[%s3154_s30] sm:$0xff] }
 0x19f   : > { %2774 = vmatmul.mubr.msk.f32.vlgmr.msra.gmra.mrb[8].mxu0 %vm699_vm0, %v1193_v51  ;;  %v2270_v51 = vmul.f32 %v3163_v44, %v2228_v45 }
 0x1a0   : > { %2776 = vmatprep.mubr.msk.f32.mxu0 %vm699_vm0, %v1224_v53  ;;  %v2186_v53 = vld [vmem:[%s3154_s30 + $0x10] sm:$0xff] }
 0x1a1   : > { %2742 = vmatmul.mubr.msk.f32.vlgmr.msra.gmra.mrb[24].mxu1 %vm699_vm0, %v1321_v50  ;;  %v2230_v50 = vsel %vm2182_vm1, 0.0, %v2222_v41 }
 0x1a2   : > { %2744 = vmatprep.mubr.msk.f32.mxu1 %vm699_vm0, %v1352_v52  ;;  %v3177_v52 = vld [vmem:[%s3148_s27 + $0x10] sm:$0xff] }
 0x1a3   : > { %2777 = vmatmul.mubr.msk.f32.gmra.mrb[10].mxu0 %vm699_vm0, %v1225_v55  ;;  %v2229_v55 = vsel %vm2183_vm2, 0.0, %v2221_v46 }
 0x1a4   : > { %2779 = vmatprep.mubr.msk.f32.mxu0 %vm699_vm0, %v1256_v57  ;;  %v2185_v57 = vld [vmem:[%s3154_s30 + $0x8] sm:$0xff] }
 0x1a5   : > { %2745 = vmatmul.mubr.msk.f32.gmra.mrb[26].mxu1 %vm699_vm0, %v1353_v54  ;;  %v2192_v54 = vsub.f32 %v3168_v47, %v2184_v48 }
 0x1a6   : > { %2747 = vmatprep.mubr.msk.f32.mxu1 %vm699_vm0, %v1384_v56  ;;  %v3184_v56 = vld [vmem:[%s3148_s27 + $0x8] sm:$0xff] }
 0x1a7   : > { %2780 = vmatmul.mubr.msk.f32.gmra.mrb[12].mxu0 %vm699_vm0, %v1257_v59  ;;  %v2231_v59 = vsel %vm2183_vm2, 0.0, %v2223_v49  ;;  %v2178_v49 = vld [vmem:[%s3122_s18 + $0x30] sm:$0xff] }
 0x1a8   : > { %2782 = vmatprep.mubr.msk.f32.mxu0 %vm699_vm0, %v1288_v61  ;;  %v2278_v61 = vsub.f32 %v2172_v32, %v2270_v51  ;;  %v2191_v32 = vld [vmem:[%s3154_s30 + $0x38] sm:$0xff] }
 0x1a9   : > { %2748 = vmatmul.mubr.msk.f32.gmra.mrb[28].mxu1 %vm699_vm0, %v1385_v58  ;;  %v2272_v58 = vmul.f32 %v3163_v44, %v2230_v50  ;;  %v2218_v50 = vld [vmem:[%s3128_s20 + $0x30] sm:$0xff] }
 0x1aa   : > { %2750 = vmatprep.mubr.msk.f32.mxu1 %vm699_vm0, %v1416_v60  ;;  %v2194_v60 = vsub.f32 %v3177_v52, %v2186_v53  ;;  %v2217_v53 = vld [vmem:[%s3128_s20 + $0x28] sm:$0xff] }
 0x1ab   : > { %2783 = vmatmul.mubr.msk.f32.gmra.mrb[14].mxu0 %vm699_vm0, %v1289_v63  ;;  %v2204_v63 = vsel %vm2182_vm1, 0.0, %v2192_v54 }
 0x1ad   : > { %2751 = vmatmul.mubr.msk.f32.gmra.mrb[30].mxu1 %vm699_vm0, %v1417_v62  ;;  %v2271_v62 = vmul.f32 %v3163_v44, %v2229_v55 }
 0x258   : > { %v2727_v0 = vpop.f32.mrb[16].mxu1 }
 0x259   : > { %v1522_v1 = vpop.f32.mrb[17].mxu1 }
 0x260   : > { %v2730_v2 = vpop.f32.mrb[18].mxu1 }
 0x261   : > { %v1532_v3 = vpop.f32.mrb[19].mxu1 }
 0x268   : > { %v2733_v4 = vpop.f32.mrb[20].mxu1 }
 0x269   : > { %v1542_v5 = vpop.f32.mrb[21].mxu1 }
 0x270   : > { %v2736_v8 = vpop.f32.mrb[22].mxu1 }
 0x271   : > { %v1552_v9 = vpop.f32.mrb[23].mxu1 }
 0x272   : > { %v2775_v6 = vpop.f32.mrb[8].mxu0 }
 0x273   : > { %v1869_v7 = vpop.f32.mrb[9].mxu0 }
 0x274   : > { %2036 = vxpose.xlu0.b32.start [1/2] (short) (narrow) %v1869_v7, 16  ;;  %v2743_v10 = vpop.f32.mrb[24].mxu1  ;;  %v2238_v7 = vmul.f32 %v3163_v44, %v2204_v63  ;;  %v2226_v63 = vsub.f32 %v2178_v49, %v2218_v50 }
 0x275   : > { %v1691_v11 = vsub.f32 %v2727_v0, %v2743_v10  ;;  %v1651_v12 = vpop.f32.mrb[25].mxu1  ;;  %v3195_v0 = vld [vmem:[%s3148_s27 + $0x18] sm:$0xff] }
 0x276   : > { %v1690_v13 = vsub.f32 %v1522_v1, %v1651_v12  ;;  %v2778_v14 = vpop.f32.mrb[10].mxu0  ;;  %v2187_v1 = vld [vmem:[%s3154_s30 + $0x18] sm:$0xff]  ;;  %v2279_v12 = vsub.f32 %v2173_v38, %v2271_v62 }
 0x277   : > { %v1879_v15 = vpop.f32.mrb[11].mxu0  ;;  %v2195_v10 = vsub.f32 %v3195_v0, %v2187_v1 }
 0x278   : > { %2068 = vxpose.xlu1.b32.start [1/2] (short) (narrow) %v1879_v15, 16  ;;  %2037 = vxpose.xlu0.b32.end [2/2] (short) (narrow) %v2775_v6, 16  ;;  %v2746_v16 = vpop.f32.mrb[26].mxu1  ;;  %v2206_v6 = vsel %vm2182_vm1, 0.0, %v2194_v60  ;;  %v2190_v15 = vld [vmem:[%s3154_s30 + $0x30] sm:$0xff] }
 0x279   : > { %v1693_v17 = vsub.f32 %v2730_v2, %v2746_v16  ;;  %v1661_v18 = vpop.f32.mrb[27].mxu1  ;;  %v2193_v2 = vsub.f32 %v3184_v56, %v2185_v57 }
 0x27a   : > { %v1692_v19 = vsub.f32 %v1532_v3, %v1661_v18  ;;  %v2781_v20 = vpop.f32.mrb[12].mxu0  ;;  %v3200_v3 = vld [vmem:[%s3148_s27 + $0x20] sm:$0xff]  ;;  %v2189_v18 = vld [vmem:[%s3154_s30 + $0x28] sm:$0xff] }
 0x27b   : > { %v1889_v21 = vpop.f32.mrb[13].mxu0 }
 0x27c   : > { %2069 = vxpose.xlu1.b32.end [2/2] (short) (narrow) %v2778_v14, 16  ;;  %1908 = vxpose.xlu0.b32.start [1/2] (short) (narrow) %v1690_v13, 16  ;;  %v2749_v22 = vpop.f32.mrb[28].mxu1  ;;  %v2205_v13 = vsel %vm2183_vm2, 0.0, %v2193_v2  ;;  %v3218_v14 = vld [vmem:[%s3148_s27 + $0x30] sm:$0xff] }
 0x27d   : > { %v1695_v23 = vsub.f32 %v2733_v4, %v2749_v22  ;;  %v1671_v24 = vpop.f32.mrb[29].mxu1  ;;  %v2188_v4 = vld [vmem:[%s3154_s30 + $0x20] sm:$0xff] }
 0x27e   : > { %v1694_v25 = vsub.f32 %v1542_v5, %v1671_v24  ;;  %v2784_v26 = vpop.f32.mrb[14].mxu0  ;;  %v2273_v5 = vmul.f32 %v3163_v44, %v2231_v59  ;;  %v2196_v16 = vsub.f32 %v3200_v3, %v2188_v4  ;;  %v2207_v24 = vsel %vm2183_vm2, 0.0, %v2195_v10 }
 0x27f   : > { %v1899_v27 = vpop.f32.mrb[15].mxu0  ;;  %v2241_v39 = vmul.f32 %v3163_v44, %v2207_v24 }
 0x280   : > { %1909 = vxpose.xlu0.b32.end [2/2] (short) (narrow) %v1691_v11, 16  ;;  %1940 = vxpose.xlu1.b32.start [1/2] (short) (narrow) %v1692_v19, 16  ;;  %v2752_v28 = vpop.f32.mrb[30].mxu1  ;;  %v2281_v19 = vsub.f32 %v3160_v42, %v2273_v5 }
 0x281   : > { %v1697_v29 = vsub.f32 %v2736_v8, %v2752_v28  ;;  %v1681_v30 = vpop.f32.mrb[31].mxu1  ;;  %v2280_v8 = vsub.f32 %v3138_v35, %v2272_v58  ;;  %v3248_v35 = vld [vmem:[%s3122_s18 + $0x20] sm:$0xff]  ;;  %v2249_v55 = vsub.f32 %v3195_v0, %v2241_v39  ;;  %v2179_v0 = vld [vmem:[%s3122_s18 + $0x38] sm:$0xff] }
 0x282   : > { %v1696_v31 = vsub.f32 %v1552_v9, %v1681_v30  ;;  %v2224_v51 = vsub.f32 %v3248_v35, %v2216_v36 }
 0x284   : > { %1941 = vxpose.xlu1.b32.end [2/2] (short) (narrow) %v1693_v17, 16  ;;  %1972 = vxpose.xlu0.b32.start [1/2] (short) (narrow) %v1694_v25, 16  ;;  %v3223_v17 = vld [vmem:[%s3148_s27 + $0x28] sm:$0xff]  ;;  %v2239_v25 = vmul.f32 %v3163_v44, %v2205_v13  ;;  %v2232_v1 = vsel %vm2182_vm1, 0.0, %v2224_v51 }
 0x285   : > { %v2197_v30 = vsub.f32 %v3223_v17, %v2189_v18 }
 0x286   : > { %v2247_v41 = vsub.f32 %v3184_v56, %v2239_v25 }
 0x287   : > { %v2209_v48 = vsel %vm2183_vm2, 0.0, %v2197_v30 }
 0x288   : > { %1973 = vxpose.xlu0.b32.end [2/2] (short) (narrow) %v1695_v23, 16  ;;  %2004 = vxpose.xlu1.b32.start [1/2] (short) (narrow) %v1696_v31, 16  ;;  %v2246_v23 = vsub.f32 %v3168_v47, %v2238_v7  ;;  %v3239_v31 = vld [vmem:[%s3148_s27 + $0x38] sm:$0xff]  ;;  %v2243_v59 = vmul.f32 %v3163_v44, %v2209_v48 }
 0x289   : > { %v2199_v47 = vsub.f32 %v3239_v31, %v2191_v32 }
 0x28b   : > { %v2211_v62 = vsel %vm2183_vm2, 0.0, %v2199_v47 }
 0x28c   : > { %2100 = vxpose.xlu0.b32.start [1/2] (short) (narrow) %v1889_v21, 16  ;;  %2005 = vxpose.xlu1.b32.end [2/2] (short) (narrow) %v1697_v29, 16  ;;  %v2208_v29 = vsel %vm2182_vm1, 0.0, %v2196_v16 }
 0x28d   : > { %v2242_v43 = vmul.f32 %v3163_v44, %v2208_v29 }
 0x28f   : > { %v2250_v58 = vsub.f32 %v3200_v3, %v2242_v43  ;;  %v2219_v3 = vld [vmem:[%s3128_s20 + $0x38] sm:$0xff] }
 0x290   : > { %2101 = vxpose.xlu0.b32.end [2/2] (short) (narrow) %v2781_v20, 16  ;;  %2132 = vxpose.xlu1.b32.start [1/2] (short) (narrow) %v1899_v27, 16  ;;  %v2240_v20 = vmul.f32 %v3163_v44, %v2206_v6  ;;  %v2251_v6 = vsub.f32 %v3223_v17, %v2243_v59  ;;  %v2227_v13 = vsub.f32 %v2179_v0, %v2219_v3 }
 0x292   : > { %v2248_v33 = vsub.f32 %v3177_v52, %v2240_v20  ;;  %v2177_v52 = vld [vmem:[%s3122_s18 + $0x28] sm:$0xff] }
 0x293   : > { %v2225_v2 = vsub.f32 %v2177_v52, %v2217_v53 }
 0x294   : > { %2133 = vxpose.xlu1.b32.end [2/2] (short) (narrow) %v2784_v26, 16  ;;  %v2198_v26 = vsub.f32 %v3218_v14, %v2190_v15 }
 0x295   : > { %v2233_v15 = vsel %vm2183_vm2, 0.0, %v2225_v2 }
 0x296   : > { %v2210_v42 = vsel %vm2182_vm1, 0.0, %v2198_v26 }
 0x297   : > { %v2244_v57 = vmul.f32 %v3163_v44, %v2210_v42 }
 0x299   : > { %v2252_v5 = vsub.f32 %v3218_v14, %v2244_v57 }
 0x2f4   : > { %v2052_v9 = vpop.trf.xlu0 }
 0x2f5   : > { %v2286_v11 = vadd.f32 %v2278_v61, %v2052_v9  ;;  %v2245_v9 = vmul.f32 %v3163_v44, %v2211_v62 }
 0x2f7   : > { %2294 = vst.msk [vmem:[%s3208_s19] sm:$0xff] %vm699_vm0, %v2286_v11  ;;  %v2234_v11 = vsel %vm2182_vm1, 0.0, %v2226_v63  ;;  %v2253_v16 = vsub.f32 %v3239_v31, %v2245_v9 }
 0x2f8   : > { %v2084_v21 = vpop.trf.xlu1  ;;  %v2053_v22 = vpop.trf.xlu0  ;;  %v2276_v34 = vmul.f32 %v3163_v44, %v2234_v11 }
 0x2f9   : > { %v2288_v27 = vadd.f32 %v2280_v8, %v2084_v21  ;;  %v2287_v28 = vadd.f32 %v2279_v12, %v2053_v22  ;;  %v2274_v12 = vmul.f32 %v3163_v44, %v2232_v1  ;;  %v2275_v21 = vmul.f32 %v3163_v44, %v2233_v15 }
 0x2fa   : > { %v2235_v22 = vsel %vm2183_vm2, 0.0, %v2227_v13  ;;  %v2284_v24 = vsub.f32 %v2178_v49, %v2276_v34 }
 0x2fb   : > { %2296 = vst.msk [vmem:[%s3208_s19 + $0x10] sm:$0xff] %vm699_vm0, %v2288_v27  ;;  %2295 = vst.msk [vmem:[%s3208_s19 + $0x8] sm:$0xff] %vm699_vm0, %v2287_v28  ;;  %v2282_v20 = vsub.f32 %v3248_v35, %v2274_v12  ;;  %v2277_v28 = vmul.f32 %v3163_v44, %v2235_v22  ;;  %v2283_v29 = vsub.f32 %v2177_v52, %v2275_v21 }
 0x2fc   : > { %v2085_v37 = vpop.trf.xlu1  ;;  %v1924_v38 = vpop.trf.xlu0 }
 0x2fd   : > { %v2289_v45 = vadd.f32 %v2281_v19, %v2085_v37  ;;  %v2254_v46 = vadd.f32 %v2246_v23, %v1924_v38  ;;  %v2285_v32 = vsub.f32 %v2179_v0, %v2277_v28 }
 0x2ff   : > { %2297 = vst.msk [vmem:[%s3208_s19 + $0x18] sm:$0xff] %vm699_vm0, %v2289_v45  ;;  %2262 = vst.msk [vmem:[%s3255_s16] sm:$0xff] %vm699_vm0, %v2254_v46 }
 0x300   : > { %v1956_v54 = vpop.trf.xlu1  ;;  %v1925_v56 = vpop.trf.xlu0 }
 0x301   : > { %v2256_v60 = vadd.f32 %v2248_v33, %v1956_v54  ;;  %v2255_v61 = vadd.f32 %v2247_v41, %v1925_v56 }
 0x303   : > { %2264 = vst.msk [vmem:[%s3255_s16 + $0x10] sm:$0xff] %vm699_vm0, %v2256_v60  ;;  %2263 = vst.msk [vmem:[%s3255_s16 + $0x8] sm:$0xff] %vm699_vm0, %v2255_v61 }
 0x304   : > { %v1957_v4 = vpop.trf.xlu1  ;;  %v1988_v8 = vpop.trf.xlu0 }
 0x305   : > { %v2257_v7 = vadd.f32 %v2249_v55, %v1957_v4  ;;  %v2258_v10 = vadd.f32 %v2250_v58, %v1988_v8 }
 0x307   : > { %2265 = vst.msk [vmem:[%s3255_s16 + $0x18] sm:$0xff] %vm699_vm0, %v2257_v7  ;;  %2266 = vst.msk [vmem:[%s3255_s16 + $0x20] sm:$0xff] %vm699_vm0, %v2258_v10 }
 0x308   : > { %v2020_v14 = vpop.trf.xlu1  ;;  %v1989_v17 = vpop.trf.xlu0 }
 0x309   : > { %v2260_v18 = vadd.f32 %v2252_v5, %v2020_v14  ;;  %v2259_v19 = vadd.f32 %v2251_v6, %v1989_v17 }
 0x30b   : > { %2268 = vst.msk [vmem:[%s3255_s16 + $0x30] sm:$0xff] %vm699_vm0, %v2260_v18  ;;  %2267 = vst.msk [vmem:[%s3255_s16 + $0x28] sm:$0xff] %vm699_vm0, %v2259_v19 }
 0x30c   : > { %v2021_v23 = vpop.trf.xlu1  ;;  %v2116_v25 = vpop.trf.xlu0 }
 0x30d   : > { %v2261_v26 = vadd.f32 %v2253_v16, %v2021_v23  ;;  %v2290_v27 = vadd.f32 %v2282_v20, %v2116_v25 }
 0x30f   : > { %2269 = vst.msk [vmem:[%s3255_s16 + $0x38] sm:$0xff] %vm699_vm0, %v2261_v26  ;;  %2298 = vst.msk [vmem:[%s3208_s19 + $0x20] sm:$0xff] %vm699_vm0, %v2290_v27 }
 0x310   : > { %v2148_v40 = vpop.trf.xlu1  ;;  %v2117_v30 = vpop.trf.xlu0 }
 0x311   : > { %v2292_v31 = vadd.f32 %v2284_v24, %v2148_v40  ;;  %v2291_v33 = vadd.f32 %v2283_v29, %v2117_v30 }
 0x313   : > { %2300 = vst.msk [vmem:[%s3208_s19 + $0x30] sm:$0xff] %vm699_vm0, %v2292_v31  ;;  %2299 = vst.msk [vmem:[%s3208_s19 + $0x28] sm:$0xff] %vm699_vm0, %v2291_v33 }
 0x314   : > { %v2149_v35 = vpop.trf.xlu1 }
 0x315   : > { %v2293_v36 = vadd.f32 %v2285_v32, %v2149_v35 }
 0x317   : > { %2301 = vst.msk [vmem:[%s3208_s19 + $0x38] sm:$0xff] %vm699_vm0, %v2293_v36 }
 0x318 PF: > { %s26_s15 = sadd.s32 1, %s2848_s15  }
 0x319   : > { %p23_p4 = scmp.ge.s32.totalorder %s26_s15, 4  }
 0x31b   :  { %25 = sbr.rel (!%p23_p4) target bundleno = 2 (0x2), region = 136 }

</bundles_post_ra>
